<compile_context>
chip_gen: v7x
topology: tpu7x:2x2x1
jax: 0.10.0
libtpu: 0.0.40
codegen_flags: <defaults>
</compile_context>

<pallas_src>
import functools

import jax
import jax.numpy as jnp
from jax.experimental import pallas as pl
from jax.experimental.pallas import tpu as pltpu

_KSIZE = 7
_PAD = 3


def _sa_kernel(x_ref, w_ref, out_ref, wgt_ref, *, H, W):
    # x_ref:   (TB, C, HW)  input features, lane-dense (VMEM block)
    # w_ref:   (98,)        conv weight flattened as [c][ky][kx] (SMEM)
    # out_ref: (TB, C, HW)  x * weights
    # wgt_ref: (TB, 1, HW)  spatial attention weights
    TB, C, HW = x_ref.shape

    x = x_ref[...]                              # native dtype
    xf = x.astype(jnp.float32)

    # ---- channel pooling (mean & max over C), whole block at once ----
    avg = jnp.mean(xf, axis=1)                  # (TB, HW) f32
    mx = jnp.max(xf, axis=1)                    # (TB, HW) f32

    # ---- re-view the tiny pooled maps spatially and zero-pad by 3 ----
    avg2 = avg.reshape(TB, H, W)
    mx2 = mx.reshape(TB, H, W)
    zrow = jnp.zeros((TB, _PAD, W), jnp.float32)
    zcol = jnp.zeros((TB, H + 2 * _PAD, _PAD), jnp.float32)

    def pad2d(m):
        m = jnp.concatenate([zrow, m, zrow], axis=1)        # (TB, H+6, W)
        return jnp.concatenate([zcol, m, zcol], axis=2)     # (TB, H+6, W+6)

    avg_p = pad2d(avg2)
    max_p = pad2d(mx2)

    # ---- 7x7 conv (2 -> 1 ch, no bias): hoist the kx lane shift; the inner
    #      ky loop is sublane slices + FMA (7 lane shifts per map, not 49). ----
    acc = jnp.zeros((TB, H, W), jnp.float32)
    for kx in range(_KSIZE):
        a_col = avg_p[:, :, kx:kx + W]          # (TB, H+6, W)
        m_col = max_p[:, :, kx:kx + W]
        for ky in range(_KSIZE):
            acc = (acc
                   + w_ref[ky * _KSIZE + kx] * a_col[:, ky:ky + H, :]
                   + w_ref[_KSIZE * _KSIZE + ky * _KSIZE + kx]
                   * m_col[:, ky:ky + H, :])

    weights = jax.nn.sigmoid(acc).reshape(TB, HW)            # (TB, HW) f32
    w_cast = weights.astype(out_ref.dtype)                   # PyTorch-style cast

    wgt_ref[...] = w_cast[:, None, :]
    # Broadcast-multiply in the native input dtype (bf16 stays bf16 on v6e/v7x).
    out_ref[...] = x * w_cast[:, None, :]


def _plan_tiling(B, C, HW, itemsize):
    """Generation-aware batch-tile + scoped-VMEM-limit choice."""
    vmem_cap = 128 * 1024 * 1024
    try:
        vmem_cap = int(pltpu.get_tpu_info().vmem_capacity_bytes)
    except Exception:
        pass

    if vmem_cap <= 64 * 1024 * 1024:
        # v7x: 64 MiB physical VMEM, 2 TensorCores -> smaller blocks, and keep
        # >= 2 parallel grid steps so both cores get work.
        budget, min_steps, limit_cap = 20 << 20, 2, 48 << 20
    else:
        # v5e / v6e: 128 MiB VMEM, single TensorCore -> go big, no step floor.
        budget, min_steps, limit_cap = 40 << 20, 1, 96 << 20

    io_per_b = 4 * C * HW * itemsize        # x + out blocks, double-buffered
    f32_per_b = (C + 10) * HW * 4           # f32 upcast + pooled/padded maps + acc
    per_b = io_per_b + f32_per_b

    tb = 1
    for d in range(1, B + 1):
        if B % d != 0:
            continue
        if d * per_b > budget:
            break
        if B >= min_steps and (B // d) < min_steps:
            break
        tb = d
    # TODO(synk): if even TB=1 overflows the budget (very large C*H*W), tile H
    # with a 3-row halo instead of just raising the scoped-VMEM limit.

    need = int(tb * per_b * 1.25) + (4 << 20)
    vmem_limit = max(32 << 20, min(limit_cap, need))
    return tb, vmem_limit


def sa_block(x_nchw, conv_w):
    """x_nchw: (B, C, H, W); conv_w: (1, 2, 7, 7) (or (2, 7, 7)) conv weight.
    Returns (x * weights (B,C,H,W), weights (B,1,H,W))."""
    B, C, H, W = x_nchw.shape
    HW = H * W
    w_flat = jnp.asarray(conv_w, jnp.float32).reshape(-1)    # (98,) [c][ky][kx]
    assert w_flat.shape == (2 * _KSIZE * _KSIZE,)

    itemsize = jnp.dtype(x_nchw.dtype).itemsize
    TB, vmem_limit = _plan_tiling(B, C, HW, itemsize)
    num_steps = B // TB

    # Free, contiguous relabel: lane-dense last dim H*W for all streamed I/O.
    x_flat = x_nchw.reshape(B, C, HW)

    x_index = lambda b: (b, 0, 0)
    x_block_bytes = TB * C * HW * itemsize
    if num_steps >= 3 and x_block_bytes < (1 << 20):
        # Tiny per-step blocks: deepen the input pipeline to hide DMA latency.
        x_spec = pl.BlockSpec((TB, C, HW), x_index, pipeline_mode=pl.Buffered(3))
    else:
        x_spec = pl.BlockSpec((TB, C, HW), x_index)

    kernel = functools.partial(_sa_kernel, H=H, W=W)

    out, wgt = pl.pallas_call(
        kernel,
        out_shape=(
            jax.ShapeDtypeStruct((B, C, HW), x_nchw.dtype),
            jax.ShapeDtypeStruct((B, 1, HW), x_nchw.dtype),
        ),
        grid_spec=pltpu.PrefetchScalarGridSpec(
            num_scalar_prefetch=0,
            grid=(num_steps,),
            in_specs=[
                x_spec,
                pl.BlockSpec(memory_space=pltpu.MemorySpace.SMEM),
            ],
            out_specs=[
                pl.BlockSpec((TB, C, HW), lambda b: (b, 0, 0)),
                pl.BlockSpec((TB, 1, HW), lambda b: (b, 0, 0)),
            ],
        ),
        compiler_params=pltpu.CompilerParams(
            dimension_semantics=("parallel",),
            vmem_limit_bytes=vmem_limit),
    )(x_flat, w_flat)

    return out.reshape(B, C, H, W), wgt.reshape(B, 1, H, W)


def _reference(x, conv_w):
    # Pure-JAX reference of the PyTorch forward (NCHW).
    w = jnp.asarray(conv_w, jnp.float32).reshape(1, 2, _KSIZE, _KSIZE)
    avg = jnp.mean(x.astype(jnp.float32), axis=1, keepdims=True)   # (B,1,H,W)
    mx = jnp.max(x.astype(jnp.float32), axis=1, keepdims=True)     # (B,1,H,W)
    pooled = jnp.concatenate([avg, mx], axis=1)                    # (B,2,H,W)
    logits = jax.lax.conv_general_dilated(
        pooled, w, window_strides=(1, 1),
        padding=((_PAD, _PAD), (_PAD, _PAD)),
        dimension_numbers=("NCHW", "OIHW", "NCHW"))
    weights = jax.nn.sigmoid(logits).astype(x.dtype)               # (B,1,H,W)
    return x * weights, weights


if __name__ == "__main__":
    B, C, H, W = 2, 4, 16, 16

    key = jax.random.PRNGKey(0)
    k_x, k_w = jax.random.split(key)
    x = jax.random.normal(k_x, (B, C, H, W), dtype=jnp.float32)
    # 7x7 conv weight, 2 input channels (avg, max), 1 output channel, no bias.
    conv_w = jax.random.normal(k_w, (1, 2, _KSIZE, _KSIZE), dtype=jnp.float32) * 0.1

    out, wgt = sa_block(x, conv_w)
    out = jax.block_until_ready(out)
    wgt = jax.block_until_ready(wgt)

    ref_out, ref_wgt = _reference(x, conv_w)
    assert out.shape == (B, C, H, W) and wgt.shape == (B, 1, H, W)
    assert jnp.allclose(wgt, ref_wgt, atol=1e-5, rtol=1e-5)
    assert jnp.allclose(out, ref_out, atol=1e-5, rtol=1e-5)

    print("KERNEL_OK")
</pallas_src>

<mosaic_0001>
module attributes {stable_mosaic.version = 11 : i64} {
  func.func @_sa_kernel(%arg0: i32, %arg1: memref<2x4x256xf32, #tpu.memory_space<vmem>>, %arg2: memref<98xf32, #tpu.memory_space<smem>>, %arg3: memref<2x4x256xf32, #tpu.memory_space<vmem>>, %arg4: memref<2x1x256xf32, #tpu.memory_space<vmem>>) attributes {dimension_semantics = [#tpu.dimension_semantics<parallel>], iteration_bounds = array<i64: 1>, scalar_prefetch = 0 : i64, scratch_operands = 0 : i64, tpu.core_type = #tpu.core_type<tc>, window_params = [{transform_indices = @transform_0, window_bounds = array<i64: 2, 4, 256>}, {transform_indices = @transform_1, window_bounds = array<i64: 98>}, {transform_indices = @transform_2, window_bounds = array<i64: 2, 4, 256>}, {transform_indices = @transform_3, window_bounds = array<i64: 2, 1, 256>}]} {
    %c0 = arith.constant 0 : index
    %c0_0 = arith.constant 0 : index
    %c0_1 = arith.constant 0 : index
    %0 = vector.load %arg1[%c0, %c0_0, %c0_1] : memref<2x4x256xf32, #tpu.memory_space<vmem>>, vector<2x4x256xf32>
    %cst = arith.constant dense<0.000000e+00> : vector<2x256xf32>
    %1 = vector.multi_reduction <add>, %0, %cst [1] : vector<2x4x256xf32> to vector<2x256xf32>
    %cst_2 = arith.constant 4.000000e+00 : f32
    %2 = vector.broadcast %cst_2 : f32 to vector<2x256xf32>
    %3 = arith.divf %1, %2 : vector<2x256xf32>
    %cst_3 = arith.constant dense<0xFF800000> : vector<2x256xf32>
    %4 = vector.multi_reduction <maximumf>, %0, %cst_3 [1] : vector<2x4x256xf32> to vector<2x256xf32>
    %5 = vector.shape_cast %3 : vector<2x256xf32> to vector<2x16x16xf32>
    %6 = vector.shape_cast %4 : vector<2x256xf32> to vector<2x16x16xf32>
    %cst_4 = arith.constant 0.000000e+00 : f32
    %7 = vector.broadcast %cst_4 : f32 to vector<2x3x16xf32>
    %cst_5 = arith.constant 0.000000e+00 : f32
    %8 = vector.broadcast %cst_5 : f32 to vector<2x22x3xf32>
    %9 = tpu.concatenate %7, %5, %7 in 1 : vector<2x3x16xf32>, vector<2x16x16xf32>, vector<2x3x16xf32> -> vector<2x22x16xf32>
    %10 = tpu.concatenate %8, %9, %8 in 2 : vector<2x22x3xf32>, vector<2x22x16xf32>, vector<2x22x3xf32> -> vector<2x22x22xf32>
    %11 = tpu.concatenate %7, %6, %7 in 1 : vector<2x3x16xf32>, vector<2x16x16xf32>, vector<2x3x16xf32> -> vector<2x22x16xf32>
    %12 = tpu.concatenate %8, %11, %8 in 2 : vector<2x22x3xf32>, vector<2x22x16xf32>, vector<2x22x3xf32> -> vector<2x22x22xf32>
    %cst_6 = arith.constant 0.000000e+00 : f32
    %13 = vector.broadcast %cst_6 : f32 to vector<2x16x16xf32>
    %14 = vector.extract_strided_slice %10 {offsets = [0, 0, 0], sizes = [2, 22, 16], strides = [1, 1, 1]} : vector<2x22x22xf32> to vector<2x22x16xf32>
    %15 = vector.extract_strided_slice %12 {offsets = [0, 0, 0], sizes = [2, 22, 16], strides = [1, 1, 1]} : vector<2x22x22xf32> to vector<2x22x16xf32>
    %c0_7 = arith.constant 0 : index
    %16 = memref.load %arg2[%c0_7] : memref<98xf32, #tpu.memory_space<smem>>
    %17 = vector.extract_strided_slice %14 {offsets = [0, 0, 0], sizes = [2, 16, 16], strides = [1, 1, 1]} : vector<2x22x16xf32> to vector<2x16x16xf32>
    %18 = vector.broadcast %16 : f32 to vector<2x16x16xf32>
    %19 = arith.mulf %18, %17 : vector<2x16x16xf32>
    %20 = arith.addf %13, %19 : vector<2x16x16xf32>
    %c49 = arith.constant 49 : index
    %21 = memref.load %arg2[%c49] : memref<98xf32, #tpu.memory_space<smem>>
    %22 = vector.extract_strided_slice %15 {offsets = [0, 0, 0], sizes = [2, 16, 16], strides = [1, 1, 1]} : vector<2x22x16xf32> to vector<2x16x16xf32>
    %23 = vector.broadcast %21 : f32 to vector<2x16x16xf32>
    %24 = arith.mulf %23, %22 : vector<2x16x16xf32>
    %25 = arith.addf %20, %24 : vector<2x16x16xf32>
    %c7 = arith.constant 7 : index
    %26 = memref.load %arg2[%c7] : memref<98xf32, #tpu.memory_space<smem>>
    %27 = vector.extract_strided_slice %14 {offsets = [0, 1, 0], sizes = [2, 16, 16], strides = [1, 1, 1]} : vector<2x22x16xf32> to vector<2x16x16xf32>
    %28 = vector.broadcast %26 : f32 to vector<2x16x16xf32>
    %29 = arith.mulf %28, %27 : vector<2x16x16xf32>
    %30 = arith.addf %25, %29 : vector<2x16x16xf32>
    %c56 = arith.constant 56 : index
    %31 = memref.load %arg2[%c56] : memref<98xf32, #tpu.memory_space<smem>>
    %32 = vector.extract_strided_slice %15 {offsets = [0, 1, 0], sizes = [2, 16, 16], strides = [1, 1, 1]} : vector<2x22x16xf32> to vector<2x16x16xf32>
    %33 = vector.broadcast %31 : f32 to vector<2x16x16xf32>
    %34 = arith.mulf %33, %32 : vector<2x16x16xf32>
    %35 = arith.addf %30, %34 : vector<2x16x16xf32>
    %c14 = arith.constant 14 : index
    %36 = memref.load %arg2[%c14] : memref<98xf32, #tpu.memory_space<smem>>
    %37 = vector.extract_strided_slice %14 {offsets = [0, 2, 0], sizes = [2, 16, 16], strides = [1, 1, 1]} : vector<2x22x16xf32> to vector<2x16x16xf32>
    %38 = vector.broadcast %36 : f32 to vector<2x16x16xf32>
    %39 = arith.mulf %38, %37 : vector<2x16x16xf32>
    %40 = arith.addf %35, %39 : vector<2x16x16xf32>
    %c63 = arith.constant 63 : index
    %41 = memref.load %arg2[%c63] : memref<98xf32, #tpu.memory_space<smem>>
    %42 = vector.extract_strided_slice %15 {offsets = [0, 2, 0], sizes = [2, 16, 16], strides = [1, 1, 1]} : vector<2x22x16xf32> to vector<2x16x16xf32>
    %43 = vector.broadcast %41 : f32 to vector<2x16x16xf32>
    %44 = arith.mulf %43, %42 : vector<2x16x16xf32>
    %45 = arith.addf %40, %44 : vector<2x16x16xf32>
    %c21 = arith.constant 21 : index
    %46 = memref.load %arg2[%c21] : memref<98xf32, #tpu.memory_space<smem>>
    %47 = vector.extract_strided_slice %14 {offsets = [0, 3, 0], sizes = [2, 16, 16], strides = [1, 1, 1]} : vector<2x22x16xf32> to vector<2x16x16xf32>
    %48 = vector.broadcast %46 : f32 to vector<2x16x16xf32>
    %49 = arith.mulf %48, %47 : vector<2x16x16xf32>
    %50 = arith.addf %45, %49 : vector<2x16x16xf32>
    %c70 = arith.constant 70 : index
    %51 = memref.load %arg2[%c70] : memref<98xf32, #tpu.memory_space<smem>>
    %52 = vector.extract_strided_slice %15 {offsets = [0, 3, 0], sizes = [2, 16, 16], strides = [1, 1, 1]} : vector<2x22x16xf32> to vector<2x16x16xf32>
    %53 = vector.broadcast %51 : f32 to vector<2x16x16xf32>
    %54 = arith.mulf %53, %52 : vector<2x16x16xf32>
    %55 = arith.addf %50, %54 : vector<2x16x16xf32>
    %c28 = arith.constant 28 : index
    %56 = memref.load %arg2[%c28] : memref<98xf32, #tpu.memory_space<smem>>
    %57 = vector.extract_strided_slice %14 {offsets = [0, 4, 0], sizes = [2, 16, 16], strides = [1, 1, 1]} : vector<2x22x16xf32> to vector<2x16x16xf32>
    %58 = vector.broadcast %56 : f32 to vector<2x16x16xf32>
    %59 = arith.mulf %58, %57 : vector<2x16x16xf32>
    %60 = arith.addf %55, %59 : vector<2x16x16xf32>
    %c77 = arith.constant 77 : index
    %61 = memref.load %arg2[%c77] : memref<98xf32, #tpu.memory_space<smem>>
    %62 = vector.extract_strided_slice %15 {offsets = [0, 4, 0], sizes = [2, 16, 16], strides = [1, 1, 1]} : vector<2x22x16xf32> to vector<2x16x16xf32>
    %63 = vector.broadcast %61 : f32 to vector<2x16x16xf32>
    %64 = arith.mulf %63, %62 : vector<2x16x16xf32>
    %65 = arith.addf %60, %64 : vector<2x16x16xf32>
    %c35 = arith.constant 35 : index
    %66 = memref.load %arg2[%c35] : memref<98xf32, #tpu.memory_space<smem>>
    %67 = vector.extract_strided_slice %14 {offsets = [0, 5, 0], sizes = [2, 16, 16], strides = [1, 1, 1]} : vector<2x22x16xf32> to vector<2x16x16xf32>
    %68 = vector.broadcast %66 : f32 to vector<2x16x16xf32>
    %69 = arith.mulf %68, %67 : vector<2x16x16xf32>
    %70 = arith.addf %65, %69 : vector<2x16x16xf32>
    %c84 = arith.constant 84 : index
    %71 = memref.load %arg2[%c84] : memref<98xf32, #tpu.memory_space<smem>>
    %72 = vector.extract_strided_slice %15 {offsets = [0, 5, 0], sizes = [2, 16, 16], strides = [1, 1, 1]} : vector<2x22x16xf32> to vector<2x16x16xf32>
    %73 = vector.broadcast %71 : f32 to vector<2x16x16xf32>
    %74 = arith.mulf %73, %72 : vector<2x16x16xf32>
    %75 = arith.addf %70, %74 : vector<2x16x16xf32>
    %c42 = arith.constant 42 : index
    %76 = memref.load %arg2[%c42] : memref<98xf32, #tpu.memory_space<smem>>
    %77 = vector.extract_strided_slice %14 {offsets = [0, 6, 0], sizes = [2, 16, 16], strides = [1, 1, 1]} : vector<2x22x16xf32> to vector<2x16x16xf32>
    %78 = vector.broadcast %76 : f32 to vector<2x16x16xf32>
    %79 = arith.mulf %78, %77 : vector<2x16x16xf32>
    %80 = arith.addf %75, %79 : vector<2x16x16xf32>
    %c91 = arith.constant 91 : index
    %81 = memref.load %arg2[%c91] : memref<98xf32, #tpu.memory_space<smem>>
    %82 = vector.extract_strided_slice %15 {offsets = [0, 6, 0], sizes = [2, 16, 16], strides = [1, 1, 1]} : vector<2x22x16xf32> to vector<2x16x16xf32>
    %83 = vector.broadcast %81 : f32 to vector<2x16x16xf32>
    %84 = arith.mulf %83, %82 : vector<2x16x16xf32>
    %85 = arith.addf %80, %84 : vector<2x16x16xf32>
    %86 = vector.extract_strided_slice %10 {offsets = [0, 0, 1], sizes = [2, 22, 16], strides = [1, 1, 1]} : vector<2x22x22xf32> to vector<2x22x16xf32>
    %87 = vector.extract_strided_slice %12 {offsets = [0, 0, 1], sizes = [2, 22, 16], strides = [1, 1, 1]} : vector<2x22x22xf32> to vector<2x22x16xf32>
    %c1 = arith.constant 1 : index
    %88 = memref.load %arg2[%c1] : memref<98xf32, #tpu.memory_space<smem>>
    %89 = vector.extract_strided_slice %86 {offsets = [0, 0, 0], sizes = [2, 16, 16], strides = [1, 1, 1]} : vector<2x22x16xf32> to vector<2x16x16xf32>
    %90 = vector.broadcast %88 : f32 to vector<2x16x16xf32>
    %91 = arith.mulf %90, %89 : vector<2x16x16xf32>
    %92 = arith.addf %85, %91 : vector<2x16x16xf32>
    %c50 = arith.constant 50 : index
    %93 = memref.load %arg2[%c50] : memref<98xf32, #tpu.memory_space<smem>>
    %94 = vector.extract_strided_slice %87 {offsets = [0, 0, 0], sizes = [2, 16, 16], strides = [1, 1, 1]} : vector<2x22x16xf32> to vector<2x16x16xf32>
    %95 = vector.broadcast %93 : f32 to vector<2x16x16xf32>
    %96 = arith.mulf %95, %94 : vector<2x16x16xf32>
    %97 = arith.addf %92, %96 : vector<2x16x16xf32>
    %c8 = arith.constant 8 : index
    %98 = memref.load %arg2[%c8] : memref<98xf32, #tpu.memory_space<smem>>
    %99 = vector.extract_strided_slice %86 {offsets = [0, 1, 0], sizes = [2, 16, 16], strides = [1, 1, 1]} : vector<2x22x16xf32> to vector<2x16x16xf32>
    %100 = vector.broadcast %98 : f32 to vector<2x16x16xf32>
    %101 = arith.mulf %100, %99 : vector<2x16x16xf32>
    %102 = arith.addf %97, %101 : vector<2x16x16xf32>
    %c57 = arith.constant 57 : index
    %103 = memref.load %arg2[%c57] : memref<98xf32, #tpu.memory_space<smem>>
    %104 = vector.extract_strided_slice %87 {offsets = [0, 1, 0], sizes = [2, 16, 16], strides = [1, 1, 1]} : vector<2x22x16xf32> to vector<2x16x16xf32>
    %105 = vector.broadcast %103 : f32 to vector<2x16x16xf32>
    %106 = arith.mulf %105, %104 : vector<2x16x16xf32>
    %107 = arith.addf %102, %106 : vector<2x16x16xf32>
    %c15 = arith.constant 15 : index
    %108 = memref.load %arg2[%c15] : memref<98xf32, #tpu.memory_space<smem>>
    %109 = vector.extract_strided_slice %86 {offsets = [0, 2, 0], sizes = [2, 16, 16], strides = [1, 1, 1]} : vector<2x22x16xf32> to vector<2x16x16xf32>
    %110 = vector.broadcast %108 : f32 to vector<2x16x16xf32>
    %111 = arith.mulf %110, %109 : vector<2x16x16xf32>
    %112 = arith.addf %107, %111 : vector<2x16x16xf32>
    %c64 = arith.constant 64 : index
    %113 = memref.load %arg2[%c64] : memref<98xf32, #tpu.memory_space<smem>>
    %114 = vector.extract_strided_slice %87 {offsets = [0, 2, 0], sizes = [2, 16, 16], strides = [1, 1, 1]} : vector<2x22x16xf32> to vector<2x16x16xf32>
    %115 = vector.broadcast %113 : f32 to vector<2x16x16xf32>
    %116 = arith.mulf %115, %114 : vector<2x16x16xf32>
    %117 = arith.addf %112, %116 : vector<2x16x16xf32>
    %c22 = arith.constant 22 : index
    %118 = memref.load %arg2[%c22] : memref<98xf32, #tpu.memory_space<smem>>
    %119 = vector.extract_strided_slice %86 {offsets = [0, 3, 0], sizes = [2, 16, 16], strides = [1, 1, 1]} : vector<2x22x16xf32> to vector<2x16x16xf32>
    %120 = vector.broadcast %118 : f32 to vector<2x16x16xf32>
    %121 = arith.mulf %120, %119 : vector<2x16x16xf32>
    %122 = arith.addf %117, %121 : vector<2x16x16xf32>
    %c71 = arith.constant 71 : index
    %123 = memref.load %arg2[%c71] : memref<98xf32, #tpu.memory_space<smem>>
    %124 = vector.extract_strided_slice %87 {offsets = [0, 3, 0], sizes = [2, 16, 16], strides = [1, 1, 1]} : vector<2x22x16xf32> to vector<2x16x16xf32>
    %125 = vector.broadcast %123 : f32 to vector<2x16x16xf32>
    %126 = arith.mulf %125, %124 : vector<2x16x16xf32>
    %127 = arith.addf %122, %126 : vector<2x16x16xf32>
    %c29 = arith.constant 29 : index
    %128 = memref.load %arg2[%c29] : memref<98xf32, #tpu.memory_space<smem>>
    %129 = vector.extract_strided_slice %86 {offsets = [0, 4, 0], sizes = [2, 16, 16], strides = [1, 1, 1]} : vector<2x22x16xf32> to vector<2x16x16xf32>
    %130 = vector.broadcast %128 : f32 to vector<2x16x16xf32>
    %131 = arith.mulf %130, %129 : vector<2x16x16xf32>
    %132 = arith.addf %127, %131 : vector<2x16x16xf32>
    %c78 = arith.constant 78 : index
    %133 = memref.load %arg2[%c78] : memref<98xf32, #tpu.memory_space<smem>>
    %134 = vector.extract_strided_slice %87 {offsets = [0, 4, 0], sizes = [2, 16, 16], strides = [1, 1, 1]} : vector<2x22x16xf32> to vector<2x16x16xf32>
    %135 = vector.broadcast %133 : f32 to vector<2x16x16xf32>
    %136 = arith.mulf %135, %134 : vector<2x16x16xf32>
    %137 = arith.addf %132, %136 : vector<2x16x16xf32>
    %c36 = arith.constant 36 : index
    %138 = memref.load %arg2[%c36] : memref<98xf32, #tpu.memory_space<smem>>
    %139 = vector.extract_strided_slice %86 {offsets = [0, 5, 0], sizes = [2, 16, 16], strides = [1, 1, 1]} : vector<2x22x16xf32> to vector<2x16x16xf32>
    %140 = vector.broadcast %138 : f32 to vector<2x16x16xf32>
    %141 = arith.mulf %140, %139 : vector<2x16x16xf32>
    %142 = arith.addf %137, %141 : vector<2x16x16xf32>
    %c85 = arith.constant 85 : index
    %143 = memref.load %arg2[%c85] : memref<98xf32, #tpu.memory_space<smem>>
    %144 = vector.extract_strided_slice %87 {offsets = [0, 5, 0], sizes = [2, 16, 16], strides = [1, 1, 1]} : vector<2x22x16xf32> to vector<2x16x16xf32>
    %145 = vector.broadcast %143 : f32 to vector<2x16x16xf32>
    %146 = arith.mulf %145, %144 : vector<2x16x16xf32>
    %147 = arith.addf %142, %146 : vector<2x16x16xf32>
    %c43 = arith.constant 43 : index
    %148 = memref.load %arg2[%c43] : memref<98xf32, #tpu.memory_space<smem>>
    %149 = vector.extract_strided_slice %86 {offsets = [0, 6, 0], sizes = [2, 16, 16], strides = [1, 1, 1]} : vector<2x22x16xf32> to vector<2x16x16xf32>
    %150 = vector.broadcast %148 : f32 to vector<2x16x16xf32>
    %151 = arith.mulf %150, %149 : vector<2x16x16xf32>
    %152 = arith.addf %147, %151 : vector<2x16x16xf32>
    %c92 = arith.constant 92 : index
    %153 = memref.load %arg2[%c92] : memref<98xf32, #tpu.memory_space<smem>>
    %154 = vector.extract_strided_slice %87 {offsets = [0, 6, 0], sizes = [2, 16, 16], strides = [1, 1, 1]} : vector<2x22x16xf32> to vector<2x16x16xf32>
    %155 = vector.broadcast %153 : f32 to vector<2x16x16xf32>
    %156 = arith.mulf %155, %154 : vector<2x16x16xf32>
    %157 = arith.addf %152, %156 : vector<2x16x16xf32>
    %158 = vector.extract_strided_slice %10 {offsets = [0, 0, 2], sizes = [2, 22, 16], strides = [1, 1, 1]} : vector<2x22x22xf32> to vector<2x22x16xf32>
    %159 = vector.extract_strided_slice %12 {offsets = [0, 0, 2], sizes = [2, 22, 16], strides = [1, 1, 1]} : vector<2x22x22xf32> to vector<2x22x16xf32>
    %c2 = arith.constant 2 : index
    %160 = memref.load %arg2[%c2] : memref<98xf32, #tpu.memory_space<smem>>
    %161 = vector.extract_strided_slice %158 {offsets = [0, 0, 0], sizes = [2, 16, 16], strides = [1, 1, 1]} : vector<2x22x16xf32> to vector<2x16x16xf32>
    %162 = vector.broadcast %160 : f32 to vector<2x16x16xf32>
    %163 = arith.mulf %162, %161 : vector<2x16x16xf32>
    %164 = arith.addf %157, %163 : vector<2x16x16xf32>
    %c51 = arith.constant 51 : index
    %165 = memref.load %arg2[%c51] : memref<98xf32, #tpu.memory_space<smem>>
    %166 = vector.extract_strided_slice %159 {offsets = [0, 0, 0], sizes = [2, 16, 16], strides = [1, 1, 1]} : vector<2x22x16xf32> to vector<2x16x16xf32>
    %167 = vector.broadcast %165 : f32 to vector<2x16x16xf32>
    %168 = arith.mulf %167, %166 : vector<2x16x16xf32>
    %169 = arith.addf %164, %168 : vector<2x16x16xf32>
    %c9 = arith.constant 9 : index
    %170 = memref.load %arg2[%c9] : memref<98xf32, #tpu.memory_space<smem>>
    %171 = vector.extract_strided_slice %158 {offsets = [0, 1, 0], sizes = [2, 16, 16], strides = [1, 1, 1]} : vector<2x22x16xf32> to vector<2x16x16xf32>
    %172 = vector.broadcast %170 : f32 to vector<2x16x16xf32>
    %173 = arith.mulf %172, %171 : vector<2x16x16xf32>
    %174 = arith.addf %169, %173 : vector<2x16x16xf32>
    %c58 = arith.constant 58 : index
    %175 = memref.load %arg2[%c58] : memref<98xf32, #tpu.memory_space<smem>>
    %176 = vector.extract_strided_slice %159 {offsets = [0, 1, 0], sizes = [2, 16, 16], strides = [1, 1, 1]} : vector<2x22x16xf32> to vector<2x16x16xf32>
    %177 = vector.broadcast %175 : f32 to vector<2x16x16xf32>
    %178 = arith.mulf %177, %176 : vector<2x16x16xf32>
    %179 = arith.addf %174, %178 : vector<2x16x16xf32>
    %c16 = arith.constant 16 : index
    %180 = memref.load %arg2[%c16] : memref<98xf32, #tpu.memory_space<smem>>
    %181 = vector.extract_strided_slice %158 {offsets = [0, 2, 0], sizes = [2, 16, 16], strides = [1, 1, 1]} : vector<2x22x16xf32> to vector<2x16x16xf32>
    %182 = vector.broadcast %180 : f32 to vector<2x16x16xf32>
    %183 = arith.mulf %182, %181 : vector<2x16x16xf32>
    %184 = arith.addf %179, %183 : vector<2x16x16xf32>
    %c65 = arith.constant 65 : index
    %185 = memref.load %arg2[%c65] : memref<98xf32, #tpu.memory_space<smem>>
    %186 = vector.extract_strided_slice %159 {offsets = [0, 2, 0], sizes = [2, 16, 16], strides = [1, 1, 1]} : vector<2x22x16xf32> to vector<2x16x16xf32>
    %187 = vector.broadcast %185 : f32 to vector<2x16x16xf32>
    %188 = arith.mulf %187, %186 : vector<2x16x16xf32>
    %189 = arith.addf %184, %188 : vector<2x16x16xf32>
    %c23 = arith.constant 23 : index
    %190 = memref.load %arg2[%c23] : memref<98xf32, #tpu.memory_space<smem>>
    %191 = vector.extract_strided_slice %158 {offsets = [0, 3, 0], sizes = [2, 16, 16], strides = [1, 1, 1]} : vector<2x22x16xf32> to vector<2x16x16xf32>
    %192 = vector.broadcast %190 : f32 to vector<2x16x16xf32>
    %193 = arith.mulf %192, %191 : vector<2x16x16xf32>
    %194 = arith.addf %189, %193 : vector<2x16x16xf32>
    %c72 = arith.constant 72 : index
    %195 = memref.load %arg2[%c72] : memref<98xf32, #tpu.memory_space<smem>>
    %196 = vector.extract_strided_slice %159 {offsets = [0, 3, 0], sizes = [2, 16, 16], strides = [1, 1, 1]} : vector<2x22x16xf32> to vector<2x16x16xf32>
    %197 = vector.broadcast %195 : f32 to vector<2x16x16xf32>
    %198 = arith.mulf %197, %196 : vector<2x16x16xf32>
    %199 = arith.addf %194, %198 : vector<2x16x16xf32>
    %c30 = arith.constant 30 : index
    %200 = memref.load %arg2[%c30] : memref<98xf32, #tpu.memory_space<smem>>
    %201 = vector.extract_strided_slice %158 {offsets = [0, 4, 0], sizes = [2, 16, 16], strides = [1, 1, 1]} : vector<2x22x16xf32> to vector<2x16x16xf32>
    %202 = vector.broadcast %200 : f32 to vector<2x16x16xf32>
    %203 = arith.mulf %202, %201 : vector<2x16x16xf32>
    %204 = arith.addf %199, %203 : vector<2x16x16xf32>
    %c79 = arith.constant 79 : index
    %205 = memref.load %arg2[%c79] : memref<98xf32, #tpu.memory_space<smem>>
    %206 = vector.extract_strided_slice %159 {offsets = [0, 4, 0], sizes = [2, 16, 16], strides = [1, 1, 1]} : vector<2x22x16xf32> to vector<2x16x16xf32>
    %207 = vector.broadcast %205 : f32 to vector<2x16x16xf32>
    %208 = arith.mulf %207, %206 : vector<2x16x16xf32>
    %209 = arith.addf %204, %208 : vector<2x16x16xf32>
    %c37 = arith.constant 37 : index
    %210 = memref.load %arg2[%c37] : memref<98xf32, #tpu.memory_space<smem>>
    %211 = vector.extract_strided_slice %158 {offsets = [0, 5, 0], sizes = [2, 16, 16], strides = [1, 1, 1]} : vector<2x22x16xf32> to vector<2x16x16xf32>
    %212 = vector.broadcast %210 : f32 to vector<2x16x16xf32>
    %213 = arith.mulf %212, %211 : vector<2x16x16xf32>
    %214 = arith.addf %209, %213 : vector<2x16x16xf32>
    %c86 = arith.constant 86 : index
    %215 = memref.load %arg2[%c86] : memref<98xf32, #tpu.memory_space<smem>>
    %216 = vector.extract_strided_slice %159 {offsets = [0, 5, 0], sizes = [2, 16, 16], strides = [1, 1, 1]} : vector<2x22x16xf32> to vector<2x16x16xf32>
    %217 = vector.broadcast %215 : f32 to vector<2x16x16xf32>
    %218 = arith.mulf %217, %216 : vector<2x16x16xf32>
    %219 = arith.addf %214, %218 : vector<2x16x16xf32>
    %c44 = arith.constant 44 : index
    %220 = memref.load %arg2[%c44] : memref<98xf32, #tpu.memory_space<smem>>
    %221 = vector.extract_strided_slice %158 {offsets = [0, 6, 0], sizes = [2, 16, 16], strides = [1, 1, 1]} : vector<2x22x16xf32> to vector<2x16x16xf32>
    %222 = vector.broadcast %220 : f32 to vector<2x16x16xf32>
    %223 = arith.mulf %222, %221 : vector<2x16x16xf32>
    %224 = arith.addf %219, %223 : vector<2x16x16xf32>
    %c93 = arith.constant 93 : index
    %225 = memref.load %arg2[%c93] : memref<98xf32, #tpu.memory_space<smem>>
    %226 = vector.extract_strided_slice %159 {offsets = [0, 6, 0], sizes = [2, 16, 16], strides = [1, 1, 1]} : vector<2x22x16xf32> to vector<2x16x16xf32>
    %227 = vector.broadcast %225 : f32 to vector<2x16x16xf32>
    %228 = arith.mulf %227, %226 : vector<2x16x16xf32>
    %229 = arith.addf %224, %228 : vector<2x16x16xf32>
    %230 = vector.extract_strided_slice %10 {offsets = [0, 0, 3], sizes = [2, 22, 16], strides = [1, 1, 1]} : vector<2x22x22xf32> to vector<2x22x16xf32>
    %231 = vector.extract_strided_slice %12 {offsets = [0, 0, 3], sizes = [2, 22, 16], strides = [1, 1, 1]} : vector<2x22x22xf32> to vector<2x22x16xf32>
    %c3 = arith.constant 3 : index
    %232 = memref.load %arg2[%c3] : memref<98xf32, #tpu.memory_space<smem>>
    %233 = vector.extract_strided_slice %230 {offsets = [0, 0, 0], sizes = [2, 16, 16], strides = [1, 1, 1]} : vector<2x22x16xf32> to vector<2x16x16xf32>
    %234 = vector.broadcast %232 : f32 to vector<2x16x16xf32>
    %235 = arith.mulf %234, %233 : vector<2x16x16xf32>
    %236 = arith.addf %229, %235 : vector<2x16x16xf32>
    %c52 = arith.constant 52 : index
    %237 = memref.load %arg2[%c52] : memref<98xf32, #tpu.memory_space<smem>>
    %238 = vector.extract_strided_slice %231 {offsets = [0, 0, 0], sizes = [2, 16, 16], strides = [1, 1, 1]} : vector<2x22x16xf32> to vector<2x16x16xf32>
    %239 = vector.broadcast %237 : f32 to vector<2x16x16xf32>
    %240 = arith.mulf %239, %238 : vector<2x16x16xf32>
    %241 = arith.addf %236, %240 : vector<2x16x16xf32>
    %c10 = arith.constant 10 : index
    %242 = memref.load %arg2[%c10] : memref<98xf32, #tpu.memory_space<smem>>
    %243 = vector.extract_strided_slice %230 {offsets = [0, 1, 0], sizes = [2, 16, 16], strides = [1, 1, 1]} : vector<2x22x16xf32> to vector<2x16x16xf32>
    %244 = vector.broadcast %242 : f32 to vector<2x16x16xf32>
    %245 = arith.mulf %244, %243 : vector<2x16x16xf32>
    %246 = arith.addf %241, %245 : vector<2x16x16xf32>
    %c59 = arith.constant 59 : index
    %247 = memref.load %arg2[%c59] : memref<98xf32, #tpu.memory_space<smem>>
    %248 = vector.extract_strided_slice %231 {offsets = [0, 1, 0], sizes = [2, 16, 16], strides = [1, 1, 1]} : vector<2x22x16xf32> to vector<2x16x16xf32>
    %249 = vector.broadcast %247 : f32 to vector<2x16x16xf32>
    %250 = arith.mulf %249, %248 : vector<2x16x16xf32>
    %251 = arith.addf %246, %250 : vector<2x16x16xf32>
    %c17 = arith.constant 17 : index
    %252 = memref.load %arg2[%c17] : memref<98xf32, #tpu.memory_space<smem>>
    %253 = vector.extract_strided_slice %230 {offsets = [0, 2, 0], sizes = [2, 16, 16], strides = [1, 1, 1]} : vector<2x22x16xf32> to vector<2x16x16xf32>
    %254 = vector.broadcast %252 : f32 to vector<2x16x16xf32>
    %255 = arith.mulf %254, %253 : vector<2x16x16xf32>
    %256 = arith.addf %251, %255 : vector<2x16x16xf32>
    %c66 = arith.constant 66 : index
    %257 = memref.load %arg2[%c66] : memref<98xf32, #tpu.memory_space<smem>>
    %258 = vector.extract_strided_slice %231 {offsets = [0, 2, 0], sizes = [2, 16, 16], strides = [1, 1, 1]} : vector<2x22x16xf32> to vector<2x16x16xf32>
    %259 = vector.broadcast %257 : f32 to vector<2x16x16xf32>
    %260 = arith.mulf %259, %258 : vector<2x16x16xf32>
    %261 = arith.addf %256, %260 : vector<2x16x16xf32>
    %c24 = arith.constant 24 : index
    %262 = memref.load %arg2[%c24] : memref<98xf32, #tpu.memory_space<smem>>
    %263 = vector.extract_strided_slice %230 {offsets = [0, 3, 0], sizes = [2, 16, 16], strides = [1, 1, 1]} : vector<2x22x16xf32> to vector<2x16x16xf32>
    %264 = vector.broadcast %262 : f32 to vector<2x16x16xf32>
    %265 = arith.mulf %264, %263 : vector<2x16x16xf32>
    %266 = arith.addf %261, %265 : vector<2x16x16xf32>
    %c73 = arith.constant 73 : index
    %267 = memref.load %arg2[%c73] : memref<98xf32, #tpu.memory_space<smem>>
    %268 = vector.extract_strided_slice %231 {offsets = [0, 3, 0], sizes = [2, 16, 16], strides = [1, 1, 1]} : vector<2x22x16xf32> to vector<2x16x16xf32>
    %269 = vector.broadcast %267 : f32 to vector<2x16x16xf32>
    %270 = arith.mulf %269, %268 : vector<2x16x16xf32>
    %271 = arith.addf %266, %270 : vector<2x16x16xf32>
    %c31 = arith.constant 31 : index
    %272 = memref.load %arg2[%c31] : memref<98xf32, #tpu.memory_space<smem>>
    %273 = vector.extract_strided_slice %230 {offsets = [0, 4, 0], sizes = [2, 16, 16], strides = [1, 1, 1]} : vector<2x22x16xf32> to vector<2x16x16xf32>
    %274 = vector.broadcast %272 : f32 to vector<2x16x16xf32>
    %275 = arith.mulf %274, %273 : vector<2x16x16xf32>
    %276 = arith.addf %271, %275 : vector<2x16x16xf32>
    %c80 = arith.constant 80 : index
    %277 = memref.load %arg2[%c80] : memref<98xf32, #tpu.memory_space<smem>>
    %278 = vector.extract_strided_slice %231 {offsets = [0, 4, 0], sizes = [2, 16, 16], strides = [1, 1, 1]} : vector<2x22x16xf32> to vector<2x16x16xf32>
    %279 = vector.broadcast %277 : f32 to vector<2x16x16xf32>
    %280 = arith.mulf %279, %278 : vector<2x16x16xf32>
    %281 = arith.addf %276, %280 : vector<2x16x16xf32>
    %c38 = arith.constant 38 : index
    %282 = memref.load %arg2[%c38] : memref<98xf32, #tpu.memory_space<smem>>
    %283 = vector.extract_strided_slice %230 {offsets = [0, 5, 0], sizes = [2, 16, 16], strides = [1, 1, 1]} : vector<2x22x16xf32> to vector<2x16x16xf32>
    %284 = vector.broadcast %282 : f32 to vector<2x16x16xf32>
    %285 = arith.mulf %284, %283 : vector<2x16x16xf32>
    %286 = arith.addf %281, %285 : vector<2x16x16xf32>
    %c87 = arith.constant 87 : index
    %287 = memref.load %arg2[%c87] : memref<98xf32, #tpu.memory_space<smem>>
    %288 = vector.extract_strided_slice %231 {offsets = [0, 5, 0], sizes = [2, 16, 16], strides = [1, 1, 1]} : vector<2x22x16xf32> to vector<2x16x16xf32>
    %289 = vector.broadcast %287 : f32 to vector<2x16x16xf32>
    %290 = arith.mulf %289, %288 : vector<2x16x16xf32>
    %291 = arith.addf %286, %290 : vector<2x16x16xf32>
    %c45 = arith.constant 45 : index
    %292 = memref.load %arg2[%c45] : memref<98xf32, #tpu.memory_space<smem>>
    %293 = vector.extract_strided_slice %230 {offsets = [0, 6, 0], sizes = [2, 16, 16], strides = [1, 1, 1]} : vector<2x22x16xf32> to vector<2x16x16xf32>
    %294 = vector.broadcast %292 : f32 to vector<2x16x16xf32>
    %295 = arith.mulf %294, %293 : vector<2x16x16xf32>
    %296 = arith.addf %291, %295 : vector<2x16x16xf32>
    %c94 = arith.constant 94 : index
    %297 = memref.load %arg2[%c94] : memref<98xf32, #tpu.memory_space<smem>>
    %298 = vector.extract_strided_slice %231 {offsets = [0, 6, 0], sizes = [2, 16, 16], strides = [1, 1, 1]} : vector<2x22x16xf32> to vector<2x16x16xf32>
    %299 = vector.broadcast %297 : f32 to vector<2x16x16xf32>
    %300 = arith.mulf %299, %298 : vector<2x16x16xf32>
    %301 = arith.addf %296, %300 : vector<2x16x16xf32>
    %302 = vector.extract_strided_slice %10 {offsets = [0, 0, 4], sizes = [2, 22, 16], strides = [1, 1, 1]} : vector<2x22x22xf32> to vector<2x22x16xf32>
    %303 = vector.extract_strided_slice %12 {offsets = [0, 0, 4], sizes = [2, 22, 16], strides = [1, 1, 1]} : vector<2x22x22xf32> to vector<2x22x16xf32>
    %c4 = arith.constant 4 : index
    %304 = memref.load %arg2[%c4] : memref<98xf32, #tpu.memory_space<smem>>
    %305 = vector.extract_strided_slice %302 {offsets = [0, 0, 0], sizes = [2, 16, 16], strides = [1, 1, 1]} : vector<2x22x16xf32> to vector<2x16x16xf32>
    %306 = vector.broadcast %304 : f32 to vector<2x16x16xf32>
    %307 = arith.mulf %306, %305 : vector<2x16x16xf32>
    %308 = arith.addf %301, %307 : vector<2x16x16xf32>
    %c53 = arith.constant 53 : index
    %309 = memref.load %arg2[%c53] : memref<98xf32, #tpu.memory_space<smem>>
    %310 = vector.extract_strided_slice %303 {offsets = [0, 0, 0], sizes = [2, 16, 16], strides = [1, 1, 1]} : vector<2x22x16xf32> to vector<2x16x16xf32>
    %311 = vector.broadcast %309 : f32 to vector<2x16x16xf32>
    %312 = arith.mulf %311, %310 : vector<2x16x16xf32>
    %313 = arith.addf %308, %312 : vector<2x16x16xf32>
    %c11 = arith.constant 11 : index
    %314 = memref.load %arg2[%c11] : memref<98xf32, #tpu.memory_space<smem>>
    %315 = vector.extract_strided_slice %302 {offsets = [0, 1, 0], sizes = [2, 16, 16], strides = [1, 1, 1]} : vector<2x22x16xf32> to vector<2x16x16xf32>
    %316 = vector.broadcast %314 : f32 to vector<2x16x16xf32>
    %317 = arith.mulf %316, %315 : vector<2x16x16xf32>
    %318 = arith.addf %313, %317 : vector<2x16x16xf32>
    %c60 = arith.constant 60 : index
    %319 = memref.load %arg2[%c60] : memref<98xf32, #tpu.memory_space<smem>>
    %320 = vector.extract_strided_slice %303 {offsets = [0, 1, 0], sizes = [2, 16, 16], strides = [1, 1, 1]} : vector<2x22x16xf32> to vector<2x16x16xf32>
    %321 = vector.broadcast %319 : f32 to vector<2x16x16xf32>
    %322 = arith.mulf %321, %320 : vector<2x16x16xf32>
    %323 = arith.addf %318, %322 : vector<2x16x16xf32>
    %c18 = arith.constant 18 : index
    %324 = memref.load %arg2[%c18] : memref<98xf32, #tpu.memory_space<smem>>
    %325 = vector.extract_strided_slice %302 {offsets = [0, 2, 0], sizes = [2, 16, 16], strides = [1, 1, 1]} : vector<2x22x16xf32> to vector<2x16x16xf32>
    %326 = vector.broadcast %324 : f32 to vector<2x16x16xf32>
    %327 = arith.mulf %326, %325 : vector<2x16x16xf32>
    %328 = arith.addf %323, %327 : vector<2x16x16xf32>
    %c67 = arith.constant 67 : index
    %329 = memref.load %arg2[%c67] : memref<98xf32, #tpu.memory_space<smem>>
    %330 = vector.extract_strided_slice %303 {offsets = [0, 2, 0], sizes = [2, 16, 16], strides = [1, 1, 1]} : vector<2x22x16xf32> to vector<2x16x16xf32>
    %331 = vector.broadcast %329 : f32 to vector<2x16x16xf32>
    %332 = arith.mulf %331, %330 : vector<2x16x16xf32>
    %333 = arith.addf %328, %332 : vector<2x16x16xf32>
    %c25 = arith.constant 25 : index
    %334 = memref.load %arg2[%c25] : memref<98xf32, #tpu.memory_space<smem>>
    %335 = vector.extract_strided_slice %302 {offsets = [0, 3, 0], sizes = [2, 16, 16], strides = [1, 1, 1]} : vector<2x22x16xf32> to vector<2x16x16xf32>
    %336 = vector.broadcast %334 : f32 to vector<2x16x16xf32>
    %337 = arith.mulf %336, %335 : vector<2x16x16xf32>
    %338 = arith.addf %333, %337 : vector<2x16x16xf32>
    %c74 = arith.constant 74 : index
    %339 = memref.load %arg2[%c74] : memref<98xf32, #tpu.memory_space<smem>>
    %340 = vector.extract_strided_slice %303 {offsets = [0, 3, 0], sizes = [2, 16, 16], strides = [1, 1, 1]} : vector<2x22x16xf32> to vector<2x16x16xf32>
    %341 = vector.broadcast %339 : f32 to vector<2x16x16xf32>
    %342 = arith.mulf %341, %340 : vector<2x16x16xf32>
    %343 = arith.addf %338, %342 : vector<2x16x16xf32>
    %c32 = arith.constant 32 : index
    %344 = memref.load %arg2[%c32] : memref<98xf32, #tpu.memory_space<smem>>
    %345 = vector.extract_strided_slice %302 {offsets = [0, 4, 0], sizes = [2, 16, 16], strides = [1, 1, 1]} : vector<2x22x16xf32> to vector<2x16x16xf32>
    %346 = vector.broadcast %344 : f32 to vector<2x16x16xf32>
    %347 = arith.mulf %346, %345 : vector<2x16x16xf32>
    %348 = arith.addf %343, %347 : vector<2x16x16xf32>
    %c81 = arith.constant 81 : index
    %349 = memref.load %arg2[%c81] : memref<98xf32, #tpu.memory_space<smem>>
    %350 = vector.extract_strided_slice %303 {offsets = [0, 4, 0], sizes = [2, 16, 16], strides = [1, 1, 1]} : vector<2x22x16xf32> to vector<2x16x16xf32>
    %351 = vector.broadcast %349 : f32 to vector<2x16x16xf32>
    %352 = arith.mulf %351, %350 : vector<2x16x16xf32>
    %353 = arith.addf %348, %352 : vector<2x16x16xf32>
    %c39 = arith.constant 39 : index
    %354 = memref.load %arg2[%c39] : memref<98xf32, #tpu.memory_space<smem>>
    %355 = vector.extract_strided_slice %302 {offsets = [0, 5, 0], sizes = [2, 16, 16], strides = [1, 1, 1]} : vector<2x22x16xf32> to vector<2x16x16xf32>
    %356 = vector.broadcast %354 : f32 to vector<2x16x16xf32>
    %357 = arith.mulf %356, %355 : vector<2x16x16xf32>
    %358 = arith.addf %353, %357 : vector<2x16x16xf32>
    %c88 = arith.constant 88 : index
    %359 = memref.load %arg2[%c88] : memref<98xf32, #tpu.memory_space<smem>>
    %360 = vector.extract_strided_slice %303 {offsets = [0, 5, 0], sizes = [2, 16, 16], strides = [1, 1, 1]} : vector<2x22x16xf32> to vector<2x16x16xf32>
    %361 = vector.broadcast %359 : f32 to vector<2x16x16xf32>
    %362 = arith.mulf %361, %360 : vector<2x16x16xf32>
    %363 = arith.addf %358, %362 : vector<2x16x16xf32>
    %c46 = arith.constant 46 : index
    %364 = memref.load %arg2[%c46] : memref<98xf32, #tpu.memory_space<smem>>
    %365 = vector.extract_strided_slice %302 {offsets = [0, 6, 0], sizes = [2, 16, 16], strides = [1, 1, 1]} : vector<2x22x16xf32> to vector<2x16x16xf32>
    %366 = vector.broadcast %364 : f32 to vector<2x16x16xf32>
    %367 = arith.mulf %366, %365 : vector<2x16x16xf32>
    %368 = arith.addf %363, %367 : vector<2x16x16xf32>
    %c95 = arith.constant 95 : index
    %369 = memref.load %arg2[%c95] : memref<98xf32, #tpu.memory_space<smem>>
    %370 = vector.extract_strided_slice %303 {offsets = [0, 6, 0], sizes = [2, 16, 16], strides = [1, 1, 1]} : vector<2x22x16xf32> to vector<2x16x16xf32>
    %371 = vector.broadcast %369 : f32 to vector<2x16x16xf32>
    %372 = arith.mulf %371, %370 : vector<2x16x16xf32>
    %373 = arith.addf %368, %372 : vector<2x16x16xf32>
    %374 = vector.extract_strided_slice %10 {offsets = [0, 0, 5], sizes = [2, 22, 16], strides = [1, 1, 1]} : vector<2x22x22xf32> to vector<2x22x16xf32>
    %375 = vector.extract_strided_slice %12 {offsets = [0, 0, 5], sizes = [2, 22, 16], strides = [1, 1, 1]} : vector<2x22x22xf32> to vector<2x22x16xf32>
    %c5 = arith.constant 5 : index
    %376 = memref.load %arg2[%c5] : memref<98xf32, #tpu.memory_space<smem>>
    %377 = vector.extract_strided_slice %374 {offsets = [0, 0, 0], sizes = [2, 16, 16], strides = [1, 1, 1]} : vector<2x22x16xf32> to vector<2x16x16xf32>
    %378 = vector.broadcast %376 : f32 to vector<2x16x16xf32>
    %379 = arith.mulf %378, %377 : vector<2x16x16xf32>
    %380 = arith.addf %373, %379 : vector<2x16x16xf32>
    %c54 = arith.constant 54 : index
    %381 = memref.load %arg2[%c54] : memref<98xf32, #tpu.memory_space<smem>>
    %382 = vector.extract_strided_slice %375 {offsets = [0, 0, 0], sizes = [2, 16, 16], strides = [1, 1, 1]} : vector<2x22x16xf32> to vector<2x16x16xf32>
    %383 = vector.broadcast %381 : f32 to vector<2x16x16xf32>
    %384 = arith.mulf %383, %382 : vector<2x16x16xf32>
    %385 = arith.addf %380, %384 : vector<2x16x16xf32>
    %c12 = arith.constant 12 : index
    %386 = memref.load %arg2[%c12] : memref<98xf32, #tpu.memory_space<smem>>
    %387 = vector.extract_strided_slice %374 {offsets = [0, 1, 0], sizes = [2, 16, 16], strides = [1, 1, 1]} : vector<2x22x16xf32> to vector<2x16x16xf32>
    %388 = vector.broadcast %386 : f32 to vector<2x16x16xf32>
    %389 = arith.mulf %388, %387 : vector<2x16x16xf32>
    %390 = arith.addf %385, %389 : vector<2x16x16xf32>
    %c61 = arith.constant 61 : index
    %391 = memref.load %arg2[%c61] : memref<98xf32, #tpu.memory_space<smem>>
    %392 = vector.extract_strided_slice %375 {offsets = [0, 1, 0], sizes = [2, 16, 16], strides = [1, 1, 1]} : vector<2x22x16xf32> to vector<2x16x16xf32>
    %393 = vector.broadcast %391 : f32 to vector<2x16x16xf32>
    %394 = arith.mulf %393, %392 : vector<2x16x16xf32>
    %395 = arith.addf %390, %394 : vector<2x16x16xf32>
    %c19 = arith.constant 19 : index
    %396 = memref.load %arg2[%c19] : memref<98xf32, #tpu.memory_space<smem>>
    %397 = vector.extract_strided_slice %374 {offsets = [0, 2, 0], sizes = [2, 16, 16], strides = [1, 1, 1]} : vector<2x22x16xf32> to vector<2x16x16xf32>
    %398 = vector.broadcast %396 : f32 to vector<2x16x16xf32>
    %399 = arith.mulf %398, %397 : vector<2x16x16xf32>
    %400 = arith.addf %395, %399 : vector<2x16x16xf32>
    %c68 = arith.constant 68 : index
    %401 = memref.load %arg2[%c68] : memref<98xf32, #tpu.memory_space<smem>>
    %402 = vector.extract_strided_slice %375 {offsets = [0, 2, 0], sizes = [2, 16, 16], strides = [1, 1, 1]} : vector<2x22x16xf32> to vector<2x16x16xf32>
    %403 = vector.broadcast %401 : f32 to vector<2x16x16xf32>
    %404 = arith.mulf %403, %402 : vector<2x16x16xf32>
    %405 = arith.addf %400, %404 : vector<2x16x16xf32>
    %c26 = arith.constant 26 : index
    %406 = memref.load %arg2[%c26] : memref<98xf32, #tpu.memory_space<smem>>
    %407 = vector.extract_strided_slice %374 {offsets = [0, 3, 0], sizes = [2, 16, 16], strides = [1, 1, 1]} : vector<2x22x16xf32> to vector<2x16x16xf32>
    %408 = vector.broadcast %406 : f32 to vector<2x16x16xf32>
    %409 = arith.mulf %408, %407 : vector<2x16x16xf32>
    %410 = arith.addf %405, %409 : vector<2x16x16xf32>
    %c75 = arith.constant 75 : index
    %411 = memref.load %arg2[%c75] : memref<98xf32, #tpu.memory_space<smem>>
    %412 = vector.extract_strided_slice %375 {offsets = [0, 3, 0], sizes = [2, 16, 16], strides = [1, 1, 1]} : vector<2x22x16xf32> to vector<2x16x16xf32>
    %413 = vector.broadcast %411 : f32 to vector<2x16x16xf32>
    %414 = arith.mulf %413, %412 : vector<2x16x16xf32>
    %415 = arith.addf %410, %414 : vector<2x16x16xf32>
    %c33 = arith.constant 33 : index
    %416 = memref.load %arg2[%c33] : memref<98xf32, #tpu.memory_space<smem>>
    %417 = vector.extract_strided_slice %374 {offsets = [0, 4, 0], sizes = [2, 16, 16], strides = [1, 1, 1]} : vector<2x22x16xf32> to vector<2x16x16xf32>
    %418 = vector.broadcast %416 : f32 to vector<2x16x16xf32>
    %419 = arith.mulf %418, %417 : vector<2x16x16xf32>
    %420 = arith.addf %415, %419 : vector<2x16x16xf32>
    %c82 = arith.constant 82 : index
    %421 = memref.load %arg2[%c82] : memref<98xf32, #tpu.memory_space<smem>>
    %422 = vector.extract_strided_slice %375 {offsets = [0, 4, 0], sizes = [2, 16, 16], strides = [1, 1, 1]} : vector<2x22x16xf32> to vector<2x16x16xf32>
    %423 = vector.broadcast %421 : f32 to vector<2x16x16xf32>
    %424 = arith.mulf %423, %422 : vector<2x16x16xf32>
    %425 = arith.addf %420, %424 : vector<2x16x16xf32>
    %c40 = arith.constant 40 : index
    %426 = memref.load %arg2[%c40] : memref<98xf32, #tpu.memory_space<smem>>
    %427 = vector.extract_strided_slice %374 {offsets = [0, 5, 0], sizes = [2, 16, 16], strides = [1, 1, 1]} : vector<2x22x16xf32> to vector<2x16x16xf32>
    %428 = vector.broadcast %426 : f32 to vector<2x16x16xf32>
    %429 = arith.mulf %428, %427 : vector<2x16x16xf32>
    %430 = arith.addf %425, %429 : vector<2x16x16xf32>
    %c89 = arith.constant 89 : index
    %431 = memref.load %arg2[%c89] : memref<98xf32, #tpu.memory_space<smem>>
    %432 = vector.extract_strided_slice %375 {offsets = [0, 5, 0], sizes = [2, 16, 16], strides = [1, 1, 1]} : vector<2x22x16xf32> to vector<2x16x16xf32>
    %433 = vector.broadcast %431 : f32 to vector<2x16x16xf32>
    %434 = arith.mulf %433, %432 : vector<2x16x16xf32>
    %435 = arith.addf %430, %434 : vector<2x16x16xf32>
    %c47 = arith.constant 47 : index
    %436 = memref.load %arg2[%c47] : memref<98xf32, #tpu.memory_space<smem>>
    %437 = vector.extract_strided_slice %374 {offsets = [0, 6, 0], sizes = [2, 16, 16], strides = [1, 1, 1]} : vector<2x22x16xf32> to vector<2x16x16xf32>
    %438 = vector.broadcast %436 : f32 to vector<2x16x16xf32>
    %439 = arith.mulf %438, %437 : vector<2x16x16xf32>
    %440 = arith.addf %435, %439 : vector<2x16x16xf32>
    %c96 = arith.constant 96 : index
    %441 = memref.load %arg2[%c96] : memref<98xf32, #tpu.memory_space<smem>>
    %442 = vector.extract_strided_slice %375 {offsets = [0, 6, 0], sizes = [2, 16, 16], strides = [1, 1, 1]} : vector<2x22x16xf32> to vector<2x16x16xf32>
    %443 = vector.broadcast %441 : f32 to vector<2x16x16xf32>
    %444 = arith.mulf %443, %442 : vector<2x16x16xf32>
    %445 = arith.addf %440, %444 : vector<2x16x16xf32>
    %446 = vector.extract_strided_slice %10 {offsets = [0, 0, 6], sizes = [2, 22, 16], strides = [1, 1, 1]} : vector<2x22x22xf32> to vector<2x22x16xf32>
    %447 = vector.extract_strided_slice %12 {offsets = [0, 0, 6], sizes = [2, 22, 16], strides = [1, 1, 1]} : vector<2x22x22xf32> to vector<2x22x16xf32>
    %c6 = arith.constant 6 : index
    %448 = memref.load %arg2[%c6] : memref<98xf32, #tpu.memory_space<smem>>
    %449 = vector.extract_strided_slice %446 {offsets = [0, 0, 0], sizes = [2, 16, 16], strides = [1, 1, 1]} : vector<2x22x16xf32> to vector<2x16x16xf32>
    %450 = vector.broadcast %448 : f32 to vector<2x16x16xf32>
    %451 = arith.mulf %450, %449 : vector<2x16x16xf32>
    %452 = arith.addf %445, %451 : vector<2x16x16xf32>
    %c55 = arith.constant 55 : index
    %453 = memref.load %arg2[%c55] : memref<98xf32, #tpu.memory_space<smem>>
    %454 = vector.extract_strided_slice %447 {offsets = [0, 0, 0], sizes = [2, 16, 16], strides = [1, 1, 1]} : vector<2x22x16xf32> to vector<2x16x16xf32>
    %455 = vector.broadcast %453 : f32 to vector<2x16x16xf32>
    %456 = arith.mulf %455, %454 : vector<2x16x16xf32>
    %457 = arith.addf %452, %456 : vector<2x16x16xf32>
    %c13 = arith.constant 13 : index
    %458 = memref.load %arg2[%c13] : memref<98xf32, #tpu.memory_space<smem>>
    %459 = vector.extract_strided_slice %446 {offsets = [0, 1, 0], sizes = [2, 16, 16], strides = [1, 1, 1]} : vector<2x22x16xf32> to vector<2x16x16xf32>
    %460 = vector.broadcast %458 : f32 to vector<2x16x16xf32>
    %461 = arith.mulf %460, %459 : vector<2x16x16xf32>
    %462 = arith.addf %457, %461 : vector<2x16x16xf32>
    %c62 = arith.constant 62 : index
    %463 = memref.load %arg2[%c62] : memref<98xf32, #tpu.memory_space<smem>>
    %464 = vector.extract_strided_slice %447 {offsets = [0, 1, 0], sizes = [2, 16, 16], strides = [1, 1, 1]} : vector<2x22x16xf32> to vector<2x16x16xf32>
    %465 = vector.broadcast %463 : f32 to vector<2x16x16xf32>
    %466 = arith.mulf %465, %464 : vector<2x16x16xf32>
    %467 = arith.addf %462, %466 : vector<2x16x16xf32>
    %c20 = arith.constant 20 : index
    %468 = memref.load %arg2[%c20] : memref<98xf32, #tpu.memory_space<smem>>
    %469 = vector.extract_strided_slice %446 {offsets = [0, 2, 0], sizes = [2, 16, 16], strides = [1, 1, 1]} : vector<2x22x16xf32> to vector<2x16x16xf32>
    %470 = vector.broadcast %468 : f32 to vector<2x16x16xf32>
    %471 = arith.mulf %470, %469 : vector<2x16x16xf32>
    %472 = arith.addf %467, %471 : vector<2x16x16xf32>
    %c69 = arith.constant 69 : index
    %473 = memref.load %arg2[%c69] : memref<98xf32, #tpu.memory_space<smem>>
    %474 = vector.extract_strided_slice %447 {offsets = [0, 2, 0], sizes = [2, 16, 16], strides = [1, 1, 1]} : vector<2x22x16xf32> to vector<2x16x16xf32>
    %475 = vector.broadcast %473 : f32 to vector<2x16x16xf32>
    %476 = arith.mulf %475, %474 : vector<2x16x16xf32>
    %477 = arith.addf %472, %476 : vector<2x16x16xf32>
    %c27 = arith.constant 27 : index
    %478 = memref.load %arg2[%c27] : memref<98xf32, #tpu.memory_space<smem>>
    %479 = vector.extract_strided_slice %446 {offsets = [0, 3, 0], sizes = [2, 16, 16], strides = [1, 1, 1]} : vector<2x22x16xf32> to vector<2x16x16xf32>
    %480 = vector.broadcast %478 : f32 to vector<2x16x16xf32>
    %481 = arith.mulf %480, %479 : vector<2x16x16xf32>
    %482 = arith.addf %477, %481 : vector<2x16x16xf32>
    %c76 = arith.constant 76 : index
    %483 = memref.load %arg2[%c76] : memref<98xf32, #tpu.memory_space<smem>>
    %484 = vector.extract_strided_slice %447 {offsets = [0, 3, 0], sizes = [2, 16, 16], strides = [1, 1, 1]} : vector<2x22x16xf32> to vector<2x16x16xf32>
    %485 = vector.broadcast %483 : f32 to vector<2x16x16xf32>
    %486 = arith.mulf %485, %484 : vector<2x16x16xf32>
    %487 = arith.addf %482, %486 : vector<2x16x16xf32>
    %c34 = arith.constant 34 : index
    %488 = memref.load %arg2[%c34] : memref<98xf32, #tpu.memory_space<smem>>
    %489 = vector.extract_strided_slice %446 {offsets = [0, 4, 0], sizes = [2, 16, 16], strides = [1, 1, 1]} : vector<2x22x16xf32> to vector<2x16x16xf32>
    %490 = vector.broadcast %488 : f32 to vector<2x16x16xf32>
    %491 = arith.mulf %490, %489 : vector<2x16x16xf32>
    %492 = arith.addf %487, %491 : vector<2x16x16xf32>
    %c83 = arith.constant 83 : index
    %493 = memref.load %arg2[%c83] : memref<98xf32, #tpu.memory_space<smem>>
    %494 = vector.extract_strided_slice %447 {offsets = [0, 4, 0], sizes = [2, 16, 16], strides = [1, 1, 1]} : vector<2x22x16xf32> to vector<2x16x16xf32>
    %495 = vector.broadcast %493 : f32 to vector<2x16x16xf32>
    %496 = arith.mulf %495, %494 : vector<2x16x16xf32>
    %497 = arith.addf %492, %496 : vector<2x16x16xf32>
    %c41 = arith.constant 41 : index
    %498 = memref.load %arg2[%c41] : memref<98xf32, #tpu.memory_space<smem>>
    %499 = vector.extract_strided_slice %446 {offsets = [0, 5, 0], sizes = [2, 16, 16], strides = [1, 1, 1]} : vector<2x22x16xf32> to vector<2x16x16xf32>
    %500 = vector.broadcast %498 : f32 to vector<2x16x16xf32>
    %501 = arith.mulf %500, %499 : vector<2x16x16xf32>
    %502 = arith.addf %497, %501 : vector<2x16x16xf32>
    %c90 = arith.constant 90 : index
    %503 = memref.load %arg2[%c90] : memref<98xf32, #tpu.memory_space<smem>>
    %504 = vector.extract_strided_slice %447 {offsets = [0, 5, 0], sizes = [2, 16, 16], strides = [1, 1, 1]} : vector<2x22x16xf32> to vector<2x16x16xf32>
    %505 = vector.broadcast %503 : f32 to vector<2x16x16xf32>
    %506 = arith.mulf %505, %504 : vector<2x16x16xf32>
    %507 = arith.addf %502, %506 : vector<2x16x16xf32>
    %c48 = arith.constant 48 : index
    %508 = memref.load %arg2[%c48] : memref<98xf32, #tpu.memory_space<smem>>
    %509 = vector.extract_strided_slice %446 {offsets = [0, 6, 0], sizes = [2, 16, 16], strides = [1, 1, 1]} : vector<2x22x16xf32> to vector<2x16x16xf32>
    %510 = vector.broadcast %508 : f32 to vector<2x16x16xf32>
    %511 = arith.mulf %510, %509 : vector<2x16x16xf32>
    %512 = arith.addf %507, %511 : vector<2x16x16xf32>
    %c97 = arith.constant 97 : index
    %513 = memref.load %arg2[%c97] : memref<98xf32, #tpu.memory_space<smem>>
    %514 = vector.extract_strided_slice %447 {offsets = [0, 6, 0], sizes = [2, 16, 16], strides = [1, 1, 1]} : vector<2x22x16xf32> to vector<2x16x16xf32>
    %515 = vector.broadcast %513 : f32 to vector<2x16x16xf32>
    %516 = arith.mulf %515, %514 : vector<2x16x16xf32>
    %517 = arith.addf %512, %516 : vector<2x16x16xf32>
    %518 = arith.negf %517 : vector<2x16x16xf32>
    %519 = math.exp %518 : vector<2x16x16xf32>
    %cst_8 = arith.constant 1.000000e+00 : f32
    %520 = vector.broadcast %cst_8 : f32 to vector<2x16x16xf32>
    %521 = arith.addf %520, %519 : vector<2x16x16xf32>
    %522 = arith.divf %520, %521 : vector<2x16x16xf32>
    %523 = vector.shape_cast %522 : vector<2x16x16xf32> to vector<2x256xf32>
    %524 = vector.shape_cast %523 : vector<2x256xf32> to vector<2x1x256xf32>
    %c0_9 = arith.constant 0 : index
    %c0_10 = arith.constant 0 : index
    %c0_11 = arith.constant 0 : index
    %525 = vector.load %arg4[%c0_9, %c0_10, %c0_11] : memref<2x1x256xf32, #tpu.memory_space<vmem>>, vector<2x1x256xf32>
    tpu.vector_store %arg4[%c0_9, %c0_10, %c0_11], %524 {strides = array<i32>} : memref<2x1x256xf32, #tpu.memory_space<vmem>>, vector<2x1x256xf32>,
    %526 = vector.shape_cast %523 : vector<2x256xf32> to vector<2x1x256xf32>
    %527 = vector.broadcast %526 : vector<2x1x256xf32> to vector<2x4x256xf32>
    %528 = arith.mulf %0, %527 : vector<2x4x256xf32>
    %c0_12 = arith.constant 0 : index
    %c0_13 = arith.constant 0 : index
    %c0_14 = arith.constant 0 : index
    %529 = vector.load %arg3[%c0_12, %c0_13, %c0_14] : memref<2x4x256xf32, #tpu.memory_space<vmem>>, vector<2x4x256xf32>
    tpu.vector_store %arg3[%c0_12, %c0_13, %c0_14], %528 {strides = array<i32>} : memref<2x4x256xf32, #tpu.memory_space<vmem>>, vector<2x4x256xf32>,
    return
  }
  func.func @transform_0(%arg0: i32) -> (i32, i32, i32) {
    %c0_i32 = arith.constant 0 : i32
    %c0_i32_0 = arith.constant 0 : i32
    %c0_i32_1 = arith.constant 0 : i32
    return %arg0, %c0_i32, %c0_i32_0 : i32, i32, i32
  }
  func.func @transform_1(%arg0: i32) -> i32 {
    %c0_i32 = arith.constant 0 : i32
    %c0_i32_0 = arith.constant 0 : i32
    return %c0_i32 : i32
  }
  func.func @transform_2(%arg0: i32) -> (i32, i32, i32) {
    %c0_i32 = arith.constant 0 : i32
    %c0_i32_0 = arith.constant 0 : i32
    %c0_i32_1 = arith.constant 0 : i32
    return %arg0, %c0_i32, %c0_i32_0 : i32, i32, i32
  }
  func.func @transform_3(%arg0: i32) -> (i32, i32, i32) {
    %c0_i32 = arith.constant 0 : i32
    %c0_i32_0 = arith.constant 0 : i32
    %c0_i32_1 = arith.constant 0 : i32
    return %arg0, %c0_i32, %c0_i32_0 : i32, i32, i32
  }
}

</mosaic_0001>

<bundles_post_ra>
// kernel: tpu_custom_call.1
= control target key start
LH: loop header
LB: loop body
LE: loop exit
PB: predicated region body
PF: predicated region fallthrough
CT: control target
= control target key end

     0   :  { %9 = vsyncpa [#allocation3], 0  ;;  %s9681_s0 = inlined_call_operand.hbm [shape: f32[2,4,256], index: 0, kind: input, shape index: {}]   ;;  %s9682_s1 = inlined_call_operand.vmem [shape: f32[98], index: 1, kind: input, shape index: {}]   ;;  %s9683_s2 = inlined_call_operand.hbm [shape: f32[2,4,256], index: 2, kind: output, shape index: {0}]   ;;  %s9684_s3 = inlined_call_operand.hbm [shape: f32[2,1,256], index: 3, kind: output, shape index: {1}]  }
   0x1   :  { %10 = vsyncpa [#allocation5], 0 }
   0x2   :  { %11 = vsyncpa [#allocation4], 0 }
   0x3   :  { %12 = vsyncpa [#allocation9], 0  ;;  %s4939_s12 = smov [#allocation2]   ;;  %s31_s16 = sshll.u32 %s9682_s1, 4  ;;  %s32_s16 = int_to_ptr.vmem [resolvable:$true] %s31_s16 }
   0x4   :  { %s18_s13 = sshll.u32 %s4939_s12, 4  ;;  %s4853_s19 = scalar_lea.hbm %s9681_s0, 256  ;;  %s19_s13 = int_to_ptr.vmem [resolvable:$true] %s18_s13 }
   0x5   :  { %p4854_p0 = scmp.ne.s32.totalorder %s9681_s0, %s4853_s19  ;;  %p4857_p1 = scmp.lt.u32.totalorder %s4853_s19, %s9681_s0 }
   0x7   :  { %p4859_p2 = pnand %p4857_p1, %p4854_p0 }
   0x9   :  { %4862 = shalt.err (!%p4859_p2)
}
   0xa   :  { %s4863_s24 = scalar_lea.vmem %s19_s13, 256  ;;  %p4868_p4 = scmp.lt.s32.totalorder %s19_s13, %s19_s13 }
   0xb   :  { %p4864_p3 = scmp.ne.s32.totalorder %s19_s13, %s4863_s24  ;;  %p4869_p5 = scmp.lt.s32.totalorder %s4863_s24, %s4863_s24 }
   0xd   :  { %p4870_p6 = por %p4869_p5, %p4868_p4 }
   0xf   :  { %p4871_p7 = pnand %p4870_p6, %p4864_p3 }
  0x11   :  { %4874 = shalt.err (!%p4871_p7)
}
  0x12   :  { %s4940_s1 = smov 128   ;;  %s4941_s25 = smov 8  }
  0x13   :  { %24 = dma.hbm_to_vmem [thread:$0]  %s9681_s0, 256, %s19_s13, [#allocation3], %s4940_s1, %s4940_s1, %s4941_s25  }
  0x14   :  { %s4875_s28 = scalar_lea.vmem %s32_s16, 16  ;;  %p4880_p9 = scmp.lt.s32.totalorder %s32_s16, %s32_s16 }
  0x15   :  { %p4876_p8 = scmp.ne.s32.totalorder %s32_s16, %s4875_s28  ;;  %p4881_p10 = scmp.lt.s32.totalorder %s4875_s28, %s4875_s28 }
  0x17   :  { %p4882_p11 = por %p4881_p10, %p4880_p9 }
  0x19   :  { %p4883_p12 = pnand %p4882_p11, %p4876_p8 }
  0x1b   :  { %4886 = shalt.err (!%p4883_p12)
}
  0x1c   :  { %s4942_s29 = smov [#allocation6]  }
  0x1d   :  { %34 = dma.vmem_to_smem %s32_s16, 16, %s4942_s29, [#allocation5]  }
  0x1e   :  { %4931 = dma.done.wait [#allocation3], 256  }
  0x1f   :  { %4932 = vsyncadd [#allocation3], 4294967040 }
  0x20   :  { %4933 = dma.done.wait [#allocation5], 16  }
  0x21   :  { %4934 = vsyncadd [#allocation5], 4294967280 }
  0x22   :  { %41 = sfence }
  0x23   :  { %v5002_v0 = vld [vmem:[#allocation2] sm:$0xff]  ;;  %vm50_vm0 = vcmask 1043456   ;;  %v43_v1 = vld [vmem:[#allocation2 + $0x8] sm:$0xff]  ;;  %vm173_vm1 = vcmask 1041409   ;;  %s4943_s0 = smov 96   ;;  %s4944_s30 = smov 112  }
  0x24   :  { %v51_v2 = vsel %vm50_vm0, %v5002_v0, 0.0  ;;  %v65_v3 = vsel %vm50_vm0, %v43_v1, 0.0  ;;  %v5007_v6 = vcombine.high %v43_v1, %v43_v1  ;;  %v5011_v9 = vcombine.high %v5002_v0, %v5002_v0  ;;  %s4945_s4 = smov 80   ;;  %s4946_s5 = smov 64  }
  0x25   :  { %v52_v4 = vrot.slane %v51_v2, 4  ;;  %v66_v5 = vrot.slane %v65_v3, 4  ;;  %s4947_s6 = smov 48   ;;  %s4948_s7 = smov 32   ;;  %v98_v40 = vsel %vm50_vm0, %v43_v1, -inf  ;;  %v84_v41 = vsel %vm50_vm0, %v5002_v0, -inf }
  0x26   :  { %v72_v12 = vsel %vm50_vm0, %v5007_v6, 0.0  ;;  %v58_v15 = vsel %vm50_vm0, %v5011_v9, 0.0  ;;  %s4949_s8 = smov 16   ;;  %v99_v42 = vrot.slane %v98_v40, 4  ;;  %v85_v43 = vrot.slane %v84_v41, 4  ;;  %s4952_s9 = smov 3  }
  0x27   :  { %v53_v7 = vadd.f32 %v52_v4, %v51_v2  ;;  %v67_v8 = vadd.f32 %v66_v5, %v65_v3  ;;  %v73_v16 = vrot.slane %v72_v12, 4  ;;  %v59_v19 = vrot.slane %v58_v15, 4  ;;  %s4721_s10 = sld [smem:[#allocation6 + $0x32]]  ;;  %s4735_s11 = sld [smem:[#allocation6 + $0x33]] }
  0x28   :  { %v100_v44 = vmax.f32 %v98_v40, %v99_v42  ;;  %v86_v45 = vmax.f32 %v84_v41, %v85_v43  ;;  %v105_v56 = vsel %vm50_vm0, %v5007_v6, -inf  ;;  %v91_v57 = vsel %vm50_vm0, %v5011_v9, -inf  ;;  %s4953_s12 = smov 127   ;;  %s4720_s13 = sld [smem:[#allocation6 + $0x1]] }
  0x29   :  { %v54_v10 = vrot.slane %v53_v7, 2  ;;  %v68_v11 = vrot.slane %v67_v8, 2  ;;  %v74_v22 = vadd.f32 %v73_v16, %v72_v12  ;;  %v60_v25 = vadd.f32 %v59_v19, %v58_v15  ;;  %s4954_s14 = smov 126   ;;  %s4734_s15 = sld [smem:[#allocation6 + $0x2]] }
  0x2a   :  { %v101_v46 = vrot.slane %v100_v44, 2  ;;  %v87_v47 = vrot.slane %v86_v45, 2  ;;  %v106_v58 = vrot.slane %v105_v56, 4  ;;  %v92_v59 = vrot.slane %v91_v57, 4  ;;  %s4723_s16 = sld [smem:[#allocation6 + $0x39]]  ;;  %s4725_s17 = sld [smem:[#allocation6 + $0x40]] }
  0x2b   :  { %v55_v13 = vadd.f32 %v54_v10, %v53_v7  ;;  %v69_v14 = vadd.f32 %v68_v11, %v67_v8  ;;  %v75_v27 = vrot.slane %v74_v22, 2  ;;  %v61_v29 = vrot.slane %v60_v25, 2  ;;  %s4727_s18 = sld [smem:[#allocation6 + $0x47]]  ;;  %s4729_s19 = sld [smem:[#allocation6 + $0x4e]] }
  0x2c   :  { %v102_v48 = vmax.f32 %v100_v44, %v101_v46  ;;  %v88_v49 = vmax.f32 %v86_v45, %v87_v47  ;;  %v107_v60 = vmax.f32 %v105_v56, %v106_v58  ;;  %v93_v61 = vmax.f32 %v91_v57, %v92_v59  ;;  %s4731_s20 = sld [smem:[#allocation6 + $0x55]]  ;;  %s4733_s21 = sld [smem:[#allocation6 + $0x5c]] }
  0x2d   :  { %v56_v17 = vrot.slane %v55_v13, 1  ;;  %v70_v18 = vrot.slane %v69_v14, 1  ;;  %v76_v30 = vadd.f32 %v75_v27, %v74_v22  ;;  %v62_v31 = vadd.f32 %v61_v29, %v60_v25  ;;  %s4722_s22 = sld [smem:[#allocation6 + $0x8]]  ;;  %s4724_s23 = sld [smem:[#allocation6 + $0xf]] }
  0x2e   :  { %v103_v50 = vrot.slane %v102_v48, 1  ;;  %v89_v51 = vrot.slane %v88_v49, 1  ;;  %v108_v62 = vrot.slane %v107_v60, 2  ;;  %v94_v63 = vrot.slane %v93_v61, 2  ;;  %s4726_s24 = sld [smem:[#allocation6 + $0x16]]  ;;  %s4728_s26 = sld [smem:[#allocation6 + $0x1d]] }
  0x2f   :  { %v57_v20 = vadd.f32 %v56_v17, %v55_v13  ;;  %v71_v21 = vadd.f32 %v70_v18, %v69_v14  ;;  %v77_v32 = vrot.slane %v76_v30, 1  ;;  %v63_v33 = vrot.slane %v62_v31, 1  ;;  %s4730_s27 = sld [smem:[#allocation6 + $0x24]]  ;;  %s4732_s28 = sld [smem:[#allocation6 + $0x2b]] }
  0x30   :  { %v104_v52 = vmax.f32 %v102_v48, %v103_v50  ;;  %v90_v53 = vmax.f32 %v88_v49, %v89_v51  ;;  %v109_v0 = vmax.f32 %v107_v60, %v108_v62  ;;  %v95_v1 = vmax.f32 %v93_v61, %v94_v63  ;;  %s4736_s29 = sld [smem:[#allocation6 + $0x9]] }
  0x31   :  { %v80_v23 = vmul.f32 0.25, %v57_v20  ;;  %v82_v24 = vmul.f32 0.25, %v71_v21  ;;  %v78_v34 = vadd.f32 %v77_v32, %v76_v30  ;;  %v64_v35 = vadd.f32 %v63_v33, %v62_v31 }
  0x32   :  { %v381_v54 = vrot.slane %v104_v52, 7  ;;  %v110_v2 = vrot.slane %v109_v0, 1  ;;  %v96_v3 = vrot.slane %v95_v1, 1  ;;  %v4950_v31 = vmov 1983009808  }
  0x33   :  { %118 = vrot.lane.b32.xlu1 %v80_v23, %s4943_s0  ;;  %114 = vrot.lane.b32.xlu0 %v80_v23, %s4944_s30  ;;  %v172_v26 = vrot.slane %v82_v24, 7  ;;  %v83_v36 = vmul.f32 0.25, %v78_v34  ;;  %v81_v37 = vmul.f32 0.25, %v64_v35  ;;  %v223_v32 = vunpack.c.l.s4 %v4950_v31 }
  0x34   :  { %v5053_v55 = vsel %vm173_vm1, %v381_v54, %v90_v53  ;;  %v111_v4 = vmax.f32 %v109_v0, %v110_v2  ;;  %v97_v5 = vmax.f32 %v95_v1, %v96_v3  ;;  %v9685_v33 = vlaneseq }
  0x35   :  { %v5020_v28 = vsel %vm173_vm1, %v172_v26, %v80_v23  ;;  %v189_v38 = vrot.slane %v83_v36, 7  ;;  %v224_v44 = vunpack.c.0.s8 %v223_v32  ;;  %v4951_v0 = vmov 1934713408  }
  0x36   :  { %v397_v6 = vrot.slane %v111_v4, 7  ;;  %v5094_v45 = vshrl.u32 %v9685_v33, 7  ;;  %v255_v1 = vunpack.c.l.s4 %v4951_v0  ;;  %vm533_vm2 = vcmask 1042432  }
  0x37   :  { %120 = vrot.lane.b32.xlu1 %v82_v24, %s4943_s0  ;;  %116 = vrot.lane.b32.xlu0 %v82_v24, %s4944_s30  ;;  %v5033_v39 = vsel %vm173_vm1, %v189_v38, %v81_v37  ;;  %vm570_vm3 = vcmask 23552   ;;  %vm577_vm4 = vcmask 154624   ;;  %vm670_vm5 = vcmask 1046528  }
  0x38   :  { %v5074_v7 = vsel %vm173_vm1, %v397_v6, %v97_v5  ;;  %9785 = vst [vmem:[#allocation14_spill] sm:$0xff] %v5094_v45  ;;  %v5104_v59 = vsub.s32 %v224_v44, %v5094_v45  ;;  %vm735_vm6 = vcmask 1045504   ;;  %vm800_vm7 = vcmask 1044480  }
  0x39   :  { %vm993_vm8 = vcmask 1041408   ;;  %vm4568_vm9 = vcmask 130048   ;;  %vm4571_vm10 = vcmask 261120   ;;  %vm4574_vm11 = vcmask 392192  }
  0x3a   :  { %9786 = vst [vmem:[#allocation15_spill] sm:$0xff] %v5104_v59  ;;  %vm4577_vm12 = vcmask 523264   ;;  %vm4580_vm13 = vcmask 654336   ;;  %vm4583_vm14 = vcmask 785408   ;;  %vm4586_vm15 = vcmask 916480  }
  0x3b   :  { %124 = vrot.lane.b32.xlu1 %v82_v24, %s4945_s4  ;;  %122 = vrot.lane.b32.xlu0 %v80_v23, %s4945_s4 }
  0x3f   :  { %128 = vrot.lane.b32.xlu1 %v82_v24, %s4946_s5  ;;  %126 = vrot.lane.b32.xlu0 %v80_v23, %s4946_s5 }
  0x43   :  { %132 = vrot.lane.b32.xlu1 %v82_v24, %s4947_s6  ;;  %130 = vrot.lane.b32.xlu0 %v80_v23, %s4947_s6 }
  0x47   :  { %136 = vrot.lane.b32.xlu1 %v82_v24, %s4948_s7  ;;  %134 = vrot.lane.b32.xlu0 %v80_v23, %s4948_s7 }
  0x4b   :  { %140 = vrot.lane.b32.xlu1 %v82_v24, %s4949_s8  ;;  %138 = vrot.lane.b32.xlu0 %v80_v23, %s4949_s8 }
  0x4f   :  { %146 = vrot.lane.b32.xlu1 %v83_v36, %s4944_s30  ;;  %144 = vrot.lane.b32.xlu0 %v81_v37, %s4944_s30 }
  0x53   :  { %150 = vrot.lane.b32.xlu1 %v83_v36, %s4943_s0  ;;  %148 = vrot.lane.b32.xlu0 %v81_v37, %s4943_s0 }
  0x57   :  { %154 = vrot.lane.b32.xlu1 %v83_v36, %s4945_s4  ;;  %152 = vrot.lane.b32.xlu0 %v81_v37, %s4945_s4 }
  0x5b   :  { %158 = vrot.lane.b32.xlu1 %v83_v36, %s4946_s5  ;;  %156 = vrot.lane.b32.xlu0 %v81_v37, %s4946_s5 }
  0x5f   :  { %162 = vrot.lane.b32.xlu1 %v83_v36, %s4947_s6  ;;  %160 = vrot.lane.b32.xlu0 %v81_v37, %s4947_s6 }
  0x63   :  { %166 = vrot.lane.b32.xlu1 %v83_v36, %s4948_s7  ;;  %164 = vrot.lane.b32.xlu0 %v81_v37, %s4948_s7 }
  0x67   :  { %170 = vrot.lane.b32.xlu1 %v83_v36, %s4949_s8  ;;  %168 = vrot.lane.b32.xlu0 %v81_v37, %s4949_s8 }
  0x6b   :  { %325 = vrot.lane.b32.xlu1 %v104_v52, %s4944_s30  ;;  %323 = vrot.lane.b32.xlu0 %v90_v53, %s4944_s30 }
  0x6f   :  { %329 = vrot.lane.b32.xlu1 %v104_v52, %s4943_s0  ;;  %327 = vrot.lane.b32.xlu0 %v90_v53, %s4943_s0 }
  0x73   :  { %333 = vrot.lane.b32.xlu1 %v104_v52, %s4945_s4  ;;  %331 = vrot.lane.b32.xlu0 %v90_v53, %s4945_s4 }
  0x77   :  { %337 = vrot.lane.b32.xlu1 %v104_v52, %s4946_s5  ;;  %335 = vrot.lane.b32.xlu0 %v90_v53, %s4946_s5 }
  0x7b   :  { %341 = vrot.lane.b32.xlu1 %v104_v52, %s4947_s6  ;;  %339 = vrot.lane.b32.xlu0 %v90_v53, %s4947_s6 }
  0x7f   :  { %345 = vrot.lane.b32.xlu1 %v104_v52, %s4948_s7  ;;  %343 = vrot.lane.b32.xlu0 %v90_v53, %s4948_s7 }
  0x83   :  { %349 = vrot.lane.b32.xlu1 %v104_v52, %s4949_s8  ;;  %347 = vrot.lane.b32.xlu0 %v90_v53, %s4949_s8 }
  0x87   :  { %355 = vrot.lane.b32.xlu1 %v111_v4, %s4944_s30  ;;  %353 = vrot.lane.b32.xlu0 %v97_v5, %s4944_s30 }
  0x8b   :  { %359 = vrot.lane.b32.xlu1 %v111_v4, %s4943_s0  ;;  %357 = vrot.lane.b32.xlu0 %v97_v5, %s4943_s0 }
  0x8f   :  { %363 = vrot.lane.b32.xlu1 %v111_v4, %s4945_s4  ;;  %361 = vrot.lane.b32.xlu0 %v97_v5, %s4945_s4 }
  0x93   :  { %367 = vrot.lane.b32.xlu1 %v111_v4, %s4946_s5  ;;  %365 = vrot.lane.b32.xlu0 %v97_v5, %s4946_s5 }
  0x97   :  { %371 = vrot.lane.b32.xlu1 %v111_v4, %s4947_s6  ;;  %369 = vrot.lane.b32.xlu0 %v97_v5, %s4947_s6 }
  0x9b   :  { %375 = vrot.lane.b32.xlu1 %v111_v4, %s4948_s7  ;;  %373 = vrot.lane.b32.xlu0 %v97_v5, %s4948_s7 }
  0x9f   :  { %379 = vrot.lane.b32.xlu1 %v111_v4, %s4949_s8  ;;  %377 = vrot.lane.b32.xlu0 %v97_v5, %s4949_s8 }
  0xa5   :  { %v119_v8 = vpop.permute.xlu1 %118  ;;  %v115_v9 = vpop.permute.xlu0 %114 }
  0xa9   :  { %v121_v10 = vpop.permute.xlu1 %120  ;;  %v117_v11 = vpop.permute.xlu0 %116 }
  0xaa   :  { %v177_v38 = vrot.slane %v121_v10, 7  ;;  %v175_v40 = vrot.slane %v117_v11, 7 }
  0xac   :  { %v178_v54 = vsel %vm173_vm1, %v177_v38, %v119_v8  ;;  %v176_v56 = vsel %vm173_vm1, %v175_v40, %v115_v9 }
  0xad   :  { %v125_v12 = vpop.permute.xlu1 %124  ;;  %v123_v13 = vpop.permute.xlu0 %122  ;;  %v221_v6 = vcombine.low %v5020_v28, %v178_v54 }
  0xae   :  { %v179_v30 = vrot.slane %v125_v12, 7 }
  0xaf   :  { %v228_v28 = vrot.slane %v221_v6, %v5104_v59 }
  0xb0   :  { %v180_v46 = vsel %vm173_vm1, %v179_v30, %v123_v13 }
  0xb1   :  { %v129_v14 = vpop.permute.xlu1 %128  ;;  %v127_v15 = vpop.permute.xlu0 %126  ;;  %v229_v60 = vcombine.low %v176_v56, %v180_v46 }
  0xb2   :  { %v181_v41 = vrot.slane %v129_v14, 7 }
  0xb3   :  { %v236_v12 = vrot.slane %v229_v60, %v5104_v59 }
  0xb4   :  { %v182_v57 = vsel %vm173_vm1, %v181_v41, %v127_v15 }
  0xb5   :  { %v133_v16 = vpop.permute.xlu1 %132  ;;  %v131_v17 = vpop.permute.xlu0 %130 }
  0xb6   :  { %v183_v36 = vrot.slane %v133_v16, 7 }
  0xb8   :  { %v184_v49 = vsel %vm173_vm1, %v183_v36, %v131_v17  ;;  %v256_v17 = vunpack.c.0.s8 %v255_v1 }
  0xb9   :  { %v137_v18 = vpop.permute.xlu1 %136  ;;  %v135_v19 = vpop.permute.xlu0 %134 }
  0xba   :  { %v185_v37 = vrot.slane %v137_v18, 7  ;;  %v5121_v30 = vsub.s32 %v256_v17, %v5094_v45 }
  0xbc   :  { %v186_v50 = vsel %vm173_vm1, %v185_v37, %v135_v19  ;;  %9787 = vst [vmem:[#allocation16_spill] sm:$0xff] %v5121_v30 }
  0xbd   :  { %v141_v20 = vpop.permute.xlu1 %140  ;;  %v139_v21 = vpop.permute.xlu0 %138  ;;  %v237_v61 = vcombine.low %v182_v57, %v186_v50 }
  0xbe   :  { %v187_v29 = vrot.slane %v141_v20, 7 }
  0xbf   :  { %v244_v13 = vrot.slane %v237_v61, %v5104_v59 }
  0xc0   :  { %v188_v42 = vsel %vm173_vm1, %v187_v29, %v139_v21 }
  0xc1   :  { %v147_v22 = vpop.permute.xlu1 %146  ;;  %v145_v23 = vpop.permute.xlu0 %144  ;;  %v245_v53 = vcombine.low %v184_v49, %v188_v42 }
  0xc2   :  { %v191_v51 = vrot.slane %v147_v22, 7 }
  0xc3   :  { %v252_v8 = vrot.slane %v245_v53, %v5104_v59 }
  0xc4   :  { %v192_v2 = vsel %vm173_vm1, %v191_v51, %v145_v23 }
  0xc5   :  { %v151_v24 = vpop.permute.xlu1 %150  ;;  %v149_v25 = vpop.permute.xlu0 %148  ;;  %v261_v20 = vcombine.low %v244_v13, %v252_v8 }
  0xc6   :  { %v193_v52 = vrot.slane %v151_v24, 7 }
  0xc8   :  { %v194_v3 = vsel %vm173_vm1, %v193_v52, %v149_v25  ;;  %v253_v25 = vcombine.low %v228_v28, %v236_v12 }
  0xc9   :  { %v155_v26 = vpop.permute.xlu1 %154  ;;  %v153_v27 = vpop.permute.xlu0 %152  ;;  %v271_v14 = vcombine.low %v5033_v39, %v194_v3 }
  0xca   :  { %v195_v43 = vrot.slane %v155_v26, 7  ;;  %v260_v40 = vrot.slane %v253_v25, %v5121_v30 }
  0xcb   :  { %v278_v26 = vrot.slane %v271_v14, %v5104_v59 }
  0xcc   :  { %v196_v58 = vsel %vm173_vm1, %v195_v43, %v153_v27 }
  0xcd   :  { %v159_v34 = vpop.permute.xlu1 %158  ;;  %v157_v35 = vpop.permute.xlu0 %156  ;;  %v279_v9 = vcombine.low %v192_v2, %v196_v58 }
  0xce   :  { %v197_v4 = vrot.slane %v159_v34, 7 }
  0xcf   :  { %v286_v21 = vrot.slane %v279_v9, %v5104_v59 }
  0xd0   :  { %v198_v18 = vsel %vm173_vm1, %v197_v4, %v157_v35  ;;  %v268_v35 = vrot.slane %v261_v20, %v5121_v30 }
  0xd1   :  { %v163_v47 = vpop.permute.xlu1 %162  ;;  %v161_v48 = vpop.permute.xlu0 %160  ;;  %v303_v31 = vcombine.low %v278_v26, %v286_v21 }
  0xd2   :  { %v199_v10 = vrot.slane %v163_v47, 7  ;;  %v270_v41 = vcombine.high %v260_v40, %v268_v35  ;;  %v269_v42 = vcombine.low %v260_v40, %v268_v35 }
  0xd3   :  { %v310_v43 = vrot.slane %v303_v31, %v5121_v30 }
  0xd4   :  { %v200_v23 = vsel %vm173_vm1, %v199_v10, %v161_v48  ;;  %v537_v50 = vrot.slane %v270_v41, 5  ;;  %v534_v51 = vrot.slane %v269_v42, 5 }
  0xd5   :  { %v167_v62 = vpop.permute.xlu1 %166  ;;  %v165_v63 = vpop.permute.xlu0 %164 }
  0xd6   :  { %v201_v5 = vrot.slane %v167_v62, 7 }
  0xd8   :  { %v202_v11 = vsel %vm173_vm1, %v201_v5, %v165_v63 }
  0xd9   :  { %v171_v15 = vpop.permute.xlu1 %170  ;;  %v169_v16 = vpop.permute.xlu0 %168  ;;  %v287_v22 = vcombine.low %v198_v18, %v202_v11 }
  0xda   :  { %v203_v19 = vrot.slane %v171_v15, 7 }
  0xdb   :  { %v294_v32 = vrot.slane %v287_v22, %v5104_v59 }
  0xdc   :  { %v204_v24 = vsel %vm173_vm1, %v203_v19, %v169_v16 }
  0xdd   :  { %v295_v39 = vcombine.low %v200_v23, %v204_v24  ;;  %v326_v27 = vpop.permute.xlu1 %325  ;;  %v324_v29 = vpop.permute.xlu0 %323 }
  0xde   :  { %v383_v63 = vrot.slane %v326_v27, 7 }
  0xdf   :  { %v302_v34 = vrot.slane %v295_v39, %v5104_v59 }
  0xe0   :  { %v384_v4 = vsel %vm173_vm1, %v383_v63, %v324_v29 }
  0xe1   :  { %v311_v36 = vcombine.low %v294_v32, %v302_v34  ;;  %v330_v37 = vpop.permute.xlu1 %329  ;;  %v328_v38 = vpop.permute.xlu0 %327 }
  0xe2   :  { %v385_v0 = vrot.slane %v330_v37, 7 }
  0xe3   :  { %v318_v44 = vrot.slane %v311_v36, %v5121_v30 }
  0xe4   :  { %v386_v5 = vsel %vm173_vm1, %v385_v0, %v328_v38 }
  0xe5   :  { %v334_v46 = vpop.permute.xlu1 %333  ;;  %v332_v47 = vpop.permute.xlu0 %331  ;;  %v319_v48 = vcombine.low %v310_v43, %v318_v44  ;;  %v320_v49 = vcombine.high %v310_v43, %v318_v44  ;;  %v429_v12 = vcombine.low %v5053_v55, %v386_v5 }
  0xe6   :  { %v387_v60 = vrot.slane %v334_v46, 7 }
  0xe7   :  { %v5129_v52 = vrot.slane %v319_v48, 5  ;;  %v5131_v53 = vrot.slane %v320_v49, 5  ;;  %v436_v20 = vrot.slane %v429_v12, %v5104_v59  ;;  %v544_v48 = vsel %vm533_vm2, 0.0, %v534_v51 }
  0xe8   :  { %v388_v1 = vsel %vm173_vm1, %v387_v60, %v332_v47  ;;  %v545_v47 = vsel %vm533_vm2, 0.0, %v537_v50 }
  0xe9   :  { %v338_v54 = vpop.permute.xlu1 %337  ;;  %v336_v56 = vpop.permute.xlu0 %335  ;;  %v5135_v57 = vsel %vm533_vm2, %v534_v51, %v5129_v52  ;;  %v5139_v58 = vsel %vm533_vm2, %v537_v50, %v5131_v53  ;;  %v437_v9 = vcombine.low %v384_v4, %v388_v1 }
  0xea   :  { %v389_v6 = vrot.slane %v338_v54, 7 }
  0xeb   :  { %v444_v17 = vrot.slane %v437_v9, %v5104_v59 }
  0xec   :  { %v390_v15 = vsel %vm173_vm1, %v389_v6, %v336_v56 }
  0xed   :  { %v342_v61 = vpop.permute.xlu1 %341  ;;  %v340_v62 = vpop.permute.xlu0 %339  ;;  %v461_v24 = vcombine.low %v436_v20, %v444_v17 }
  0xee   :  { %v391_v10 = vrot.slane %v342_v61, 7 }
  0xef   :  { %v468_v29 = vrot.slane %v461_v24, %v5121_v30 }
  0xf0   :  { %v392_v19 = vsel %vm173_vm1, %v391_v10, %v340_v62 }
  0xf1   :  { %v346_v2 = vpop.permute.xlu1 %345  ;;  %v344_v3 = vpop.permute.xlu0 %343 }
  0xf2   :  { %v393_v8 = vrot.slane %v346_v2, 7 }
  0xf4   :  { %v394_v11 = vsel %vm173_vm1, %v393_v8, %v344_v3 }
  0xf5   :  { %v350_v13 = vpop.permute.xlu1 %349  ;;  %v348_v14 = vpop.permute.xlu0 %347  ;;  %v445_v18 = vcombine.low %v390_v15, %v394_v11 }
  0xf6   :  { %v395_v16 = vrot.slane %v350_v13, 7 }
  0xf7   :  { %v452_v55 = vrot.slane %v445_v18, %v5104_v59 }
  0xf8   :  { %v396_v28 = vsel %vm173_vm1, %v395_v16, %v348_v14 }
  0xf9   :  { %v453_v21 = vcombine.low %v392_v19, %v396_v28  ;;  %v356_v22 = vpop.permute.xlu1 %355  ;;  %v354_v23 = vpop.permute.xlu0 %353 }
  0xfa   :  { %v399_v54 = vrot.slane %v356_v22, 7 }
  0xfb   :  { %v460_v25 = vrot.slane %v453_v21, %v5104_v59 }
  0xfc   :  { %v400_v63 = vsel %vm173_vm1, %v399_v54, %v354_v23  ;;  %v5230_v54 = vstv %s4734_s15  ;;  %s4741_s15 = sld [smem:[#allocation6 + $0x48]] }
  0xfd   :  { %v469_v26 = vcombine.low %v452_v55, %v460_v25  ;;  %v360_v39 = vpop.permute.xlu1 %359  ;;  %v358_v27 = vpop.permute.xlu0 %357 }
  0xfe   :  { %v401_v56 = vrot.slane %v360_v39, 7  ;;  %v546_v39 = vsel %vm533_vm2, %v5129_v52, 0.0 }
  0xff   :  { %v476_v31 = vrot.slane %v469_v26, %v5121_v30 }
 0x100   :  { %v402_v0 = vsel %vm173_vm1, %v401_v56, %v358_v27  ;;  %v547_v27 = vsel %vm533_vm2, %v5131_v53, 0.0  ;;  %v5233_v56 = vstv %s4723_s16  ;;  %s4743_s16 = sld [smem:[#allocation6 + $0x4f]] }
 0x101   :  { %v364_v32 = vpop.permute.xlu1 %363  ;;  %v362_v34 = vpop.permute.xlu0 %361  ;;  %v478_v35 = vcombine.high %v468_v29, %v476_v31  ;;  %v477_v36 = vcombine.low %v468_v29, %v476_v31  ;;  %v479_v4 = vcombine.low %v5074_v7, %v402_v0 }
 0x102   :  { %v403_v44 = vrot.slane %v364_v32, 7  ;;  %v1071_v32 = vstv %s4721_s10  ;;  %s4738_s10 = sld [smem:[#allocation6 + $0x10]] }
 0x103   :  { %v591_v37 = vrot.slane %v478_v35, 5  ;;  %v588_v38 = vrot.slane %v477_v36, 5  ;;  %v486_v14 = vrot.slane %v479_v4, %v5104_v59  ;;  %v5206_v36 = vstv %s4735_s11  ;;  %s4739_s11 = sld [smem:[#allocation6 + $0x41]] }
 0x104   :  { %v404_v60 = vsel %vm173_vm1, %v403_v44, %v362_v34  ;;  %v5218_v44 = vstv %s4720_s13  ;;  %s4740_s13 = sld [smem:[#allocation6 + $0x17]] }
 0x105   :  { %v368_v40 = vpop.permute.xlu1 %367  ;;  %v599_v41 = vsel %vm533_vm2, 0.0, %v591_v37  ;;  %v598_v42 = vsel %vm533_vm2, 0.0, %v588_v38  ;;  %v366_v43 = vpop.permute.xlu0 %365  ;;  %v487_v50 = vcombine.low %v400_v63, %v404_v60 }
 0x106   :  { %612 = vrot.lane.b32.xlu1 %v599_v41, %s4952_s9  ;;  %606 = vrot.lane.b32.xlu0 %v598_v42, %s4952_s9  ;;  %v405_v1 = vrot.slane %v368_v40, 7 }
 0x107   :  { %v494_v10 = vrot.slane %v487_v50, %v5104_v59 }
 0x108   :  { %v406_v8 = vsel %vm173_vm1, %v405_v1, %v366_v43 }
 0x109   :  { %v372_v46 = vpop.permute.xlu1 %371  ;;  %v370_v49 = vpop.permute.xlu0 %369  ;;  %v511_v16 = vcombine.low %v486_v14, %v494_v10  ;;  %v5272_v14 = vstv %s4725_s17  ;;  %s4744_s17 = sld [smem:[#allocation6 + $0x25]] }
 0x10a   :  { %558 = vrot.lane.b32.xlu1 %v545_v47, %s4952_s9  ;;  %552 = vrot.lane.b32.xlu0 %v544_v48, %s4952_s9  ;;  %v407_v3 = vrot.slane %v372_v46, 7 }
 0x10b   :  { %v518_v19 = vrot.slane %v511_v16, %v5121_v30 }
 0x10c   :  { %v408_v12 = vsel %vm173_vm1, %v407_v3, %v370_v49 }
 0x10d   :  { %v376_v61 = vpop.permute.xlu1 %375  ;;  %v374_v62 = vpop.permute.xlu0 %373 }
 0x10e   :  { %v409_v2 = vrot.slane %v376_v61, 7 }
 0x110   :  { %v410_v51 = vsel %vm173_vm1, %v409_v2, %v374_v62 }
 0x111   :  { %v380_v5 = vpop.permute.xlu1 %379  ;;  %v378_v6 = vpop.permute.xlu0 %377  ;;  %v495_v11 = vcombine.low %v406_v8, %v410_v51 }
 0x112   :  { %v411_v9 = vrot.slane %v380_v5, 7 }
 0x113   :  { %v502_v17 = vrot.slane %v495_v11, %v5104_v59 }
 0x114   :  { %v412_v13 = vsel %vm173_vm1, %v411_v9, %v378_v6 }
 0x115   :  { %v503_v15 = vcombine.low %v408_v12, %v412_v13 }
 0x117   :  { %v510_v7 = vrot.slane %v503_v15, %v5104_v59 }
 0x119   :  { %v519_v18 = vcombine.low %v502_v17, %v510_v7 }
 0x11b   :  { %v526_v28 = vrot.slane %v519_v18, %v5121_v30 }
 0x11d   :  { %v527_v20 = vcombine.low %v518_v19, %v526_v28  ;;  %v528_v21 = vcombine.high %v518_v19, %v526_v28 }
 0x11f   :  { %v589_v22 = vrot.slane %v527_v20, 5  ;;  %v592_v23 = vrot.slane %v528_v21, 5 }
 0x121   :  { %v600_v24 = vsel %vm533_vm2, %v589_v22, 0.0  ;;  %v590_v55 = vsel %vm533_vm2, %v588_v38, %v589_v22  ;;  %v593_v25 = vsel %vm533_vm2, %v591_v37, %v592_v23  ;;  %v601_v26 = vsel %vm533_vm2, %v592_v23, 0.0 }
 0x122   :  { %610 = vrot.lane.b32.xlu0 %v600_v24, %s4952_s9  ;;  %608 = vrot.lane.b32.xlu1 %v590_v55, %s4952_s9 }
 0x126   :  { %614 = vrot.lane.b32.xlu0 %v593_v25, %s4952_s9  ;;  %616 = vrot.lane.b32.xlu1 %v601_v26, %s4952_s9 }
 0x12a   :  { %556 = vrot.lane.b32.xlu0 %v546_v39, %s4952_s9  ;;  %554 = vrot.lane.b32.xlu1 %v5135_v57, %s4952_s9 }
 0x12e   :  { %560 = vrot.lane.b32.xlu0 %v5139_v58, %s4952_s9  ;;  %562 = vrot.lane.b32.xlu1 %v547_v27, %s4952_s9  ;;  %s4737_s9 = sld [smem:[#allocation6 + $0x3a]] }
 0x178   :  { %v613_v29 = vpop.permute.xlu1 %612  ;;  %v607_v31 = vpop.permute.xlu0 %606 }
 0x179   :  { %v627_v52 = vsel %vm570_vm3, 0.0, %v613_v29  ;;  %v624_v34 = vsel %vm570_vm3, 0.0, %v607_v31 }
 0x17a   :  { %v5198_v57 = vsel %vm577_vm4, %v624_v34, 0.0  ;;  %v5202_v58 = vsel %vm577_vm4, %v627_v52, 0.0  ;;  %v5308_v52 = vstv %s4727_s18  ;;  %s4745_s18 = sld [smem:[#allocation6 + $0x56]] }
 0x17b   :  { %v1072_v53 = vmul.f32 %v1071_v32, %v5198_v57  ;;  %v1074_v35 = vmul.f32 %v1071_v32, %v5202_v58  ;;  %v1604_v38 = vmul.f32 %v5206_v36, %v5198_v57  ;;  %v1606_v42 = vmul.f32 %v5206_v36, %v5202_v58 }
 0x17c   :  { %v553_v37 = vpop.permute.xlu0 %552  ;;  %v559_v41 = vpop.permute.xlu1 %558  ;;  %v1138_v0 = vmul.f32 %v5233_v56, %v5198_v57  ;;  %v1141_v9 = vmul.f32 %v5233_v56, %v5202_v58  ;;  %v1218_v20 = vmul.f32 %v5272_v14, %v5198_v57  ;;  %v1221_v31 = vmul.f32 %v5272_v14, %v5202_v58 }
 0x17d   :  { %1080 = vrot.lane.b32.xlu0 %v1072_v53, %s4953_s12  ;;  %v571_v40 = vsel %vm570_vm3, 0.0, %v553_v37  ;;  %v574_v46 = vsel %vm570_vm3, 0.0, %v559_v41 }
 0x17e   :  { %v5216_v43 = vsel %vm577_vm4, %v571_v40, 0.0  ;;  %v5225_v48 = vsel %vm577_vm4, %v574_v46, 0.0  ;;  %v1150_v6 = vrot.slane %v1138_v0, 1  ;;  %v1155_v18 = vrot.slane %v1141_v9, 1 }
 0x17f   :  { %v1046_v47 = vmul.f32 %v5218_v44, %v5216_v43  ;;  %v1048_v49 = vmul.f32 %v5218_v44, %v5225_v48  ;;  %v1578_v60 = vmul.f32 %v5230_v54, %v5216_v43  ;;  %v1580_v2 = vmul.f32 %v5230_v54, %v5225_v48 }
 0x180   :  { %v1230_v29 = vrot.slane %v1218_v20, 2  ;;  %v1298_v40 = vmul.f32 %v5308_v52, %v5198_v57 }
 0x181   :  { %1084 = vrot.lane.b32.xlu0 %v1074_v35, %s4953_s12 }
 0x185   :  { %1612 = vrot.lane.b32.xlu0 %v1604_v38, %s4954_s14 }
 0x189   :  { %1616 = vrot.lane.b32.xlu0 %v1606_v42, %s4954_s14 }
 0x18d   :  { %1054 = vrot.lane.b32.xlu0 %v1046_v47, %s4953_s12 }
 0x191   :  { %1058 = vrot.lane.b32.xlu0 %v1048_v49, %s4953_s12 }
 0x194   :  { %v609_v61 = vpop.permute.xlu1 %608  ;;  %v5237_v62 = vpop.permute.xlu0 %610 }
 0x195   :  { %v625_v63 = vsel %vm570_vm3, 0.0, %v609_v61  ;;  %1586 = vrot.lane.b32.xlu0 %v1578_v60, %s4954_s14  ;;  %v626_v60 = vsel %vm570_vm3, 0.0, %v5237_v62  ;;  %v1310_v61 = vrot.slane %v1298_v40, 3 }
 0x196   :  { %v5244_v1 = vsel %vm577_vm4, %v625_v63, 0.0  ;;  %v1301_v63 = vmul.f32 %v5308_v52, %v5202_v58 }
 0x197   :  { %v1073_v50 = vmul.f32 %v1071_v32, %v5244_v1  ;;  %v5251_v3 = vmul.f32 %v5233_v56, %v5244_v1  ;;  %v5276_v17 = vmul.f32 %v5272_v14, %v5244_v1  ;;  %v1605_v22 = vmul.f32 %v5206_v36, %v5244_v1 }
 0x198   :  { %v5253_v51 = vpop.permute.xlu1 %616  ;;  %v615_v4 = vpop.permute.xlu0 %614  ;;  %v5319_v37 = vmul.f32 %v5308_v52, %v5244_v1 }
 0x199   :  { %v628_v5 = vsel %vm570_vm3, 0.0, %v615_v4  ;;  %1590 = vrot.lane.b32.xlu0 %v1580_v2, %s4954_s14  ;;  %1082 = vrot.lane.b32.xlu1 %v1073_v50, %s4953_s12  ;;  %v1151_v8 = vrot.slane %v5251_v3, 1  ;;  %v1231_v24 = vrot.slane %v5276_v17, 2  ;;  %v5347_v2 = vstv %s4729_s19  ;;  %s4746_s19 = sld [smem:[#allocation6 + $0x2c]] }
 0x19a   :  { %v5262_v10 = vsel %vm577_vm4, %v628_v5, 0.0  ;;  %v1311_v47 = vrot.slane %v5319_v37, 3  ;;  %v5350_v50 = vsel %vm577_vm4, %v626_v60, 0.0  ;;  %v5358_v5 = vmul.f32 %v5347_v2, %v5244_v1 }
 0x19b   :  { %v1152_v11 = vsel %vm670_vm5, %v1150_v6, %v1151_v8  ;;  %v1075_v12 = vmul.f32 %v1071_v32, %v5262_v10  ;;  %v5270_v13 = vmul.f32 %v5233_v56, %v5262_v10  ;;  %v5295_v55 = vmul.f32 %v5272_v14, %v5262_v10 }
 0x19c   :  { %v557_v15 = vpop.permute.xlu0 %556  ;;  %v555_v16 = vpop.permute.xlu1 %554  ;;  %v1607_v32 = vmul.f32 %v5206_v36, %v5262_v10  ;;  %v1232_v53 = vsel %vm735_vm6, %v1230_v29, %v1231_v24  ;;  %v1235_v36 = vrot.slane %v1221_v31, 2  ;;  %v5337_v49 = vmul.f32 %v5308_v52, %v5262_v10 }
 0x19d   :  { %v573_v7 = vsel %vm570_vm3, 0.0, %v557_v15  ;;  %1160 = vrot.lane.b32.xlu0 %v1152_v11, %s4953_s12  ;;  %1086 = vrot.lane.b32.xlu1 %v1075_v12, %s4953_s12  ;;  %v1156_v19 = vrot.slane %v5270_v13, 1  ;;  %v572_v25 = vsel %vm570_vm3, 0.0, %v555_v16  ;;  %v1236_v35 = vrot.slane %v5295_v55, 2 }
 0x19e   :  { %v5283_v28 = vsel %vm577_vm4, %v573_v7, 0.0  ;;  %v5311_v34 = vsel %vm577_vm4, %v572_v25, 0.0  ;;  %v1312_v62 = vsel %vm800_vm7, %v1310_v61, %v1311_v47  ;;  %v1316_v4 = vrot.slane %v5337_v49, 3 }
 0x19f   :  { %v1157_v21 = vsel %vm670_vm5, %v1155_v18, %v1156_v19  ;;  %v1047_v41 = vmul.f32 %v5218_v44, %v5311_v34  ;;  %v1237_v46 = vsel %vm735_vm6, %v1235_v36, %v1236_v35  ;;  %v1315_v6 = vrot.slane %v1301_v63, 3 }
 0x1a0   :  { %v563_v23 = vpop.permute.xlu1 %562  ;;  %v561_v39 = vpop.permute.xlu0 %560  ;;  %v1378_v9 = vmul.f32 %v5347_v2, %v5198_v57  ;;  %v1579_v11 = vmul.f32 %v5230_v54, %v5311_v34  ;;  %v1140_v12 = vmul.f32 %v5233_v56, %v5350_v50  ;;  %v1391_v16 = vrot.slane %v5358_v5, 4 }
 0x1a1   :  { %v576_v26 = vsel %vm570_vm3, 0.0, %v563_v23  ;;  %1164 = vrot.lane.b32.xlu0 %v1157_v21, %s4953_s12  ;;  %1614 = vrot.lane.b32.xlu1 %v1605_v22, %s4954_s14  ;;  %v575_v38 = vsel %vm570_vm3, 0.0, %v561_v39  ;;  %v1317_v15 = vsel %vm800_vm7, %v1315_v6, %v1316_v4  ;;  %v5376_v7 = vmul.f32 %v5347_v2, %v5262_v10 }
 0x1a2   :  { %v5302_v27 = vsel %vm577_vm4, %v576_v26, 0.0  ;;  %v5329_v42 = vsel %vm577_vm4, %v575_v38, 0.0  ;;  %v1390_v18 = vrot.slane %v1378_v9, 4  ;;  %v1381_v20 = vmul.f32 %v5347_v2, %v5202_v58 }
 0x1a3   :  { %v1049_v0 = vmul.f32 %v5218_v44, %v5329_v42  ;;  %v629_v44 = vsel %vm570_vm3, 0.0, %v5253_v51  ;;  %v5385_v21 = vstv %s4731_s20  ;;  %v1581_v22 = vmul.f32 %v5230_v54, %v5329_v42  ;;  %s4747_s20 = sld [smem:[#allocation6 + $0x5d]] }
 0x1a4   :  { %v5379_v51 = vsel %vm577_vm4, %v629_v44, 0.0  ;;  %v1153_v23 = vrot.slane %v1140_v12, 1  ;;  %v5391_v25 = vmul.f32 %v5385_v21, %v5244_v1  ;;  %v1392_v26 = vsel %vm50_vm0, %v1390_v18, %v1391_v16 }
 0x1a5   :  { %1240 = vrot.lane.b32.xlu0 %v1232_v53, %s4953_s12  ;;  %1618 = vrot.lane.b32.xlu1 %v1607_v32, %s4954_s14  ;;  %v1396_v39 = vrot.slane %v5376_v7, 4  ;;  %v1143_v29 = vmul.f32 %v5233_v56, %v5379_v51  ;;  %v1458_v54 = vmul.f32 %v5385_v21, %v5198_v57  ;;  %v1395_v31 = vrot.slane %v1381_v20, 4 }
 0x1a6   :  { %v1154_v32 = vsel %vm670_vm5, %v1151_v8, %v1153_v23  ;;  %v1471_v53 = vrot.slane %v5391_v25, 5  ;;  %v5412_v56 = vmul.f32 %v5385_v21, %v5262_v10  ;;  %v1220_v40 = vmul.f32 %v5272_v14, %v5350_v50 }
 0x1a7   :  { %v1397_v38 = vsel %vm50_vm0, %v1395_v31, %v1396_v39  ;;  %v1158_v36 = vrot.slane %v1143_v29, 1  ;;  %v1470_v3 = vrot.slane %v1458_v54, 5  ;;  %v1461_v8 = vmul.f32 %v5385_v21, %v5202_v58 }
 0x1a8   :  { %v1476_v63 = vrot.slane %v5412_v56, 5  ;;  %v1300_v13 = vmul.f32 %v5308_v52, %v5350_v50  ;;  %v5457_v23 = vstv %s4722_s22  ;;  %v1303_v29 = vmul.f32 %v5308_v52, %v5379_v51  ;;  %s4749_s22 = sld [smem:[#allocation6 + $0x34]] }
 0x1a9   :  { %1244 = vrot.lane.b32.xlu0 %v1237_v46, %s4953_s12  ;;  %1056 = vrot.lane.b32.xlu1 %v1047_v41, %s4953_s12  ;;  %v5420_v41 = vstv %s4733_s21  ;;  %v1472_v46 = vsel %vm533_vm2, %v1470_v3, %v1471_v53  ;;  %v1159_v61 = vsel %vm670_vm5, %v1156_v19, %v1158_v36  ;;  %v1475_v44 = vrot.slane %v1461_v8, 5  ;;  %s4748_s21 = sld [smem:[#allocation6 + $0x3]] }
 0x1aa   :  { %v5427_v60 = vmul.f32 %v5420_v41, %v5244_v1  ;;  %v1538_v6 = vmul.f32 %v5420_v41, %v5198_v57  ;;  %v5441_v9 = vmul.f32 %v5420_v41, %v5262_v10  ;;  %v1098_v31 = vmul.f32 %v5457_v23, %v5216_v43 }
 0x1ab   :  { %v1477_v19 = vsel %vm533_vm2, %v1475_v44, %v1476_v63  ;;  %v5484_v52 = vmul.f32 %v5457_v23, %v5329_v42  ;;  %v1380_v36 = vmul.f32 %v5347_v2, %v5350_v50  ;;  %v1101_v37 = vmul.f32 %v5457_v23, %v5225_v48 }
 0x1ac   :  { %v1550_v18 = vrot.slane %v1538_v6, 6  ;;  %v1556_v20 = vrot.slane %v5441_v9, 6  ;;  %v5492_v3 = vstv %s4724_s23  ;;  %v1383_v8 = vmul.f32 %v5347_v2, %v5379_v51  ;;  %s4750_s23 = sld [smem:[#allocation6 + $0xa]] }
 0x1ad   :  { %1320 = vrot.lane.b32.xlu0 %v1312_v62, %s4953_s12  ;;  %1060 = vrot.lane.b32.xlu1 %v1049_v0, %s4953_s12  ;;  %v1233_v0 = vrot.slane %v1220_v40, 2  ;;  %v1223_v62 = vmul.f32 %v5272_v14, %v5379_v51  ;;  %v1110_v40 = vrot.slane %v1098_v31, 1  ;;  %v1115_v44 = vrot.slane %v1101_v37, 1 }
 0x1ae   :  { %v1178_v2 = vmul.f32 %v5492_v3, %v5216_v43  ;;  %v5513_v6 = vmul.f32 %v5492_v3, %v5329_v42  ;;  %v1460_v49 = vmul.f32 %v5385_v21, %v5350_v50  ;;  %v1543_v37 = vmul.f32 %v5420_v41, %v5379_v51 }
 0x1af   :  { %v1234_v14 = vsel %vm735_vm6, %v1231_v24, %v1233_v0  ;;  %v1238_v12 = vrot.slane %v1223_v62, 2  ;;  %v1116_v0 = vrot.slane %v5484_v52, 1  ;;  %v1393_v62 = vrot.slane %v1380_v36, 4 }
 0x1b1   :  { %1324 = vrot.lane.b32.xlu0 %v1317_v15, %s4953_s12  ;;  %1588 = vrot.lane.b32.xlu1 %v1579_v11, %s4954_s14  ;;  %v1551_v11 = vrot.slane %v5427_v60, 6  ;;  %v1541_v15 = vmul.f32 %v5420_v41, %v5202_v58  ;;  %v1239_v24 = vsel %vm735_vm6, %v1236_v35, %v1238_v12  ;;  %v1181_v12 = vmul.f32 %v5492_v3, %v5225_v48 }
 0x1b3   :  { %v1552_v17 = vsel %vm993_vm8, %v1550_v18, %v1551_v11  ;;  %v1555_v54 = vrot.slane %v1541_v15, 6  ;;  %v1190_v15 = vrot.slane %v1178_v2, 2  ;;  %v1196_v18 = vrot.slane %v5513_v6, 2 }
 0x1b5   :  { %1400 = vrot.lane.b32.xlu0 %v1392_v26, %s4953_s12  ;;  %1592 = vrot.lane.b32.xlu1 %v1581_v22, %s4954_s14  ;;  %v1313_v22 = vrot.slane %v1300_v13, 3  ;;  %v5467_v26 = vmul.f32 %v5457_v23, %v5311_v34  ;;  %v1557_v55 = vsel %vm993_vm8, %v1555_v54, %v1556_v20  ;;  %v1394_v13 = vsel %vm50_vm0, %v1391_v16, %v1393_v62 }
 0x1b6   :  { %v1195_v54 = vrot.slane %v1181_v12, 2 }
 0x1b7   :  { %v1314_v35 = vsel %vm800_vm7, %v1311_v47, %v1313_v22  ;;  %v5496_v47 = vmul.f32 %v5492_v3, %v5311_v34  ;;  %v1473_v22 = vrot.slane %v1460_v49, 5 }
 0x1b8   :  { %v1197_v7 = vsel %vm735_vm6, %v1195_v54, %v1196_v18 }
 0x1b9   :  { %1404 = vrot.lane.b32.xlu0 %v1397_v38, %s4953_s12  ;;  %1162 = vrot.lane.b32.xlu1 %v1154_v32, %s4953_s12  ;;  %v1111_v32 = vrot.slane %v5467_v26, 1  ;;  %v1318_v38 = vrot.slane %v1303_v29, 3  ;;  %v1463_v29 = vmul.f32 %v5385_v21, %v5379_v51 }
 0x1bd   :  { %1480 = vrot.lane.b32.xlu0 %v1472_v46, %s4953_s12  ;;  %1166 = vrot.lane.b32.xlu1 %v1159_v61, %s4953_s12  ;;  %v1112_v46 = vsel %vm670_vm5, %v1110_v40, %v1111_v32  ;;  %v1319_v61 = vsel %vm800_vm7, %v1316_v4, %v1318_v38  ;;  %v1117_v4 = vsel %vm670_vm5, %v1115_v44, %v1116_v0  ;;  %v5564_v40 = vstv %s4728_s26  ;;  %s4751_s26 = sld [smem:[#allocation6 + $0x3b]] }
 0x1be   :  { %v1540_v38 = vmul.f32 %v5420_v41, %v5350_v50  ;;  %v1338_v2 = vmul.f32 %v5564_v40, %v5216_v43  ;;  %v5586_v49 = vmul.f32 %v5564_v40, %v5329_v42 }
 0x1c0   :  { %v1553_v62 = vrot.slane %v1540_v38, 6  ;;  %v1350_v12 = vrot.slane %v1338_v2, 4 }
 0x1c1   :  { %1484 = vrot.lane.b32.xlu0 %v1477_v19, %s4953_s12  ;;  %1242 = vrot.lane.b32.xlu1 %v1234_v14, %s4953_s12  ;;  %v1191_v19 = vrot.slane %v5496_v47, 2  ;;  %v1398_v14 = vrot.slane %v1383_v8, 4 }
 0x1c3   :  { %v1192_v5 = vsel %vm735_vm6, %v1190_v15, %v1191_v19  ;;  %v1399_v16 = vsel %vm50_vm0, %v1396_v39, %v1398_v14  ;;  %v1474_v39 = vsel %vm533_vm2, %v1471_v53, %v1473_v22  ;;  %v5568_v53 = vmul.f32 %v5564_v40, %v5311_v34 }
 0x1c4   :  { %v1341_v14 = vmul.f32 %v5564_v40, %v5225_v48  ;;  %v5600_v15 = vstv %s4730_s27  ;;  %v1356_v22 = vrot.slane %v5586_v49, 4  ;;  %s4752_s27 = sld [smem:[#allocation6 + $0x11]] }
 0x1c5   :  { %1560 = vrot.lane.b32.xlu0 %v1552_v17, %s4953_s12  ;;  %1246 = vrot.lane.b32.xlu1 %v1239_v24, %s4953_s12  ;;  %v5529_v17 = vstv %s4726_s24  ;;  %v1351_v41 = vrot.slane %v5568_v53, 4  ;;  %v5605_v60 = vmul.f32 %v5600_v15, %v5311_v34  ;;  %s4955_s24 = smov 125  }
 0x1c6   :  { %v5539_v24 = vmul.f32 %v5529_v17, %v5311_v34  ;;  %v1258_v31 = vmul.f32 %v5529_v17, %v5216_v43  ;;  %v5556_v21 = vmul.f32 %v5529_v17, %v5329_v42  ;;  %v1261_v25 = vmul.f32 %v5529_v17, %v5225_v48 }
 0x1c7   :  { %v1355_v54 = vrot.slane %v1341_v14, 4  ;;  %v1431_v9 = vrot.slane %v5605_v60, 5 }
 0x1c8   :  { %v1270_v36 = vrot.slane %v1258_v31, 3  ;;  %v1275_v44 = vrot.slane %v1261_v25, 3  ;;  %v1418_v31 = vmul.f32 %v5600_v15, %v5216_v43  ;;  %v5636_v25 = vstv %s4732_s28  ;;  %s4753_s28 = sld [smem:[#allocation6 + $0x42]] }
 0x1c9   :  { %1564 = vrot.lane.b32.xlu0 %v1557_v55, %s4953_s12  ;;  %1322 = vrot.lane.b32.xlu1 %v1314_v35, %s4953_s12  ;;  %v1271_v55 = vrot.slane %v5539_v24, 3  ;;  %v1478_v35 = vrot.slane %v1463_v29, 5  ;;  %v1103_v29 = vmul.f32 %v5457_v23, %v5302_v27  ;;  %v5640_v26 = vmul.f32 %v5636_v25, %v5311_v34 }
 0x1ca   :  { %v1430_v38 = vrot.slane %v1418_v31, 5  ;;  %v1498_v2 = vmul.f32 %v5636_v25, %v5216_v43  ;;  %v5660_v52 = vmul.f32 %v5636_v25, %v5329_v42  ;;  %v1501_v14 = vmul.f32 %v5636_v25, %v5225_v48 }
 0x1cb   :  { %v1272_v8 = vsel %vm800_vm7, %v1270_v36, %v1271_v55  ;;  %v1421_v36 = vmul.f32 %v5600_v15, %v5225_v48  ;;  %v1263_v31 = vmul.f32 %v5529_v17, %v5302_v27 }
 0x1cc   :  { %v1516_v47 = vrot.slane %v5660_v52, 6 }
 0x1cd   :  { %1120 = vrot.lane.b32.xlu0 %v1112_v46, %s4953_s12  ;;  %1326 = vrot.lane.b32.xlu1 %v1319_v61, %s4953_s12  ;;  %v1479_v46 = vsel %vm533_vm2, %v1476_v63, %v1478_v35  ;;  %v1276_v61 = vrot.slane %v5556_v21, 3  ;;  %v1554_v63 = vsel %vm993_vm8, %v1551_v11, %v1553_v62  ;;  %v1352_v11 = vsel %vm50_vm0, %v1350_v12, %v1351_v41 }
 0x1ce   :  { %v1180_v35 = vmul.f32 %v5492_v3, %v5283_v28  ;;  %v1510_v12 = vrot.slane %v1498_v2, 6 }
 0x1cf   :  { %v1277_v56 = vsel %vm800_vm7, %v1275_v44, %v1276_v61  ;;  %v1435_v44 = vrot.slane %v1421_v36, 5  ;;  %v1340_v36 = vmul.f32 %v5564_v40, %v5283_v28 }
 0x1d0   :  { %v1193_v62 = vrot.slane %v1180_v35, 2 }
 0x1d1   :  { %1124 = vrot.lane.b32.xlu0 %v1117_v4, %s4953_s12  ;;  %1402 = vrot.lane.b32.xlu1 %v1394_v13, %s4953_s12  ;;  %v1558_v4 = vrot.slane %v1543_v37, 6  ;;  %v1100_v13 = vmul.f32 %v5457_v23, %v5283_v28  ;;  %v5628_v23 = vmul.f32 %v5600_v15, %v5329_v42  ;;  %v1432_v37 = vsel %vm533_vm2, %v1430_v38, %v1431_v9 }
 0x1d2   :  { %v1278_v38 = vrot.slane %v1263_v31, 3 }
 0x1d4   :  { %v1279_v2 = vsel %vm800_vm7, %v1276_v61, %v1278_v38 }
 0x1d5   :  { %1200 = vrot.lane.b32.xlu0 %v1192_v5, %s4953_s12  ;;  %1406 = vrot.lane.b32.xlu1 %v1399_v16, %s4953_s12  ;;  %v1559_v5 = vsel %vm993_vm8, %v1556_v20, %v1558_v4  ;;  %v1113_v16 = vrot.slane %v1100_v13, 1  ;;  %v1260_v13 = vmul.f32 %v5529_v17, %v5283_v28 }
 0x1d7   :  { %v1114_v20 = vsel %vm670_vm5, %v1111_v32, %v1113_v16  ;;  %v1183_v32 = vmul.f32 %v5492_v3, %v5302_v27 }
 0x1d9   :  { %1204 = vrot.lane.b32.xlu0 %v1197_v7, %s4953_s12  ;;  %1482 = vrot.lane.b32.xlu1 %v1474_v39, %s4953_s12  ;;  %v1357_v7 = vsel %vm50_vm0, %v1355_v54, %v1356_v22  ;;  %v1118_v39 = vrot.slane %v1103_v29, 1  ;;  %v1198_v4 = vrot.slane %v1183_v32, 2  ;;  %v1273_v54 = vrot.slane %v1260_v13, 3 }
 0x1db   :  { %v1199_v29 = vsel %vm735_vm6, %v1196_v18, %v1198_v4  ;;  %v1274_v17 = vsel %vm800_vm7, %v1271_v55, %v1273_v54 }
 0x1dd   :  { %1280 = vrot.lane.b32.xlu0 %v1272_v8, %s4953_s12  ;;  %1486 = vrot.lane.b32.xlu1 %v1479_v46, %s4953_s12  ;;  %v1119_v8 = vsel %vm670_vm5, %v1116_v0, %v1118_v39  ;;  %v1436_v46 = vrot.slane %v5628_v23, 5 }
 0x1df   :  { %v1437_v0 = vsel %vm533_vm2, %v1435_v44, %v1436_v46 }
 0x1e1   :  { %1284 = vrot.lane.b32.xlu0 %v1277_v56, %s4953_s12  ;;  %1562 = vrot.lane.b32.xlu1 %v1554_v63, %s4953_s12  ;;  %v1511_v56 = vrot.slane %v5640_v26, 6  ;;  %v1194_v63 = vsel %vm735_vm6, %v1191_v19, %v1193_v62 }
 0x1e3   :  { %v1512_v16 = vsel %vm993_vm8, %v1510_v12, %v1511_v56 }
 0x1e5   :  { %1360 = vrot.lane.b32.xlu0 %v1352_v11, %s4953_s12  ;;  %1566 = vrot.lane.b32.xlu1 %v1559_v5, %s4953_s12  ;;  %v5674_v11 = vstv %s4736_s29  ;;  %s4755_s29 = sld [smem:[#allocation6 + $0x49]] }
 0x1e6   :  { %v5681_v19 = vmul.f32 %v5674_v11, %v5311_v34  ;;  %v5702_v18 = vmul.f32 %v5674_v11, %v5329_v42  ;;  %v1633_v32 = vmul.f32 %v5674_v11, %v5225_v48 }
 0x1e8   :  { %v1643_v35 = vrot.slane %v5681_v19, 1  ;;  %v1648_v55 = vrot.slane %v5702_v18, 1  ;;  %v1647_v4 = vrot.slane %v1633_v32, 1 }
 0x1e9   :  { %1364 = vrot.lane.b32.xlu0 %v1357_v7, %s4953_s12  ;;  %1122 = vrot.lane.b32.xlu1 %v1114_v20, %s4953_s12  ;;  %v1515_v7 = vrot.slane %v1501_v14, 6  ;;  %v1630_v20 = vmul.f32 %v5674_v11, %v5216_v43 }
 0x1ea   :  { %v1649_v21 = vsel %vm670_vm5, %v1647_v4, %v1648_v55 }
 0x1eb   :  { %v1517_v6 = vsel %vm993_vm8, %v1515_v7, %v1516_v47  ;;  %v5754_v7 = vstv %s4738_s10  ;;  %s4757_s10 = sld [smem:[#allocation6 + $0x50]] }
 0x1ec   :  { %v1710_v32 = vmul.f32 %v5754_v7, %v5216_v43 }
 0x1ed   :  { %1440 = vrot.lane.b32.xlu0 %v1432_v37, %s4953_s12  ;;  %1126 = vrot.lane.b32.xlu1 %v1119_v8, %s4953_s12  ;;  %v1642_v37 = vrot.slane %v1630_v20, 1  ;;  %v5714_v8 = vstv %s4737_s9  ;;  %v5763_v20 = vmul.f32 %v5754_v7, %v5311_v34  ;;  %s4756_s9 = sld [smem:[#allocation6 + $0x1f]] }
 0x1ee   :  { %v5721_v62 = vmul.f32 %v5714_v8, %v5244_v1  ;;  %v1670_v13 = vmul.f32 %v5714_v8, %v5198_v57  ;;  %v1673_v31 = vmul.f32 %v5714_v8, %v5202_v58  ;;  %v1722_v4 = vrot.slane %v1710_v32, 2 }
 0x1ef   :  { %v5655_v3 = vpop.permute.xlu0 %1080  ;;  %v1644_v44 = vsel %vm670_vm5, %v1642_v37, %v1643_v35  ;;  %v1723_v49 = vrot.slane %v5763_v20, 2 }
 0x1f0   :  { %9788 = vst [vmem:[#allocation17_spill] sm:$0xff] %v5655_v3  ;;  %v1683_v61 = vrot.slane %v5721_v62, 1  ;;  %v1682_v54 = vrot.slane %v1670_v13, 1  ;;  %v1687_v37 = vrot.slane %v1673_v31, 1  ;;  %v1713_v13 = vmul.f32 %v5754_v7, %v5225_v48 }
 0x1f1   :  { %1444 = vrot.lane.b32.xlu0 %v1437_v0, %s4953_s12  ;;  %1202 = vrot.lane.b32.xlu1 %v1194_v63, %s4953_s12  ;;  %v1353_v0 = vrot.slane %v1340_v36, 4  ;;  %v1343_v63 = vmul.f32 %v5564_v40, %v5302_v27  ;;  %v1423_v36 = vmul.f32 %v5600_v15, %v5302_v27  ;;  %v1724_v60 = vsel %vm735_vm6, %v1722_v4, %v1723_v49 }
 0x1f2   :  { %v5838_v4 = vstv %s4740_s13  ;;  %s4759_s13 = sld [smem:[#allocation6 + $0x57]] }
 0x1f3   :  { %v5676_v5 = vpop.permute.xlu0 %1084  ;;  %v1354_v40 = vsel %vm50_vm0, %v1351_v41, %v1353_v0  ;;  %v1358_v12 = vrot.slane %v1343_v63, 4  ;;  %v1684_v41 = vsel %vm670_vm5, %v1682_v54, %v1683_v61  ;;  %v1438_v0 = vrot.slane %v1423_v36, 5 }
 0x1f4   :  { %9789 = vst [vmem:[#allocation18_spill] sm:$0xff] %v5676_v5  ;;  %v1500_v63 = vmul.f32 %v5636_v25, %v5283_v28 }
 0x1f5   :  { %1520 = vrot.lane.b32.xlu0 %v1512_v16, %s4953_s12  ;;  %1206 = vrot.lane.b32.xlu1 %v1199_v29, %s4953_s12  ;;  %v5746_v16 = vmul.f32 %v5714_v8, %v5262_v10  ;;  %v1420_v29 = vmul.f32 %v5600_v15, %v5283_v28 }
 0x1f6   :  { %v1513_v54 = vrot.slane %v1500_v63, 6 }
 0x1f7   :  { %v5695_v39 = vpop.permute.xlu0 %1612  ;;  %v1433_v38 = vrot.slane %v1420_v29, 5  ;;  %v1439_v29 = vsel %vm533_vm2, %v1436_v46, %v1438_v0 }
 0x1f8   :  { %9790 = vst [vmem:[#allocation19_spill] sm:$0xff] %v5695_v39 }
 0x1f9   :  { %1524 = vrot.lane.b32.xlu0 %v1517_v6, %s4953_s12  ;;  %1282 = vrot.lane.b32.xlu1 %v1274_v17, %s4953_s12  ;;  %v1359_v6 = vsel %vm50_vm0, %v1356_v22, %v1358_v12  ;;  %v1688_v17 = vrot.slane %v5746_v16, 1  ;;  %v5780_v22 = vmul.f32 %v5754_v7, %v5329_v42  ;;  %v5802_v12 = vstv %s4739_s11  ;;  %s4758_s11 = sld [smem:[#allocation6 + $0x26]] }
 0x1fa   :  { %v5809_v31 = vmul.f32 %v5802_v12, %v5244_v1  ;;  %v5826_v32 = vmul.f32 %v5802_v12, %v5262_v10  ;;  %v1753_v0 = vmul.f32 %v5802_v12, %v5202_v58  ;;  %v1755_v30 = vmul.f32 %v5802_v12, %v5379_v51 }
 0x1fb   :  { %v5716_v24 = vpop.permute.xlu0 %1616  ;;  %v1689_v15 = vsel %vm670_vm5, %v1687_v37, %v1688_v17 }
 0x1fc   :  { %9791 = vst [vmem:[#allocation20_spill] sm:$0xff] %v5716_v24  ;;  %v9688_v37 = vrot.slane %v5809_v31, 2 }
 0x1fd   :  { %1652 = vrot.lane.b32.xlu0 %v1644_v44, %s4954_s14  ;;  %1286 = vrot.lane.b32.xlu1 %v1279_v2, %s4953_s12  ;;  %v1434_v2 = vsel %vm533_vm2, %v1431_v9, %v1433_v38  ;;  %v9689_v9 = vrot.slane %v5780_v22, 2  ;;  %v1750_v38 = vmul.f32 %v5802_v12, %v5198_v57 }
 0x1ff   :  { %v5735_v14 = vpop.permute.xlu0 %1054  ;;  %v1762_v63 = vrot.slane %v1750_v38, 2  ;;  %v1767_v38 = vrot.slane %v1753_v0, 2  ;;  %v1672_v0 = vmul.f32 %v5714_v8, %v5350_v50 }
 0x200   :  { %9792 = vst [vmem:[#allocation21_spill] sm:$0xff] %v5735_v14 }
 0x201   :  { %1656 = vrot.lane.b32.xlu0 %v1649_v21, %s4954_s14  ;;  %1362 = vrot.lane.b32.xlu1 %v1354_v40, %s4953_s12 }
 0x203   :  { %v5756_v53 = vpop.permute.xlu0 %1058 }
 0x204   :  { %9793 = vst [vmem:[#allocation22_spill] sm:$0xff] %v5756_v53 }
 0x205   :  { %1692 = vrot.lane.b32.xlu0 %v1684_v41, %s4954_s14  ;;  %1366 = vrot.lane.b32.xlu1 %v1359_v6, %s4953_s12  ;;  %v1503_v41 = vmul.f32 %v5636_v25, %v5302_v27  ;;  %v1727_v6 = vrot.slane %v1713_v13, 2  ;;  %v1514_v25 = vsel %vm993_vm8, %v1511_v56, %v1513_v54  ;;  %v9687_v13 = vrot.slane %v5826_v32, 2 }
 0x207   :  { %v5775_v44 = vpop.permute.xlu0 %1586  ;;  %v1729_v46 = vsel %vm735_vm6, %v1727_v6, %v9689_v9  ;;  %v1635_v6 = vmul.f32 %v5674_v11, %v5302_v27  ;;  %v1769_v52 = vsel %vm735_vm6, %v1767_v38, %v9687_v13 }
 0x208   :  { %9794 = vst [vmem:[#allocation23_spill] sm:$0xff] %v5775_v44 }
 0x209   :  { %1696 = vrot.lane.b32.xlu0 %v1689_v15, %s4954_s14  ;;  %1442 = vrot.lane.b32.xlu1 %v1434_v2, %s4953_s12  ;;  %v1518_v15 = vrot.slane %v1503_v41, 6  ;;  %v1632_v2 = vmul.f32 %v5674_v11, %v5283_v28 }
 0x20b   :  { %v5794_v21 = vpop.permute.xlu0 %1590  ;;  %v5796_v40 = vpop.permute.xlu1 %1082  ;;  %v1519_v54 = vsel %vm993_vm8, %v1516_v47, %v1518_v15  ;;  %v1645_v41 = vrot.slane %v1632_v2, 1  ;;  %v1650_v15 = vrot.slane %v1635_v6, 1  ;;  %v5874_v2 = vmul.f32 %v5838_v4, %v5329_v42 }
 0x20c   :  { %9795 = vst [vmem:[#allocation24_spill] sm:$0xff] %v5794_v21  ;;  %9796 = vst [vmem:[#allocation25_spill] sm:$0xff] %v5796_v40 }
 0x20d   :  { %1732 = vrot.lane.b32.xlu0 %v1724_v60, %s4954_s14  ;;  %1446 = vrot.lane.b32.xlu1 %v1439_v29, %s4953_s12  ;;  %v5847_v60 = vmul.f32 %v5838_v4, %v5311_v34  ;;  %v1764_v29 = vsel %vm735_vm6, %v1762_v63, %v9688_v37  ;;  %v1646_v11 = vsel %vm670_vm5, %v1643_v35, %v1645_v41 }
 0x20e   :  { %v1651_v38 = vsel %vm670_vm5, %v1648_v55, %v1650_v15 }
 0x20f   :  { %v5817_v36 = vpop.permute.xlu0 %1160  ;;  %v5819_v23 = vpop.permute.xlu1 %1086  ;;  %v9686_v47 = vrot.slane %v5847_v60, 3 }
 0x210   :  { %9797 = vst [vmem:[#allocation26_spill] sm:$0xff] %v5817_v36  ;;  %9798 = vst [vmem:[#allocation27_spill] sm:$0xff] %v5819_v23 }
 0x211   :  { %1736 = vrot.lane.b32.xlu0 %v1729_v46, %s4954_s14  ;;  %1522 = vrot.lane.b32.xlu1 %v1514_v25, %s4953_s12  ;;  %v1790_v46 = vmul.f32 %v5838_v4, %v5216_v43 }
 0x213   :  { %v5840_v26 = vpop.permute.xlu0 %1164  ;;  %v5842_v56 = vpop.permute.xlu1 %1614  ;;  %v1802_v63 = vrot.slane %v1790_v46, 3  ;;  %v9691_v46 = vrot.slane %v5874_v2, 3 }
 0x214   :  { %9799 = vst [vmem:[#allocation28_spill] sm:$0xff] %v5840_v26  ;;  %9800 = vst [vmem:[#allocation29_spill] sm:$0xff] %v5842_v56 }
 0x215   :  { %1772 = vrot.lane.b32.xlu0 %v1764_v29, %s4954_s14  ;;  %1526 = vrot.lane.b32.xlu1 %v1519_v54, %s4953_s12  ;;  %v1793_v29 = vmul.f32 %v5838_v4, %v5225_v48  ;;  %v5882_v54 = vstv %s4741_s15  ;;  %v1804_v41 = vsel %vm800_vm7, %v1802_v63, %v9686_v47  ;;  %s4742_s12 = sld [smem:[#allocation6 + $0x1e]]  ;;  %s4760_s15 = sld [smem:[#allocation6 + $0x2d]] }
 0x216   :  { %v5893_v6 = vmul.f32 %v5882_v54, %v5244_v1  ;;  %v1830_v63 = vmul.f32 %v5882_v54, %v5198_v57  ;;  %v5912_v55 = vmul.f32 %v5882_v54, %v5262_v10  ;;  %v1835_v44 = vmul.f32 %v5882_v54, %v5379_v51 }
 0x217   :  { %v5861_v25 = vpop.permute.xlu0 %1240  ;;  %v5863_v33 = vpop.permute.xlu1 %1618  ;;  %v1807_v47 = vrot.slane %v1793_v29, 3  ;;  %v1712_v29 = vmul.f32 %v5754_v7, %v5283_v28 }
 0x218   :  { %9801 = vst [vmem:[#allocation30_spill] sm:$0xff] %v5861_v25  ;;  %9802 = vst [vmem:[#allocation31_spill] sm:$0xff] %v5863_v33  ;;  %v9690_v18 = vrot.slane %v5893_v6, 3 }
 0x219   :  { %1776 = vrot.lane.b32.xlu0 %v1769_v52, %s4954_s14  ;;  %1654 = vrot.lane.b32.xlu1 %v1646_v11, %s4954_s14  ;;  %v1685_v52 = vrot.slane %v1672_v0, 1  ;;  %v1675_v11 = vmul.f32 %v5714_v8, %v5379_v51  ;;  %v1809_v8 = vsel %vm800_vm7, %v1807_v47, %v9691_v46 }
 0x21b   :  { %v5884_v19 = vpop.permute.xlu0 %1244  ;;  %v5886_v35 = vpop.permute.xlu1 %1056  ;;  %v1686_v15 = vsel %vm670_vm5, %v1683_v61, %v1685_v52  ;;  %v1690_v0 = vrot.slane %v1675_v11, 1  ;;  %v9692_v61 = vrot.slane %v5912_v55, 3  ;;  %v5934_v52 = vstv %s4742_s12  ;;  %s4761_s12 = sld [smem:[#allocation6 + $0x5e]] }
 0x21c   :  { %9803 = vst [vmem:[#allocation32_spill] sm:$0xff] %v5884_v19  ;;  %9804 = vst [vmem:[#allocation33_spill] sm:$0xff] %v5886_v35 }
 0x21d   :  { %1812 = vrot.lane.b32.xlu0 %v1804_v41, %s4954_s14  ;;  %1658 = vrot.lane.b32.xlu1 %v1651_v38, %s4954_s14  ;;  %v1842_v41 = vrot.slane %v1830_v63, 3  ;;  %v1833_v38 = vmul.f32 %v5882_v54, %v5202_v58  ;;  %v1691_v11 = vsel %vm670_vm5, %v1688_v17, %v1690_v0  ;;  %v1725_v63 = vrot.slane %v1712_v29, 2 }
 0x21e   :  { %v5958_v0 = vmul.f32 %v5934_v52, %v5329_v42 }
 0x21f   :  { %v5905_v13 = vpop.permute.xlu0 %1320  ;;  %v5907_v37 = vpop.permute.xlu1 %1060  ;;  %v1844_v62 = vsel %vm800_vm7, %v1842_v41, %v9690_v18  ;;  %v1847_v41 = vrot.slane %v1833_v38, 3  ;;  %v1870_v18 = vmul.f32 %v5934_v52, %v5216_v43 }
 0x220   :  { %9805 = vst [vmem:[#allocation34_spill] sm:$0xff] %v5905_v13  ;;  %9806 = vst [vmem:[#allocation35_spill] sm:$0xff] %v5907_v37 }
 0x221   :  { %1816 = vrot.lane.b32.xlu0 %v1809_v8, %s4954_s14  ;;  %1694 = vrot.lane.b32.xlu1 %v1686_v15, %s4954_s14  ;;  %v5941_v8 = vmul.f32 %v5934_v52, %v5311_v34  ;;  %v1715_v15 = vmul.f32 %v5754_v7, %v5302_v27  ;;  %v1849_v17 = vsel %vm800_vm7, %v1847_v41, %v9692_v61  ;;  %v1882_v41 = vrot.slane %v1870_v18, 4 }
 0x222   :  { %v1726_v7 = vsel %vm735_vm6, %v1723_v49, %v1725_v63  ;;  %v5970_v61 = vstv %s4743_s16  ;;  %s4762_s16 = sld [smem:[#allocation6 + $0x4]] }
 0x223   :  { %v5926_v9 = vpop.permute.xlu0 %1324  ;;  %v5928_v47 = vpop.permute.xlu1 %1588  ;;  %v9699_v29 = vrot.slane %v5941_v8, 4  ;;  %v1730_v38 = vrot.slane %v1715_v15, 2  ;;  %v5979_v15 = vmul.f32 %v5970_v61, %v5244_v1  ;;  %v1910_v59 = vmul.f32 %v5970_v61, %v5198_v57 }
 0x224   :  { %9807 = vst [vmem:[#allocation36_spill] sm:$0xff] %v5926_v9  ;;  %9808 = vst [vmem:[#allocation37_spill] sm:$0xff] %v5928_v47 }
 0x225   :  { %1852 = vrot.lane.b32.xlu0 %v1844_v62, %s4954_s14  ;;  %1698 = vrot.lane.b32.xlu1 %v1691_v11, %s4954_s14  ;;  %v1752_v62 = vmul.f32 %v5802_v12, %v5350_v50  ;;  %v1873_v11 = vmul.f32 %v5934_v52, %v5225_v48  ;;  %v9817_v12 = vrot.slane %v5809_v31, 2 }
 0x227   :  { %v5949_v46 = vpop.permute.xlu0 %1400  ;;  %v5951_v16 = vpop.permute.xlu1 %1592  ;;  %v1765_v45 = vrot.slane %v1752_v62, 2  ;;  %v1887_v63 = vrot.slane %v1873_v11, 4  ;;  %v6002_v62 = vmul.f32 %v5970_v61, %v5262_v10  ;;  %v9700_v11 = vrot.slane %v5979_v15, 4 }
 0x228   :  { %9809 = vst [vmem:[#allocation38_spill] sm:$0xff] %v5949_v46  ;;  %9810 = vst [vmem:[#allocation39_spill] sm:$0xff] %v5951_v16  ;;  %v1795_v16 = vmul.f32 %v5838_v4, %v5302_v27 }
 0x229   :  { %1856 = vrot.lane.b32.xlu0 %v1849_v17, %s4954_s14  ;;  %1734 = vrot.lane.b32.xlu1 %v1726_v7, %s4954_s14  ;;  %v1884_v17 = vsel %vm50_vm0, %v1882_v41, %v9699_v29  ;;  %v9813_v7 = vrot.slane %v5780_v22, 2  ;;  %v9816_v22 = vrot.slane %v5958_v0, 4  ;;  %v1766_v41 = vsel %vm735_vm6, %v9817_v12, %v1765_v45 }
 0x22b   :  { %v5972_v20 = vpop.permute.xlu0 %1404  ;;  %v5974_v49 = vpop.permute.xlu1 %1162  ;;  %v1731_v18 = vsel %vm735_vm6, %v9813_v7, %v1730_v38  ;;  %v1889_v38 = vsel %vm50_vm0, %v1887_v63, %v9816_v22  ;;  %v1792_v7 = vmul.f32 %v5838_v4, %v5283_v28  ;;  %v1913_v63 = vmul.f32 %v5970_v61, %v5202_v58 }
 0x22c   :  { %9811 = vst [vmem:[#allocation40_spill] sm:$0xff] %v5972_v20  ;;  %9812 = vst [vmem:[#allocation41_spill] sm:$0xff] %v5974_v49  ;;  %v6014_v22 = vstv %s4744_s17  ;;  %v9824_v4 = vrot.slane %v5847_v60, 3  ;;  %s4763_s17 = sld [smem:[#allocation6 + $0x35]] }
 0x22d   :  { %1892 = vrot.lane.b32.xlu0 %v1884_v17, %s4954_s14  ;;  %1738 = vrot.lane.b32.xlu1 %v1731_v18, %s4954_s14  ;;  %v1770_v17 = vrot.slane %v1755_v30, 2  ;;  %v1922_v18 = vrot.slane %v1910_v59, 4  ;;  %v6023_v12 = vmul.f32 %v6014_v22, %v5311_v34  ;;  %v1805_v29 = vrot.slane %v1792_v7, 3 }
 0x22e   :  { %v1927_v30 = vrot.slane %v1913_v63, 4  ;;  %v1950_v47 = vmul.f32 %v6014_v22, %v5216_v43  ;;  %v6050_v63 = vmul.f32 %v6014_v22, %v5329_v42 }
 0x22f   :  { %v5993_v33 = vpop.permute.xlu0 %1480  ;;  %v5995_v56 = vpop.permute.xlu1 %1166  ;;  %v9701_v7 = vrot.slane %v6023_v12, 5 }
 0x230   :  { %9814 = vst [vmem:[#allocation42_spill] sm:$0xff] %v5993_v33  ;;  %9815 = vst [vmem:[#allocation43_spill] sm:$0xff] %v5995_v56 }
 0x231   :  { %1896 = vrot.lane.b32.xlu0 %v1889_v38, %s4954_s14  ;;  %1774 = vrot.lane.b32.xlu1 %v1766_v41, %s4954_s14  ;;  %v1924_v38 = vsel %vm50_vm0, %v1922_v18, %v9700_v11  ;;  %v9820_v41 = vrot.slane %v5826_v32, 2  ;;  %v9823_v32 = vrot.slane %v6002_v62, 4  ;;  %v1806_v18 = vsel %vm800_vm7, %v9824_v4, %v1805_v29 }
 0x233   :  { %v6016_v31 = vpop.permute.xlu0 %1484  ;;  %v6018_v45 = vpop.permute.xlu1 %1242  ;;  %v1771_v59 = vsel %vm735_vm6, %v9820_v41, %v1770_v17  ;;  %v1929_v17 = vsel %vm50_vm0, %v1927_v30, %v9823_v32  ;;  %v1832_v41 = vmul.f32 %v5882_v54, %v5350_v50  ;;  %v1953_v30 = vmul.f32 %v6014_v22, %v5225_v48 }
 0x234   :  { %9818 = vst [vmem:[#allocation44_spill] sm:$0xff] %v6016_v31  ;;  %9819 = vst [vmem:[#allocation45_spill] sm:$0xff] %v6018_v45  ;;  %v6058_v32 = vstv %s4745_s18  ;;  %v1912_v31 = vmul.f32 %v5970_v61, %v5350_v50  ;;  %s4764_s18 = sld [smem:[#allocation6 + $0xb]] }
 0x235   :  { %1932 = vrot.lane.b32.xlu0 %v1924_v38, %s4954_s14  ;;  %1778 = vrot.lane.b32.xlu1 %v1771_v59, %s4954_s14  ;;  %v1810_v38 = vrot.slane %v1795_v16, 3  ;;  %v1962_v59 = vrot.slane %v1950_v47, 5  ;;  %v6069_v4 = vmul.f32 %v6058_v32, %v5244_v1  ;;  %v9827_v47 = vrot.slane %v5874_v2, 3 }
 0x236   :  { %v1845_v11 = vrot.slane %v1832_v41, 3  ;;  %v9830_v41 = vrot.slane %v5893_v6, 3  ;;  %v1993_v2 = vmul.f32 %v6058_v32, %v5202_v58 }
 0x237   :  { %v6037_v39 = vpop.permute.xlu0 %1560  ;;  %v6039_v24 = vpop.permute.xlu1 %1246  ;;  %v1964_v29 = vsel %vm533_vm2, %v1962_v59, %v9701_v7  ;;  %v1990_v59 = vmul.f32 %v6058_v32, %v5198_v57  ;;  %v1967_v7 = vrot.slane %v1953_v30, 5  ;;  %v1872_v30 = vmul.f32 %v5934_v52, %v5283_v28 }
 0x238   :  { %9821 = vst [vmem:[#allocation46_spill] sm:$0xff] %v6037_v39  ;;  %9822 = vst [vmem:[#allocation47_spill] sm:$0xff] %v6039_v24  ;;  %v9833_v6 = vrot.slane %v6069_v4, 5 }
 0x239   :  { %1936 = vrot.lane.b32.xlu0 %v1929_v17, %s4954_s14  ;;  %1814 = vrot.lane.b32.xlu1 %v1806_v18, %s4954_s14  ;;  %v1811_v17 = vsel %vm800_vm7, %v9827_v47, %v1810_v38  ;;  %v9702_v18 = vrot.slane %v6050_v63, 5  ;;  %v6088_v38 = vmul.f32 %v6058_v32, %v5262_v10  ;;  %v1850_v47 = vrot.slane %v1835_v44, 3 }
 0x23b   :  { %v6060_v60 = vpop.permute.xlu0 %1564  ;;  %v6062_v16 = vpop.permute.xlu1 %1322  ;;  %v1969_v54 = vsel %vm533_vm2, %v1967_v7, %v9702_v18 }
 0x23c   :  { %9825 = vst [vmem:[#allocation48_spill] sm:$0xff] %v6060_v60  ;;  %9826 = vst [vmem:[#allocation49_spill] sm:$0xff] %v6062_v16 }
 0x23d   :  { %1972 = vrot.lane.b32.xlu0 %v1964_v29, %s4954_s14  ;;  %1818 = vrot.lane.b32.xlu1 %v1811_v17, %s4954_s14  ;;  %v1846_v29 = vsel %vm800_vm7, %v9830_v41, %v1845_v11  ;;  %v2002_v17 = vrot.slane %v1990_v59, 5  ;;  %v6110_v41 = vstv %s4746_s19  ;;  %s4956_s19 = smov 124  }
 0x23e   :  { %v6117_v18 = vmul.f32 %v6110_v41, %v5311_v34 }
 0x23f   :  { %v6081_v21 = vpop.permute.xlu0 %1120  ;;  %v6083_v39 = vpop.permute.xlu1 %1326  ;;  %v2004_v44 = vsel %vm533_vm2, %v2002_v17, %v9833_v6  ;;  %v2007_v17 = vrot.slane %v1993_v2, 5  ;;  %v2030_v6 = vmul.f32 %v6110_v41, %v5216_v43 }
 0x240   :  { %9828 = vst [vmem:[#allocation50_spill] sm:$0xff] %v6081_v21  ;;  %9829 = vst [vmem:[#allocation51_spill] sm:$0xff] %v6083_v39  ;;  %v9703_v2 = vrot.slane %v6117_v18, 6  ;;  %v1915_v39 = vmul.f32 %v5970_v61, %v5379_v51  ;;  %v9845_v61 = vrot.slane %v5979_v15, 4 }
 0x241   :  { %1976 = vrot.lane.b32.xlu0 %v1969_v54, %s4954_s14  ;;  %1854 = vrot.lane.b32.xlu1 %v1846_v29, %s4954_s14  ;;  %v9834_v54 = vrot.slane %v5912_v55, 3  ;;  %v1885_v29 = vrot.slane %v1872_v30, 4 }
 0x243   :  { %v6102_v60 = vpop.permute.xlu0 %1124  ;;  %v6104_v7 = vpop.permute.xlu1 %1402  ;;  %v1851_v59 = vsel %vm800_vm7, %v9834_v54, %v1850_v47  ;;  %v9837_v47 = vrot.slane %v6088_v38, 5  ;;  %v6134_v54 = vmul.f32 %v6110_v41, %v5329_v42 }
 0x244   :  { %9831 = vst [vmem:[#allocation52_spill] sm:$0xff] %v6102_v60  ;;  %9832 = vst [vmem:[#allocation53_spill] sm:$0xff] %v6104_v7  ;;  %v1875_v7 = vmul.f32 %v5934_v52, %v5302_v27  ;;  %v9838_v52 = vrot.slane %v5941_v8, 4 }
 0x245   :  { %2012 = vrot.lane.b32.xlu0 %v2004_v44, %s4954_s14  ;;  %1858 = vrot.lane.b32.xlu1 %v1851_v59, %s4954_s14  ;;  %v2009_v30 = vsel %vm533_vm2, %v2007_v17, %v9837_v47  ;;  %v2033_v17 = vmul.f32 %v6110_v41, %v5225_v48  ;;  %v2042_v47 = vrot.slane %v2030_v6, 6 }
 0x246   :  { %v1886_v44 = vsel %vm50_vm0, %v9838_v52, %v1885_v29  ;;  %v1890_v59 = vrot.slane %v1875_v7, 4  ;;  %v9841_v52 = vrot.slane %v5958_v0, 4  ;;  %v9844_v0 = vrot.slane %v6134_v54, 6 }
 0x247   :  { %v6125_v11 = vpop.permute.xlu0 %1200  ;;  %v6127_v55 = vpop.permute.xlu1 %1406  ;;  %v2047_v29 = vrot.slane %v2033_v17, 6 }
 0x248   :  { %9835 = vst [vmem:[#allocation54_spill] sm:$0xff] %v6125_v11  ;;  %9836 = vst [vmem:[#allocation55_spill] sm:$0xff] %v6127_v55  ;;  %v6146_v55 = vstv %s4747_s20  ;;  %v1891_v6 = vsel %vm50_vm0, %v9841_v52, %v1890_v59  ;;  %v1952_v52 = vmul.f32 %v6014_v22, %v5283_v28  ;;  %s4765_s20 = sld [smem:[#allocation6 + $0x3c]] }
 0x249   :  { %2016 = vrot.lane.b32.xlu0 %v2009_v30, %s4954_s14  ;;  %1894 = vrot.lane.b32.xlu1 %v1886_v44, %s4954_s14  ;;  %v6155_v7 = vmul.f32 %v6146_v55, %v5244_v1  ;;  %v2044_v30 = vsel %vm993_vm8, %v2042_v47, %v9703_v2  ;;  %v1925_v44 = vrot.slane %v1912_v31, 4  ;;  %v2049_v59 = vsel %vm993_vm8, %v2047_v29, %v9844_v0 }
 0x24a   :  { %v6182_v17 = vmul.f32 %v6146_v55, %v5262_v10  ;;  %v1965_v2 = vrot.slane %v1952_v52, 5 }
 0x24b   :  { %v6148_v33 = vpop.permute.xlu0 %1204  ;;  %v6150_v8 = vpop.permute.xlu1 %1482  ;;  %v9705_v31 = vrot.slane %v6155_v7, 6  ;;  %v1926_v47 = vsel %vm50_vm0, %v9845_v61, %v1925_v44  ;;  %v9848_v44 = vrot.slane %v6002_v62, 4 }
 0x24c   :  { %9839 = vst [vmem:[#allocation56_spill] sm:$0xff] %v6148_v33  ;;  %9840 = vst [vmem:[#allocation57_spill] sm:$0xff] %v6150_v8  ;;  %v2070_v8 = vmul.f32 %v6146_v55, %v5198_v57 }
 0x24d   :  { %2052 = vrot.lane.b32.xlu0 %v2044_v30, %s4954_s14  ;;  %1898 = vrot.lane.b32.xlu1 %v1891_v6, %s4954_s14  ;;  %v1930_v30 = vrot.slane %v1915_v39, 4  ;;  %v2073_v6 = vmul.f32 %v6146_v55, %v5202_v58 }
 0x24e   :  { %v2082_v29 = vrot.slane %v2070_v8, 6  ;;  %v1955_v8 = vmul.f32 %v6014_v22, %v5302_v27 }
 0x24f   :  { %v6169_v16 = vpop.permute.xlu0 %1280  ;;  %v6171_v20 = vpop.permute.xlu1 %1486  ;;  %v1931_v61 = vsel %vm50_vm0, %v9848_v44, %v1930_v30  ;;  %v9851_v30 = vrot.slane %v6023_v12, 5  ;;  %v9854_v12 = vrot.slane %v6050_v63, 5  ;;  %v9857_v63 = vrot.slane %v6069_v4, 5 }
 0x250   :  { %9842 = vst [vmem:[#allocation58_spill] sm:$0xff] %v6169_v16  ;;  %9843 = vst [vmem:[#allocation59_spill] sm:$0xff] %v6171_v20  ;;  %v2084_v39 = vsel %vm993_vm8, %v2082_v29, %v9705_v31  ;;  %v6209_v29 = vstv %s4748_s21  ;;  %v1970_v22 = vrot.slane %v1955_v8, 5  ;;  %v6255_v4 = vstv %s4750_s23  ;;  %s4766_s21 = sld [smem:[#allocation6 + $0x12]]  ;;  %s6925_s23 = sld [smem:[#allocation6 + $0x31]] }
 0x251   :  { %2056 = vrot.lane.b32.xlu0 %v2049_v59, %s4954_s14  ;;  %1934 = vrot.lane.b32.xlu1 %v1926_v47, %s4954_s14  ;;  %v9704_v59 = vrot.slane %v6182_v17, 6  ;;  %v2087_v47 = vrot.slane %v2073_v6, 6  ;;  %v1966_v52 = vsel %vm533_vm2, %v9851_v30, %v1965_v2  ;;  %v2162_v31 = vmul.f32 %v6255_v4, %v5216_v43 }
 0x252   :  { %v1971_v2 = vsel %vm533_vm2, %v9854_v12, %v1970_v22 }
 0x253   :  { %v6190_v0 = vpop.permute.xlu0 %1284  ;;  %v6192_v15 = vpop.permute.xlu1 %1562  ;;  %v2089_v62 = vsel %vm993_vm8, %v2087_v47, %v9704_v59  ;;  %v1995_v47 = vmul.f32 %v6058_v32, %v5379_v51 }
 0x254   :  { %9846 = vst [vmem:[#allocation60_spill] sm:$0xff] %v6190_v0  ;;  %9847 = vst [vmem:[#allocation61_spill] sm:$0xff] %v6192_v15 }
 0x255   :  { %2092 = vrot.lane.b32.xlu0 %v2084_v39, %s4954_s14  ;;  %1938 = vrot.lane.b32.xlu1 %v1931_v61, %s4954_s14  ;;  %v1992_v39 = vmul.f32 %v6058_v32, %v5350_v50  ;;  %v2110_v61 = vmul.f32 %v6209_v29, %v5216_v43  ;;  %v2010_v12 = vrot.slane %v1995_v47, 5  ;;  %v2032_v32 = vmul.f32 %v6110_v41, %v5283_v28 }
 0x256   :  { %v9860_v47 = vrot.slane %v6088_v38, 5 }
 0x257   :  { %v6205_v15 = vpop.permute.xlu0 %1360  ;;  %v6207_v20 = vpop.permute.xlu1 %1566  ;;  %v2005_v8 = vrot.slane %v1992_v39, 5  ;;  %v6243_v39 = vstv %s4749_s22  ;;  %s4767_s22 = sld [smem:[#allocation6 + $0x43]] }
 0x258   :  { %9849 = vst [vmem:[#allocation62_spill] sm:$0xff] %v6205_v15  ;;  %9850 = vst [vmem:[#allocation63_spill] sm:$0xff] %v6207_v20  ;;  %v2136_v59 = vmul.f32 %v6243_v39, %v5198_v57  ;;  %v2138_v38 = vmul.f32 %v6243_v39, %v5202_v58 }
 0x259   :  { %2096 = vrot.lane.b32.xlu0 %v2089_v62, %s4954_s14  ;;  %1974 = vrot.lane.b32.xlu1 %v1966_v52, %s4954_s14  ;;  %v2112_v52 = vmul.f32 %v6209_v29, %v5225_v48  ;;  %v2006_v22 = vsel %vm533_vm2, %v9857_v63, %v2005_v8  ;;  %v2035_v8 = vmul.f32 %v6110_v41, %v5302_v27 }
 0x25a   :  { %v2011_v63 = vsel %vm533_vm2, %v9860_v47, %v2010_v12  ;;  %v9863_v47 = vrot.slane %v6117_v18, 6  ;;  %v9866_v18 = vrot.slane %v6134_v54, 6 }
 0x25b   :  { %v6221_v6 = vpop.permute.xlu0 %1364  ;;  %v6223_v44 = vpop.permute.xlu1 %1122  ;;  %v2050_v12 = vrot.slane %v2035_v8, 6  ;;  %v2165_v8 = vmul.f32 %v6255_v4, %v5225_v48 }
 0x25c   :  { %9852 = vst [vmem:[#allocation64_spill] sm:$0xff] %v6221_v6  ;;  %9853 = vst [vmem:[#allocation65_spill] sm:$0xff] %v6223_v44 }
 0x25d   :  { %2118 = vrot.lane.b32.xlu0 %v2110_v61, %s4955_s24  ;;  %1978 = vrot.lane.b32.xlu1 %v1971_v2, %s4954_s14  ;;  %v2179_v54 = vrot.slane %v2165_v8, 1 }
 0x25f   :  { %v6234_v62 = vpop.permute.xlu0 %1440  ;;  %v6236_v30 = vpop.permute.xlu1 %1126 }
 0x260   :  { %9855 = vst [vmem:[#allocation66_spill] sm:$0xff] %v6234_v62  ;;  %9856 = vst [vmem:[#allocation67_spill] sm:$0xff] %v6236_v30 }
 0x261   :  { %2122 = vrot.lane.b32.xlu0 %v2112_v52, %s4955_s24  ;;  %2014 = vrot.lane.b32.xlu1 %v2006_v22, %s4954_s14  ;;  %v2045_v52 = vrot.slane %v2032_v32, 6  ;;  %v6264_v22 = vmul.f32 %v6255_v4, %v5311_v34  ;;  %v2072_v32 = vmul.f32 %v6146_v55, %v5350_v50 }
 0x263   :  { %v6249_v61 = vpop.permute.xlu0 %1444  ;;  %v6251_v2 = vpop.permute.xlu1 %1202 }
 0x264   :  { %9858 = vst [vmem:[#allocation68_spill] sm:$0xff] %v6249_v61  ;;  %9859 = vst [vmem:[#allocation69_spill] sm:$0xff] %v6251_v2  ;;  %v6284_v61 = vmul.f32 %v6255_v4, %v5329_v42 }
 0x265   :  { %2144 = vrot.lane.b32.xlu0 %v2136_v59, %s4955_s24  ;;  %2018 = vrot.lane.b32.xlu1 %v2011_v63, %s4954_s14  ;;  %v2046_v59 = vsel %vm993_vm8, %v9863_v47, %v2045_v52  ;;  %v2051_v52 = vsel %vm993_vm8, %v9866_v18, %v2050_v12  ;;  %v2085_v47 = vrot.slane %v2072_v32, 6  ;;  %v6297_v63 = vstv %s4751_s26  ;;  %s6927_s26 = sld [smem:[#allocation6 + $0x38]] }
 0x266   :  { %v6305_v46 = vmul.f32 %v6297_v63, %v5244_v1  ;;  %v2202_v12 = vmul.f32 %v6297_v63, %v5198_v57  ;;  %v9870_v18 = vrot.slane %v6155_v7, 6  ;;  %v6326_v8 = vmul.f32 %v6297_v63, %v5262_v10 }
 0x267   :  { %v6270_v20 = vpop.permute.xlu0 %1520  ;;  %v6272_v41 = vpop.permute.xlu1 %1206  ;;  %v2205_v7 = vmul.f32 %v6297_v63, %v5202_v58 }
 0x268   :  { %9861 = vst [vmem:[#allocation70_spill] sm:$0xff] %v6270_v20  ;;  %9862 = vst [vmem:[#allocation71_spill] sm:$0xff] %v6272_v41  ;;  %v2174_v20 = vrot.slane %v2162_v31, 1  ;;  %v9706_v31 = vrot.slane %v6284_v61, 1 }
 0x269   :  { %2148 = vrot.lane.b32.xlu0 %v2138_v38, %s4955_s24  ;;  %2054 = vrot.lane.b32.xlu1 %v2046_v59, %s4954_s14  ;;  %v9867_v38 = vrot.slane %v6264_v22, 1 }
 0x26b   :  { %v6290_v62 = vpop.permute.xlu0 %1524  ;;  %v6292_v24 = vpop.permute.xlu1 %1282  ;;  %v2176_v59 = vsel %vm670_vm5, %v2174_v20, %v9867_v38  ;;  %v2086_v38 = vsel %vm993_vm8, %v9870_v18, %v2085_v47 }
 0x26c   :  { %9864 = vst [vmem:[#allocation72_spill] sm:$0xff] %v6290_v62  ;;  %9865 = vst [vmem:[#allocation73_spill] sm:$0xff] %v6292_v24  ;;  %v2075_v62 = vmul.f32 %v6146_v55, %v5379_v51  ;;  %v2181_v55 = vsel %vm670_vm5, %v2179_v54, %v9706_v31  ;;  %v6336_v54 = vstv %s4752_s27  ;;  %v9873_v31 = vrot.slane %v6182_v17, 6  ;;  %s6945_s27 = sld [smem:[#allocation6 + $0x7]] }
 0x26d   :  { %2184 = vrot.lane.b32.xlu0 %v2176_v59, %s4955_s24  ;;  %2058 = vrot.lane.b32.xlu1 %v2051_v52, %s4954_s14  ;;  %v9707_v59 = vrot.slane %v6305_v46, 1  ;;  %v2214_v52 = vrot.slane %v2202_v12, 1  ;;  %v9708_v12 = vrot.slane %v6326_v8, 1 }
 0x26e   :  { %v2090_v24 = vrot.slane %v2075_v62, 6 }
 0x26f   :  { %v6313_v32 = vpop.permute.xlu0 %1652  ;;  %v6315_v20 = vpop.permute.xlu1 %1286  ;;  %v2216_v62 = vsel %vm670_vm5, %v2214_v52, %v9707_v59 }
 0x270   :  { %9868 = vst [vmem:[#allocation74_spill] sm:$0xff] %v6313_v32  ;;  %9869 = vst [vmem:[#allocation75_spill] sm:$0xff] %v6315_v20  ;;  %v2219_v32 = vrot.slane %v2205_v7, 1  ;;  %v2139_v20 = vmul.f32 %v6243_v39, %v5262_v10 }
 0x271   :  { %2188 = vrot.lane.b32.xlu0 %v2181_v55, %s4955_s24  ;;  %2094 = vrot.lane.b32.xlu1 %v2086_v38, %s4954_s14  ;;  %v2091_v55 = vsel %vm993_vm8, %v9873_v31, %v2090_v24  ;;  %v6347_v38 = vmul.f32 %v6336_v54, %v5311_v34  ;;  %v2111_v24 = vmul.f32 %v6209_v29, %v5311_v34 }
 0x272   :  { %v2221_v17 = vsel %vm670_vm5, %v2219_v32, %v9708_v12  ;;  %v2113_v32 = vmul.f32 %v6209_v29, %v5329_v42  ;;  %v6377_v12 = vstv %s4753_s28  ;;  %s6949_s28 = sld [smem:[#allocation6 + $0x3f]] }
 0x273   :  { %v6332_v47 = vpop.permute.xlu0 %1656  ;;  %v6334_v18 = vpop.permute.xlu1 %1362  ;;  %v9709_v31 = vrot.slane %v6347_v38, 2  ;;  %v2282_v29 = vmul.f32 %v6377_v12, %v5198_v57 }
 0x274   :  { %9871 = vst [vmem:[#allocation76_spill] sm:$0xff] %v6332_v47  ;;  %9872 = vst [vmem:[#allocation77_spill] sm:$0xff] %v6334_v18  ;;  %v2242_v47 = vmul.f32 %v6336_v54, %v5216_v43 }
 0x275   :  { %2224 = vrot.lane.b32.xlu0 %v2216_v62, %s4955_s24  ;;  %2098 = vrot.lane.b32.xlu1 %v2091_v55, %s4954_s14  ;;  %v6365_v62 = vmul.f32 %v6336_v54, %v5329_v42  ;;  %v2245_v55 = vmul.f32 %v6336_v54, %v5225_v48  ;;  %s4754_s14 = sld [smem:[#allocation6 + $0x18]] }
 0x276   :  { %v2254_v7 = vrot.slane %v2242_v47, 2  ;;  %v6385_v47 = vmul.f32 %v6377_v12, %v5244_v1 }
 0x277   :  { %v6353_v18 = vpop.permute.xlu0 %1692  ;;  %v6355_v52 = vpop.permute.xlu1 %1366 }
 0x278   :  { %9874 = vst [vmem:[#allocation78_spill] sm:$0xff] %v6353_v18  ;;  %9875 = vst [vmem:[#allocation79_spill] sm:$0xff] %v6355_v52 }
 0x279   :  { %2228 = vrot.lane.b32.xlu0 %v2221_v17, %s4955_s24  ;;  %2120 = vrot.lane.b32.xlu1 %v2111_v24, %s4955_s24  ;;  %v2256_v17 = vsel %vm735_vm6, %v2254_v7, %v9709_v31  ;;  %v9710_v24 = vrot.slane %v6365_v62, 2  ;;  %v2137_v7 = vmul.f32 %v6243_v39, %v5244_v1 }
 0x27b   :  { %v6371_v59 = vpop.permute.xlu0 %1696  ;;  %v6373_v18 = vpop.permute.xlu1 %1442 }
 0x27c   :  { %9876 = vst [vmem:[#allocation80_spill] sm:$0xff] %v6371_v59  ;;  %9877 = vst [vmem:[#allocation81_spill] sm:$0xff] %v6373_v18  ;;  %v2259_v59 = vrot.slane %v2245_v55, 2  ;;  %v2164_v55 = vmul.f32 %v6255_v4, %v5283_v28 }
 0x27d   :  { %2264 = vrot.lane.b32.xlu0 %v2256_v17, %s4955_s24  ;;  %2124 = vrot.lane.b32.xlu1 %v2113_v32, %s4955_s24  ;;  %v6403_v32 = vmul.f32 %v6377_v12, %v5262_v10  ;;  %v2294_v17 = vrot.slane %v2282_v29, 2 }
 0x27e   :  { %v2261_v31 = vsel %vm735_vm6, %v2259_v59, %v9710_v24  ;;  %v2177_v6 = vrot.slane %v2164_v55, 1 }
 0x27f   :  { %v6391_v18 = vpop.permute.xlu0 %1732  ;;  %v6393_v52 = vpop.permute.xlu1 %1446 }
 0x280   :  { %9878 = vst [vmem:[#allocation82_spill] sm:$0xff] %v6391_v18  ;;  %9879 = vst [vmem:[#allocation83_spill] sm:$0xff] %v6393_v52  ;;  %v2285_v18 = vmul.f32 %v6377_v12, %v5202_v58  ;;  %v6411_v52 = vstv %s4754_s14  ;;  %s6953_s14 = sld [smem:[#allocation6 + $0x19]] }
 0x281   :  { %2268 = vrot.lane.b32.xlu0 %v2261_v31, %s4955_s24  ;;  %2146 = vrot.lane.b32.xlu1 %v2137_v7, %s4955_s24  ;;  %v6421_v45 = vmul.f32 %v6411_v52, %v5311_v34  ;;  %v9882_v31 = vrot.slane %v6385_v47, 2  ;;  %v9711_v7 = vrot.slane %v6403_v32, 2  ;;  %v2322_v39 = vmul.f32 %v6411_v52, %v5216_v43 }
 0x282   :  { %v6440_v55 = vmul.f32 %v6411_v52, %v5329_v42 }
 0x283   :  { %v6413_v59 = vpop.permute.xlu0 %1736  ;;  %v6415_v24 = vpop.permute.xlu1 %1522  ;;  %v2296_v29 = vsel %vm735_vm6, %v2294_v17, %v9882_v31  ;;  %v2334_v17 = vrot.slane %v2322_v39, 3 }
 0x284   :  { %9880 = vst [vmem:[#allocation84_spill] sm:$0xff] %v6413_v59  ;;  %9881 = vst [vmem:[#allocation85_spill] sm:$0xff] %v6415_v24  ;;  %v2167_v59 = vmul.f32 %v6255_v4, %v5302_v27  ;;  %v2299_v24 = vrot.slane %v2285_v18, 2  ;;  %v2204_v18 = vmul.f32 %v6297_v63, %v5350_v50 }
 0x285   :  { %2304 = vrot.lane.b32.xlu0 %v2296_v29, %s4955_s24  ;;  %2150 = vrot.lane.b32.xlu1 %v2139_v20, %s4955_s24  ;;  %v9885_v20 = vrot.slane %v6264_v22, 1  ;;  %v9888_v22 = vrot.slane %v6421_v45, 3 }
 0x286   :  { %v2301_v4 = vsel %vm735_vm6, %v2299_v24, %v9711_v7  ;;  %v2182_v29 = vrot.slane %v2167_v59, 1 }
 0x287   :  { %v6433_v41 = vpop.permute.xlu0 %1772  ;;  %v6435_v9 = vpop.permute.xlu1 %1526  ;;  %v2178_v31 = vsel %vm670_vm5, %v9885_v20, %v2177_v6  ;;  %v2336_v6 = vsel %vm800_vm7, %v2334_v17, %v9888_v22  ;;  %v6462_v20 = vstv %s4755_s29  ;;  %s6955_s29 = sld [smem:[#allocation6 + $0x46]] }
 0x288   :  { %9883 = vst [vmem:[#allocation86_spill] sm:$0xff] %v6433_v41  ;;  %9884 = vst [vmem:[#allocation87_spill] sm:$0xff] %v6435_v9  ;;  %v2325_v41 = vmul.f32 %v6411_v52, %v5225_v48  ;;  %v6469_v7 = vmul.f32 %v6462_v20, %v5244_v1  ;;  %v2362_v22 = vmul.f32 %v6462_v20, %v5198_v57 }
 0x289   :  { %2308 = vrot.lane.b32.xlu0 %v2301_v4, %s4955_s24  ;;  %2186 = vrot.lane.b32.xlu1 %v2178_v31, %s4955_s24  ;;  %v9889_v4 = vrot.slane %v6284_v61, 1  ;;  %v2217_v31 = vrot.slane %v2204_v18, 1 }
 0x28a   :  { %v2339_v17 = vrot.slane %v2325_v41, 3  ;;  %v9712_v41 = vrot.slane %v6469_v7, 3 }
 0x28b   :  { %v6454_v9 = vpop.permute.xlu0 %1776  ;;  %v6456_v24 = vpop.permute.xlu1 %1654  ;;  %v2183_v39 = vsel %vm670_vm5, %v9889_v4, %v2182_v29  ;;  %v9892_v29 = vrot.slane %v6440_v55, 3  ;;  %v6486_v4 = vmul.f32 %v6462_v20, %v5262_v10 }
 0x28c   :  { %9886 = vst [vmem:[#allocation88_spill] sm:$0xff] %v6454_v9  ;;  %9887 = vst [vmem:[#allocation89_spill] sm:$0xff] %v6456_v24  ;;  %v2207_v24 = vmul.f32 %v6297_v63, %v5379_v51  ;;  %v9893_v63 = vrot.slane %v6305_v46, 1 }
 0x28d   :  { %2344 = vrot.lane.b32.xlu0 %v2336_v6, %s4955_s24  ;;  %2190 = vrot.lane.b32.xlu1 %v2183_v39, %s4955_s24  ;;  %v2341_v18 = vsel %vm800_vm7, %v2339_v17, %v9892_v29  ;;  %v2365_v17 = vmul.f32 %v6462_v20, %v5202_v58  ;;  %v2374_v29 = vrot.slane %v2362_v22, 3 }
 0x28e   :  { %v2218_v6 = vsel %vm670_vm5, %v9893_v63, %v2217_v31  ;;  %v2222_v39 = vrot.slane %v2207_v24, 1 }
 0x28f   :  { %v6477_v59 = vpop.permute.xlu0 %1812  ;;  %v6479_v61 = vpop.permute.xlu1 %1658  ;;  %v2379_v24 = vrot.slane %v2365_v17, 3 }
 0x290   :  { %9890 = vst [vmem:[#allocation90_spill] sm:$0xff] %v6477_v59  ;;  %9891 = vst [vmem:[#allocation91_spill] sm:$0xff] %v6479_v61  ;;  %v2244_v59 = vmul.f32 %v6336_v54, %v5283_v28  ;;  %v6498_v61 = vstv %s4756_s9  ;;  %s6957_s9 = sld [smem:[#allocation6 + $0x4d]] }
 0x291   :  { %2348 = vrot.lane.b32.xlu0 %v2341_v18, %s4955_s24  ;;  %2226 = vrot.lane.b32.xlu1 %v2218_v6, %s4955_s24  ;;  %v6507_v63 = vmul.f32 %v6498_v61, %v5311_v34  ;;  %v2376_v18 = vsel %vm800_vm7, %v2374_v29, %v9712_v41  ;;  %v9896_v6 = vrot.slane %v6326_v8, 1  ;;  %v9899_v8 = vrot.slane %v6486_v4, 3 }
 0x292   :  { %v2257_v9 = vrot.slane %v2244_v59, 2  ;;  %v6534_v17 = vmul.f32 %v6498_v61, %v5329_v42 }
 0x293   :  { %v6500_v46 = vpop.permute.xlu0 %1816  ;;  %v6502_v31 = vpop.permute.xlu1 %1694  ;;  %v2223_v22 = vsel %vm670_vm5, %v9896_v6, %v2222_v39  ;;  %v2381_v39 = vsel %vm800_vm7, %v2379_v24, %v9899_v8  ;;  %v9713_v59 = vrot.slane %v6507_v63, 4  ;;  %v2284_v6 = vmul.f32 %v6377_v12, %v5350_v50 }
 0x294   :  { %9894 = vst [vmem:[#allocation92_spill] sm:$0xff] %v6500_v46  ;;  %9895 = vst [vmem:[#allocation93_spill] sm:$0xff] %v6502_v31  ;;  %v2247_v46 = vmul.f32 %v6336_v54, %v5302_v27  ;;  %v2402_v31 = vmul.f32 %v6498_v61, %v5216_v43  ;;  %v9900_v54 = vrot.slane %v6347_v38, 2  ;;  %v2405_v24 = vmul.f32 %v6498_v61, %v5225_v48 }
 0x295   :  { %2384 = vrot.lane.b32.xlu0 %v2376_v18, %s4955_s24  ;;  %2230 = vrot.lane.b32.xlu1 %v2223_v22, %s4955_s24  ;;  %v6542_v8 = vstv %s4757_s10  ;;  %v2297_v41 = vrot.slane %v2284_v6, 2  ;;  %v9906_v6 = vrot.slane %v6385_v47, 2  ;;  %s6975_s10 = sld [smem:[#allocation6 + $0x54]] }
 0x296   :  { %v2258_v29 = vsel %vm735_vm6, %v9900_v54, %v2257_v9  ;;  %v2262_v18 = vrot.slane %v2247_v46, 2  ;;  %v2414_v22 = vrot.slane %v2402_v31, 4  ;;  %v6553_v54 = vmul.f32 %v6542_v8, %v5244_v1 }
 0x297   :  { %v6521_v15 = vpop.permute.xlu0 %1852  ;;  %v6523_v2 = vpop.permute.xlu1 %1698  ;;  %v9903_v31 = vrot.slane %v6365_v62, 2 }
 0x298   :  { %9897 = vst [vmem:[#allocation94_spill] sm:$0xff] %v6521_v15  ;;  %9898 = vst [vmem:[#allocation95_spill] sm:$0xff] %v6523_v2  ;;  %v2416_v46 = vsel %vm50_vm0, %v2414_v22, %v9713_v59  ;;  %v2287_v2 = vmul.f32 %v6377_v12, %v5379_v51  ;;  %v2419_v22 = vrot.slane %v2405_v24, 4  ;;  %v2442_v59 = vmul.f32 %v6542_v8, %v5198_v57 }
 0x299   :  { %2388 = vrot.lane.b32.xlu0 %v2381_v39, %s4955_s24  ;;  %2266 = vrot.lane.b32.xlu1 %v2258_v29, %s4955_s24  ;;  %v2263_v39 = vsel %vm735_vm6, %v9903_v31, %v2262_v18  ;;  %v9714_v29 = vrot.slane %v6534_v17, 4  ;;  %v6572_v18 = vmul.f32 %v6542_v8, %v5262_v10  ;;  %v2298_v24 = vsel %vm735_vm6, %v9906_v6, %v2297_v41 }
 0x29a   :  { %v2324_v31 = vmul.f32 %v6411_v52, %v5283_v28  ;;  %v2454_v62 = vrot.slane %v2442_v59, 4  ;;  %v9909_v41 = vrot.slane %v6553_v54, 4  ;;  %v9910_v6 = vrot.slane %v6403_v32, 2 }
 0x29b   :  { %v6544_v38 = vpop.permute.xlu0 %1856  ;;  %v6546_v9 = vpop.permute.xlu1 %1734  ;;  %v2421_v12 = vsel %vm50_vm0, %v2419_v22, %v9714_v29  ;;  %v6591_v22 = vstv %s4758_s11  ;;  %v9913_v32 = vrot.slane %v6572_v18, 4  ;;  %s6977_s11 = sld [smem:[#allocation6 + $0x5b]] }
 0x29c   :  { %9901 = vst [vmem:[#allocation96_spill] sm:$0xff] %v6544_v38  ;;  %9902 = vst [vmem:[#allocation97_spill] sm:$0xff] %v6546_v9  ;;  %v6603_v29 = vmul.f32 %v6591_v22, %v5311_v34 }
 0x29d   :  { %2424 = vrot.lane.b32.xlu0 %v2416_v46, %s4955_s24  ;;  %2270 = vrot.lane.b32.xlu1 %v2263_v39, %s4955_s24  ;;  %v2302_v46 = vrot.slane %v2287_v2, 2  ;;  %v2445_v39 = vmul.f32 %v6542_v8, %v5202_v58  ;;  %v2327_v2 = vmul.f32 %v6411_v52, %v5302_v27  ;;  %v2482_v52 = vmul.f32 %v6591_v22, %v5216_v43 }
 0x29f   :  { %v6565_v9 = vpop.permute.xlu0 %1892  ;;  %v6567_v15 = vpop.permute.xlu1 %1738  ;;  %v2303_v59 = vsel %vm735_vm6, %v9910_v6, %v2302_v46  ;;  %v2459_v47 = vrot.slane %v2445_v39, 4  ;;  %v6622_v39 = vmul.f32 %v6591_v22, %v5329_v42 }
 0x2a0   :  { %9904 = vst [vmem:[#allocation98_spill] sm:$0xff] %v6565_v9  ;;  %9905 = vst [vmem:[#allocation99_spill] sm:$0xff] %v6567_v15 }
 0x2a1   :  { %2428 = vrot.lane.b32.xlu0 %v2421_v12, %s4955_s24  ;;  %2306 = vrot.lane.b32.xlu1 %v2298_v24, %s4955_s24  ;;  %v2456_v12 = vsel %vm50_vm0, %v2454_v62, %v9909_v41  ;;  %v2337_v24 = vrot.slane %v2324_v31, 3  ;;  %v2461_v46 = vsel %vm50_vm0, %v2459_v47, %v9913_v32  ;;  %v2342_v31 = vrot.slane %v2327_v2, 3 }
 0x2a2   :  { %v9914_v41 = vrot.slane %v6421_v45, 3  ;;  %v2485_v47 = vmul.f32 %v6591_v22, %v5225_v48  ;;  %v7059_v13 = vstv %s6977_s11  ;;  %s8026_s11 = sld [smem:[#allocation6 + $0x44]] }
 0x2a3   :  { %v6586_v15 = vpop.permute.xlu0 %1896  ;;  %v6588_v9 = vpop.permute.xlu1 %1774  ;;  %9980 = vst [vmem:[#allocation147_spill] sm:$0xff] %v7059_v13 }
 0x2a4   :  { %9907 = vst [vmem:[#allocation100_spill] sm:$0xff] %v6586_v15  ;;  %9908 = vst [vmem:[#allocation101_spill] sm:$0xff] %v6588_v9  ;;  %v2338_v6 = vsel %vm800_vm7, %v9914_v41, %v2337_v24  ;;  %v9917_v24 = vrot.slane %v6440_v55, 3  ;;  %v6637_v41 = vstv %s4759_s13  ;;  %v2499_v55 = vrot.slane %v2485_v47, 5  ;;  %s6981_s13 = sld [smem:[#allocation6 + $0xe]] }
 0x2a5   :  { %2464 = vrot.lane.b32.xlu0 %v2456_v12, %s4955_s24  ;;  %2310 = vrot.lane.b32.xlu1 %v2303_v59, %s4955_s24  ;;  %v2364_v59 = vmul.f32 %v6462_v20, %v5350_v50  ;;  %v2367_v12 = vmul.f32 %v6462_v20, %v5379_v51  ;;  %v2522_v20 = vmul.f32 %v6637_v41, %v5198_v57 }
 0x2a6   :  { %v2343_v32 = vsel %vm800_vm7, %v9917_v24, %v2342_v31 }
 0x2a7   :  { %v6609_v9 = vpop.permute.xlu0 %1932  ;;  %v6611_v62 = vpop.permute.xlu1 %1778 }
 0x2a8   :  { %9911 = vst [vmem:[#allocation102_spill] sm:$0xff] %v6609_v9  ;;  %9912 = vst [vmem:[#allocation103_spill] sm:$0xff] %v6611_v62  ;;  %v2494_v62 = vrot.slane %v2482_v52, 5  ;;  %v2377_v9 = vrot.slane %v2364_v59, 3  ;;  %v6659_v59 = vmul.f32 %v6637_v41, %v5262_v10 }
 0x2a9   :  { %2468 = vrot.lane.b32.xlu0 %v2461_v46, %s4955_s24  ;;  %2346 = vrot.lane.b32.xlu1 %v2338_v6, %s4955_s24  ;;  %v9918_v46 = vrot.slane %v6603_v29, 5  ;;  %v9715_v6 = vrot.slane %v6622_v39, 5 }
 0x2ab   :  { %v6630_v45 = vpop.permute.xlu0 %1936  ;;  %v6632_v2 = vpop.permute.xlu1 %1814  ;;  %v2496_v52 = vsel %vm533_vm2, %v2494_v62, %v9918_v46  ;;  %v2382_v62 = vrot.slane %v2367_v12, 3  ;;  %v2501_v46 = vsel %vm533_vm2, %v2499_v55, %v9715_v6  ;;  %v2525_v12 = vmul.f32 %v6637_v41, %v5202_v58 }
 0x2ac   :  { %9915 = vst [vmem:[#allocation104_spill] sm:$0xff] %v6630_v45  ;;  %9916 = vst [vmem:[#allocation105_spill] sm:$0xff] %v6632_v2  ;;  %v6647_v2 = vmul.f32 %v6637_v41, %v5244_v1  ;;  %v6682_v6 = vstv %s4760_s15  ;;  %s6983_s15 = sld [smem:[#allocation6 + $0x15]] }
 0x2ad   :  { %2504 = vrot.lane.b32.xlu0 %v2496_v52, %s4955_s24  ;;  %2350 = vrot.lane.b32.xlu1 %v2343_v32, %s4955_s24  ;;  %v9921_v52 = vrot.slane %v6469_v7, 3  ;;  %v9924_v7 = vrot.slane %v6486_v4, 3  ;;  %v2539_v4 = vrot.slane %v2525_v12, 5 }
 0x2ae   :  { %v9716_v32 = vrot.slane %v6647_v2, 5 }
 0x2af   :  { %v6653_v31 = vpop.permute.xlu0 %1972  ;;  %v6655_v24 = vpop.permute.xlu1 %1818  ;;  %v2378_v47 = vsel %vm800_vm7, %v9921_v52, %v2377_v9  ;;  %v2383_v9 = vsel %vm800_vm7, %v9924_v7, %v2382_v62  ;;  %v2562_v62 = vmul.f32 %v6682_v6, %v5216_v43 }
 0x2b0   :  { %9919 = vst [vmem:[#allocation106_spill] sm:$0xff] %v6653_v31  ;;  %9920 = vst [vmem:[#allocation107_spill] sm:$0xff] %v6655_v24  ;;  %v2404_v31 = vmul.f32 %v6498_v61, %v5283_v28  ;;  %v2534_v24 = vrot.slane %v2522_v20, 5  ;;  %v6689_v20 = vmul.f32 %v6682_v6, %v5311_v34 }
 0x2b1   :  { %2508 = vrot.lane.b32.xlu0 %v2501_v46, %s4955_s24  ;;  %2386 = vrot.lane.b32.xlu1 %v2378_v47, %s4955_s24 }
 0x2b2   :  { %v2536_v46 = vsel %vm533_vm2, %v2534_v24, %v9716_v32  ;;  %v2417_v47 = vrot.slane %v2404_v31, 4  ;;  %v9927_v31 = vrot.slane %v6659_v59, 5  ;;  %v6706_v32 = vmul.f32 %v6682_v6, %v5329_v42 }
 0x2b3   :  { %v6674_v45 = vpop.permute.xlu0 %1976  ;;  %v6676_v55 = vpop.permute.xlu1 %1854  ;;  %v9717_v12 = vrot.slane %v6689_v20, 6 }
 0x2b4   :  { %9922 = vst [vmem:[#allocation108_spill] sm:$0xff] %v6674_v45  ;;  %9923 = vst [vmem:[#allocation109_spill] sm:$0xff] %v6676_v55  ;;  %v2407_v55 = vmul.f32 %v6498_v61, %v5302_v27  ;;  %v2541_v24 = vsel %vm533_vm2, %v2539_v4, %v9927_v31  ;;  %v9928_v61 = vrot.slane %v6507_v63, 4  ;;  %v2565_v4 = vmul.f32 %v6682_v6, %v5225_v48 }
 0x2b5   :  { %2544 = vrot.lane.b32.xlu0 %v2536_v46, %s4955_s24  ;;  %2390 = vrot.lane.b32.xlu1 %v2383_v9, %s4955_s24  ;;  %v2574_v31 = vrot.slane %v2562_v62, 6 }
 0x2b6   :  { %v2418_v9 = vsel %vm50_vm0, %v9928_v61, %v2417_v47  ;;  %v2422_v46 = vrot.slane %v2407_v55, 4  ;;  %v6723_v47 = vstv %s4761_s12  ;;  %v2447_v55 = vmul.f32 %v6542_v8, %v5379_v51  ;;  %s7015_s12 = sld [smem:[#allocation6 + $0x1c]] }
 0x2b7   :  { %v6697_v7 = vpop.permute.xlu0 %2012  ;;  %v6699_v52 = vpop.permute.xlu1 %1858  ;;  %v9931_v61 = vrot.slane %v6534_v17, 4  ;;  %v2579_v63 = vrot.slane %v2565_v4, 6  ;;  %v9934_v17 = vrot.slane %v6706_v32, 6  ;;  %v6754_v4 = vmul.f32 %v6723_v47, %v5262_v10 }
 0x2b8   :  { %9925 = vst [vmem:[#allocation110_spill] sm:$0xff] %v6697_v7  ;;  %9926 = vst [vmem:[#allocation111_spill] sm:$0xff] %v6699_v52  ;;  %v2444_v7 = vmul.f32 %v6542_v8, %v5350_v50  ;;  %v2602_v8 = vmul.f32 %v6723_v47, %v5198_v57 }
 0x2b9   :  { %2548 = vrot.lane.b32.xlu0 %v2541_v24, %s4955_s24  ;;  %2426 = vrot.lane.b32.xlu1 %v2418_v9, %s4955_s24  ;;  %v2576_v24 = vsel %vm993_vm8, %v2574_v31, %v9717_v12  ;;  %v2423_v9 = vsel %vm50_vm0, %v9931_v61, %v2422_v46  ;;  %v2462_v46 = vrot.slane %v2447_v55, 4  ;;  %v9935_v61 = vrot.slane %v6553_v54, 4 }
 0x2ba   :  { %v2457_v62 = vrot.slane %v2444_v7, 4  ;;  %v2581_v7 = vsel %vm993_vm8, %v2579_v63, %v9934_v17  ;;  %v2484_v12 = vmul.f32 %v6591_v22, %v5283_v28  ;;  %v2614_v63 = vrot.slane %v2602_v8, 6 }
 0x2bb   :  { %v6718_v52 = vpop.permute.xlu0 %2016  ;;  %v6720_v45 = vpop.permute.xlu1 %1894  ;;  %v2605_v55 = vmul.f32 %v6723_v47, %v5202_v58  ;;  %v9938_v17 = vrot.slane %v6572_v18, 4  ;;  %v2487_v8 = vmul.f32 %v6591_v22, %v5302_v27 }
 0x2bc   :  { %9929 = vst [vmem:[#allocation112_spill] sm:$0xff] %v6718_v52  ;;  %9930 = vst [vmem:[#allocation113_spill] sm:$0xff] %v6720_v45  ;;  %v6735_v52 = vmul.f32 %v6723_v47, %v5244_v1 }
 0x2bd   :  { %2584 = vrot.lane.b32.xlu0 %v2576_v24, %s4955_s24  ;;  %2430 = vrot.lane.b32.xlu1 %v2423_v9, %s4955_s24  ;;  %v2458_v24 = vsel %vm50_vm0, %v9935_v61, %v2457_v62  ;;  %v2463_v61 = vsel %vm50_vm0, %v9938_v17, %v2462_v46  ;;  %v6781_v46 = vstv %s4762_s16  ;;  %v2502_v22 = vrot.slane %v2487_v8, 5  ;;  %s7022_s16 = sld [smem:[#allocation6 + $0x23]] }
 0x2be   :  { %v9719_v9 = vrot.slane %v6735_v52, 6 }
 0x2bf   :  { %v6741_v45 = vpop.permute.xlu0 %2052  ;;  %v6743_v31 = vpop.permute.xlu1 %1898 }
 0x2c0   :  { %9932 = vst [vmem:[#allocation114_spill] sm:$0xff] %v6741_v45  ;;  %9933 = vst [vmem:[#allocation115_spill] sm:$0xff] %v6743_v31  ;;  %v2616_v31 = vsel %vm993_vm8, %v2614_v63, %v9719_v9  ;;  %v2497_v45 = vrot.slane %v2484_v12, 5  ;;  %v9941_v12 = vrot.slane %v6603_v29, 5  ;;  %v9944_v29 = vrot.slane %v6622_v39, 5 }
 0x2c1   :  { %2588 = vrot.lane.b32.xlu0 %v2581_v7, %s4955_s24  ;;  %2466 = vrot.lane.b32.xlu1 %v2458_v24, %s4955_s24  ;;  %v9718_v7 = vrot.slane %v6754_v4, 6  ;;  %v2619_v24 = vrot.slane %v2605_v55, 6  ;;  %v9947_v39 = vrot.slane %v6647_v2, 5 }
 0x2c2   :  { %v2498_v17 = vsel %vm533_vm2, %v9941_v12, %v2497_v45  ;;  %v2503_v45 = vsel %vm533_vm2, %v9944_v29, %v2502_v22  ;;  %v2527_v12 = vmul.f32 %v6637_v41, %v5379_v51 }
 0x2c3   :  { %v6762_v54 = vpop.permute.xlu0 %2056  ;;  %v6764_v62 = vpop.permute.xlu1 %1934  ;;  %v2621_v63 = vsel %vm993_vm8, %v2619_v24, %v9718_v7  ;;  %v2642_v24 = vmul.f32 %v6781_v46, %v5216_v43  ;;  %v2644_v7 = vmul.f32 %v6781_v46, %v5225_v48 }
 0x2c4   :  { %9936 = vst [vmem:[#allocation116_spill] sm:$0xff] %v6762_v54  ;;  %9937 = vst [vmem:[#allocation117_spill] sm:$0xff] %v6764_v62  ;;  %v2542_v29 = vrot.slane %v2527_v12, 5  ;;  %v9950_v12 = vrot.slane %v6659_v59, 5  ;;  %v7035_v54 = vstv %s6957_s9  ;;  %s7898_s9 = sld [smem:[#allocation6 + $0x3d]] }
 0x2c5   :  { %2624 = vrot.lane.b32.xlu0 %v2616_v31, %s4955_s24  ;;  %2470 = vrot.lane.b32.xlu1 %v2463_v61, %s4955_s24  ;;  %v2524_v31 = vmul.f32 %v6637_v41, %v5350_v50  ;;  %v2564_v41 = vmul.f32 %v6682_v6, %v5283_v28  ;;  %9975 = vst [vmem:[#allocation143_spill] sm:$0xff] %v7035_v54 }
 0x2c7   :  { %v6777_v62 = vpop.permute.xlu0 %2092  ;;  %v6779_v18 = vpop.permute.xlu1 %1938  ;;  %v2537_v8 = vrot.slane %v2524_v31, 5  ;;  %v6815_v31 = vstv %s4763_s17  ;;  %s7024_s17 = sld [smem:[#allocation6 + $0x2a]] }
 0x2c8   :  { %9939 = vst [vmem:[#allocation118_spill] sm:$0xff] %v6777_v62  ;;  %9940 = vst [vmem:[#allocation119_spill] sm:$0xff] %v6779_v18  ;;  %v2668_v2 = vmul.f32 %v6815_v31, %v5198_v57  ;;  %v2670_v59 = vmul.f32 %v6815_v31, %v5202_v58  ;;  %v7029_v62 = vstv %s6953_s14  ;;  %v2671_v15 = vmul.f32 %v6815_v31, %v5262_v10  ;;  %s7829_s14 = sld [smem:[#allocation6 + $0xc]] }
 0x2c9   :  { %2628 = vrot.lane.b32.xlu0 %v2621_v63, %s4955_s24  ;;  %2506 = vrot.lane.b32.xlu1 %v2498_v17, %s4955_s24  ;;  %v2538_v22 = vsel %vm533_vm2, %v9947_v39, %v2537_v8  ;;  %v2577_v39 = vrot.slane %v2564_v41, 6  ;;  %v7086_v19 = vmul.f32 %v7029_v62, %v5329_v42 }
 0x2cb   :  { %v6793_v55 = vpop.permute.xlu0 %2096  ;;  %v6795_v61 = vpop.permute.xlu1 %1974  ;;  %v9723_v26 = vrot.slane %v7086_v19, 3 }
 0x2cc   :  { %9942 = vst [vmem:[#allocation120_spill] sm:$0xff] %v6793_v55  ;;  %9943 = vst [vmem:[#allocation121_spill] sm:$0xff] %v6795_v61  ;;  %v7032_v55 = vstv %s6955_s29  ;;  %s4957_s29 = smov 123  }
 0x2cd   :  { %2650 = vrot.lane.b32.xlu0 %v2642_v24, %s4956_s19  ;;  %2510 = vrot.lane.b32.xlu1 %v2503_v45, %s4955_s24  ;;  %v6821_v24 = vstv %s4764_s18  ;;  %9974 = vst [vmem:[#allocation142_spill] sm:$0xff] %v7032_v55  ;;  %s7047_s18 = sld [smem:[#allocation6 + $0x4a]] }
 0x2ce   :  { %v6831_v8 = vmul.f32 %v6821_v24, %v5311_v34  ;;  %v6851_v41 = vmul.f32 %v6821_v24, %v5329_v42 }
 0x2cf   :  { %v6806_v63 = vpop.permute.xlu0 %2118  ;;  %v6808_v17 = vpop.permute.xlu1 %1978 }
 0x2d0   :  { %9945 = vst [vmem:[#allocation122_spill] sm:$0xff] %v6806_v63  ;;  %9946 = vst [vmem:[#allocation123_spill] sm:$0xff] %v6808_v17  ;;  %v9984_v23 = vrot.slane %v6831_v8, 1  ;;  %v9991_v11 = vrot.slane %v6851_v41, 1 }
 0x2d1   :  { %2654 = vrot.lane.b32.xlu0 %v2644_v7, %s4956_s19  ;;  %2546 = vrot.lane.b32.xlu1 %v2538_v22, %s4955_s24  ;;  %v2543_v7 = vsel %vm533_vm2, %v9950_v12, %v2542_v29  ;;  %v2567_v22 = vmul.f32 %v6682_v6, %v5302_v27  ;;  %v9953_v6 = vrot.slane %v6689_v20, 6  ;;  %v2697_v29 = vmul.f32 %v6821_v24, %v5225_v48 }
 0x2d2   :  { %v9956_v20 = vrot.slane %v6831_v8, 1  ;;  %v7113_v8 = vstv %s7015_s12  ;;  %s8301_s12 = sld [smem:[#allocation6 + $0x52]] }
 0x2d3   :  { %v6823_v45 = vpop.permute.xlu0 %2122  ;;  %v6825_v9 = vpop.permute.xlu1 %2014  ;;  %v2582_v12 = vrot.slane %v2567_v22, 6  ;;  %9986 = vst [vmem:[#allocation151_spill] sm:$0xff] %v7113_v8  ;;  %v7134_v35 = vstv %s7047_s18  ;;  %s8464_s18 = sld [smem:[#allocation6 + $0x2f]] }
 0x2d4   :  { %9948 = vst [vmem:[#allocation124_spill] sm:$0xff] %v6823_v45  ;;  %9949 = vst [vmem:[#allocation125_spill] sm:$0xff] %v6825_v9  ;;  %v2694_v9 = vmul.f32 %v6821_v24, %v5216_v43  ;;  %v7013_v45 = vstv %s6945_s27  ;;  %s7707_s27 = sld [smem:[#allocation6 + $0x5]] }
 0x2d5   :  { %2676 = vrot.lane.b32.xlu0 %v2668_v2, %s4956_s19  ;;  %2550 = vrot.lane.b32.xlu1 %v2543_v7, %s4955_s24  ;;  %v2578_v2 = vsel %vm993_vm8, %v9953_v6, %v2577_v39  ;;  %v2604_v7 = vmul.f32 %v6723_v47, %v5350_v50  ;;  %v6870_v6 = vstv %s4765_s20  ;;  %v7077_v30 = vmul.f32 %v7013_v45, %v5216_v43  ;;  %s7121_s20 = sld [smem:[#allocation6 + $0x20]] }
 0x2d6   :  { %v6877_v63 = vmul.f32 %v6870_v6, %v5244_v1 }
 0x2d7   :  { %v6842_v17 = vpop.permute.xlu0 %2144  ;;  %v6844_v61 = vpop.permute.xlu1 %2018 }
 0x2d8   :  { %9951 = vst [vmem:[#allocation126_spill] sm:$0xff] %v6842_v17  ;;  %9952 = vst [vmem:[#allocation127_spill] sm:$0xff] %v6844_v61  ;;  %v2706_v61 = vrot.slane %v2694_v9, 1 }
 0x2d9   :  { %2680 = vrot.lane.b32.xlu0 %v2670_v59, %s4956_s19  ;;  %2586 = vrot.lane.b32.xlu1 %v2578_v2, %s4955_s24  ;;  %v9957_v59 = vrot.slane %v6706_v32, 6  ;;  %v2617_v2 = vrot.slane %v2604_v7, 6 }
 0x2da   :  { %v2708_v39 = vsel %vm670_vm5, %v2706_v61, %v9956_v20  ;;  %v2711_v61 = vrot.slane %v2697_v29, 1  ;;  %v2734_v20 = vmul.f32 %v6870_v6, %v5198_v57  ;;  %v6898_v29 = vmul.f32 %v6870_v6, %v5262_v10 }
 0x2db   :  { %v6862_v18 = vpop.permute.xlu0 %2148  ;;  %v6864_v17 = vpop.permute.xlu1 %2054  ;;  %v2583_v9 = vsel %vm993_vm8, %v9957_v59, %v2582_v12  ;;  %v9960_v12 = vrot.slane %v6851_v41, 1  ;;  %v9961_v59 = vrot.slane %v6735_v52, 6 }
 0x2dc   :  { %9954 = vst [vmem:[#allocation128_spill] sm:$0xff] %v6862_v18  ;;  %9955 = vst [vmem:[#allocation129_spill] sm:$0xff] %v6864_v17  ;;  %v2607_v17 = vmul.f32 %v6723_v47, %v5379_v51 }
 0x2dd   :  { %2716 = vrot.lane.b32.xlu0 %v2708_v39, %s4956_s19  ;;  %2590 = vrot.lane.b32.xlu1 %v2583_v9, %s4955_s24  ;;  %v2713_v7 = vsel %vm670_vm5, %v2711_v61, %v9960_v12  ;;  %v2618_v47 = vsel %vm993_vm8, %v9961_v59, %v2617_v2  ;;  %v9721_v39 = vrot.slane %v6877_v63, 1  ;;  %v2746_v9 = vrot.slane %v2734_v20, 1 }
 0x2de   :  { %v2622_v18 = vrot.slane %v2607_v17, 6  ;;  %v6908_v2 = vstv %s4766_s21  ;;  %v9964_v12 = vrot.slane %v6754_v4, 6  ;;  %v9720_v20 = vrot.slane %v6898_v29, 1  ;;  %s7210_s21 = sld [smem:[#allocation6 + $0x51]] }
 0x2df   :  { %v6885_v22 = vpop.permute.xlu0 %2184  ;;  %v6887_v32 = vpop.permute.xlu1 %2058  ;;  %v2748_v17 = vsel %vm670_vm5, %v2746_v9, %v9721_v39  ;;  %v6919_v59 = vmul.f32 %v6908_v2, %v5311_v34  ;;  %v2643_v9 = vmul.f32 %v6781_v46, %v5311_v34 }
 0x2e0   :  { %9958 = vst [vmem:[#allocation130_spill] sm:$0xff] %v6885_v22  ;;  %9959 = vst [vmem:[#allocation131_spill] sm:$0xff] %v6887_v32  ;;  %v2737_v32 = vmul.f32 %v6870_v6, %v5202_v58 }
 0x2e1   :  { %2720 = vrot.lane.b32.xlu0 %v2713_v7, %s4956_s19  ;;  %2626 = vrot.lane.b32.xlu1 %v2618_v47, %s4955_s24  ;;  %v2623_v7 = vsel %vm993_vm8, %v9964_v12, %v2622_v18  ;;  %v6941_v12 = vmul.f32 %v6908_v2, %v5329_v42 }
 0x2e2   :  { %v2751_v47 = vrot.slane %v2737_v32, 1  ;;  %v9722_v32 = vrot.slane %v6919_v59, 2 }
 0x2e3   :  { %v6904_v61 = vpop.permute.xlu0 %2188  ;;  %v6906_v52 = vpop.permute.xlu1 %2094 }
 0x2e4   :  { %9962 = vst [vmem:[#allocation132_spill] sm:$0xff] %v6904_v61  ;;  %9963 = vst [vmem:[#allocation133_spill] sm:$0xff] %v6906_v52  ;;  %v2774_v52 = vmul.f32 %v6908_v2, %v5216_v43  ;;  %v7288_v14 = vstv %s7210_s21  ;;  %s4790_s21 = sld [smem:[#allocation6 + $0x6]] }
 0x2e5   :  { %2756 = vrot.lane.b32.xlu0 %v2748_v17, %s4956_s19  ;;  %2630 = vrot.lane.b32.xlu1 %v2623_v7, %s4955_s24  ;;  %v2753_v17 = vsel %vm670_vm5, %v2751_v47, %v9720_v20  ;;  %s6943_s24 = sld [smem:[#allocation6]]  ;;  %v2777_v47 = vmul.f32 %v6908_v2, %v5225_v48 }
 0x2e6   :  { %v2786_v7 = vrot.slane %v2774_v52, 2 }
 0x2e7   :  { %v6929_v4 = vpop.permute.xlu0 %2224  ;;  %v6931_v18 = vpop.permute.xlu1 %2098 }
 0x2e8   :  { %9965 = vst [vmem:[#allocation134_spill] sm:$0xff] %v6929_v4  ;;  %9966 = vst [vmem:[#allocation135_spill] sm:$0xff] %v6931_v18  ;;  %v2788_v52 = vsel %vm735_vm6, %v2786_v7, %v9722_v32  ;;  %v6988_v32 = vstv %s6925_s23  ;;  %v6991_v18 = vstv %s6927_s26  ;;  %s7386_s23 = sld [smem:[#allocation6 + $0x58]]  ;;  %s7485_s26 = sld [smem:[#allocation6 + $0x2e]] }
 0x2e9   :  { %2760 = vrot.lane.b32.xlu0 %v2753_v17, %s4956_s19  ;;  %2652 = vrot.lane.b32.xlu1 %v2643_v9, %s4956_s19  ;;  %v2645_v9 = vmul.f32 %v6781_v46, %v5329_v42  ;;  %v6965_v17 = vstv %s4767_s22  ;;  %v2791_v46 = vrot.slane %v2777_v47, 2  ;;  %9969 = vst [vmem:[#allocation138_spill] sm:$0xff] %v6988_v32  ;;  %s7306_s22 = sld [smem:[#allocation6 + $0x27]] }
 0x2ea   :  { %v6973_v4 = vmul.f32 %v6965_v17, %v5244_v1  ;;  %v2814_v7 = vmul.f32 %v6965_v17, %v5198_v57  ;;  %v7005_v61 = vmul.f32 %v6965_v17, %v5262_v10  ;;  %v2817_v22 = vmul.f32 %v6965_v17, %v5202_v58 }
 0x2eb   :  { %v6959_v20 = vpop.permute.xlu0 %2228  ;;  %v6961_v39 = vpop.permute.xlu1 %2120 }
 0x2ec   :  { %9967 = vst [vmem:[#allocation136_spill] sm:$0xff] %v6959_v20  ;;  %9968 = vst [vmem:[#allocation137_spill] sm:$0xff] %v6961_v39  ;;  %v9978_v38 = vrot.slane %v6973_v4, 2  ;;  %v2831_v49 = vrot.slane %v2817_v22, 2  ;;  %v9983_v22 = vrot.slane %v7005_v61, 2 }
 0x2ed   :  { %2796 = vrot.lane.b32.xlu0 %v2788_v52, %s4956_s19  ;;  %2656 = vrot.lane.b32.xlu1 %v2645_v9, %s4956_s19  ;;  %v2669_v9 = vmul.f32 %v6815_v31, %v5244_v1  ;;  %v9972_v52 = vrot.slane %v6941_v12, 2  ;;  %v2854_v31 = vmul.f32 %v7029_v62, %v5216_v43 }
 0x2ee   :  { %v2833_v16 = vsel %vm735_vm6, %v2831_v49, %v9983_v22  ;;  %v7119_v22 = vstv %s7024_s17  ;;  %s8405_s17 = sld [smem:[#allocation6 + $0x59]] }
 0x2ef   :  { %v6993_v39 = vpop.permute.xlu0 %2264  ;;  %v6995_v20 = vpop.permute.xlu1 %2124  ;;  %v2793_v47 = vsel %vm735_vm6, %v2791_v46, %v9972_v52  ;;  %v7020_v46 = vstv %s6949_s28  ;;  %v2826_v52 = vrot.slane %v2814_v7, 2  ;;  %v7045_v7 = vmul.f32 %v7029_v62, %v5311_v34  ;;  %9987 = vst [vmem:[#allocation152_spill] sm:$0xff] %v7119_v22  ;;  %s7798_s28 = sld [smem:[#allocation6 + $0x36]] }
 0x2f0   :  { %9970 = vst [vmem:[#allocation139_spill] sm:$0xff] %v6993_v39  ;;  %9971 = vst [vmem:[#allocation140_spill] sm:$0xff] %v6995_v20  ;;  %v2696_v39 = vmul.f32 %v6821_v24, %v5283_v28  ;;  %v7010_v20 = vstv %s6943_s24  ;;  %v2866_v49 = vrot.slane %v2854_v31, 3  ;;  %s7579_s24 = sld [smem:[#allocation6 + $0x5f]] }
 0x2f1   :  { %9973 = vst [vmem:[#allocation141_spill] sm:$0xff] %v7010_v20  ;;  %2800 = vrot.lane.b32.xlu0 %v2793_v47, %s4956_s19  ;;  %2678 = vrot.lane.b32.xlu1 %v2669_v9, %s4956_s19  ;;  %v2828_v56 = vsel %vm735_vm6, %v2826_v52, %v9978_v38  ;;  %v638_v38 = vmul.f32 %v7010_v20, %v5216_v43  ;;  %v7068_v52 = vstv %s6981_s13  ;;  %v9990_v31 = vrot.slane %v7045_v7, 3  ;;  %s8165_s13 = sld [smem:[#allocation6 + $0x4b]] }
 0x2f2   :  { %v2709_v0 = vrot.slane %v2696_v39, 1  ;;  %v7071_v39 = vstv %s6983_s15  ;;  %v7102_v44 = vmul.f32 %v7068_v52, %v5216_v43  ;;  %s8235_s15 = sld [smem:[#allocation6 + $0x21]] }
 0x2f3   :  { %v7037_v9 = vpop.permute.xlu0 %2268  ;;  %v7039_v47 = vpop.permute.xlu1 %2146  ;;  %v2868_v37 = vsel %vm800_vm7, %v2866_v49, %v9990_v31 }
 0x2f4   :  { %9976 = vst [vmem:[#allocation144_spill] sm:$0xff] %v7037_v9  ;;  %9977 = vst [vmem:[#allocation145_spill] sm:$0xff] %v7039_v47  ;;  %v2699_v9 = vmul.f32 %v6821_v24, %v5302_v27  ;;  %v7056_v47 = vstv %s6975_s10  ;;  %v648_v24 = vmul.f32 %v6988_v32, %v5198_v57  ;;  %v2710_v40 = vsel %vm670_vm5, %v9984_v23, %v2709_v0  ;;  %s7961_s10 = sld [smem:[#allocation6 + $0x13]] }
 0x2f5   :  { %9979 = vst [vmem:[#allocation146_spill] sm:$0xff] %v7056_v47  ;;  %2836 = vrot.lane.b32.xlu0 %v2828_v56, %s4956_s19  ;;  %2682 = vrot.lane.b32.xlu1 %v2671_v15, %s4956_s19  ;;  %9985 = vst [vmem:[#allocation150_spill] sm:$0xff] %v7102_v44  ;;  %v2857_v23 = vmul.f32 %v7029_v62, %v5225_v48  ;;  %v7110_v0 = vmul.f32 %v7020_v46, %v5198_v57 }
 0x2f6   :  { %v2714_v33 = vrot.slane %v2699_v9, 1  ;;  %v7116_v9 = vstv %s7022_s16  ;;  %v7123_v25 = vadd.f32 %v648_v24, %v638_v38  ;;  %v7141_v38 = vmul.f32 %v7134_v35, %v5244_v1  ;;  %s8360_s16 = sld [smem:[#allocation6 + $0x28]] }
 0x2f7   :  { %v7079_v56 = vpop.permute.xlu0 %2304  ;;  %v7081_v15 = vpop.permute.xlu1 %2150  ;;  %v2739_v24 = vmul.f32 %v6870_v6, %v5379_v51  ;;  %v2871_v41 = vrot.slane %v2857_v23, 3  ;;  %v7192_v3 = vmul.f32 %v7056_v47, %v5198_v57 }
 0x2f8   :  { %9981 = vst [vmem:[#allocation148_spill] sm:$0xff] %v7079_v56  ;;  %9982 = vst [vmem:[#allocation149_spill] sm:$0xff] %v7081_v15  ;;  %v2736_v56 = vmul.f32 %v6870_v6, %v5350_v50  ;;  %v7098_v15 = vmul.f32 %v6991_v18, %v5198_v57  ;;  %v2715_v60 = vsel %vm670_vm5, %v9991_v11, %v2714_v33 }
 0x2f9   :  { %2840 = vrot.lane.b32.xlu0 %v2833_v16, %s4956_s19  ;;  %2718 = vrot.lane.b32.xlu1 %v2710_v40, %s4956_s19  ;;  %v7152_v33 = vmul.f32 %v7071_v39, %v5216_v43  ;;  %v7156_v11 = vmul.f32 %v7032_v55, %v5198_v57  ;;  %v7160_v6 = vmul.f32 %v7113_v8, %v5216_v43  ;;  %v2754_v53 = vrot.slane %v2739_v24, 1 }
 0x2fa   :  { %v2749_v36 = vrot.slane %v2736_v56, 1  ;;  %v2894_v56 = vmul.f32 %v7134_v35, %v5198_v57  ;;  %v2873_v49 = vsel %vm800_vm7, %v2871_v41, %v9723_v26  ;;  %v7196_v41 = vmul.f32 %v7119_v22, %v5216_v43 }
 0x2fb   :  { %v7125_v16 = vpop.permute.xlu0 %2308  ;;  %v7127_v40 = vpop.permute.xlu1 %2186  ;;  %9992 = vst [vmem:[#allocation155_spill] sm:$0xff] %v7152_v33  ;;  %9993 = vst [vmem:[#allocation156_spill] sm:$0xff] %v7160_v6  ;;  %v7208_v26 = vstv %s7121_s20  ;;  %v10002_v22 = vrot.slane %v6898_v29, 1  ;;  %v7342_v6 = vmul.f32 %v7288_v14, %v5262_v10  ;;  %s8534_s20 = sld [smem:[#allocation6 + $0x60]] }
 0x2fc   :  { %9988 = vst [vmem:[#allocation153_spill] sm:$0xff] %v7125_v16  ;;  %9989 = vst [vmem:[#allocation154_spill] sm:$0xff] %v7127_v40  ;;  %v7181_v40 = vmul.f32 %v7134_v35, %v5262_v10  ;;  %v9997_v16 = vrot.slane %v6877_v63, 1  ;;  %v2906_v24 = vrot.slane %v2894_v56, 3  ;;  %v7221_v63 = vmul.f32 %v7208_v26, %v5311_v34 }
 0x2fd   :  { %2876 = vrot.lane.b32.xlu0 %v2868_v37, %s4956_s19  ;;  %2722 = vrot.lane.b32.xlu1 %v2715_v60, %s4956_s19  ;;  %v7166_v37 = vmul.f32 %v7035_v54, %v5198_v57  ;;  %v7170_v60 = vmul.f32 %v7116_v9, %v5216_v43  ;;  %9998 = vst [vmem:[#allocation160_spill] sm:$0xff] %v7196_v41  ;;  %v10001_v56 = vrot.slane %v7141_v38, 3 }
 0x2fe   :  { %v2750_v5 = vsel %vm670_vm5, %v9997_v16, %v2749_v36  ;;  %v2897_v36 = vmul.f32 %v7134_v35, %v5202_v58  ;;  %v7205_v16 = vmul.f32 %v7059_v13, %v5198_v57  ;;  %v7293_v41 = vmul.f32 %v7032_v55, %v5202_v58 }
 0x2ff   :  { %9994 = vst [vmem:[#allocation157_spill] sm:$0xff] %v7170_v60  ;;  %v7172_v23 = vpop.permute.xlu0 %2344  ;;  %v7174_v31 = vpop.permute.xlu1 %2190  ;;  %v2908_v33 = vsel %vm800_vm7, %v2906_v24, %v10001_v56  ;;  %v2934_v24 = vmul.f32 %v7208_v26, %v5216_v43  ;;  %v10005_v56 = vrot.slane %v7181_v40, 3 }
 0x300   :  { %9995 = vst [vmem:[#allocation158_spill] sm:$0xff] %v7172_v23  ;;  %9996 = vst [vmem:[#allocation159_spill] sm:$0xff] %v7174_v31  ;;  %v2776_v23 = vmul.f32 %v6908_v2, %v5283_v28  ;;  %v2755_v31 = vsel %vm670_vm5, %v10002_v22, %v2754_v53  ;;  %v10006_v22 = vrot.slane %v6919_v59, 2  ;;  %v7275_v59 = vmul.f32 %v7020_v46, %v5202_v58 }
 0x301   :  { %2880 = vrot.lane.b32.xlu0 %v2873_v49, %s4956_s19  ;;  %2758 = vrot.lane.b32.xlu1 %v2750_v5, %s4956_s19  ;;  %v2779_v49 = vmul.f32 %v6908_v2, %v5302_v27  ;;  %v640_v2 = vmul.f32 %v7010_v20, %v5225_v48  ;;  %10011 = vst [vmem:[#allocation169_spill] sm:$0xff] %v7293_v41  ;;  %v10015_v20 = vrot.slane %v6941_v12, 2  ;;  %v7384_v41 = vstv %s7306_s22  ;;  %s4791_s22 = sld [smem:[#allocation6 + $0x37]] }
 0x302   :  { %v2789_v44 = vrot.slane %v2776_v23, 2  ;;  %v650_v23 = vmul.f32 %v6988_v32, %v5202_v58  ;;  %v7261_v32 = vmul.f32 %v7208_v26, %v5329_v42  ;;  %10008 = vst [vmem:[#allocation166_spill] sm:$0xff] %v7275_v59  ;;  %v2974_v12 = vmul.f32 %v7288_v14, %v5198_v57 }
 0x303   :  { %v7214_v21 = vpop.permute.xlu0 %2348  ;;  %v7216_v5 = vpop.permute.xlu1 %2226 }
 0x304   :  { %9999 = vst [vmem:[#allocation161_spill] sm:$0xff] %v7214_v21  ;;  %10000 = vst [vmem:[#allocation162_spill] sm:$0xff] %v7216_v5  ;;  %v2911_v21 = vrot.slane %v2897_v36, 3  ;;  %v2790_v29 = vsel %vm735_vm6, %v10006_v22, %v2789_v44  ;;  %v2794_v5 = vrot.slane %v2779_v49, 2  ;;  %v2946_v44 = vrot.slane %v2934_v24, 4 }
 0x305   :  { %2916 = vrot.lane.b32.xlu0 %v2908_v33, %s4956_s19  ;;  %2762 = vrot.lane.b32.xlu1 %v2755_v31, %s4956_s19  ;;  %v7246_v33 = vmul.f32 %v7013_v45, %v5225_v48  ;;  %v7279_v49 = vadd.f32 %v650_v23, %v640_v2  ;;  %v7283_v22 = vmul.f32 %v7071_v39, %v5225_v48  ;;  %v10021_v59 = vrot.slane %v7261_v32, 4 }
 0x306   :  { %v2913_v53 = vsel %vm800_vm7, %v2911_v21, %v10005_v56  ;;  %v7271_v21 = vmul.f32 %v7068_v52, %v5225_v48  ;;  %v2937_v56 = vmul.f32 %v7208_v26, %v5225_v48  ;;  %v7304_v23 = vmul.f32 %v7288_v14, %v5244_v1 }
 0x307   :  { %v7248_v31 = vpop.permute.xlu0 %2384  ;;  %v7250_v36 = vpop.permute.xlu1 %2230  ;;  %10009 = vst [vmem:[#allocation167_spill] sm:$0xff] %v7279_v49  ;;  %10010 = vst [vmem:[#allocation168_spill] sm:$0xff] %v7283_v22  ;;  %v2795_v60 = vsel %vm735_vm6, %v10015_v20, %v2794_v5  ;;  %v7323_v20 = vmul.f32 %v6991_v18, %v5244_v1  ;;  %v10022_v5 = vrot.slane %v6973_v4, 2  ;;  %v2986_v4 = vrot.slane %v2974_v12, 4 }
 0x308   :  { %10003 = vst [vmem:[#allocation163_spill] sm:$0xff] %v7248_v31  ;;  %10004 = vst [vmem:[#allocation164_spill] sm:$0xff] %v7250_v36  ;;  %v2816_v31 = vmul.f32 %v6965_v17, %v5350_v50  ;;  %v7267_v36 = vmul.f32 %v6991_v18, %v5202_v58  ;;  %v10028_v12 = vrot.slane %v7304_v23, 4 }
 0x309   :  { %10007 = vst [vmem:[#allocation165_spill] sm:$0xff] %v7271_v21  ;;  %2920 = vrot.lane.b32.xlu0 %v2913_v53, %s4956_s19  ;;  %2798 = vrot.lane.b32.xlu1 %v2790_v29, %s4956_s19  ;;  %v10014_v29 = vrot.slane %v7221_v63, 4  ;;  %10016 = vst [vmem:[#allocation172_spill] sm:$0xff] %v7323_v20 }
 0x30a   :  { %v2829_v49 = vrot.slane %v2816_v31, 2  ;;  %v2951_v31 = vrot.slane %v2937_v56, 4 }
 0x30b   :  { %v7295_v53 = vpop.permute.xlu0 %2388  ;;  %v7297_v24 = vpop.permute.xlu1 %2266  ;;  %v2948_v2 = vsel %vm50_vm0, %v2946_v44, %v10014_v29  ;;  %v7332_v29 = vmul.f32 %v7020_v46, %v5244_v1 }
 0x30c   :  { %10012 = vst [vmem:[#allocation170_spill] sm:$0xff] %v7295_v53  ;;  %10013 = vst [vmem:[#allocation171_spill] sm:$0xff] %v7297_v24  ;;  %v2819_v24 = vmul.f32 %v6965_v17, %v5379_v51  ;;  %v7327_v17 = vmul.f32 %v7013_v45, %v5311_v34  ;;  %v2953_v56 = vsel %vm50_vm0, %v2951_v31, %v10021_v59 }
 0x30d   :  { %2956 = vrot.lane.b32.xlu0 %v2948_v2, %s4956_s19  ;;  %2802 = vrot.lane.b32.xlu1 %v2795_v60, %s4956_s19  ;;  %10018 = vst [vmem:[#allocation174_spill] sm:$0xff] %v7332_v29  ;;  %v2830_v22 = vsel %vm735_vm6, %v10022_v5, %v2829_v49  ;;  %v2856_v60 = vmul.f32 %v7029_v62, %v5283_v28 }
 0x30e   :  { %10017 = vst [vmem:[#allocation173_spill] sm:$0xff] %v7327_v17  ;;  %v2834_v21 = vrot.slane %v2819_v24, 2  ;;  %v7354_v53 = vmul.f32 %v7032_v55, %v5244_v1  ;;  %v2977_v59 = vmul.f32 %v7288_v14, %v5202_v58  ;;  %v7368_v5 = vmul.f32 %v7113_v8, %v5225_v48 }
 0x30f   :  { %v7335_v2 = vpop.permute.xlu0 %2424  ;;  %v7337_v44 = vpop.permute.xlu1 %2270  ;;  %v7372_v31 = vmul.f32 %v7035_v54, %v5202_v58  ;;  %v2988_v49 = vsel %vm50_vm0, %v2986_v4, %v10028_v12  ;;  %v10029_v55 = vrot.slane %v7005_v61, 2  ;;  %v7401_v24 = vmul.f32 %v7056_v47, %v5244_v1 }
 0x310   :  { %10019 = vst [vmem:[#allocation175_spill] sm:$0xff] %v7335_v2  ;;  %10020 = vst [vmem:[#allocation176_spill] sm:$0xff] %v7337_v44  ;;  %v7358_v44 = vmul.f32 %v7035_v54, %v5244_v1  ;;  %v2869_v54 = vrot.slane %v2856_v60, 3  ;;  %v7407_v61 = vmul.f32 %v7059_v13, %v5244_v1  ;;  %v7416_v12 = vmul.f32 %v7068_v52, %v5311_v34 }
 0x311   :  { %10023 = vst [vmem:[#allocation177_spill] sm:$0xff] %v7354_v53  ;;  %2960 = vrot.lane.b32.xlu0 %v2953_v56, %s4956_s19  ;;  %2838 = vrot.lane.b32.xlu1 %v2830_v22, %s4956_s19  ;;  %10025 = vst [vmem:[#allocation179_spill] sm:$0xff] %v7372_v31  ;;  %v2835_v31 = vsel %vm735_vm6, %v10029_v55, %v2834_v21  ;;  %v7393_v56 = vmul.f32 %v7384_v41, %v5311_v34  ;;  %v2991_v55 = vrot.slane %v2977_v59, 4 }
 0x312   :  { %10024 = vst [vmem:[#allocation178_spill] sm:$0xff] %v7358_v44  ;;  %10030 = vst [vmem:[#allocation182_spill] sm:$0xff] %v7401_v24  ;;  %v10032_v21 = vrot.slane %v7327_v17, 1  ;;  %v10036_v59 = vrot.slane %v7098_v15, 1  ;;  %v10038_v17 = vrot.slane %v7110_v0, 2  ;;  %v10041_v13 = vrot.slane %v7342_v6, 4 }
 0x313   :  { %v7375_v2 = vpop.permute.xlu0 %2428  ;;  %v7377_v22 = vpop.permute.xlu1 %2306  ;;  %10031 = vst [vmem:[#allocation183_spill] sm:$0xff] %v7407_v61  ;;  %10034 = vst [vmem:[#allocation184_spill] sm:$0xff] %v7416_v12  ;;  %v7441_v15 = vmul.f32 %v7384_v41, %v5329_v42  ;;  %v7481_v0 = vstv %s7386_s23  ;;  %s8669_s23 = sld [smem:[#allocation6 + $0xd]] }
 0x314   :  { %10026 = vst [vmem:[#allocation180_spill] sm:$0xff] %v7375_v2  ;;  %10027 = vst [vmem:[#allocation181_spill] sm:$0xff] %v7377_v22  ;;  %v2859_v22 = vmul.f32 %v7029_v62, %v5302_v27  ;;  %v10033_v62 = vrot.slane %v7077_v30, 1  ;;  %v10037_v2 = vrot.slane %v7332_v29, 2  ;;  %v2993_v47 = vsel %vm50_vm0, %v2991_v55, %v10041_v13 }
 0x315   :  { %2996 = vrot.lane.b32.xlu0 %v2988_v49, %s4956_s19  ;;  %2842 = vrot.lane.b32.xlu1 %v2835_v31, %s4956_s19  ;;  %v3014_v49 = vmul.f32 %v7384_v41, %v5216_v43  ;;  %v10035_v31 = vrot.slane %v7323_v20, 1  ;;  %v10061_v29 = vrot.slane %v7141_v38, 3  ;;  %v10085_v20 = vrot.slane %v7221_v63, 4 }
 0x316   :  { %v673_v60 = vsel %vm670_vm5, %v10033_v62, %v10032_v21  ;;  %v7430_v30 = vsel %vm735_vm6, %v10038_v17, %v10037_v2  ;;  %v2874_v17 = vrot.slane %v2859_v22, 3  ;;  %v2896_v2 = vmul.f32 %v7134_v35, %v5350_v50 }
 0x317   :  { %v705_v4 = vsel %vm670_vm5, %v10036_v59, %v10035_v31  ;;  %v7432_v21 = vpop.permute.xlu0 %2464  ;;  %v7434_v62 = vpop.permute.xlu1 %2310  ;;  %v10042_v31 = vrot.slane %v7045_v7, 3  ;;  %v685_v55 = vadd.f32 %v673_v60, %v7123_v25  ;;  %v10045_v22 = vrot.slane %v7358_v44, 4 }
 0x318   :  { %10039 = vst [vmem:[#allocation185_spill] sm:$0xff] %v7432_v21  ;;  %10040 = vst [vmem:[#allocation186_spill] sm:$0xff] %v7434_v62  ;;  %v10043_v62 = vrot.slane %v7354_v53, 3  ;;  %v10044_v21 = vrot.slane %v7156_v11, 3  ;;  %v7472_v25 = vmul.f32 %v7013_v45, %v5329_v42  ;;  %v3026_v60 = vrot.slane %v3014_v49, 5 }
 0x319   :  { %v2870_v59 = vsel %vm800_vm7, %v10042_v31, %v2869_v54  ;;  %3000 = vrot.lane.b32.xlu0 %v2993_v47, %s4956_s19  ;;  %v3017_v54 = vmul.f32 %v7384_v41, %v5225_v48  ;;  %v10046_v31 = vrot.slane %v7166_v37, 4  ;;  %v2899_v37 = vmul.f32 %v7134_v35, %v5379_v51 }
 0x31a   :  { %v7454_v13 = vsel %vm800_vm7, %v10044_v21, %v10043_v62  ;;  %2878 = vrot.lane.b32.xlu1 %v2870_v59, %s4956_s19  ;;  %10047 = vst [vmem:[#allocation187_spill] sm:$0xff] %v7472_v25  ;;  %v10051_v49 = vrot.slane %v7086_v19, 3  ;;  %v2909_v47 = vrot.slane %v2896_v2, 3  ;;  %v7500_v35 = vmul.f32 %v7071_v39, %v5311_v34 }
 0x31b   :  { %v7467_v11 = vsel %vm50_vm0, %v10046_v31, %v10045_v22  ;;  %v7475_v62 = vpop.permute.xlu0 %2468  ;;  %v7477_v59 = vpop.permute.xlu1 %2346  ;;  %v10050_v22 = vrot.slane %v7393_v56, 5  ;;  %v7506_v19 = vmul.f32 %v7113_v8, %v5311_v34  ;;  %v10060_v44 = vrot.slane %v7441_v15, 5 }
 0x31c   :  { %10048 = vst [vmem:[#allocation188_spill] sm:$0xff] %v7475_v62  ;;  %10049 = vst [vmem:[#allocation189_spill] sm:$0xff] %v7477_v59  ;;  %v2875_v21 = vsel %vm800_vm7, %v10051_v49, %v2874_v17  ;;  %v7495_v59 = vmul.f32 %v7481_v0, %v5244_v1  ;;  %v717_v62 = vadd.f32 %v705_v4, %v685_v55  ;;  %v10055_v55 = vrot.slane %v7416_v12, 2 }
 0x31d   :  { %v3028_v31 = vsel %vm533_vm2, %v3026_v60, %v10050_v22  ;;  %10052 = vst [vmem:[#allocation190_spill] sm:$0xff] %v7500_v35  ;;  %v3031_v60 = vrot.slane %v3017_v54, 5  ;;  %10053 = vst [vmem:[#allocation191_spill] sm:$0xff] %v7506_v19  ;;  %v7510_v17 = vmul.f32 %v7116_v9, %v5311_v34  ;;  %v3054_v4 = vmul.f32 %v7481_v0, %v5198_v57  ;;  %v10056_v22 = vld [vmem:[#allocation150_spill] sm:$0xff] }
 0x31e   :  { %3036 = vrot.lane.b32.xlu0 %v3028_v31, %s4956_s19  ;;  %2882 = vrot.lane.b32.xlu1 %v2875_v21, %s4956_s19  ;;  %v10057_v31 = vrot.slane %v10056_v22, 2  ;;  %v7522_v54 = vmul.f32 %v6991_v18, %v5262_v10  ;;  %v2914_v53 = vrot.slane %v2899_v37, 3  ;;  %v2910_v12 = vsel %vm800_vm7, %v10061_v29, %v2909_v47  ;;  %v10064_v47 = vld [vmem:[#allocation152_spill] sm:$0xff] }
 0x31f   :  { %10054 = vst [vmem:[#allocation192_spill] sm:$0xff] %v7510_v17  ;;  %v7524_v49 = vpop.permute.xlu0 %2504  ;;  %v7526_v7 = vpop.permute.xlu1 %2350  ;;  %v3033_v2 = vsel %vm533_vm2, %v3031_v60, %v10060_v44  ;;  %v7551_v37 = vmul.f32 %v10064_v47, %v5311_v34  ;;  %v10066_v60 = vrot.slane %v7472_v25, 1  ;;  %v10067_v22 = vrot.slane %v7246_v33, 1  ;;  %v10075_v25 = vld [vmem:[#allocation167_spill] sm:$0xff] }
 0x320   :  { %v738_v21 = vsel %vm735_vm6, %v10057_v31, %v10055_v55  ;;  %10058 = vst [vmem:[#allocation150_spill] sm:$0xff] %v7524_v49  ;;  %10059 = vst [vmem:[#allocation193_spill] sm:$0xff] %v7526_v7  ;;  %v7537_v55 = vmul.f32 %v7481_v0, %v5262_v10  ;;  %v2936_v31 = vmul.f32 %v7208_v26, %v5283_v28  ;;  %v10062_v7 = vrot.slane %v7401_v24, 5 }
 0x321   :  { %v10063_v49 = vrot.slane %v7192_v3, 5  ;;  %v750_v38 = vadd.f32 %v738_v21, %v717_v62  ;;  %10065 = vst [vmem:[#allocation194_spill] sm:$0xff] %v7551_v37  ;;  %v678_v3 = vsel %vm670_vm5, %v10067_v22, %v10066_v60  ;;  %v3066_v62 = vrot.slane %v3054_v4, 5 }
 0x322   :  { %3040 = vrot.lane.b32.xlu0 %v3033_v2, %s4956_s19  ;;  %2918 = vrot.lane.b32.xlu1 %v2910_v12, %s4956_s19  ;;  %v3057_v21 = vmul.f32 %v7481_v0, %v5202_v58  ;;  %v10070_v12 = vrot.slane %v7181_v40, 3  ;;  %v7575_v24 = vstv %s7485_s26  ;;  %v2939_v22 = vmul.f32 %v7208_v26, %v5302_v27  ;;  %s4958_s26 = smov 122  }
 0x323   :  { %v7546_v44 = vsel %vm533_vm2, %v10063_v49, %v10062_v7  ;;  %v7562_v7 = vmul.f32 %v7068_v52, %v5329_v42  ;;  %v7567_v29 = vpop.permute.xlu0 %2508  ;;  %v7569_v2 = vpop.permute.xlu1 %2386  ;;  %v10071_v4 = vrot.slane %v7495_v59, 5  ;;  %v10072_v40 = vrot.slane %v7407_v61, 6 }
 0x324   :  { %10068 = vst [vmem:[#allocation195_spill] sm:$0xff] %v7567_v29  ;;  %10069 = vst [vmem:[#allocation196_spill] sm:$0xff] %v7569_v2  ;;  %v2915_v33 = vsel %vm800_vm7, %v10070_v12, %v2914_v53  ;;  %v2949_v29 = vrot.slane %v2936_v31, 4  ;;  %v7587_v2 = vmul.f32 %v7575_v24, %v5311_v34  ;;  %v10073_v53 = vrot.slane %v7205_v16, 6 }
 0x325   :  { %v3068_v60 = vsel %vm533_vm2, %v3066_v62, %v10071_v4  ;;  %v782_v26 = vadd.f32 %v7430_v30, %v750_v38  ;;  %v687_v62 = vadd.f32 %v678_v3, %v10075_v25  ;;  %v10076_v31 = vrot.slane %v7500_v35, 3  ;;  %v10077_v4 = vld [vmem:[#allocation155_spill] sm:$0xff] }
 0x326   :  { %v7594_v12 = vsel %vm993_vm8, %v10073_v53, %v10072_v40  ;;  %3076 = vrot.lane.b32.xlu0 %v3068_v60, %s4956_s19  ;;  %2922 = vrot.lane.b32.xlu1 %v2915_v33, %s4956_s19  ;;  %v10078_v49 = vrot.slane %v10077_v4, 3  ;;  %v7608_v16 = vmul.f32 %v7020_v46, %v5262_v10  ;;  %v3071_v40 = vrot.slane %v3057_v21, 5 }
 0x327   :  { %10074 = vst [vmem:[#allocation197_spill] sm:$0xff] %v7594_v12  ;;  %v3094_v30 = vmul.f32 %v7575_v24, %v5216_v43  ;;  %v10080_v25 = vrot.slane %v7522_v54, 1  ;;  %v10081_v38 = vrot.slane %v7267_v36, 1  ;;  %v7618_v60 = vpop.permute.xlu0 %2544  ;;  %v7620_v53 = vpop.permute.xlu1 %2390  ;;  %v10084_v21 = vrot.slane %v7537_v55, 5 }
 0x328   :  { %v803_v61 = vsel %vm800_vm7, %v10078_v49, %v10076_v31  ;;  %10079 = vst [vmem:[#allocation167_spill] sm:$0xff] %v7608_v16  ;;  %10082 = vst [vmem:[#allocation155_spill] sm:$0xff] %v7618_v60  ;;  %v2954_v49 = vrot.slane %v2939_v22, 4  ;;  %v2976_v31 = vmul.f32 %v7288_v14, %v5350_v50  ;;  %v2950_v36 = vsel %vm50_vm0, %v10085_v20, %v2949_v29 }
 0x329   :  { %v710_v3 = vsel %vm670_vm5, %v10081_v38, %v10080_v25  ;;  %10083 = vst [vmem:[#allocation198_spill] sm:$0xff] %v7620_v53  ;;  %v3073_v4 = vsel %vm533_vm2, %v3071_v40, %v10084_v21  ;;  %v9757_v25 = vrot.slane %v7587_v2, 6  ;;  %v7633_v38 = vmul.f32 %v7575_v24, %v5329_v42  ;;  %v10087_v53 = vld [vmem:[#allocation156_spill] sm:$0xff] }
 0x32a   :  { %v815_v33 = vadd.f32 %v803_v61, %v782_v26  ;;  %v10086_v22 = vrot.slane %v7506_v19, 4  ;;  %v10088_v60 = vrot.slane %v10087_v53, 4  ;;  %v719_v21 = vadd.f32 %v710_v3, %v687_v62  ;;  %3080 = vrot.lane.b32.xlu0 %v3073_v4, %s4956_s19  ;;  %2958 = vrot.lane.b32.xlu1 %v2950_v36, %s4956_s19 }
 0x32b   :  { %v7646_v20 = vmul.f32 %v7071_v39, %v5329_v42  ;;  %v3106_v61 = vrot.slane %v3094_v30, 6  ;;  %v3097_v29 = vmul.f32 %v7575_v24, %v5225_v48  ;;  %v10090_v26 = vrot.slane %v7562_v7, 2  ;;  %v7655_v3 = vpop.permute.xlu0 %2548  ;;  %v7657_v4 = vpop.permute.xlu1 %2426 }
 0x32c   :  { %v867_v12 = vsel %vm50_vm0, %v10088_v60, %v10086_v22  ;;  %v10091_v60 = vld [vmem:[#allocation165_spill] sm:$0xff]  ;;  %10094 = vst [vmem:[#allocation199_spill] sm:$0xff] %v7657_v4  ;;  %v2989_v36 = vrot.slane %v2976_v31, 4  ;;  %v7660_v22 = vstv %s7579_s24  ;;  %v2979_v63 = vmul.f32 %v7288_v14, %v5379_v51  ;;  %s8715_s24 = sld [smem:[#allocation6 + $0x3e]] }
 0x32d   :  { %10089 = vst [vmem:[#allocation156_spill] sm:$0xff] %v7646_v20  ;;  %v10092_v53 = vrot.slane %v10091_v60, 2  ;;  %10093 = vst [vmem:[#allocation165_spill] sm:$0xff] %v7655_v3  ;;  %v3108_v30 = vsel %vm993_vm8, %v3106_v61, %v9757_v25  ;;  %v10095_v40 = vrot.slane %v7261_v32, 4  ;;  %v847_v31 = vadd.f32 %v7454_v13, %v815_v33  ;;  %v10097_v3 = vld [vmem:[#allocation157_spill] sm:$0xff]  ;;  %v10099_v32 = vld [vmem:[#allocation142_spill] sm:$0xff] }
 0x32e   :  { %v10096_v4 = vrot.slane %v7510_v17, 5  ;;  %v10098_v14 = vrot.slane %v10097_v3, 5  ;;  %3116 = vrot.lane.b32.xlu0 %v3108_v30, %s4956_s19  ;;  %v7690_v13 = vmul.f32 %v7113_v8, %v5329_v42  ;;  %v3111_v33 = vrot.slane %v3097_v29, 6 }
 0x32f   :  { %v743_v62 = vsel %vm735_vm6, %v10092_v53, %v10090_v26  ;;  %v2955_v60 = vsel %vm50_vm0, %v10095_v40, %v2954_v49  ;;  %v7673_v53 = vmul.f32 %v7660_v22, %v5244_v1  ;;  %v7686_v49 = vmul.f32 %v10099_v32, %v5262_v10 }
 0x330   :  { %v931_v19 = vsel %vm533_vm2, %v10098_v14, %v10096_v4  ;;  %v752_v25 = vadd.f32 %v743_v62, %v719_v21  ;;  %2962 = vrot.lane.b32.xlu1 %v2955_v60, %s4956_s19  ;;  %v3134_v40 = vmul.f32 %v7660_v22, %v5198_v57  ;;  %v10101_v3 = vrot.slane %v7608_v16, 2  ;;  %v10102_v4 = vld [vmem:[#allocation166_spill] sm:$0xff]  ;;  %v7700_v60 = vpop.permute.xlu0 %2584  ;;  %v7702_v14 = vpop.permute.xlu1 %2430 }
 0x331   :  { %10100 = vst [vmem:[#allocation157_spill] sm:$0xff] %v7686_v49  ;;  %v10103_v21 = vrot.slane %v10102_v4, 2  ;;  %10104 = vst [vmem:[#allocation142_spill] sm:$0xff] %v7700_v60  ;;  %v10106_v61 = vrot.slane %v7304_v23, 4  ;;  %v2994_v29 = vrot.slane %v2979_v63, 4  ;;  %v10107_v17 = vrot.slane %v7633_v38, 6 }
 0x332   :  { %10105 = vst [vmem:[#allocation166_spill] sm:$0xff] %v7702_v14  ;;  %v879_v30 = vadd.f32 %v867_v12, %v847_v31  ;;  %v3146_v4 = vrot.slane %v3134_v40, 6  ;;  %v3137_v12 = vmul.f32 %v7660_v22, %v5202_v58  ;;  %v10111_v31 = vld [vmem:[#allocation160_spill] sm:$0xff]  ;;  %v10118_v8 = vrot.slane %v7342_v6, 4 }
 0x333   :  { %v775_v62 = vsel %vm735_vm6, %v10103_v21, %v10101_v3  ;;  %v2990_v26 = vsel %vm50_vm0, %v10106_v61, %v2989_v36  ;;  %v3113_v35 = vsel %vm993_vm8, %v3111_v33, %v10107_v17  ;;  %v7715_v3 = vmul.f32 %v7660_v22, %v5262_v10  ;;  %v10108_v36 = vld [vmem:[#allocation143_spill] sm:$0xff] }
 0x334   :  { %v3016_v21 = vmul.f32 %v7384_v41, %v5283_v28  ;;  %v784_v23 = vadd.f32 %v775_v62, %v752_v25  ;;  %v7721_v63 = vmul.f32 %v10108_v36, %v5262_v10  ;;  %v10109_v61 = vld [vmem:[#allocation179_spill] sm:$0xff]  ;;  %3120 = vrot.lane.b32.xlu0 %v3113_v35, %s4956_s19  ;;  %2998 = vrot.lane.b32.xlu1 %v2990_v26, %s4956_s19  ;;  %v10110_v25 = vrot.slane %v7551_v37, 6  ;;  %v10114_v26 = vld [vmem:[#allocation168_spill] sm:$0xff]  ;;  %v7746_v16 = vpop.permute.xlu0 %2588  ;;  %v7748_v40 = vpop.permute.xlu1 %2466 }
 0x335   :  { %v902_v14 = vrot.slane %v10109_v61, 4  ;;  %v7729_v33 = vmul.f32 %v7116_v9, %v5329_v42  ;;  %v10112_v62 = vrot.slane %v10111_v31, 6  ;;  %v10113_v35 = vrot.slane %v7646_v20, 3  ;;  %10116 = vst [vmem:[#allocation179_spill] sm:$0xff] %v7746_v16  ;;  %10117 = vst [vmem:[#allocation160_spill] sm:$0xff] %v7748_v40 }
 0x336   :  { %v10115_v60 = vrot.slane %v10114_v26, 3  ;;  %v2995_v37 = vsel %vm50_vm0, %v10118_v8, %v2994_v29  ;;  %v10119_v31 = vrot.slane %v7673_v53, 6  ;;  %v3029_v20 = vrot.slane %v3016_v21, 5  ;;  %v10121_v29 = vld [vmem:[#allocation169_spill] sm:$0xff] }
 0x337   :  { %v7738_v61 = vsel %vm993_vm8, %v10112_v62, %v10110_v25  ;;  %v9767_v62 = vrot.slane %v7715_v3, 6  ;;  %v920_v6 = vmul.f32 %v7116_v9, %v5225_v48  ;;  %v10120_v8 = vrot.slane %v7686_v49, 3 }
 0x338   :  { %v808_v17 = vsel %vm800_vm7, %v10115_v60, %v10113_v35  ;;  %v3148_v25 = vsel %vm993_vm8, %v3146_v4, %v10119_v31  ;;  %v3019_v60 = vmul.f32 %v7384_v41, %v5302_v27  ;;  %v911_v35 = vadd.f32 %v7467_v11, %v879_v30  ;;  %3002 = vrot.lane.b32.xlu1 %v2995_v37, %s4956_s19  ;;  %v10123_v11 = vld [vmem:[#allocation146_spill] sm:$0xff] }
 0x339   :  { %v817_v26 = vadd.f32 %v808_v17, %v784_v23  ;;  %3156 = vrot.lane.b32.xlu0 %v3148_v25, %s4956_s19  ;;  %v10122_v4 = vrot.slane %v10121_v29, 3  ;;  %v7773_v30 = vmul.f32 %v10123_v11, %v5262_v10  ;;  %v3151_v23 = vrot.slane %v3137_v12, 6  ;;  %v7783_v25 = vpop.permute.xlu0 %2624 }
 0x33a   :  { %v952_v17 = vmul.f32 %v10123_v11, %v5202_v58  ;;  %v984_v31 = vmul.f32 %v10064_v47, %v5225_v48  ;;  %v7781_v37 = vmul.f32 %v10064_v47, %v5329_v42  ;;  %10124 = vst [vmem:[#allocation168_spill] sm:$0xff] %v7783_v25  ;;  %v7788_v29 = vstv %s7707_s27  ;;  %s8785_s27 = sld [smem:[#allocation6 + $0x14]] }
 0x33b   :  { %v840_v21 = vsel %vm800_vm7, %v10122_v4, %v10120_v8  ;;  %v7785_v8 = vpop.permute.xlu1 %2470  ;;  %v3153_v12 = vsel %vm993_vm8, %v3151_v23, %v9767_v62  ;;  %v10126_v4 = vrot.slane %v7393_v56, 5  ;;  %v3034_v36 = vrot.slane %v3019_v60, 5 }
 0x33c   :  { %10125 = vst [vmem:[#allocation169_spill] sm:$0xff] %v7785_v8  ;;  %v3056_v40 = vmul.f32 %v7481_v0, %v5350_v50  ;;  %v943_v16 = vadd.f32 %v931_v19, %v911_v35  ;;  %v849_v25 = vadd.f32 %v840_v21, %v817_v26  ;;  %v934_v47 = vrot.slane %v920_v6, 5  ;;  %v10127_v8 = vld [vmem:[#allocation147_spill] sm:$0xff] }
 0x33d   :  { %v3030_v41 = vsel %vm533_vm2, %v10126_v4, %v3029_v20  ;;  %v7802_v49 = vmul.f32 %v10127_v8, %v5262_v10  ;;  %3160 = vrot.lane.b32.xlu0 %v3153_v12, %s4956_s19  ;;  %v10129_v56 = vrot.slane %v7690_v13, 4  ;;  %v10130_v20 = vrot.slane %v7368_v5, 4  ;;  %v7823_v12 = vpop.permute.xlu0 %2628 }
 0x33e   :  { %3038 = vrot.lane.b32.xlu1 %v3030_v41, %s4956_s19  ;;  %v1017_v19 = vmul.f32 %v10127_v8, %v5202_v58  ;;  %v660_v35 = vmul.f32 %v7013_v45, %v5283_v28  ;;  %v10131_v26 = vrot.slane %v7721_v63, 4  ;;  %v10132_v21 = vrot.slane %v7729_v33, 5  ;;  %10133 = vst [vmem:[#allocation147_spill] sm:$0xff] %v7823_v12 }
 0x33f   :  { %10128 = vst [vmem:[#allocation146_spill] sm:$0xff] %v7802_v49  ;;  %v872_v60 = vsel %vm50_vm0, %v10130_v20, %v10129_v56  ;;  %v7825_v4 = vpop.permute.xlu1 %2506  ;;  %v3174_v56 = vmul.f32 %v7788_v29, %v5216_v43  ;;  %v966_v20 = vrot.slane %v952_v17, 5  ;;  %v10135_v62 = vrot.slane %v7441_v15, 5 }
 0x340   :  { %v904_v6 = vsel %vm50_vm0, %v902_v14, %v10131_v26  ;;  %v936_v41 = vsel %vm533_vm2, %v934_v47, %v10132_v21  ;;  %10134 = vst [vmem:[#allocation200_spill] sm:$0xff] %v7825_v4  ;;  %v3069_v26 = vrot.slane %v3056_v40, 5  ;;  %v3059_v47 = vmul.f32 %v7481_v0, %v5379_v51  ;;  %v10137_v0 = vld [vmem:[#allocation141_spill] sm:$0xff] }
 0x341   :  { %v3035_v14 = vsel %vm533_vm2, %v10135_v62, %v3034_v36  ;;  %v975_v21 = vadd.f32 %v7546_v44, %v943_v16  ;;  %v881_v5 = vadd.f32 %v872_v60, %v849_v25  ;;  %v999_v23 = vrot.slane %v984_v31, 6  ;;  %3182 = vrot.lane.b32.xlu0 %v3174_v56, %s4957_s29  ;;  %v10139_v31 = vld [vmem:[#allocation138_spill] sm:$0xff]  ;;  %v7856_v56 = vpop.permute.xlu0 %2650 }
 0x342   :  { %3042 = vrot.lane.b32.xlu1 %v3035_v14, %s4956_s19  ;;  %v10136_v15 = vrot.slane %v7773_v30, 5  ;;  %v1031_v40 = vrot.slane %v1017_v19, 6  ;;  %v639_v62 = vmul.f32 %v10137_v0, %v5311_v34  ;;  %v674_v44 = vrot.slane %v660_v35, 1  ;;  %10140 = vst [vmem:[#allocation141_spill] sm:$0xff] %v7856_v56 }
 0x343   :  { %v10138_v16 = vrot.slane %v7781_v37, 6  ;;  %v649_v25 = vmul.f32 %v10139_v31, %v5244_v1  ;;  %v663_v60 = vmul.f32 %v7013_v45, %v5302_v27  ;;  %v3176_v19 = vmul.f32 %v7788_v29, %v5225_v48 }
 0x344   :  { %v7843_v36 = vsel %vm533_vm2, %v966_v20, %v10136_v15  ;;  %v7858_v20 = vpop.permute.xlu1 %2510  ;;  %v10142_v35 = vrot.slane %v7495_v59, 5  ;;  %v7866_v15 = vstv %s7798_s28  ;;  %v7871_v45 = vadd.f32 %v7738_v61, %v975_v21  ;;  %s8826_s28 = sld [smem:[#allocation6 + $0x45]] }
 0x345   :  { %v7850_v17 = vsel %vm993_vm8, %v999_v23, %v10138_v16  ;;  %10141 = vst [vmem:[#allocation138_spill] sm:$0xff] %v7858_v20  ;;  %v3074_v23 = vrot.slane %v3059_v47, 5  ;;  %v3096_v16 = vmul.f32 %v7575_v24, %v5283_v28  ;;  %v913_v4 = vadd.f32 %v904_v6, %v881_v5  ;;  %3186 = vrot.lane.b32.xlu0 %v3176_v19, %s4957_s29  ;;  %v7887_v5 = vpop.permute.xlu0 %2654 }
 0x346   :  { %v3070_v14 = vsel %vm533_vm2, %v10142_v35, %v3069_v26  ;;  %v10143_v20 = vrot.slane %v7802_v49, 6  ;;  %v653_v59 = vadd.f32 %v649_v25, %v639_v62  ;;  %v10144_v26 = vld [vmem:[#allocation173_spill] sm:$0xff]  ;;  %v693_v12 = vmul.f32 %v6991_v18, %v5350_v50 }
 0x347   :  { %3078 = vrot.lane.b32.xlu1 %v3070_v14, %s4956_s19  ;;  %v10145_v35 = vrot.slane %v10144_v26, 1  ;;  %v641_v61 = vmul.f32 %v10137_v0, %v5329_v42  ;;  %v679_v6 = vrot.slane %v663_v60, 1  ;;  %10146 = vst [vmem:[#allocation173_spill] sm:$0xff] %v7887_v5  ;;  %v3099_v62 = vmul.f32 %v7575_v24, %v5302_v27 }
 0x348   :  { %v7876_v56 = vsel %vm993_vm8, %v1031_v40, %v10143_v20  ;;  %v7889_v21 = vpop.permute.xlu1 %2546  ;;  %v3200_v40 = vmul.f32 %v7866_v15, %v5198_v57  ;;  %v7894_v20 = vstv %s7829_s14  ;;  %v10148_v0 = vrot.slane %v7537_v55, 5  ;;  %s8886_s14 = sld [smem:[#allocation6 + $0x1b]] }
 0x349   :  { %v675_v47 = vsel %vm670_vm5, %v10145_v35, %v674_v44  ;;  %10147 = vst [vmem:[#allocation201_spill] sm:$0xff] %v7889_v21  ;;  %v651_v44 = vmul.f32 %v10139_v31, %v5262_v10  ;;  %v3109_v60 = vrot.slane %v3096_v16, 6  ;;  %v7907_v19 = vmul.f32 %v7894_v20, %v5311_v34  ;;  %v10149_v16 = vld [vmem:[#allocation187_spill] sm:$0xff] }
 0x34a   :  { %v3075_v25 = vsel %vm533_vm2, %v10148_v0, %v3074_v23  ;;  %v945_v14 = vadd.f32 %v936_v41, %v913_v4  ;;  %v725_v26 = vmul.f32 %v7068_v52, %v5283_v28  ;;  %v696_v24 = vmul.f32 %v6991_v18, %v5379_v51  ;;  %3208 = vrot.lane.b32.xlu0 %v3200_v40, %s4957_s29  ;;  %v7920_v4 = vpop.permute.xlu0 %2676 }
 0x34b   :  { %3082 = vrot.lane.b32.xlu1 %v3075_v25, %s4956_s19  ;;  %v686_v31 = vadd.f32 %v675_v47, %v653_v59  ;;  %v706_v55 = vrot.slane %v693_v12, 1  ;;  %v655_v35 = vadd.f32 %v651_v44, %v641_v61  ;;  %v3226_v23 = vmul.f32 %v7894_v20, %v5216_v43  ;;  %10151 = vst [vmem:[#allocation187_spill] sm:$0xff] %v7920_v4 }
 0x34c   :  { %v10150_v0 = vrot.slane %v10149_v16, 1  ;;  %v7922_v21 = vpop.permute.xlu1 %2550  ;;  %v3202_v18 = vmul.f32 %v7866_v15, %v5202_v58  ;;  %v3114_v40 = vrot.slane %v3099_v62, 6  ;;  %v3136_v59 = vmul.f32 %v7660_v22, %v5350_v50 }
 0x34d   :  { %10152 = vst [vmem:[#allocation202_spill] sm:$0xff] %v7922_v21  ;;  %v758_v12 = vmul.f32 %v7020_v46, %v5350_v50  ;;  %v10153_v47 = vrot.slane %v7587_v2, 6  ;;  %v7936_v44 = vmul.f32 %v7894_v20, %v5329_v42  ;;  %v739_v25 = vrot.slane %v725_v26, 2  ;;  %v10154_v2 = vld [vmem:[#allocation172_spill] sm:$0xff] }
 0x34e   :  { %v680_v41 = vsel %vm670_vm5, %v10150_v0, %v679_v6  ;;  %v7940_v62 = vmul.f32 %v7071_v39, %v5283_v28  ;;  %v711_v16 = vrot.slane %v696_v24, 1  ;;  %v728_v0 = vmul.f32 %v7068_v52, %v5302_v27  ;;  %3212 = vrot.lane.b32.xlu0 %v3202_v18, %s4957_s29  ;;  %v7951_v5 = vpop.permute.xlu0 %2680 }
 0x34f   :  { %v3110_v61 = vsel %vm993_vm8, %v10153_v47, %v3109_v60  ;;  %v10155_v60 = vrot.slane %v10154_v2, 1  ;;  %v688_v6 = vadd.f32 %v680_v41, %v655_v35  ;;  %v3238_v21 = vrot.slane %v3226_v23, 1 }
 0x350   :  { %3118 = vrot.lane.b32.xlu1 %v3110_v61, %s4956_s19  ;;  %v3229_v26 = vmul.f32 %v7894_v20, %v5225_v48  ;;  %v7953_v24 = vpop.permute.xlu1 %2586  ;;  %v10157_v52 = vrot.slane %v7633_v38, 6  ;;  %v3149_v49 = vrot.slane %v3136_v59, 6  ;;  %v7959_v61 = vstv %s7898_s9  ;;  %s8983_s9 = sld [smem:[#allocation6 + $0x22]] }
 0x351   :  { %v707_v47 = vsel %vm670_vm5, %v10155_v60, %v706_v55  ;;  %10156 = vst [vmem:[#allocation172_spill] sm:$0xff] %v7953_v24  ;;  %v10158_v55 = vrot.slane %v7907_v19, 1  ;;  %v3139_v38 = vmul.f32 %v7660_v22, %v5379_v51  ;;  %v771_v41 = vrot.slane %v758_v12, 2  ;;  %v10188_v24 = vld [vmem:[#allocation178_spill] sm:$0xff] }
 0x352   :  { %v718_v4 = vadd.f32 %v707_v47, %v686_v31  ;;  %v3115_v18 = vsel %vm993_vm8, %v10157_v52, %v3114_v40  ;;  %v7969_v31 = vmul.f32 %v7959_v61, %v5244_v1  ;;  %v10159_v40 = vrot.slane %v7522_v54, 1 }
 0x353   :  { %v3240_v35 = vsel %vm670_vm5, %v3238_v21, %v10158_v55  ;;  %v744_v2 = vrot.slane %v728_v0, 2  ;;  %v761_v60 = vmul.f32 %v7020_v46, %v5379_v51  ;;  %v10160_v21 = vld [vmem:[#allocation184_spill] sm:$0xff]  ;;  %v3243_v23 = vrot.slane %v3229_v26, 1  ;;  %v7988_v46 = vpop.permute.xlu0 %2716 }
 0x354   :  { %v712_v59 = vsel %vm670_vm5, %v10159_v40, %v711_v16  ;;  %3248 = vrot.lane.b32.xlu0 %v3240_v35, %s4957_s29  ;;  %3122 = vrot.lane.b32.xlu1 %v3115_v18, %s4956_s19  ;;  %v10161_v47 = vrot.slane %v10160_v21, 2  ;;  %v3266_v22 = vmul.f32 %v7959_v61, %v5198_v57  ;;  %v977_v54 = vadd.f32 %v7843_v36, %v945_v14  ;;  %v7990_v0 = vpop.permute.xlu1 %2590 }
 0x355   :  { %v720_v55 = vadd.f32 %v712_v59, %v688_v6  ;;  %v823_v16 = vmul.f32 %v10099_v32, %v5350_v50  ;;  %10162 = vst [vmem:[#allocation184_spill] sm:$0xff] %v7990_v0  ;;  %v10163_v18 = vrot.slane %v7673_v53, 6  ;;  %v10164_v6 = vrot.slane %v7936_v44, 1 }
 0x356   :  { %v740_v52 = vsel %vm735_vm6, %v10161_v47, %v739_v25  ;;  %v9770_v26 = vrot.slane %v7969_v31, 1  ;;  %v3154_v40 = vrot.slane %v3139_v38, 6  ;;  %v8001_v36 = vmul.f32 %v7959_v61, %v5262_v10 }
 0x357   :  { %v751_v12 = vadd.f32 %v740_v52, %v718_v4  ;;  %v3150_v35 = vsel %vm993_vm8, %v10163_v18, %v3149_v49  ;;  %v3245_v25 = vsel %vm670_vm5, %v3243_v23, %v10164_v6  ;;  %v804_v14 = vrot.slane %v7940_v62, 3  ;;  %v10166_v23 = vld [vmem:[#allocation174_spill] sm:$0xff] }
 0x358   :  { %v10165_v4 = vrot.slane %v7562_v7, 2  ;;  %v776_v59 = vrot.slane %v761_v60, 2  ;;  %v793_v49 = vmul.f32 %v7071_v39, %v5302_v27  ;;  %3252 = vrot.lane.b32.xlu0 %v3245_v25, %s4957_s29  ;;  %3158 = vrot.lane.b32.xlu1 %v3150_v35, %s4956_s19  ;;  %v10167_v38 = vrot.slane %v10166_v23, 2  ;;  %v10168_v60 = vld [vmem:[#allocation151_spill] sm:$0xff]  ;;  %v8019_v39 = vpop.permute.xlu0 %2720  ;;  %v8021_v6 = vpop.permute.xlu1 %2626 }
 0x359   :  { %v3278_v52 = vrot.slane %v3266_v22, 1  ;;  %v3269_v62 = vmul.f32 %v7959_v61, %v5202_v58  ;;  %v1010_v7 = vadd.f32 %v7850_v17, %v977_v54  ;;  %v855_v18 = vmul.f32 %v10168_v60, %v5283_v28  ;;  %10169 = vst [vmem:[#allocation174_spill] sm:$0xff] %v8021_v6  ;;  %v10171_v25 = vld [vmem:[#allocation167_spill] sm:$0xff] }
 0x35a   :  { %v745_v53 = vsel %vm735_vm6, %v10165_v4, %v744_v2  ;;  %v772_v21 = vsel %vm735_vm6, %v10167_v38, %v771_v41  ;;  %v8024_v35 = vstv %s7961_s10  ;;  %v9769_v22 = vrot.slane %v8001_v36, 1  ;;  %s9026_s10 = sld [smem:[#allocation6 + $0x53]] }
 0x35b   :  { %v753_v47 = vadd.f32 %v745_v53, %v720_v55  ;;  %v783_v2 = vadd.f32 %v772_v21, %v751_v12  ;;  %v3280_v41 = vsel %vm670_vm5, %v3278_v52, %v9770_v26  ;;  %v10170_v55 = vrot.slane %v7715_v3, 6  ;;  %v10173_v3 = vld [vmem:[#allocation190_spill] sm:$0xff] }
 0x35c   :  { %v8037_v54 = vmul.f32 %v8024_v35, %v5311_v34  ;;  %v836_v12 = vrot.slane %v823_v16, 3  ;;  %v10172_v4 = vrot.slane %v10171_v25, 2  ;;  %v809_v23 = vrot.slane %v793_v49, 3  ;;  %3288 = vrot.lane.b32.xlu0 %v3280_v41, %s4957_s29  ;;  %v10175_v25 = vld [vmem:[#allocation197_spill] sm:$0xff]  ;;  %v8057_v41 = vpop.permute.xlu0 %2756 }
 0x35d   :  { %v3155_v17 = vsel %vm993_vm8, %v10170_v55, %v3154_v40  ;;  %v826_v38 = vmul.f32 %v10099_v32, %v5379_v51  ;;  %v10174_v40 = vrot.slane %v10173_v3, 3  ;;  %v3283_v55 = vrot.slane %v3269_v62, 1  ;;  %v10176_v32 = vld [vmem:[#allocation143_spill] sm:$0xff]  ;;  %v10178_v3 = vld [vmem:[#allocation156_spill] sm:$0xff] }
 0x35e   :  { %v777_v53 = vsel %vm735_vm6, %v10172_v4, %v776_v59  ;;  %3162 = vrot.lane.b32.xlu1 %v3155_v17, %s4956_s19  ;;  %v3306_v16 = vmul.f32 %v8024_v35, %v5216_v43  ;;  %v8053_v59 = vadd.f32 %v10175_v25, %v7871_v45  ;;  %v887_v4 = vmul.f32 %v10176_v32, %v5350_v50  ;;  %v8059_v17 = vpop.permute.xlu1 %2630  ;;  %s8095_s19 = sld [smem:[#allocation6 + $0x1a]] }
 0x35f   :  { %v805_v21 = vsel %vm800_vm7, %v10174_v40, %v804_v14  ;;  %v785_v52 = vadd.f32 %v777_v53, %v753_v47  ;;  %10177 = vst [vmem:[#allocation151_spill] sm:$0xff] %v8059_v17  ;;  %v3175_v14 = vmul.f32 %v7788_v29, %v5311_v34  ;;  %v8064_v47 = vadd.f32 %v7876_v56, %v1010_v7  ;;  %v10180_v7 = vld [vmem:[#allocation177_spill] sm:$0xff] }
 0x360   :  { %v816_v49 = vadd.f32 %v805_v21, %v783_v2  ;;  %v3285_v62 = vsel %vm670_vm5, %v3283_v55, %v9769_v22  ;;  %v8072_v2 = vmul.f32 %v8024_v35, %v5329_v42  ;;  %v868_v53 = vrot.slane %v855_v18, 4 }
 0x361   :  { %v10179_v40 = vrot.slane %v10178_v3, 3  ;;  %v841_v25 = vrot.slane %v826_v38, 3  ;;  %v858_v56 = vmul.f32 %v10168_v60, %v5302_v27  ;;  %3292 = vrot.lane.b32.xlu0 %v3285_v62, %s4957_s29  ;;  %v10181_v55 = vrot.slane %v10180_v7, 3 }
 0x362   :  { %3184 = vrot.lane.b32.xlu1 %v3175_v14, %s4957_s29  ;;  %v3318_v45 = vrot.slane %v3306_v16, 2  ;;  %v3309_v18 = vmul.f32 %v8024_v35, %v5225_v48  ;;  %v900_v6 = vrot.slane %v887_v4, 4  ;;  %v8088_v38 = vpop.permute.xlu1 %2652  ;;  %v3177_v60 = vmul.f32 %v7788_v29, %v5329_v42  ;;  %v10184_v4 = vld [vmem:[#allocation157_spill] sm:$0xff] }
 0x363   :  { %v810_v21 = vsel %vm800_vm7, %v10179_v40, %v809_v23  ;;  %v837_v22 = vsel %vm800_vm7, %v10181_v55, %v836_v12  ;;  %v8086_v23 = vpop.permute.xlu0 %2760  ;;  %10182 = vst [vmem:[#allocation167_spill] sm:$0xff] %v8088_v38  ;;  %v8093_v62 = vstv %s8026_s11  ;;  %v919_v12 = vmul.f32 %v7116_v9, %v5283_v28  ;;  %s9122_s11 = sld [smem:[#allocation6 + $0x29]] }
 0x364   :  { %v818_v26 = vadd.f32 %v810_v21, %v785_v52  ;;  %v848_v3 = vadd.f32 %v837_v22, %v816_v49  ;;  %v10183_v52 = vrot.slane %v8037_v54, 2  ;;  %v8105_v49 = vmul.f32 %v8093_v62, %v5244_v1 }
 0x365   :  { %v8109_v29 = vmul.f32 %v10123_v11, %v5350_v50  ;;  %v10185_v14 = vrot.slane %v10184_v4, 3  ;;  %v873_v21 = vrot.slane %v858_v56, 4  ;;  %v890_v7 = vmul.f32 %v10176_v32, %v5379_v51 }
 0x366   :  { %v3320_v16 = vsel %vm735_vm6, %v3318_v45, %v10183_v52  ;;  %3188 = vrot.lane.b32.xlu1 %v3177_v60, %s4957_s29  ;;  %v10186_v45 = vld [vmem:[#allocation191_spill] sm:$0xff]  ;;  %v3323_v38 = vrot.slane %v3309_v18, 2  ;;  %v3346_v17 = vmul.f32 %v8093_v62, %v5198_v57  ;;  %v8128_v32 = vpop.permute.xlu1 %2656  ;;  %v3201_v60 = vmul.f32 %v7866_v15, %v5244_v1 }
 0x367   :  { %v842_v40 = vsel %vm800_vm7, %v10185_v14, %v841_v25  ;;  %3328 = vrot.lane.b32.xlu0 %v3320_v16, %s4957_s29  ;;  %v10187_v55 = vrot.slane %v10186_v45, 4  ;;  %v10189_v25 = vrot.slane %v10188_v24, 4  ;;  %v8126_v14 = vpop.permute.xlu0 %2796  ;;  %10190 = vst [vmem:[#allocation190_spill] sm:$0xff] %v8128_v32  ;;  %v8144_v16 = vmul.f32 %v8093_v62, %v5262_v10 }
 0x368   :  { %v850_v22 = vadd.f32 %v842_v40, %v818_v26  ;;  %v10191_v26 = vld [vmem:[#allocation152_spill] sm:$0xff]  ;;  %v932_v40 = vrot.slane %v919_v12, 5  ;;  %v10193_v45 = vrot.slane %v7690_v13, 4  ;;  %v3349_v32 = vmul.f32 %v8093_v62, %v5202_v58 }
 0x369   :  { %v869_v52 = vsel %vm50_vm0, %v10187_v55, %v868_v53  ;;  %v901_v56 = vsel %vm50_vm0, %v10189_v25, %v900_v6  ;;  %v3228_v53 = vmul.f32 %v7894_v20, %v5283_v28  ;;  %v8136_v18 = vmul.f32 %v10191_v26, %v5283_v28 }
 0x36a   :  { %v880_v4 = vadd.f32 %v869_v52, %v848_v3  ;;  %v10192_v3 = vrot.slane %v8072_v2, 2  ;;  %v874_v55 = vsel %vm50_vm0, %v10193_v45, %v873_v21  ;;  %v905_v52 = vrot.slane %v890_v7, 4  ;;  %3210 = vrot.lane.b32.xlu1 %v3201_v60, %s4957_s29  ;;  %v8158_v13 = vpop.permute.xlu1 %2678  ;;  %v10197_v45 = vld [vmem:[#allocation192_spill] sm:$0xff] }
 0x36b   :  { %v922_v25 = vmul.f32 %v7116_v9, %v5302_v27  ;;  %v3358_v6 = vrot.slane %v3346_v17, 2  ;;  %v8156_v0 = vpop.permute.xlu0 %2800  ;;  %10194 = vst [vmem:[#allocation197_spill] sm:$0xff] %v8158_v13  ;;  %v3203_v21 = vmul.f32 %v7866_v15, %v5262_v10  ;;  %v3241_v9 = vrot.slane %v3228_v53, 1 }
 0x36c   :  { %v3325_v24 = vsel %vm735_vm6, %v3323_v38, %v10192_v3  ;;  %v964_v38 = vrot.slane %v8109_v29, 5  ;;  %v882_v3 = vadd.f32 %v874_v55, %v850_v22  ;;  %v912_v12 = vadd.f32 %v901_v56, %v880_v4 }
 0x36d   :  { %3332 = vrot.lane.b32.xlu0 %v3325_v24, %s4957_s29  ;;  %v8163_v7 = vstv %s8095_s19  ;;  %v10195_v29 = vrot.slane %v8105_v49, 2  ;;  %v3231_v56 = vmul.f32 %v7894_v20, %v5302_v27  ;;  %v8179_v15 = vmul.f32 %v10127_v8, %v5350_v50  ;;  %s9164_s19 = sld [smem:[#allocation6 + $0x5a]] }
 0x36e   :  { %v8173_v4 = vmul.f32 %v8163_v7, %v5311_v34  ;;  %v10196_v60 = vrot.slane %v7721_v63, 4  ;;  %v937_v24 = vrot.slane %v922_v25, 5  ;;  %3214 = vrot.lane.b32.xlu1 %v3203_v21, %s4957_s29  ;;  %v10198_v55 = vrot.slane %v10197_v45, 5 }
 0x36f   :  { %v3360_v17 = vsel %vm735_vm6, %v3358_v6, %v10195_v29  ;;  %v954_v6 = vmul.f32 %v10123_v11, %v5379_v51  ;;  %v3363_v22 = vrot.slane %v3349_v32, 2  ;;  %v3386_v13 = vmul.f32 %v8163_v7, %v5216_v43  ;;  %v8194_v25 = vpop.permute.xlu0 %2836 }
 0x370   :  { %v906_v53 = vsel %vm50_vm0, %v10196_v60, %v905_v52  ;;  %v933_v20 = vsel %vm533_vm2, %v10198_v55, %v932_v40  ;;  %v997_v52 = vrot.slane %v8136_v18, 6  ;;  %v8196_v60 = vpop.permute.xlu1 %2682  ;;  %v10200_v11 = vrot.slane %v7907_v19, 1 }
 0x371   :  { %3368 = vrot.lane.b32.xlu0 %v3360_v17, %s4957_s29  ;;  %v914_v29 = vadd.f32 %v906_v53, %v882_v3  ;;  %v944_v63 = vadd.f32 %v933_v20, %v912_v12  ;;  %10199 = vst [vmem:[#allocation143_spill] sm:$0xff] %v8196_v60  ;;  %v8203_v17 = vmul.f32 %v8163_v7, %v5329_v42  ;;  %v10201_v32 = vrot.slane %v8144_v16, 2  ;;  %v10202_v53 = vld [vmem:[#allocation21_spill] sm:$0xff]  ;;  %v10275_v60 = vld [vmem:[#allocation68_spill] sm:$0xff] }
 0x372   :  { %v3242_v21 = vsel %vm670_vm5, %v10200_v11, %v3241_v9  ;;  %v3246_v12 = vrot.slane %v3231_v56, 1  ;;  %v3268_v18 = vmul.f32 %v7959_v61, %v5350_v50  ;;  %v1066_v19 = vadd.f32 %v10202_v53, %v8053_v59 }
 0x373   :  { %v3365_v40 = vsel %vm735_vm6, %v3363_v22, %v10201_v32  ;;  %v10203_v9 = vrot.slane %v7729_v33, 5  ;;  %v969_v55 = vrot.slane %v954_v6, 5  ;;  %v986_v20 = vmul.f32 %v10191_v26, %v5302_v27  ;;  %3250 = vrot.lane.b32.xlu1 %v3242_v21, %s4957_s29  ;;  %v10204_v22 = vld [vmem:[#allocation182_spill] sm:$0xff]  ;;  %v8225_v53 = vpop.permute.xlu0 %2840 }
 0x374   :  { %v10205_v56 = vrot.slane %v10204_v22, 5  ;;  %v3398_v3 = vrot.slane %v3386_v13, 3  ;;  %v3389_v59 = vmul.f32 %v8163_v7, %v5225_v48  ;;  %v8231_v6 = vstv %s8165_s13  ;;  %s9242_s13 = sld [smem:[#allocation6 + $0x30]] }
 0x375   :  { %v938_v45 = vsel %vm533_vm2, %v10203_v9, %v937_v24  ;;  %3372 = vrot.lane.b32.xlu0 %v3365_v40, %s4957_s29  ;;  %v8227_v24 = vpop.permute.xlu1 %2718  ;;  %v3271_v21 = vmul.f32 %v7959_v61, %v5379_v51  ;;  %v3281_v40 = vrot.slane %v3268_v18, 1  ;;  %v8245_v9 = vmul.f32 %v8231_v6, %v5244_v1 }
 0x376   :  { %v965_v11 = vsel %vm533_vm2, %v10205_v56, %v964_v38  ;;  %v946_v32 = vadd.f32 %v938_v45, %v914_v29  ;;  %10206 = vst [vmem:[#allocation156_spill] sm:$0xff] %v8227_v24  ;;  %v10207_v38 = vrot.slane %v8173_v4, 3  ;;  %v10208_v29 = vrot.slane %v7936_v44, 1  ;;  %v10209_v45 = vld [vmem:[#allocation17_spill] sm:$0xff]  ;;  %v10211_v44 = vld [vmem:[#allocation22_spill] sm:$0xff] }
 0x377   :  { %v976_v33 = vadd.f32 %v965_v11, %v944_v63  ;;  %v1092_v22 = vadd.f32 %v10209_v45, %v1066_v19  ;;  %v10210_v56 = vrot.slane %v7773_v30, 5  ;;  %v1002_v11 = vrot.slane %v986_v20, 6  ;;  %v10214_v20 = vld [vmem:[#allocation50_spill] sm:$0xff]  ;;  %v8263_v45 = vpop.permute.xlu0 %2876 }
 0x378   :  { %v3400_v13 = vsel %vm800_vm7, %v3398_v3, %v10207_v38  ;;  %v3247_v63 = vsel %vm670_vm5, %v10208_v29, %v3246_v12  ;;  %v1019_v26 = vmul.f32 %v10127_v8, %v5379_v51  ;;  %v1068_v3 = vadd.f32 %v10211_v44, %v8064_v47  ;;  %v10212_v38 = vld [vmem:[#allocation194_spill] sm:$0xff] }
 0x379   :  { %v970_v61 = vsel %vm533_vm2, %v10210_v56, %v969_v55  ;;  %3408 = vrot.lane.b32.xlu0 %v3400_v13, %s4957_s29  ;;  %3254 = vrot.lane.b32.xlu1 %v3247_v63, %s4957_s29  ;;  %v3403_v18 = vrot.slane %v3389_v59, 3  ;;  %v3426_v19 = vmul.f32 %v8231_v6, %v5198_v57  ;;  %v10213_v30 = vrot.slane %v10212_v38, 6  ;;  %v8265_v8 = vpop.permute.xlu1 %2722 }
 0x37a   :  { %v978_v12 = vadd.f32 %v970_v61, %v946_v32  ;;  %v1132_v29 = vadd.f32 %v10214_v20, %v1092_v22  ;;  %10215 = vst [vmem:[#allocation177_spill] sm:$0xff] %v8265_v8  ;;  %v3286_v13 = vrot.slane %v3271_v21, 1  ;;  %v8269_v63 = vmul.f32 %v8231_v6, %v5262_v10 }
 0x37b   :  { %v998_v55 = vsel %vm993_vm8, %v10213_v30, %v997_v52  ;;  %v10216_v47 = vrot.slane %v8203_v17, 3  ;;  %v10217_v59 = vrot.slane %v7969_v31, 1  ;;  %v9771_v52 = vrot.slane %v8245_v9, 3 }
 0x37c   :  { %v3308_v22 = vmul.f32 %v8024_v35, %v5283_v28  ;;  %v1009_v61 = vadd.f32 %v998_v55, %v976_v33  ;;  %v1029_v21 = vrot.slane %v8179_v15, 6  ;;  %v10218_v44 = vrot.slane %v7781_v37, 6  ;;  %v8290_v55 = vpop.permute.xlu0 %2880 }
 0x37d   :  { %v3405_v32 = vsel %vm800_vm7, %v3403_v18, %v10216_v47  ;;  %v3282_v56 = vsel %vm670_vm5, %v10217_v59, %v3281_v40  ;;  %v3429_v31 = vmul.f32 %v8231_v6, %v5202_v58  ;;  %v10219_v40 = vld [vmem:[#allocation18_spill] sm:$0xff]  ;;  %v1034_v20 = vrot.slane %v1019_v26, 6  ;;  %v8292_v15 = vpop.permute.xlu1 %2758 }
 0x37e   :  { %v1003_v38 = vsel %vm993_vm8, %v10218_v44, %v1002_v11  ;;  %3412 = vrot.lane.b32.xlu0 %v3405_v32, %s4957_s29  ;;  %3290 = vrot.lane.b32.xlu1 %v3282_v56, %s4957_s29  ;;  %v1094_v18 = vadd.f32 %v10219_v40, %v1068_v3  ;;  %v3438_v47 = vrot.slane %v3426_v19, 3  ;;  %v10220_v59 = vld [vmem:[#allocation26_spill] sm:$0xff]  ;;  %10221 = vst [vmem:[#allocation157_spill] sm:$0xff] %v8292_v15  ;;  %v10222_v37 = vrot.slane %v8001_v36, 1  ;;  %v10223_v19 = vld [vmem:[#allocation52_spill] sm:$0xff]  ;;  %v10224_v44 = vld [vmem:[#allocation183_spill] sm:$0xff] }
 0x37f   :  { %v1011_v30 = vadd.f32 %v1003_v38, %v978_v12  ;;  %v1172_v33 = vadd.f32 %v10220_v59, %v1132_v29  ;;  %v8299_v56 = vstv %s8235_s15  ;;  %v3321_v3 = vrot.slane %v3308_v22, 2  ;;  %s9310_s15 = sld [smem:[#allocation6 + $0x61]] }
 0x380   :  { %v3287_v11 = vsel %vm670_vm5, %v10222_v37, %v3286_v13  ;;  %v3440_v26 = vsel %vm800_vm7, %v3438_v47, %v9771_v52  ;;  %v8308_v12 = vmul.f32 %v8299_v56, %v5311_v34  ;;  %v3311_v36 = vmul.f32 %v8024_v35, %v5302_v27  ;;  %v10226_v47 = vld [vmem:[#allocation146_spill] sm:$0xff] }
 0x381   :  { %v1134_v29 = vadd.f32 %v10223_v19, %v1094_v18  ;;  %v3443_v13 = vrot.slane %v3429_v31, 3  ;;  %v10225_v38 = vrot.slane %v10224_v44, 6  ;;  %v10227_v22 = vrot.slane %v10226_v47, 6  ;;  %v10228_v37 = vld [vmem:[#allocation54_spill] sm:$0xff]  ;;  %v8324_v19 = vpop.permute.xlu0 %2916  ;;  %v10233_v47 = vld [vmem:[#allocation28_spill] sm:$0xff] }
 0x382   :  { %3448 = vrot.lane.b32.xlu0 %v3440_v26, %s4957_s29  ;;  %3294 = vrot.lane.b32.xlu1 %v3287_v11, %s4957_s29  ;;  %v1212_v52 = vadd.f32 %v10228_v37, %v1172_v33  ;;  %v3466_v35 = vmul.f32 %v8299_v56, %v5216_v43  ;;  %v8326_v26 = vpop.permute.xlu1 %2762  ;;  %v10230_v31 = vrot.slane %v8269_v63, 3  ;;  %v3348_v44 = vmul.f32 %v8093_v62, %v5350_v50 }
 0x383   :  { %v1030_v40 = vsel %vm993_vm8, %v10225_v38, %v1029_v21  ;;  %v1035_v59 = vsel %vm993_vm8, %v10227_v22, %v1034_v20  ;;  %10229 = vst [vmem:[#allocation191_spill] sm:$0xff] %v8326_v26  ;;  %v8333_v21 = vmul.f32 %v8299_v56, %v5329_v42  ;;  %v10231_v20 = vrot.slane %v8037_v54, 2  ;;  %v10232_v38 = vld [vmem:[#allocation33_spill] sm:$0xff]  ;;  %v10235_v54 = vld [vmem:[#allocation30_spill] sm:$0xff] }
 0x384   :  { %v1041_v32 = vadd.f32 %v1030_v40, %v1009_v61  ;;  %v1043_v18 = vadd.f32 %v1035_v59, %v1011_v30  ;;  %v3445_v11 = vsel %vm800_vm7, %v3443_v13, %v10230_v31  ;;  %v3326_v30 = vrot.slane %v3311_v36, 2  ;;  %v10234_v13 = vld [vmem:[#allocation35_spill] sm:$0xff]  ;;  %v10236_v36 = vld [vmem:[#allocation56_spill] sm:$0xff] }
 0x385   :  { %v3322_v33 = vsel %vm735_vm6, %v10231_v20, %v3321_v3  ;;  %v1174_v22 = vadd.f32 %v10233_v47, %v1134_v29  ;;  %v1252_v37 = vadd.f32 %v10235_v54, %v1212_v52  ;;  %v3478_v3 = vrot.slane %v3466_v35, 4  ;;  %v8350_v61 = vpop.permute.xlu0 %2920 }
 0x386   :  { %v1067_v40 = vadd.f32 %v10232_v38, %v1041_v32  ;;  %3452 = vrot.lane.b32.xlu0 %v3445_v11, %s4957_s29  ;;  %3330 = vrot.lane.b32.xlu1 %v3322_v33, %s4957_s29  ;;  %v1069_v59 = vadd.f32 %v10234_v13, %v1043_v18  ;;  %v3469_v31 = vmul.f32 %v8299_v56, %v5225_v48  ;;  %v8352_v15 = vpop.permute.xlu1 %2798  ;;  %v8356_v29 = vstv %s8301_s12 }
 0x387   :  { %v1214_v20 = vadd.f32 %v10236_v36, %v1174_v22  ;;  %10237 = vst [vmem:[#allocation178_spill] sm:$0xff] %v8352_v15  ;;  %v3351_v11 = vmul.f32 %v8093_v62, %v5379_v51  ;;  %v10238_v52 = vrot.slane %v8308_v12, 4  ;;  %v10239_v18 = vrot.slane %v8072_v2, 2  ;;  %v10240_v22 = vld [vmem:[#allocation25_spill] sm:$0xff]  ;;  %v10241_v62 = vld [vmem:[#allocation27_spill] sm:$0xff]  ;;  %v10242_v36 = vld [vmem:[#allocation58_spill] sm:$0xff] }
 0x388   :  { %v3361_v38 = vrot.slane %v3348_v44, 2  ;;  %v8370_v47 = vmul.f32 %v8356_v29, %v5244_v1  ;;  %v1093_v13 = vadd.f32 %v10240_v22, %v1067_v40  ;;  %v1095_v54 = vadd.f32 %v10241_v62, %v1069_v59  ;;  %v10249_v62 = vld [vmem:[#allocation34_spill] sm:$0xff] }
 0x389   :  { %v3480_v35 = vsel %vm50_vm0, %v3478_v3, %v10238_v52  ;;  %v3327_v33 = vsel %vm735_vm6, %v10239_v18, %v3326_v30  ;;  %v1292_v32 = vadd.f32 %v10242_v36, %v1252_v37  ;;  %v3483_v3 = vrot.slane %v3469_v31, 4  ;;  %v10243_v30 = vld [vmem:[#allocation32_spill] sm:$0xff]  ;;  %v10244_v52 = vld [vmem:[#allocation65_spill] sm:$0xff]  ;;  %v8381_v15 = vpop.permute.xlu0 %2956 }
 0x38a   :  { %3488 = vrot.lane.b32.xlu0 %v3480_v35, %s4957_s29  ;;  %3334 = vrot.lane.b32.xlu1 %v3327_v33, %s4957_s29  ;;  %v3506_v2 = vmul.f32 %v8356_v29, %v5198_v57  ;;  %v1254_v44 = vadd.f32 %v10243_v30, %v1214_v20  ;;  %v1133_v18 = vadd.f32 %v10244_v52, %v1093_v13  ;;  %v8383_v26 = vpop.permute.xlu1 %2802  ;;  %v3366_v40 = vrot.slane %v3351_v11, 2  ;;  %v10248_v13 = vld [vmem:[#allocation67_spill] sm:$0xff]  ;;  %v10251_v52 = vld [vmem:[#allocation41_spill] sm:$0xff] }
 0x38b   :  { %10245 = vst [vmem:[#allocation152_spill] sm:$0xff] %v8383_v26  ;;  %v3388_v35 = vmul.f32 %v8163_v7, %v5283_v28  ;;  %v10246_v59 = vrot.slane %v8333_v21, 4  ;;  %v10247_v31 = vrot.slane %v8105_v49, 2  ;;  %v8396_v22 = vmul.f32 %v8356_v29, %v5262_v10  ;;  %v10259_v26 = vld [vmem:[#allocation71_spill] sm:$0xff] }
 0x38c   :  { %v1135_v11 = vadd.f32 %v10248_v13, %v1095_v54  ;;  %v1332_v36 = vadd.f32 %v10249_v62, %v1292_v32  ;;  %v3518_v49 = vrot.slane %v3506_v2, 4  ;;  %v10253_v54 = vrot.slane %v8144_v16, 2  ;;  %v10258_v13 = vld [vmem:[#allocation36_spill] sm:$0xff] }
 0x38d   :  { %v3485_v37 = vsel %vm50_vm0, %v3483_v3, %v10246_v59  ;;  %v3362_v33 = vsel %vm735_vm6, %v10247_v31, %v3361_v38  ;;  %v10250_v3 = vld [vmem:[#allocation60_spill] sm:$0xff]  ;;  %v3509_v38 = vmul.f32 %v8356_v29, %v5202_v58  ;;  %v1173_v59 = vadd.f32 %v10251_v52, %v1133_v18  ;;  %v8408_v31 = vpop.permute.xlu0 %2960  ;;  %v10256_v52 = vld [vmem:[#allocation69_spill] sm:$0xff] }
 0x38e   :  { %3492 = vrot.lane.b32.xlu0 %v3485_v37, %s4957_s29  ;;  %3370 = vrot.lane.b32.xlu1 %v3362_v33, %s4957_s29  ;;  %v1294_v30 = vadd.f32 %v10250_v3, %v1254_v44  ;;  %v8410_v20 = vpop.permute.xlu1 %2838  ;;  %v3367_v37 = vsel %vm735_vm6, %v10253_v54, %v3366_v40  ;;  %v3401_v33 = vrot.slane %v3388_v35, 3  ;;  %v8416_v32 = vstv %s8360_s16  ;;  %v10255_v3 = vld [vmem:[#allocation43_spill] sm:$0xff]  ;;  %v10257_v35 = vld [vmem:[#allocation62_spill] sm:$0xff] }
 0x38f   :  { %10252 = vst [vmem:[#allocation192_spill] sm:$0xff] %v8410_v20  ;;  %v10254_v2 = vrot.slane %v8370_v47, 4  ;;  %v8424_v18 = vmul.f32 %v8416_v32, %v5311_v34  ;;  %v3391_v62 = vmul.f32 %v8163_v7, %v5302_v27  ;;  %v1175_v16 = vadd.f32 %v10255_v3, %v1135_v11  ;;  %v10264_v3 = vld [vmem:[#allocation64_spill] sm:$0xff] }
 0x390   :  { %v1213_v40 = vadd.f32 %v10256_v52, %v1173_v59  ;;  %v1372_v54 = vadd.f32 %v10257_v35, %v1332_v36  ;;  %v1334_v20 = vadd.f32 %v10258_v13, %v1294_v30  ;;  %v10262_v59 = vrot.slane %v8173_v4, 3  ;;  %v10265_v52 = vld [vmem:[#allocation45_spill] sm:$0xff]  ;;  %v10266_v35 = vld [vmem:[#allocation38_spill] sm:$0xff] }
 0x391   :  { %v3520_v44 = vsel %vm50_vm0, %v3518_v49, %v10254_v2  ;;  %v3523_v49 = vrot.slane %v3509_v38, 4  ;;  %v3546_v2 = vmul.f32 %v8416_v32, %v5216_v43  ;;  %v1215_v24 = vadd.f32 %v10259_v26, %v1175_v16  ;;  %v8437_v7 = vpop.permute.xlu0 %2996 }
 0x392   :  { %3528 = vrot.lane.b32.xlu0 %v3520_v44, %s4957_s29  ;;  %3374 = vrot.lane.b32.xlu1 %v3367_v37, %s4957_s29  ;;  %10260 = vst [vmem:[#allocation21_spill] sm:$0xff] %v8437_v7  ;;  %v8439_v11 = vpop.permute.xlu1 %2842  ;;  %v3402_v44 = vsel %vm800_vm7, %v10262_v59, %v3401_v33  ;;  %v8446_v36 = vmul.f32 %v8416_v32, %v5329_v42  ;;  %v10263_v38 = vrot.slane %v8396_v22, 4  ;;  %v3406_v26 = vrot.slane %v3391_v62, 3  ;;  %v10267_v62 = vld [vmem:[#allocation47_spill] sm:$0xff] }
 0x393   :  { %10261 = vst [vmem:[#allocation182_spill] sm:$0xff] %v8439_v11  ;;  %v3428_v13 = vmul.f32 %v8231_v6, %v5350_v50  ;;  %v1374_v16 = vadd.f32 %v10264_v3, %v1334_v20  ;;  %v1253_v4 = vadd.f32 %v10265_v52, %v1213_v40  ;;  %v3549_v33 = vmul.f32 %v8416_v32, %v5225_v48  ;;  %v10268_v11 = vld [vmem:[#allocation73_spill] sm:$0xff] }
 0x394   :  { %v3525_v37 = vsel %vm50_vm0, %v3523_v49, %v10263_v38  ;;  %v1412_v59 = vadd.f32 %v10266_v35, %v1372_v54  ;;  %v3558_v49 = vrot.slane %v3546_v2, 5  ;;  %v8462_v38 = vstv %s8405_s17 }
 0x395   :  { %v1255_v30 = vadd.f32 %v10267_v62, %v1215_v24  ;;  %v1293_v20 = vadd.f32 %v10268_v11, %v1253_v4  ;;  %v8468_v3 = vpop.permute.xlu0 %3000  ;;  %v10270_v54 = vrot.slane %v8424_v18, 5  ;;  %v10271_v52 = vrot.slane %v8203_v17, 3  ;;  %v10272_v4 = vld [vmem:[#allocation40_spill] sm:$0xff] }
 0x396   :  { %3532 = vrot.lane.b32.xlu0 %v3525_v37, %s4957_s29  ;;  %3410 = vrot.lane.b32.xlu1 %v3402_v44, %s4957_s29  ;;  %v8470_v40 = vpop.permute.xlu1 %2878  ;;  %v8475_v37 = vmul.f32 %v8462_v38, %v5244_v1  ;;  %v3441_v35 = vrot.slane %v3428_v13, 3  ;;  %v3431_v11 = vmul.f32 %v8231_v6, %v5379_v51  ;;  %v1414_v62 = vadd.f32 %v10272_v4, %v1374_v16  ;;  %v10276_v13 = vld [vmem:[#allocation49_spill] sm:$0xff]  ;;  %v10281_v4 = vld [vmem:[#allocation51_spill] sm:$0xff] }
 0x397   :  { %10269 = vst [vmem:[#allocation17_spill] sm:$0xff] %v8470_v40  ;;  %v3560_v2 = vsel %vm533_vm2, %v3558_v49, %v10270_v54  ;;  %v3407_v24 = vsel %vm800_vm7, %v10271_v52, %v3406_v26  ;;  %v10273_v40 = vld [vmem:[#allocation75_spill] sm:$0xff]  ;;  %v3563_v8 = vrot.slane %v3549_v33, 5  ;;  %v3586_v49 = vmul.f32 %v8462_v38, %v5198_v57  ;;  %v10274_v54 = vld [vmem:[#allocation66_spill] sm:$0xff] }
 0x398   :  { %v1295_v44 = vadd.f32 %v10273_v40, %v1255_v30  ;;  %v1452_v17 = vadd.f32 %v10274_v54, %v1412_v59  ;;  %v1454_v26 = vadd.f32 %v10275_v60, %v1414_v62  ;;  %v1333_v52 = vadd.f32 %v10276_v13, %v1293_v20  ;;  %v10282_v54 = vld [vmem:[#allocation77_spill] sm:$0xff] }
 0x399   :  { %v8494_v6 = vpop.permute.xlu0 %3036  ;;  %v10279_v30 = vrot.slane %v8446_v36, 5  ;;  %v3446_v59 = vrot.slane %v3431_v11, 3  ;;  %v8507_v60 = vmul.f32 %v8462_v38, %v5262_v10  ;;  %v3468_v20 = vmul.f32 %v8299_v56, %v5283_v28 }
 0x39a   :  { %3568 = vrot.lane.b32.xlu0 %v3560_v2, %s4957_s29  ;;  %3414 = vrot.lane.b32.xlu1 %v3407_v24, %s4957_s29  ;;  %10277 = vst [vmem:[#allocation22_spill] sm:$0xff] %v8494_v6  ;;  %v8496_v16 = vpop.permute.xlu1 %2882  ;;  %v10280_v2 = vrot.slane %v8245_v9, 3  ;;  %v1335_v62 = vadd.f32 %v10281_v4, %v1295_v44  ;;  %v1373_v13 = vadd.f32 %v10282_v54, %v1333_v52  ;;  %v10283_v9 = vld [vmem:[#allocation42_spill] sm:$0xff]  ;;  %v8519_v11 = vstv %s8464_s18 }
 0x39b   :  { %10278 = vst [vmem:[#allocation194_spill] sm:$0xff] %v8496_v16  ;;  %v3565_v40 = vsel %vm533_vm2, %v3563_v8, %v10279_v30  ;;  %v3598_v8 = vrot.slane %v3586_v49, 5  ;;  %v1492_v30 = vadd.f32 %v10283_v9, %v1452_v17  ;;  %v10285_v16 = vld [vmem:[#allocation79_spill] sm:$0xff]  ;;  %v10288_v52 = vrot.slane %v8475_v37, 5  ;;  %v10291_v9 = vld [vmem:[#allocation53_spill] sm:$0xff] }
 0x39c   :  { %v3442_v24 = vsel %vm800_vm7, %v10280_v2, %v3441_v35  ;;  %v3589_v35 = vmul.f32 %v8462_v38, %v5202_v58  ;;  %v10284_v2 = vld [vmem:[#allocation44_spill] sm:$0xff]  ;;  %v1375_v6 = vadd.f32 %v10285_v16, %v1335_v62  ;;  %v8532_v49 = vmul.f32 %v8519_v11, %v5311_v34 }
 0x39d   :  { %v1494_v33 = vadd.f32 %v10284_v2, %v1454_v26  ;;  %v8523_v7 = vpop.permute.xlu0 %3040  ;;  %v10289_v17 = vrot.slane %v8269_v63, 3  ;;  %v3471_v4 = vmul.f32 %v8299_v56, %v5302_v27  ;;  %v10290_v62 = vld [vmem:[#allocation72_spill] sm:$0xff]  ;;  %v3626_v2 = vmul.f32 %v8519_v11, %v5216_v43  ;;  %v10292_v63 = vld [vmem:[#allocation70_spill] sm:$0xff] }
 0x39e   :  { %3572 = vrot.lane.b32.xlu0 %v3565_v40, %s4957_s29  ;;  %3450 = vrot.lane.b32.xlu1 %v3442_v24, %s4957_s29  ;;  %10286 = vst [vmem:[#allocation50_spill] sm:$0xff] %v8523_v7  ;;  %v8525_v44 = vpop.permute.xlu1 %2918  ;;  %v3600_v40 = vsel %vm533_vm2, %v3598_v8, %v10288_v52  ;;  %v3481_v24 = vrot.slane %v3468_v20, 4  ;;  %v1413_v8 = vadd.f32 %v10291_v9, %v1373_v13  ;;  %v10294_v20 = vld [vmem:[#allocation81_spill] sm:$0xff]  ;;  %v10299_v9 = vld [vmem:[#allocation48_spill] sm:$0xff] }
 0x39f   :  { %10287 = vst [vmem:[#allocation18_spill] sm:$0xff] %v8525_v44  ;;  %v3447_v26 = vsel %vm800_vm7, %v10289_v17, %v3446_v59  ;;  %v1534_v54 = vadd.f32 %v10290_v62, %v1494_v33  ;;  %v1532_v52 = vadd.f32 %v10292_v63, %v1492_v30  ;;  %v3603_v59 = vrot.slane %v3589_v35, 5  ;;  %v10293_v17 = vld [vmem:[#allocation55_spill] sm:$0xff]  ;;  %v10302_v33 = vld [vmem:[#allocation57_spill] sm:$0xff] }
 0x3a0   :  { %v1415_v16 = vadd.f32 %v10293_v17, %v1375_v6  ;;  %v1453_v44 = vadd.f32 %v10294_v20, %v1413_v8  ;;  %v8558_v13 = vmul.f32 %v8519_v11, %v5329_v42  ;;  %v10298_v30 = vrot.slane %v8308_v12, 4  ;;  %v10300_v63 = vld [vmem:[#allocation83_spill] sm:$0xff]  ;;  %v10301_v12 = vld [vmem:[#allocation46_spill] sm:$0xff] }
 0x3a1   :  { %v8551_v7 = vpop.permute.xlu0 %3076  ;;  %v3486_v35 = vrot.slane %v3471_v4, 4  ;;  %v3508_v62 = vmul.f32 %v8356_v29, %v5350_v50  ;;  %v1574_v8 = vadd.f32 %v10299_v9, %v1534_v54  ;;  %v3638_v20 = vrot.slane %v3626_v2, 6 }
 0x3a2   :  { %3608 = vrot.lane.b32.xlu0 %v3600_v40, %s4957_s29  ;;  %3454 = vrot.lane.b32.xlu1 %v3447_v26, %s4957_s29  ;;  %10295 = vst [vmem:[#allocation26_spill] sm:$0xff] %v8551_v7  ;;  %v8553_v56 = vpop.permute.xlu1 %2922  ;;  %v10297_v40 = vrot.slane %v8507_v60, 5  ;;  %v3482_v6 = vsel %vm50_vm0, %v10298_v30, %v3481_v24  ;;  %v1455_v17 = vadd.f32 %v10300_v63, %v1415_v16  ;;  %v10305_v54 = vrot.slane %v8532_v49, 6 }
 0x3a3   :  { %10296 = vst [vmem:[#allocation52_spill] sm:$0xff] %v8553_v56  ;;  %v1493_v24 = vadd.f32 %v10302_v33, %v1453_v44  ;;  %v8585_v9 = vstv %s8534_s20  ;;  %v10306_v2 = vrot.slane %v8333_v21, 4  ;;  %v3521_v63 = vrot.slane %v3508_v62, 4  ;;  %v10307_v33 = vld [vmem:[#allocation24_spill] sm:$0xff]  ;;  %v10309_v21 = vld [vmem:[#allocation85_spill] sm:$0xff]  ;;  %v10310_v62 = vld [vmem:[#allocation23_spill] sm:$0xff] }
 0x3a4   :  { %v3605_v26 = vsel %vm533_vm2, %v3603_v59, %v10297_v40  ;;  %v3629_v59 = vmul.f32 %v8519_v11, %v5225_v48  ;;  %v1572_v40 = vadd.f32 %v10301_v12, %v1532_v52  ;;  %v3640_v16 = vsel %vm993_vm8, %v3638_v20, %v10305_v54  ;;  %v10311_v56 = vld [vmem:[#allocation87_spill] sm:$0xff] }
 0x3a5   :  { %v8576_v4 = vpop.permute.xlu0 %3080  ;;  %v8592_v44 = vmul.f32 %v8585_v9, %v5244_v1  ;;  %v3511_v52 = vmul.f32 %v8356_v29, %v5379_v51  ;;  %v1600_v12 = vadd.f32 %v10307_v33, %v1574_v8  ;;  %v10314_v8 = vrot.slane %v8558_v13, 6 }
 0x3a6   :  { %3612 = vrot.lane.b32.xlu0 %v3605_v26, %s4957_s29  ;;  %3490 = vrot.lane.b32.xlu1 %v3482_v6, %s4957_s29  ;;  %10303 = vst [vmem:[#allocation183_spill] sm:$0xff] %v8576_v4  ;;  %v8578_v30 = vpop.permute.xlu1 %2958  ;;  %v3487_v6 = vsel %vm50_vm0, %v10306_v2, %v3486_v35  ;;  %v3643_v54 = vrot.slane %v3629_v59, 6  ;;  %v1533_v26 = vadd.f32 %v10309_v21, %v1493_v24  ;;  %v10315_v24 = vrot.slane %v8370_v47, 4 }
 0x3a7   :  { %10304 = vst [vmem:[#allocation146_spill] sm:$0xff] %v8578_v30  ;;  %v10308_v30 = vld [vmem:[#allocation59_spill] sm:$0xff]  ;;  %v3666_v35 = vmul.f32 %v8585_v9, %v5198_v57  ;;  %v1598_v2 = vadd.f32 %v10310_v62, %v1572_v40  ;;  %v8614_v59 = vmul.f32 %v8585_v9, %v5262_v10  ;;  %v3669_v47 = vmul.f32 %v8585_v9, %v5202_v58 }
 0x3a8   :  { %v1495_v20 = vadd.f32 %v10308_v30, %v1455_v17  ;;  %v3645_v17 = vsel %vm993_vm8, %v3643_v54, %v10314_v8  ;;  %v3522_v30 = vsel %vm50_vm0, %v10315_v24, %v3521_v63  ;;  %v10318_v62 = vld [vmem:[#allocation19_spill] sm:$0xff] }
 0x3a9   :  { %v8605_v4 = vpop.permute.xlu0 %3116  ;;  %v3678_v21 = vrot.slane %v3666_v35, 6  ;;  %v1624_v63 = vadd.f32 %v10318_v62, %v1598_v2  ;;  %v10319_v8 = vld [vmem:[#allocation63_spill] sm:$0xff]  ;;  %v3551_v2 = vmul.f32 %v8416_v32, %v5302_v27  ;;  %v10325_v62 = vld [vmem:[#allocation37_spill] sm:$0xff] }
 0x3aa   :  { %3648 = vrot.lane.b32.xlu0 %v3640_v16, %s4957_s29  ;;  %3494 = vrot.lane.b32.xlu1 %v3487_v6, %s4957_s29  ;;  %v1535_v7 = vadd.f32 %v10311_v56, %v1495_v20  ;;  %10312 = vst [vmem:[#allocation54_spill] sm:$0xff] %v8605_v4  ;;  %v8607_v29 = vpop.permute.xlu1 %2962  ;;  %v3526_v56 = vrot.slane %v3511_v52, 4  ;;  %v3548_v16 = vmul.f32 %v8416_v32, %v5283_v28  ;;  %v10316_v6 = vld [vmem:[#allocation20_spill] sm:$0xff]  ;;  %v10317_v20 = vld [vmem:[#allocation61_spill] sm:$0xff]  ;;  %v8654_v32 = vstv %s4790_s21 }
 0x3ab   :  { %10313 = vst [vmem:[#allocation33_spill] sm:$0xff] %v8607_v29  ;;  %v1626_v33 = vadd.f32 %v10316_v6, %v1600_v12  ;;  %v1573_v54 = vadd.f32 %v10317_v20, %v1533_v26  ;;  %v10323_v26 = vrot.slane %v8396_v22, 4  ;;  %v10324_v20 = vld [vmem:[#allocation76_spill] sm:$0xff]  ;;  %v3683_v12 = vrot.slane %v3669_v47, 6  ;;  %v10328_v22 = vld [vmem:[#allocation39_spill] sm:$0xff] }
 0x3ac   :  { %v1575_v24 = vadd.f32 %v10319_v8, %v1535_v7  ;;  %v3561_v6 = vrot.slane %v3548_v16, 5  ;;  %v3566_v47 = vrot.slane %v3551_v2, 5 }
 0x3ad   :  { %v8630_v52 = vpop.permute.xlu0 %3120  ;;  %v3527_v35 = vsel %vm50_vm0, %v10323_v26, %v3526_v56  ;;  %v1666_v7 = vadd.f32 %v10324_v20, %v1626_v33  ;;  %v1599_v8 = vadd.f32 %v10325_v62, %v1573_v54  ;;  %v10331_v33 = vrot.slane %v8614_v59, 6 }
 0x3ae   :  { %3652 = vrot.lane.b32.xlu0 %v3645_v17, %s4957_s29  ;;  %3530 = vrot.lane.b32.xlu1 %v3522_v30, %s4957_s29  ;;  %10320 = vst [vmem:[#allocation28_spill] sm:$0xff] %v8630_v52  ;;  %v8632_v40 = vpop.permute.xlu1 %2998  ;;  %v10322_v17 = vrot.slane %v8592_v44, 6  ;;  %v1601_v4 = vadd.f32 %v10328_v22, %v1575_v24  ;;  %v10332_v26 = vrot.slane %v8424_v18, 5  ;;  %v10336_v18 = vld [vmem:[#allocation82_spill] sm:$0xff] }
 0x3af   :  { %10321 = vst [vmem:[#allocation35_spill] sm:$0xff] %v8632_v40  ;;  %v10326_v40 = vld [vmem:[#allocation74_spill] sm:$0xff] }
 0x3b0   :  { %v3680_v30 = vsel %vm993_vm8, %v3678_v21, %v10322_v17  ;;  %v1664_v29 = vadd.f32 %v10326_v40, %v1624_v63  ;;  %v10327_v21 = vld [vmem:[#allocation80_spill] sm:$0xff]  ;;  %v3562_v54 = vsel %vm533_vm2, %v10332_v26, %v3561_v6  ;;  %v3588_v40 = vmul.f32 %v8462_v38, %v5350_v50  ;;  %v10333_v63 = vld [vmem:[#allocation78_spill] sm:$0xff]  ;;  %v10337_v6 = vld [vmem:[#allocation31_spill] sm:$0xff] }
 0x3b1   :  { %v1706_v17 = vadd.f32 %v10327_v21, %v1666_v7  ;;  %v8650_v56 = vpop.permute.xlu0 %3156  ;;  %v10335_v7 = vld [vmem:[#allocation29_spill] sm:$0xff]  ;;  %v1627_v2 = vadd.f32 %v10337_v6, %v1601_v4  ;;  %v10338_v21 = vld [vmem:[#allocation88_spill] sm:$0xff] }
 0x3b2   :  { %3688 = vrot.lane.b32.xlu0 %v3680_v30, %s4957_s29  ;;  %3534 = vrot.lane.b32.xlu1 %v3527_v35, %s4957_s29  ;;  %10329 = vst [vmem:[#allocation30_spill] sm:$0xff] %v8650_v56  ;;  %v8652_v16 = vpop.permute.xlu1 %3002  ;;  %v3685_v30 = vsel %vm993_vm8, %v3683_v12, %v10331_v33  ;;  %v1704_v24 = vadd.f32 %v10333_v63, %v1664_v29  ;;  %v10334_v35 = vld [vmem:[#allocation84_spill] sm:$0xff]  ;;  %v10342_v63 = vld [vmem:[#allocation86_spill] sm:$0xff] }
 0x3b3   :  { %10330 = vst [vmem:[#allocation56_spill] sm:$0xff] %v8652_v16  ;;  %v1746_v20 = vadd.f32 %v10334_v35, %v1706_v17  ;;  %v1625_v62 = vadd.f32 %v10335_v7, %v1599_v8  ;;  %v3706_v29 = vmul.f32 %v8654_v32, %v5216_v43  ;;  %v10341_v17 = vrot.slane %v8446_v36, 5  ;;  %v10343_v4 = vld [vmem:[#allocation92_spill] sm:$0xff]  ;;  %v10346_v36 = vld [vmem:[#allocation91_spill] sm:$0xff] }
 0x3b4   :  { %v1744_v12 = vadd.f32 %v10336_v18, %v1704_v24  ;;  %v3601_v8 = vrot.slane %v3588_v40, 5  ;;  %v10345_v18 = vld [vmem:[#allocation90_spill] sm:$0xff]  ;;  %v10347_v40 = vld [vmem:[#allocation96_spill] sm:$0xff] }
 0x3b5   :  { %v1786_v22 = vadd.f32 %v10338_v21, %v1746_v20  ;;  %v8674_v33 = vpop.permute.xlu0 %3160  ;;  %v10344_v20 = vld [vmem:[#allocation89_spill] sm:$0xff] }
 0x3b6   :  { %3692 = vrot.lane.b32.xlu0 %v3685_v30, %s4957_s29  ;;  %3570 = vrot.lane.b32.xlu1 %v3562_v54, %s4957_s29  ;;  %10339 = vst [vmem:[#allocation25_spill] sm:$0xff] %v8674_v33  ;;  %v8676_v26 = vpop.permute.xlu1 %3038  ;;  %v3567_v30 = vsel %vm533_vm2, %v10341_v17, %v3566_v47  ;;  %v3591_v54 = vmul.f32 %v8462_v38, %v5379_v51  ;;  %v8945_v33 = vstv %s8886_s14 }
 0x3b7   :  { %10340 = vst [vmem:[#allocation27_spill] sm:$0xff] %v8676_v26  ;;  %v1784_v24 = vadd.f32 %v10342_v63, %v1744_v12  ;;  %v1826_v35 = vadd.f32 %v10343_v4, %v1786_v22  ;;  %v1665_v7 = vadd.f32 %v10344_v20, %v1625_v62  ;;  %v1667_v47 = vadd.f32 %v10346_v36, %v1627_v2  ;;  %v10351_v2 = vld [vmem:[#allocation94_spill] sm:$0xff]  ;;  %v10352_v4 = vld [vmem:[#allocation100_spill] sm:$0xff]  ;;  %v10353_v20 = vld [vmem:[#allocation93_spill] sm:$0xff] }
 0x3b8   :  { %v3708_v12 = vmul.f32 %v8654_v32, %v5225_v48  ;;  %v10350_v22 = vrot.slane %v8475_v37, 5  ;;  %v3606_v62 = vrot.slane %v3591_v54, 5  ;;  %v3628_v63 = vmul.f32 %v8519_v11, %v5283_v28  ;;  %v10354_v36 = vld [vmem:[#allocation95_spill] sm:$0xff]  ;;  %10434 = vst [vmem:[#allocation66_spill] sm:$0xff] %v8945_v33 }
 0x3b9   :  { %v1824_v6 = vadd.f32 %v10345_v18, %v1784_v24  ;;  %v1866_v21 = vadd.f32 %v10347_v40, %v1826_v35  ;;  %v8693_v17 = vpop.permute.xlu0 %3182  ;;  %v1705_v18 = vadd.f32 %v10353_v20, %v1665_v7  ;;  %v1707_v37 = vadd.f32 %v10354_v36, %v1667_v47  ;;  %v10359_v47 = vld [vmem:[#allocation97_spill] sm:$0xff]  ;;  %v10362_v36 = vld [vmem:[#allocation108_spill] sm:$0xff] }
 0x3ba   :  { %3714 = vrot.lane.b32.xlu0 %v3706_v29, %s4958_s26  ;;  %3574 = vrot.lane.b32.xlu1 %v3567_v30, %s4957_s29  ;;  %10348 = vst [vmem:[#allocation58_spill] sm:$0xff] %v8693_v17  ;;  %v8695_v38 = vpop.permute.xlu1 %3042  ;;  %v3602_v29 = vsel %vm533_vm2, %v10350_v22, %v3601_v8  ;;  %v8702_v30 = vstv %s4791_s22  ;;  %v8713_v40 = vstv %s8669_s23  ;;  %v10355_v8 = vld [vmem:[#allocation98_spill] sm:$0xff]  ;;  %v10356_v22 = vld [vmem:[#allocation104_spill] sm:$0xff] }
 0x3bb   :  { %10349 = vst [vmem:[#allocation32_spill] sm:$0xff] %v8695_v38  ;;  %v1864_v24 = vadd.f32 %v10351_v2, %v1824_v6  ;;  %v1906_v35 = vadd.f32 %v10352_v4, %v1866_v21  ;;  %v3732_v21 = vmul.f32 %v8702_v30, %v5198_v57  ;;  %v8727_v7 = vmul.f32 %v8713_v40, %v5311_v34  ;;  %v10375_v17 = vld [vmem:[#allocation120_spill] sm:$0xff] }
 0x3bc   :  { %v3631_v4 = vmul.f32 %v8519_v11, %v5302_v27 }
 0x3bd   :  { %v1904_v54 = vadd.f32 %v10355_v8, %v1864_v24  ;;  %v1946_v26 = vadd.f32 %v10356_v22, %v1906_v35  ;;  %v8719_v38 = vpop.permute.xlu0 %3186  ;;  %v3641_v24 = vrot.slane %v3628_v63, 6  ;;  %v10361_v35 = vld [vmem:[#allocation102_spill] sm:$0xff]  ;;  %v3758_v22 = vmul.f32 %v8713_v40, %v5216_v43 }
 0x3be   :  { %3718 = vrot.lane.b32.xlu0 %v3708_v12, %s4958_s26  ;;  %3610 = vrot.lane.b32.xlu1 %v3602_v29, %s4957_s29  ;;  %10357 = vst [vmem:[#allocation65_spill] sm:$0xff] %v8719_v38  ;;  %v8721_v6 = vpop.permute.xlu1 %3078  ;;  %v1745_v12 = vadd.f32 %v10359_v47, %v1705_v18  ;;  %v10360_v29 = vrot.slane %v8507_v60, 5  ;;  %v10363_v18 = vld [vmem:[#allocation99_spill] sm:$0xff]  ;;  %v10364_v60 = vld [vmem:[#allocation101_spill] sm:$0xff] }
 0x3bf   :  { %10358 = vst [vmem:[#allocation67_spill] sm:$0xff] %v8721_v6  ;;  %v1944_v20 = vadd.f32 %v10361_v35, %v1904_v54  ;;  %v1986_v8 = vadd.f32 %v10362_v36, %v1946_v26  ;;  %v1747_v47 = vadd.f32 %v10363_v18, %v1707_v37  ;;  %v3734_v26 = vmul.f32 %v8702_v30, %v5202_v58  ;;  %v10370_v36 = vld [vmem:[#allocation110_spill] sm:$0xff]  ;;  %v10371_v18 = vld [vmem:[#allocation116_spill] sm:$0xff] }
 0x3c0   :  { %v3607_v2 = vsel %vm533_vm2, %v10360_v29, %v3606_v62  ;;  %v1785_v6 = vadd.f32 %v10364_v60, %v1745_v12  ;;  %v10365_v62 = vld [vmem:[#allocation106_spill] sm:$0xff]  ;;  %v10366_v29 = vld [vmem:[#allocation112_spill] sm:$0xff]  ;;  %v3646_v35 = vrot.slane %v3631_v4, 6  ;;  %v8757_v12 = vmul.f32 %v8713_v40, %v5329_v42 }
 0x3c1   :  { %v1984_v63 = vadd.f32 %v10365_v62, %v1944_v20  ;;  %v2026_v16 = vadd.f32 %v10366_v29, %v1986_v8  ;;  %v8745_v11 = vpop.permute.xlu0 %3208  ;;  %v3668_v20 = vmul.f32 %v8585_v9, %v5350_v50  ;;  %v3770_v62 = vrot.slane %v3758_v22, 1 }
 0x3c2   :  { %3740 = vrot.lane.b32.xlu0 %v3732_v21, %s4958_s26  ;;  %3614 = vrot.lane.b32.xlu1 %v3607_v2, %s4957_s29  ;;  %10367 = vst [vmem:[#allocation34_spill] sm:$0xff] %v8745_v11  ;;  %v8747_v54 = vpop.permute.xlu1 %3082  ;;  %v10369_v2 = vrot.slane %v8532_v49, 6  ;;  %v10372_v49 = vld [vmem:[#allocation103_spill] sm:$0xff]  ;;  %v8770_v21 = vstv %s8715_s24 }
 0x3c3   :  { %10368 = vst [vmem:[#allocation60_spill] sm:$0xff] %v8747_v54  ;;  %v2024_v8 = vadd.f32 %v10370_v36, %v1984_v63  ;;  %v2066_v60 = vadd.f32 %v10371_v18, %v2026_v16  ;;  %v1787_v29 = vadd.f32 %v10372_v49, %v1747_v47  ;;  %v10374_v54 = vld [vmem:[#allocation114_spill] sm:$0xff]  ;;  %v10379_v47 = vrot.slane %v8558_v13, 6  ;;  %v10381_v49 = vld [vmem:[#allocation124_spill] sm:$0xff]  ;;  %v10382_v13 = vld [vmem:[#allocation107_spill] sm:$0xff] }
 0x3c4   :  { %v3642_v37 = vsel %vm993_vm8, %v10369_v2, %v3641_v24  ;;  %v10373_v24 = vld [vmem:[#allocation105_spill] sm:$0xff]  ;;  %v3761_v2 = vmul.f32 %v8713_v40, %v5225_v48  ;;  %v10380_v18 = vld [vmem:[#allocation118_spill] sm:$0xff] }
 0x3c5   :  { %v1825_v4 = vadd.f32 %v10373_v24, %v1785_v6  ;;  %v2064_v11 = vadd.f32 %v10374_v54, %v2024_v8  ;;  %v2106_v63 = vadd.f32 %v10375_v17, %v2066_v60  ;;  %v8774_v36 = vpop.permute.xlu0 %3212  ;;  %v8783_v6 = vmul.f32 %v8770_v21, %v5244_v1 }
 0x3c6   :  { %3744 = vrot.lane.b32.xlu0 %v3734_v26, %s4958_s26  ;;  %3650 = vrot.lane.b32.xlu1 %v3642_v37, %s4957_s29  ;;  %10376 = vst [vmem:[#allocation41_spill] sm:$0xff] %v8774_v36  ;;  %v8776_v16 = vpop.permute.xlu1 %3118  ;;  %v10378_v26 = vrot.slane %v8727_v7, 1  ;;  %v3647_v54 = vsel %vm993_vm8, %v10379_v47, %v3646_v35  ;;  %v3681_v37 = vrot.slane %v3668_v20, 6  ;;  %v3671_v8 = vmul.f32 %v8585_v9, %v5379_v51  ;;  %v10383_v47 = vld [vmem:[#allocation109_spill] sm:$0xff]  ;;  %v10384_v20 = vld [vmem:[#allocation122_spill] sm:$0xff]  ;;  %v10385_v36 = vld [vmem:[#allocation128_spill] sm:$0xff] }
 0x3c7   :  { %10377 = vst [vmem:[#allocation43_spill] sm:$0xff] %v8776_v16  ;;  %v2104_v60 = vadd.f32 %v10380_v18, %v2064_v11  ;;  %v3798_v24 = vmul.f32 %v8770_v21, %v5198_v57  ;;  %v3775_v35 = vrot.slane %v3761_v2, 1  ;;  %v1865_v17 = vadd.f32 %v10383_v47, %v1825_v4 }
 0x3c8   :  { %v3772_v22 = vsel %vm670_vm5, %v3770_v62, %v10378_v26  ;;  %v2132_v62 = vadd.f32 %v10381_v49, %v2106_v63  ;;  %v1827_v26 = vadd.f32 %v10382_v13, %v1787_v29  ;;  %v9772_v63 = vrot.slane %v8783_v6, 1  ;;  %v10391_v49 = vld [vmem:[#allocation126_spill] sm:$0xff] }
 0x3c9   :  { %v2130_v16 = vadd.f32 %v10384_v20, %v2104_v60  ;;  %v8803_v38 = vpop.permute.xlu0 %3248  ;;  %v10389_v18 = vrot.slane %v8592_v44, 6  ;;  %v3686_v2 = vrot.slane %v3671_v8, 6  ;;  %v8816_v4 = vmul.f32 %v8770_v21, %v5262_v10  ;;  %v10393_v44 = vld [vmem:[#allocation132_spill] sm:$0xff]  ;;  %v10394_v8 = vld [vmem:[#allocation115_spill] sm:$0xff] }
 0x3ca   :  { %3780 = vrot.lane.b32.xlu0 %v3772_v22, %s4958_s26  ;;  %3654 = vrot.lane.b32.xlu1 %v3647_v54, %s4957_s29  ;;  %v2158_v9 = vadd.f32 %v10385_v36, %v2132_v62  ;;  %10386 = vst [vmem:[#allocation69_spill] sm:$0xff] %v8803_v38  ;;  %v8805_v11 = vpop.permute.xlu1 %3122  ;;  %v10388_v22 = vrot.slane %v8757_v12, 1  ;;  %v10390_v36 = vld [vmem:[#allocation111_spill] sm:$0xff]  ;;  %v3810_v13 = vrot.slane %v3798_v24, 1 }
 0x3cb   :  { %10387 = vst [vmem:[#allocation62_spill] sm:$0xff] %v8805_v11  ;;  %v3682_v29 = vsel %vm993_vm8, %v10389_v18, %v3681_v37  ;;  %v1867_v60 = vadd.f32 %v10390_v36, %v1827_v26  ;;  %v2156_v62 = vadd.f32 %v10391_v49, %v2130_v16  ;;  %v3801_v37 = vmul.f32 %v8770_v21, %v5202_v58  ;;  %v10395_v18 = vld [vmem:[#allocation130_spill] sm:$0xff] }
 0x3cc   :  { %v3777_v54 = vsel %vm670_vm5, %v3775_v35, %v10388_v22  ;;  %v10392_v35 = vld [vmem:[#allocation113_spill] sm:$0xff]  ;;  %v2198_v20 = vadd.f32 %v10393_v44, %v2158_v9  ;;  %v3812_v24 = vsel %vm670_vm5, %v3810_v13, %v9772_v63  ;;  %v10398_v9 = vld [vmem:[#allocation136_spill] sm:$0xff]  ;;  %v10402_v13 = vld [vmem:[#allocation134_spill] sm:$0xff] }
 0x3cd   :  { %v1905_v47 = vadd.f32 %v10392_v35, %v1865_v17  ;;  %v1907_v22 = vadd.f32 %v10394_v8, %v1867_v60  ;;  %v2196_v26 = vadd.f32 %v10395_v18, %v2156_v62  ;;  %v8830_v36 = vpop.permute.xlu0 %3252  ;;  %v8838_v17 = vstv %s8785_s27  ;;  %v10400_v35 = vld [vmem:[#allocation117_spill] sm:$0xff]  ;;  %v10401_v8 = vld [vmem:[#allocation119_spill] sm:$0xff] }
 0x3ce   :  { %3784 = vrot.lane.b32.xlu0 %v3777_v54, %s4958_s26  ;;  %3690 = vrot.lane.b32.xlu1 %v3682_v29, %s4957_s29  ;;  %10396 = vst [vmem:[#allocation36_spill] sm:$0xff] %v8830_v36  ;;  %v8832_v16 = vpop.permute.xlu1 %3158  ;;  %v2238_v54 = vadd.f32 %v10398_v9, %v2198_v20  ;;  %v10399_v29 = vrot.slane %v8614_v59, 6  ;;  %v8847_v62 = vmul.f32 %v8838_v17, %v5311_v34  ;;  %v10403_v9 = vld [vmem:[#allocation144_spill] sm:$0xff]  ;;  %v3815_v63 = vrot.slane %v3801_v37, 1  ;;  %v10408_v37 = vld [vmem:[#allocation139_spill] sm:$0xff] }
 0x3cf   :  { %10397 = vst [vmem:[#allocation71_spill] sm:$0xff] %v8832_v16  ;;  %v1945_v44 = vadd.f32 %v10400_v35, %v1905_v47  ;;  %v1947_v18 = vadd.f32 %v10401_v8, %v1907_v22  ;;  %v2236_v20 = vadd.f32 %v10402_v13, %v2196_v26  ;;  %v10405_v16 = vld [vmem:[#allocation123_spill] sm:$0xff]  ;;  %v3707_v22 = vmul.f32 %v8654_v32, %v5311_v34  ;;  %v10411_v8 = vld [vmem:[#allocation125_spill] sm:$0xff] }
 0x3d0   :  { %v3687_v49 = vsel %vm993_vm8, %v10399_v29, %v3686_v2  ;;  %v2278_v59 = vadd.f32 %v10403_v9, %v2238_v54  ;;  %v3838_v2 = vmul.f32 %v8838_v17, %v5216_v43  ;;  %v10404_v29 = vld [vmem:[#allocation121_spill] sm:$0xff]  ;;  %v8867_v26 = vmul.f32 %v8838_v17, %v5329_v42  ;;  %v10412_v13 = vld [vmem:[#allocation127_spill] sm:$0xff] }
 0x3d1   :  { %v1985_v60 = vadd.f32 %v10404_v29, %v1945_v44  ;;  %v1987_v11 = vadd.f32 %v10405_v16, %v1947_v18  ;;  %v8859_v38 = vpop.permute.xlu0 %3288  ;;  %v10409_v54 = vld [vmem:[#allocation153_spill] sm:$0xff]  ;;  %v10410_v35 = vrot.slane %v8816_v4, 1  ;;  %v9773_v44 = vrot.slane %v8847_v62, 2 }
 0x3d2   :  { %3820 = vrot.lane.b32.xlu0 %v3812_v24, %s4958_s26  ;;  %3694 = vrot.lane.b32.xlu1 %v3687_v49, %s4957_s29  ;;  %10406 = vst [vmem:[#allocation64_spill] sm:$0xff] %v8859_v38  ;;  %v8861_v47 = vpop.permute.xlu1 %3162  ;;  %v2276_v24 = vadd.f32 %v10408_v37, %v2236_v20  ;;  %v2318_v49 = vadd.f32 %v10409_v54, %v2278_v59  ;;  %v10413_v20 = vld [vmem:[#allocation148_spill] sm:$0xff]  ;;  %v10414_v59 = vld [vmem:[#allocation161_spill] sm:$0xff]  ;;  %v8884_v38 = vstv %s8826_s28  ;;  %s8919_s29 = sld [smem:[#allocation6 + $0x4c]] }
 0x3d3   :  { %10407 = vst [vmem:[#allocation45_spill] sm:$0xff] %v8861_v47  ;;  %v3817_v16 = vsel %vm670_vm5, %v3815_v63, %v10410_v35  ;;  %v2025_v18 = vadd.f32 %v10411_v8, %v1985_v60  ;;  %v2027_v9 = vadd.f32 %v10412_v13, %v1987_v11  ;;  %v3841_v29 = vmul.f32 %v8838_v17, %v5225_v48  ;;  %v10415_v63 = vld [vmem:[#allocation129_spill] sm:$0xff]  ;;  %v10419_v8 = vld [vmem:[#allocation170_spill] sm:$0xff] }
 0x3d4   :  { %v2316_v37 = vadd.f32 %v10413_v20, %v2276_v24  ;;  %v2358_v54 = vadd.f32 %v10414_v59, %v2318_v49  ;;  %v3850_v47 = vrot.slane %v3838_v2, 2  ;;  %v8898_v24 = vmul.f32 %v8884_v38, %v5244_v1  ;;  %v10418_v2 = vld [vmem:[#allocation158_spill] sm:$0xff]  ;;  %v10421_v59 = vld [vmem:[#allocation131_spill] sm:$0xff] }
 0x3d5   :  { %v2065_v60 = vadd.f32 %v10415_v63, %v2025_v18  ;;  %v8889_v35 = vpop.permute.xlu0 %3292  ;;  %v8907_v20 = vmul.f32 %v8884_v38, %v5262_v10  ;;  %v3878_v63 = vmul.f32 %v8884_v38, %v5198_v57 }
 0x3d6   :  { %3824 = vrot.lane.b32.xlu0 %v3817_v16, %s4958_s26  ;;  %3716 = vrot.lane.b32.xlu1 %v3707_v22, %s4958_s26  ;;  %10416 = vst [vmem:[#allocation38_spill] sm:$0xff] %v8889_v35  ;;  %v8891_v11 = vpop.permute.xlu1 %3184  ;;  %v3709_v22 = vmul.f32 %v8654_v32, %v5329_v42  ;;  %v2356_v49 = vadd.f32 %v10418_v2, %v2316_v37 }
 0x3d7   :  { %10417 = vst [vmem:[#allocation47_spill] sm:$0xff] %v8891_v11  ;;  %v2398_v13 = vadd.f32 %v10419_v8, %v2358_v54  ;;  %v3852_v18 = vsel %vm735_vm6, %v3850_v47, %v9773_v44  ;;  %10420 = vst [vmem:[#allocation73_spill] sm:$0xff] %v8907_v20  ;;  %v2067_v32 = vadd.f32 %v10421_v59, %v2027_v9  ;;  %v10422_v54 = vld [vmem:[#allocation133_spill] sm:$0xff]  ;;  %v10423_v8 = vld [vmem:[#allocation163_spill] sm:$0xff]  ;;  %v3855_v11 = vrot.slane %v3841_v29, 2 }
 0x3d8   :  { %v3881_v37 = vmul.f32 %v8884_v38, %v5202_v58  ;;  %v2105_v2 = vadd.f32 %v10422_v54, %v2065_v60  ;;  %v2396_v47 = vadd.f32 %v10423_v8, %v2356_v49  ;;  %v10424_v44 = vld [vmem:[#allocation180_spill] sm:$0xff]  ;;  %v10425_v9 = vld [vmem:[#allocation135_spill] sm:$0xff]  ;;  %v3733_v35 = vmul.f32 %v8702_v30, %v5244_v1 }
 0x3d9   :  { %v2438_v16 = vadd.f32 %v10424_v44, %v2398_v13  ;;  %v2107_v59 = vadd.f32 %v10425_v9, %v2067_v32  ;;  %v3760_v60 = vmul.f32 %v8713_v40, %v5283_v28  ;;  %v10428_v49 = vld [vmem:[#allocation175_spill] sm:$0xff]  ;;  %v10429_v29 = vld [vmem:[#allocation188_spill] sm:$0xff]  ;;  %v10430_v54 = vrot.slane %v8867_v26, 2  ;;  %v10431_v9 = vld [vmem:[#allocation137_spill] sm:$0xff] }
 0x3da   :  { %3860 = vrot.lane.b32.xlu0 %v3852_v18, %s4958_s26  ;;  %3720 = vrot.lane.b32.xlu1 %v3709_v22, %s4958_s26  ;;  %v8922_v18 = vpop.permute.xlu0 %3328  ;;  %v8924_v22 = vpop.permute.xlu1 %3188  ;;  %v2436_v44 = vadd.f32 %v10428_v49, %v2396_v47  ;;  %v9774_v8 = vrot.slane %v8907_v20, 2  ;;  %v3890_v36 = vrot.slane %v3878_v63, 2  ;;  %v3895_v56 = vrot.slane %v3881_v37, 2  ;;  %v10432_v47 = vld [vmem:[#allocation185_spill] sm:$0xff] }
 0x3db   :  { %10426 = vst [vmem:[#allocation40_spill] sm:$0xff] %v8922_v18  ;;  %10427 = vst [vmem:[#allocation75_spill] sm:$0xff] %v8924_v22  ;;  %v2478_v13 = vadd.f32 %v10429_v29, %v2438_v16  ;;  %v3857_v32 = vsel %vm735_vm6, %v3855_v11, %v10430_v54  ;;  %v2131_v22 = vadd.f32 %v10431_v9, %v2105_v2  ;;  %v10433_v16 = vld [vmem:[#allocation195_spill] sm:$0xff]  ;;  %v10435_v54 = vld [vmem:[#allocation140_spill] sm:$0xff]  ;;  %v3773_v63 = vrot.slane %v3760_v60, 1 }
 0x3dc   :  { %v3735_v18 = vmul.f32 %v8702_v30, %v5262_v10  ;;  %v2476_v49 = vadd.f32 %v10432_v47, %v2436_v44  ;;  %v3763_v11 = vmul.f32 %v8713_v40, %v5302_v27  ;;  %v2133_v2 = vadd.f32 %v10435_v54, %v2107_v59  ;;  %v10439_v44 = vld [vmem:[#allocation150_spill] sm:$0xff]  ;;  %v10440_v47 = vld [vmem:[#allocation165_spill] sm:$0xff] }
 0x3dd   :  { %v2518_v29 = vadd.f32 %v10433_v16, %v2478_v13  ;;  %v8959_v37 = vmul.f32 %v8945_v33, %v5311_v34  ;;  %v3897_v59 = vsel %vm735_vm6, %v3895_v56, %v9774_v8  ;;  %v8968_v16 = vmul.f32 %v8945_v33, %v5329_v42  ;;  %v10442_v56 = vld [vmem:[#allocation179_spill] sm:$0xff] }
 0x3de   :  { %3864 = vrot.lane.b32.xlu0 %v3857_v32, %s4958_s26  ;;  %3742 = vrot.lane.b32.xlu1 %v3733_v35, %s4958_s26  ;;  %v8952_v32 = vpop.permute.xlu1 %3210  ;;  %v10438_v35 = vrot.slane %v8898_v24, 2  ;;  %v2516_v13 = vadd.f32 %v10439_v44, %v2476_v49  ;;  %v3921_v60 = vmul.f32 %v8945_v33, %v5225_v48  ;;  %v3800_v49 = vmul.f32 %v8770_v21, %v5350_v50 }
 0x3df   :  { %v8950_v9 = vpop.permute.xlu0 %3332  ;;  %10437 = vst [vmem:[#allocation49_spill] sm:$0xff] %v8952_v32  ;;  %v2558_v40 = vadd.f32 %v10440_v47, %v2518_v29  ;;  %v10441_v29 = vld [vmem:[#allocation155_spill] sm:$0xff]  ;;  %v3778_v44 = vrot.slane %v3763_v11, 1  ;;  %v8981_v47 = vstv %s8919_s29  ;;  %v10445_v8 = vrot.slane %v8727_v7, 1 }
 0x3e0   :  { %10436 = vst [vmem:[#allocation68_spill] sm:$0xff] %v8950_v9  ;;  %v3892_v30 = vsel %vm735_vm6, %v3890_v36, %v10438_v35  ;;  %v3918_v36 = vmul.f32 %v8945_v33, %v5216_v43  ;;  %v2556_v54 = vadd.f32 %v10441_v29, %v2516_v13  ;;  %v8995_v13 = vmul.f32 %v8981_v47, %v5244_v1  ;;  %v10449_v9 = vld [vmem:[#allocation168_spill] sm:$0xff] }
 0x3e1   :  { %v2598_v35 = vadd.f32 %v10442_v56, %v2558_v40  ;;  %v3774_v32 = vsel %vm670_vm5, %v10445_v8, %v3773_v63  ;;  %v3803_v11 = vmul.f32 %v8770_v21, %v5379_v51  ;;  %v10446_v40 = vld [vmem:[#allocation145_spill] sm:$0xff]  ;;  %v10447_v56 = vld [vmem:[#allocation142_spill] sm:$0xff]  ;;  %v3813_v8 = vrot.slane %v3800_v49, 1 }
 0x3e2   :  { %3900 = vrot.lane.b32.xlu0 %v3892_v30, %s4958_s26  ;;  %3746 = vrot.lane.b32.xlu1 %v3735_v18, %s4958_s26  ;;  %v8987_v18 = vpop.permute.xlu1 %3214  ;;  %v2157_v29 = vadd.f32 %v10446_v40, %v2131_v22  ;;  %v2596_v52 = vadd.f32 %v10447_v56, %v2556_v54  ;;  %v3930_v7 = vrot.slane %v3918_v36, 3  ;;  %v3958_v63 = vmul.f32 %v8981_v47, %v5198_v57  ;;  %v10450_v40 = vld [vmem:[#allocation173_spill] sm:$0xff] }
 0x3e3   :  { %v8985_v30 = vpop.permute.xlu0 %3368  ;;  %10444 = vst [vmem:[#allocation77_spill] sm:$0xff] %v8987_v18  ;;  %v3840_v21 = vmul.f32 %v8838_v17, %v5283_v28  ;;  %v3935_v56 = vrot.slane %v3921_v60, 3  ;;  %v10452_v36 = vrot.slane %v8959_v37, 3  ;;  %v3818_v33 = vrot.slane %v3803_v11, 1 }
 0x3e4   :  { %10443 = vst [vmem:[#allocation51_spill] sm:$0xff] %v8985_v30  ;;  %v10448_v30 = vld [vmem:[#allocation147_spill] sm:$0xff]  ;;  %v2636_v22 = vadd.f32 %v10449_v9, %v2596_v52  ;;  %v9024_v52 = vmul.f32 %v8981_v47, %v5262_v10  ;;  %v10454_v9 = vld [vmem:[#allocation141_spill] sm:$0xff]  ;;  %v10456_v11 = vrot.slane %v8783_v6, 1  ;;  %v10459_v6 = vrot.slane %v8995_v13, 3 }
 0x3e5   :  { %v2638_v20 = vadd.f32 %v10448_v30, %v2598_v35  ;;  %v10451_v35 = vrot.slane %v8757_v12, 1  ;;  %v3932_v49 = vsel %vm800_vm7, %v3930_v7, %v10452_v36  ;;  %v10453_v12 = vld [vmem:[#allocation149_spill] sm:$0xff]  ;;  %v3970_v36 = vrot.slane %v3958_v63, 3 }
 0x3e6   :  { %3904 = vrot.lane.b32.xlu0 %v3897_v59, %s4958_s26  ;;  %3782 = vrot.lane.b32.xlu1 %v3774_v32, %s4958_s26  ;;  %v9016_v32 = vpop.permute.xlu1 %3250  ;;  %v2662_v60 = vadd.f32 %v10454_v9, %v2636_v22  ;;  %v10457_v22 = vld [vmem:[#allocation159_spill] sm:$0xff]  ;;  %v10460_v63 = vrot.slane %v8816_v4, 1 }
 0x3e7   :  { %v2664_v54 = vadd.f32 %v10450_v40, %v2638_v20  ;;  %v3779_v30 = vsel %vm670_vm5, %v10451_v35, %v3778_v44  ;;  %v9014_v59 = vpop.permute.xlu0 %3372  ;;  %v2159_v20 = vadd.f32 %v10453_v12, %v2133_v2  ;;  %v10455_v40 = vrot.slane %v8968_v16, 3 }
 0x3e8   :  { %v3814_v35 = vsel %vm670_vm5, %v10456_v11, %v3813_v8  ;;  %v3961_v2 = vmul.f32 %v8981_v47, %v5202_v58  ;;  %v3853_v12 = vrot.slane %v3840_v21, 2  ;;  %v3972_v8 = vsel %vm800_vm7, %v3970_v36, %v10459_v6 }
 0x3e9   :  { %v2690_v44 = vadd.f32 %v7951_v5, %v2664_v54  ;;  %v3937_v7 = vsel %vm800_vm7, %v3935_v56, %v10455_v40  ;;  %v2199_v9 = vadd.f32 %v10457_v22, %v2159_v20  ;;  %v10458_v5 = vld [vmem:[#allocation187_spill] sm:$0xff]  ;;  %v9045_v56 = vstv %s8983_s9  ;;  %v10462_v40 = vld [vmem:[#allocation164_spill] sm:$0xff] }
 0x3ea   :  { %3940 = vrot.lane.b32.xlu0 %v3932_v49, %s4958_s26  ;;  %3786 = vrot.lane.b32.xlu1 %v3779_v30, %s4958_s26  ;;  %v2688_v54 = vadd.f32 %v10458_v5, %v2662_v60  ;;  %v3819_v21 = vsel %vm670_vm5, %v10460_v63, %v3818_v33  ;;  %v9782_v20 = vrot.slane %v9024_v52, 3  ;;  %v3843_v60 = vmul.f32 %v8838_v17, %v5302_v27 }
 0x3eb   :  { %v2730_v18 = vadd.f32 %v8019_v39, %v2690_v44  ;;  %v9047_v49 = vpop.permute.xlu0 %3408  ;;  %v9049_v30 = vpop.permute.xlu1 %3254  ;;  %v10461_v39 = vld [vmem:[#allocation154_spill] sm:$0xff]  ;;  %v2239_v11 = vadd.f32 %v10462_v40, %v2199_v9  ;;  %v3975_v4 = vrot.slane %v3961_v2, 3  ;;  %v10463_v33 = vrot.slane %v8847_v62, 2 }
 0x3ec   :  { %v2197_v44 = vadd.f32 %v10461_v39, %v2157_v29  ;;  %v2728_v22 = vadd.f32 %v7988_v46, %v2688_v54  ;;  %v3998_v17 = vmul.f32 %v9045_v56, %v5216_v43  ;;  %v9073_v29 = vmul.f32 %v9045_v56, %v5311_v34  ;;  %v10464_v46 = vld [vmem:[#allocation162_spill] sm:$0xff]  ;;  %v10466_v39 = vld [vmem:[#allocation171_spill] sm:$0xff] }
 0x3ed   :  { %v2770_v5 = vadd.f32 %v8086_v23, %v2730_v18  ;;  %v3854_v36 = vsel %vm735_vm6, %v10463_v33, %v3853_v12  ;;  %v10465_v23 = vld [vmem:[#allocation176_spill] sm:$0xff]  ;;  %v3977_v12 = vsel %vm800_vm7, %v3975_v4, %v9782_v20  ;;  %v3858_v54 = vrot.slane %v3843_v60, 2  ;;  %v10468_v33 = vld [vmem:[#allocation181_spill] sm:$0xff] }
 0x3ee   :  { %3944 = vrot.lane.b32.xlu0 %v3937_v7, %s4958_s26  ;;  %3822 = vrot.lane.b32.xlu1 %v3814_v35, %s4958_s26  ;;  %v2237_v9 = vadd.f32 %v10464_v46, %v2197_v44  ;;  %v2279_v18 = vadd.f32 %v10465_v23, %v2239_v11  ;;  %v2768_v7 = vadd.f32 %v8057_v41, %v2728_v22  ;;  %v9091_v63 = vstv %s9026_s10  ;;  %v10467_v41 = vld [vmem:[#allocation186_spill] sm:$0xff] }
 0x3ef   :  { %v2810_v35 = vadd.f32 %v8156_v0, %v2770_v5  ;;  %v9088_v6 = vmul.f32 %v9045_v56, %v5329_v42  ;;  %v4010_v22 = vrot.slane %v3998_v17, 4  ;;  %v9781_v60 = vrot.slane %v9073_v29, 4 }
 0x3f0   :  { %v9079_v2 = vpop.permute.xlu0 %3412  ;;  %v9081_v62 = vpop.permute.xlu1 %3290  ;;  %v2277_v44 = vadd.f32 %v10466_v39, %v2237_v9  ;;  %v2319_v40 = vadd.f32 %v10467_v41, %v2279_v18  ;;  %v2808_v0 = vadd.f32 %v8126_v14, %v2768_v7  ;;  %v4001_v5 = vmul.f32 %v9045_v56, %v5225_v48  ;;  %v10469_v9 = vld [vmem:[#allocation193_spill] sm:$0xff] }
 0x3f1   :  { %v2850_v11 = vadd.f32 %v8225_v53, %v2810_v35  ;;  %v3880_v4 = vmul.f32 %v8884_v38, %v5350_v50  ;;  %v10470_v17 = vrot.slane %v8867_v26, 2  ;;  %v9779_v7 = vrot.slane %v9088_v6, 4 }
 0x3f2   :  { %3980 = vrot.lane.b32.xlu0 %v3972_v8, %s4958_s26  ;;  %3826 = vrot.lane.b32.xlu1 %v3819_v21, %s4958_s26  ;;  %v2317_v46 = vadd.f32 %v10468_v33, %v2277_v44  ;;  %v2359_v23 = vadd.f32 %v10469_v9, %v2319_v40  ;;  %v2848_v14 = vadd.f32 %v8194_v25, %v2808_v0  ;;  %v10471_v25 = vld [vmem:[#allocation189_spill] sm:$0xff]  ;;  %v10472_v44 = vld [vmem:[#allocation198_spill] sm:$0xff]  ;;  %v4015_v0 = vrot.slane %v4001_v5, 4 }
 0x3f3   :  { %v2890_v53 = vadd.f32 %v8290_v55, %v2850_v11  ;;  %v3859_v18 = vsel %vm735_vm6, %v10470_v17, %v3858_v54  ;;  %v4038_v35 = vmul.f32 %v9091_v63, %v5198_v57  ;;  %v9120_v39 = vmul.f32 %v9091_v63, %v5244_v1 }
 0x3f4   :  { %v9108_v8 = vpop.permute.xlu0 %3448  ;;  %v9110_v21 = vpop.permute.xlu1 %3294  ;;  %v2357_v55 = vadd.f32 %v10471_v25, %v2317_v46  ;;  %v2399_v41 = vadd.f32 %v10472_v44, %v2359_v23  ;;  %v2888_v40 = vadd.f32 %v8263_v45, %v2848_v14  ;;  %v4012_v54 = vsel %vm50_vm0, %v4010_v22, %v9781_v60  ;;  %v10473_v46 = vld [vmem:[#allocation196_spill] sm:$0xff]  ;;  %v10474_v23 = vld [vmem:[#allocation166_spill] sm:$0xff]  ;;  %v10476_v14 = vld [vmem:[#allocation199_spill] sm:$0xff] }
 0x3f5   :  { %v2930_v26 = vadd.f32 %v8350_v61, %v2890_v53  ;;  %v3893_v11 = vrot.slane %v3880_v4, 2  ;;  %v3883_v33 = vmul.f32 %v8884_v38, %v5379_v51  ;;  %v4017_v22 = vsel %vm50_vm0, %v4015_v0, %v9779_v7 }
 0x3f6   :  { %3984 = vrot.lane.b32.xlu0 %v3977_v12, %s4958_s26  ;;  %3862 = vrot.lane.b32.xlu1 %v3854_v36, %s4958_s26  ;;  %v2397_v9 = vadd.f32 %v10473_v46, %v2357_v55  ;;  %v2439_v17 = vadd.f32 %v10474_v23, %v2399_v41  ;;  %v2928_v45 = vadd.f32 %v8324_v19, %v2888_v40  ;;  %v4050_v5 = vrot.slane %v4038_v35, 4  ;;  %v10477_v19 = vld [vmem:[#allocation169_spill] sm:$0xff]  ;;  %v10481_v46 = vld [vmem:[#allocation138_spill] sm:$0xff] }
 0x3f7   :  { %v2970_v61 = vadd.f32 %v8408_v31, %v2930_v26  ;;  %v9778_v4 = vrot.slane %v9120_v39, 4  ;;  %v9149_v38 = vmul.f32 %v9091_v63, %v5262_v10  ;;  %v10478_v35 = vrot.slane %v8898_v24, 2  ;;  %v10479_v26 = vld [vmem:[#allocation66_spill] sm:$0xff] }
 0x3f8   :  { %v9139_v12 = vpop.permute.xlu0 %3452  ;;  %v9141_v36 = vpop.permute.xlu1 %3330  ;;  %v2437_v53 = vadd.f32 %v10476_v14, %v2397_v9  ;;  %v2479_v25 = vadd.f32 %v10477_v19, %v2439_v17  ;;  %v2968_v31 = vadd.f32 %v8381_v15, %v2928_v45  ;;  %v3898_v41 = vrot.slane %v3883_v33, 2  ;;  %v10480_v15 = vld [vmem:[#allocation160_spill] sm:$0xff] }
 0x3f9   :  { %10475 = vst [vmem:[#allocation42_spill] sm:$0xff] %v9141_v36  ;;  %v3010_v55 = vadd.f32 %v8468_v3, %v2970_v61  ;;  %v3894_v44 = vsel %vm735_vm6, %v10478_v35, %v3893_v11  ;;  %v4041_v40 = vmul.f32 %v9091_v63, %v5202_v58  ;;  %v3920_v0 = vmul.f32 %v10479_v26, %v5283_v28 }
 0x3fa   :  { %4020 = vrot.lane.b32.xlu0 %v4012_v54, %s4958_s26  ;;  %3866 = vrot.lane.b32.xlu1 %v3859_v18, %s4958_s26  ;;  %v2477_v3 = vadd.f32 %v10480_v15, %v2437_v53  ;;  %v2519_v9 = vadd.f32 %v10481_v46, %v2479_v25  ;;  %v10482_v54 = vld [vmem:[#allocation21_spill] sm:$0xff]  ;;  %v10483_v18 = vld [vmem:[#allocation50_spill] sm:$0xff]  ;;  %v4052_v33 = vsel %vm50_vm0, %v4050_v5, %v9778_v4  ;;  %v9780_v45 = vrot.slane %v9149_v38, 4  ;;  %v10485_v53 = vld [vmem:[#allocation200_spill] sm:$0xff] }
 0x3fb   :  { %v3008_v23 = vadd.f32 %v10482_v54, %v2968_v31  ;;  %v3050_v17 = vadd.f32 %v10483_v18, %v3010_v55  ;;  %v9179_v61 = vstv %s9122_s11  ;;  %v3923_v14 = vmul.f32 %v10479_v26, %v5302_v27  ;;  %v10486_v25 = vld [vmem:[#allocation202_spill] sm:$0xff]  ;;  %v10488_v15 = vld [vmem:[#allocation183_spill] sm:$0xff]  ;;  %v10489_v5 = vld [vmem:[#allocation73_spill] sm:$0xff] }
 0x3fc   :  { %v9170_v24 = vpop.permute.xlu0 %3488  ;;  %v9172_v11 = vpop.permute.xlu1 %3334  ;;  %v2517_v19 = vadd.f32 %v10485_v53, %v2477_v3  ;;  %v2559_v31 = vadd.f32 %v10486_v25, %v2519_v9  ;;  %v10487_v55 = vld [vmem:[#allocation22_spill] sm:$0xff]  ;;  %v10490_v54 = vrot.slane %v10489_v5, 2  ;;  %v4055_v4 = vrot.slane %v4041_v40, 4  ;;  %v10491_v3 = vld [vmem:[#allocation201_spill] sm:$0xff]  ;;  %v10492_v53 = vld [vmem:[#allocation184_spill] sm:$0xff] }
 0x3fd   :  { %10484 = vst [vmem:[#allocation44_spill] sm:$0xff] %v9172_v11  ;;  %v3048_v35 = vadd.f32 %v10487_v55, %v3008_v23  ;;  %v3090_v46 = vadd.f32 %v10488_v15, %v3050_v17  ;;  %v3933_v7 = vrot.slane %v3920_v0, 3  ;;  %v9194_v26 = vmul.f32 %v9179_v61, %v5311_v34  ;;  %v10493_v25 = vld [vmem:[#allocation26_spill] sm:$0xff]  ;;  %v10494_v55 = vld [vmem:[#allocation28_spill] sm:$0xff] }
 0x3fe   :  { %4024 = vrot.lane.b32.xlu0 %v4017_v22, %s4958_s26  ;;  %3902 = vrot.lane.b32.xlu1 %v3894_v44, %s4958_s26  ;;  %v3899_v18 = vsel %vm735_vm6, %v10490_v54, %v3898_v41  ;;  %v2557_v9 = vadd.f32 %v10491_v3, %v2517_v19  ;;  %v2599_v23 = vadd.f32 %v10492_v53, %v2559_v31  ;;  %v3938_v0 = vrot.slane %v3923_v14, 3  ;;  %v10497_v31 = vld [vmem:[#allocation172_spill] sm:$0xff]  ;;  %v10499_v54 = vld [vmem:[#allocation54_spill] sm:$0xff]  ;;  %v10500_v53 = vld [vmem:[#allocation25_spill] sm:$0xff] }
 0x3ff   :  { %v3088_v17 = vadd.f32 %v10493_v25, %v3048_v35  ;;  %v3130_v22 = vadd.f32 %v10494_v55, %v3090_v46  ;;  %v4057_v41 = vsel %vm50_vm0, %v4055_v4, %v9780_v45  ;;  %v4078_v40 = vmul.f32 %v9179_v61, %v5216_v43  ;;  %v10498_v46 = vld [vmem:[#allocation151_spill] sm:$0xff]  ;;  %v10528_v11 = vld [vmem:[#allocation182_spill] sm:$0xff] }
 0x400   :  { %v9200_v44 = vpop.permute.xlu0 %3492  ;;  %v9202_v15 = vpop.permute.xlu1 %3370  ;;  %v9211_v19 = vmul.f32 %v9179_v61, %v5329_v42  ;;  %v2597_v35 = vadd.f32 %v10497_v31, %v2557_v9  ;;  %v2639_v5 = vadd.f32 %v10498_v46, %v2599_v23  ;;  %v4081_v14 = vmul.f32 %v9179_v61, %v5225_v48  ;;  %v10501_v9 = vld [vmem:[#allocation174_spill] sm:$0xff] }
 0x401   :  { %10495 = vst [vmem:[#allocation79_spill] sm:$0xff] %v9202_v15  ;;  %v3128_v3 = vadd.f32 %v10499_v54, %v3088_v17  ;;  %v3170_v25 = vadd.f32 %v10500_v53, %v3130_v22  ;;  %v3960_v55 = vmul.f32 %v8981_v47, %v5350_v50  ;;  %v9225_v45 = vstv %s9164_s19  ;;  %v10502_v31 = vld [vmem:[#allocation190_spill] sm:$0xff]  ;;  %v10504_v54 = vld [vmem:[#allocation65_spill] sm:$0xff] }
 0x402   :  { %10496 = vst [vmem:[#allocation72_spill] sm:$0xff] %v9211_v19  ;;  %4060 = vrot.lane.b32.xlu0 %v4052_v33, %s4958_s26  ;;  %3906 = vrot.lane.b32.xlu1 %v3899_v18, %s4958_s26  ;;  %v2637_v23 = vadd.f32 %v10501_v9, %v2597_v35  ;;  %v2665_v17 = vadd.f32 %v10502_v31, %v2639_v5  ;;  %v10503_v46 = vld [vmem:[#allocation30_spill] sm:$0xff]  ;;  %v10506_v60 = vrot.slane %v8959_v37, 3  ;;  %v4090_v4 = vrot.slane %v4078_v40, 5  ;;  %v10508_v5 = vld [vmem:[#allocation167_spill] sm:$0xff]  ;;  %v10513_v40 = vld [vmem:[#allocation197_spill] sm:$0xff] }
 0x403   :  { %v3168_v22 = vadd.f32 %v10503_v46, %v3128_v3  ;;  %v3196_v33 = vadd.f32 %v10504_v54, %v3170_v25  ;;  %v10507_v15 = vrot.slane %v8968_v16, 3  ;;  %v9783_v35 = vrot.slane %v9211_v19, 5  ;;  %v10509_v25 = vld [vmem:[#allocation143_spill] sm:$0xff]  ;;  %v10510_v31 = vld [vmem:[#allocation58_spill] sm:$0xff]  ;;  %v10511_v54 = vld [vmem:[#allocation41_spill] sm:$0xff] }
 0x404   :  { %v9231_v53 = vpop.permute.xlu0 %3528  ;;  %v9233_v18 = vpop.permute.xlu1 %3374  ;;  %v3934_v20 = vsel %vm800_vm7, %v10506_v60, %v3933_v7  ;;  %v2663_v3 = vadd.f32 %v10508_v5, %v2637_v23  ;;  %v2691_v9 = vadd.f32 %v10509_v25, %v2665_v17  ;;  %v10512_v37 = vrot.slane %v9194_v26, 5  ;;  %v10514_v23 = vld [vmem:[#allocation177_spill] sm:$0xff] }
 0x405   :  { %10505 = vst [vmem:[#allocation53_spill] sm:$0xff] %v9233_v18  ;;  %v3939_v36 = vsel %vm800_vm7, %v10507_v15, %v3938_v0  ;;  %v3194_v46 = vadd.f32 %v10510_v31, %v3168_v22  ;;  %v3222_v18 = vadd.f32 %v10511_v54, %v3196_v33  ;;  %v4095_v60 = vrot.slane %v4081_v14, 5  ;;  %v10515_v22 = vld [vmem:[#allocation34_spill] sm:$0xff]  ;;  %v10516_v33 = vld [vmem:[#allocation36_spill] sm:$0xff]  ;;  %v10519_v31 = vld [vmem:[#allocation191_spill] sm:$0xff] }
 0x406   :  { %4064 = vrot.lane.b32.xlu0 %v4057_v41, %s4958_s26  ;;  %3942 = vrot.lane.b32.xlu1 %v3934_v20, %s4958_s26  ;;  %v4092_v16 = vsel %vm533_vm2, %v4090_v4, %v10512_v37  ;;  %v3973_v7 = vrot.slane %v3960_v55, 3  ;;  %v4118_v15 = vmul.f32 %v9225_v45, %v5198_v57  ;;  %v2689_v0 = vadd.f32 %v10513_v40, %v2663_v3  ;;  %v10520_v54 = vld [vmem:[#allocation69_spill] sm:$0xff]  ;;  %v10521_v40 = vld [vmem:[#allocation38_spill] sm:$0xff] }
 0x407   :  { %v2731_v17 = vadd.f32 %v10514_v23, %v2691_v9  ;;  %v3220_v5 = vadd.f32 %v10515_v22, %v3194_v46  ;;  %v3262_v25 = vadd.f32 %v10516_v33, %v3222_v18  ;;  %v4097_v4 = vsel %vm533_vm2, %v4095_v60, %v9783_v35  ;;  %v10518_v9 = vld [vmem:[#allocation156_spill] sm:$0xff] }
 0x408   :  { %v9259_v41 = vpop.permute.xlu0 %3532  ;;  %v9261_v20 = vpop.permute.xlu1 %3410  ;;  %v9268_v14 = vmul.f32 %v9225_v45, %v5244_v1  ;;  %v3963_v55 = vmul.f32 %v8981_v47, %v5379_v51  ;;  %v4121_v3 = vmul.f32 %v9225_v45, %v5202_v58  ;;  %v2729_v18 = vadd.f32 %v10518_v9, %v2689_v0  ;;  %v10524_v33 = vld [vmem:[#allocation152_spill] sm:$0xff] }
 0x409   :  { %10517 = vst [vmem:[#allocation70_spill] sm:$0xff] %v9261_v20  ;;  %v2771_v46 = vadd.f32 %v10519_v31, %v2731_v17  ;;  %v3260_v37 = vadd.f32 %v10520_v54, %v3220_v5  ;;  %v3302_v23 = vadd.f32 %v10521_v40, %v3262_v25  ;;  %v10522_v60 = vrot.slane %v8995_v13, 3  ;;  %v10523_v17 = vld [vmem:[#allocation157_spill] sm:$0xff]  ;;  %v10525_v25 = vld [vmem:[#allocation64_spill] sm:$0xff]  ;;  %v10527_v20 = vld [vmem:[#allocation178_spill] sm:$0xff] }
 0x40a   :  { %4100 = vrot.lane.b32.xlu0 %v4092_v16, %s4958_s26  ;;  %3946 = vrot.lane.b32.xlu1 %v3939_v36, %s4958_s26  ;;  %v9285_v22 = vmul.f32 %v9225_v45, %v5262_v10  ;;  %v4000_v0 = vmul.f32 %v9045_v56, %v5283_v28  ;;  %v2769_v5 = vadd.f32 %v10523_v17, %v2729_v18  ;;  %v10526_v16 = vld [vmem:[#allocation68_spill] sm:$0xff]  ;;  %v4131_v40 = vrot.slane %v9268_v14, 5 }
 0x40b   :  { %v3974_v47 = vsel %vm800_vm7, %v10522_v60, %v3973_v7  ;;  %v2811_v9 = vadd.f32 %v10524_v33, %v2771_v46  ;;  %v3300_v31 = vadd.f32 %v10525_v25, %v3260_v37  ;;  %v3342_v54 = vadd.f32 %v10526_v16, %v3302_v23  ;;  %v10529_v17 = vld [vmem:[#allocation40_spill] sm:$0xff]  ;;  %v10532_v25 = vld [vmem:[#allocation51_spill] sm:$0xff] }
 0x40c   :  { %v9293_v36 = vpop.permute.xlu0 %3568  ;;  %v9295_v13 = vpop.permute.xlu1 %3414  ;;  %v4130_v7 = vrot.slane %v4118_v15, 5  ;;  %v3978_v60 = vrot.slane %v3963_v55, 3  ;;  %v9299_v35 = vstv %s9242_s13  ;;  %v2809_v19 = vadd.f32 %v10527_v20, %v2769_v5  ;;  %v10530_v20 = vld [vmem:[#allocation192_spill] sm:$0xff] }
 0x40d   :  { %v2851_v18 = vadd.f32 %v10528_v11, %v2811_v9  ;;  %v3340_v46 = vadd.f32 %v10529_v17, %v3300_v31  ;;  %v3382_v37 = vadd.f32 %v9014_v59, %v3342_v54  ;;  %v4135_v23 = vrot.slane %v4121_v3, 5  ;;  %v10531_v11 = vld [vmem:[#allocation194_spill] sm:$0xff]  ;;  %v10534_v54 = vld [vmem:[#allocation17_spill] sm:$0xff] }
 0x40e   :  { %4104 = vrot.lane.b32.xlu0 %v4097_v4, %s4958_s26  ;;  %3982 = vrot.lane.b32.xlu1 %v3974_v47, %s4958_s26  ;;  %v4136_v15 = vrot.slane %v9285_v22, 5  ;;  %v4013_v33 = vrot.slane %v4000_v0, 4  ;;  %v4003_v55 = vmul.f32 %v9045_v56, %v5302_v27  ;;  %v2849_v5 = vadd.f32 %v10530_v20, %v2809_v19  ;;  %v10537_v20 = vld [vmem:[#allocation33_spill] sm:$0xff] }
 0x40f   :  { %v2891_v9 = vadd.f32 %v10531_v11, %v2851_v18  ;;  %v3380_v31 = vadd.f32 %v10532_v25, %v3340_v46  ;;  %v3422_v59 = vadd.f32 %v9079_v2, %v3382_v37  ;;  %v4132_v3 = vsel %vm533_vm2, %v4130_v7, %v4131_v40  ;;  %v10535_v18 = vld [vmem:[#allocation52_spill] sm:$0xff]  ;;  %v10536_v7 = vld [vmem:[#allocation18_spill] sm:$0xff] }
 0x410   :  { %v3573_v4 = vpop.permute.xlu0 %3572  ;;  %v9316_v16 = vpop.permute.xlu1 %3450  ;;  %v10533_v47 = vrot.slane %v9024_v52, 3  ;;  %v4158_v19 = vmul.f32 %v9299_v35, %v5216_v43  ;;  %v9328_v0 = vmul.f32 %v9299_v35, %v5311_v34  ;;  %v2889_v2 = vadd.f32 %v10534_v54, %v2849_v5 }
 0x411   :  { %v2931_v17 = vadd.f32 %v10535_v18, %v2891_v9  ;;  %v3420_v46 = vadd.f32 %v9047_v49, %v3380_v31  ;;  %v3462_v37 = vadd.f32 %v9139_v12, %v3422_v59  ;;  %v4137_v43 = vsel %vm533_vm2, %v4135_v23, %v4136_v15  ;;  %v10542_v18 = vld [vmem:[#allocation35_spill] sm:$0xff] }
 0x412   :  { %v3979_v56 = vsel %vm800_vm7, %v10533_v47, %v3978_v60  ;;  %4140 = vrot.lane.b32.xlu0 %v4132_v3, %s4958_s26  ;;  %v4018_v52 = vrot.slane %v4003_v55, 4  ;;  %v4040_v34 = vmul.f32 %v9091_v63, %v5350_v50  ;;  %v2929_v60 = vadd.f32 %v10536_v7, %v2889_v2  ;;  %v10539_v3 = vld [vmem:[#allocation146_spill] sm:$0xff] }
 0x413   :  { %3986 = vrot.lane.b32.xlu1 %v3979_v56, %s4958_s26  ;;  %v2971_v5 = vadd.f32 %v10537_v20, %v2931_v17  ;;  %v3460_v49 = vadd.f32 %v9108_v8, %v3420_v46  ;;  %v3502_v12 = vadd.f32 %v9200_v44, %v3462_v37  ;;  %v10538_v25 = vrot.slane %v9073_v29, 4  ;;  %v10540_v8 = vld [vmem:[#allocation56_spill] sm:$0xff] }
 0x414   :  { %v3609_v11 = vpop.permute.xlu0 %3608  ;;  %v9345_v9 = vpop.permute.xlu1 %3454  ;;  %v4170_v55 = vrot.slane %v4158_v19, 6  ;;  %v4171_v31 = vrot.slane %v9328_v0, 6  ;;  %v9353_v59 = vmul.f32 %v9299_v35, %v5329_v42  ;;  %v2969_v47 = vadd.f32 %v10539_v3, %v2929_v60  ;;  %v10543_v46 = vld [vmem:[#allocation32_spill] sm:$0xff]  ;;  %v10544_v60 = vld [vmem:[#allocation27_spill] sm:$0xff] }
 0x415   :  { %v4014_v23 = vsel %vm50_vm0, %v10538_v25, %v4013_v33  ;;  %v3011_v56 = vadd.f32 %v10540_v8, %v2971_v5  ;;  %v3500_v44 = vadd.f32 %v9170_v24, %v3460_v49  ;;  %v3542_v54 = vadd.f32 %v9259_v41, %v3502_v12 }
 0x416   :  { %4144 = vrot.lane.b32.xlu0 %v4137_v43, %s4958_s26  ;;  %v10541_v29 = vrot.slane %v9088_v6, 4  ;;  %v4161_v42 = vmul.f32 %v9299_v35, %v5225_v48  ;;  %v4053_v19 = vrot.slane %v4040_v34, 4  ;;  %v9367_v2 = vstv %s9310_s15 }
 0x417   :  { %4022 = vrot.lane.b32.xlu1 %v4014_v23, %s4958_s26  ;;  %v3009_v17 = vadd.f32 %v10542_v18, %v2969_v47  ;;  %v3051_v24 = vadd.f32 %v10543_v46, %v3011_v56  ;;  %v3540_v41 = vadd.f32 %v9231_v53, %v3500_v44  ;;  %v3582_v37 = vadd.f32 %v3573_v4, %v3542_v54  ;;  %v10545_v53 = vld [vmem:[#allocation60_spill] sm:$0xff] }
 0x418   :  { %v4019_v33 = vsel %vm50_vm0, %v10541_v29, %v4018_v52  ;;  %v3613_v43 = vpop.permute.xlu0 %3612  ;;  %v9372_v7 = vpop.permute.xlu1 %3490  ;;  %v4172_v6 = vsel %vm993_vm8, %v4170_v55, %v4171_v31  ;;  %v4176_v52 = vrot.slane %v9353_v59, 6  ;;  %v9380_v48 = vmul.f32 %v9367_v2, %v5244_v1  ;;  %v10546_v1 = vld [vmem:[#allocation67_spill] sm:$0xff]  ;;  %v10547_v55 = vld [vmem:[#allocation62_spill] sm:$0xff] }
 0x419   :  { %v4043_v34 = vmul.f32 %v9091_v63, %v5379_v51  ;;  %v3049_v20 = vadd.f32 %v10544_v60, %v3009_v17  ;;  %v3091_v4 = vadd.f32 %v10545_v53, %v3051_v24  ;;  %v3580_v5 = vadd.f32 %v9293_v36, %v3540_v41  ;;  %v10551_v24 = vld [vmem:[#allocation71_spill] sm:$0xff] }
 0x41a   :  { %v3622_v49 = vadd.f32 %v3613_v43, %v3582_v37  ;;  %4180 = vrot.lane.b32.xlu0 %v4172_v6, %s4958_s26  ;;  %v4175_v12 = vrot.slane %v4161_v42, 6  ;;  %v4198_v25 = vmul.f32 %v9367_v2, %v5198_v57  ;;  %v10548_v47 = vrot.slane %v9120_v39, 4  ;;  %v10550_v42 = vld [vmem:[#allocation45_spill] sm:$0xff] }
 0x41b   :  { %4026 = vrot.lane.b32.xlu1 %v4019_v33, %s4958_s26  ;;  %v3089_v23 = vadd.f32 %v10546_v1, %v3049_v20  ;;  %v3131_v3 = vadd.f32 %v10547_v55, %v3091_v4  ;;  %v3620_v63 = vadd.f32 %v3609_v11, %v3580_v5  ;;  %v4211_v54 = vrot.slane %v9380_v48, 6  ;;  %v10549_v33 = vld [vmem:[#allocation43_spill] sm:$0xff] }
 0x41c   :  { %v4054_v8 = vsel %vm50_vm0, %v10548_v47, %v4053_v19  ;;  %v3649_v56 = vpop.permute.xlu0 %3648  ;;  %v9396_v36 = vpop.permute.xlu1 %3494  ;;  %v4177_v44 = vsel %vm993_vm8, %v4175_v12, %v4176_v52  ;;  %v4058_v29 = vrot.slane %v4043_v34, 4  ;;  %v9404_v57 = vmul.f32 %v9367_v2, %v5262_v10  ;;  %v10552_v10 = vld [vmem:[#allocation75_spill] sm:$0xff]  ;;  %v10555_v12 = vld [vmem:[#allocation77_spill] sm:$0xff] }
 0x41d   :  { %v3129_v11 = vadd.f32 %v10549_v33, %v3089_v23  ;;  %v3171_v39 = vadd.f32 %v10550_v42, %v3131_v3  ;;  %v3660_v18 = vadd.f32 %v3649_v56, %v3620_v63  ;;  %v4080_v19 = vmul.f32 %v9179_v61, %v5283_v28  ;;  %v10556_v3 = vld [vmem:[#allocation49_spill] sm:$0xff] }
 0x41e   :  { %4184 = vrot.lane.b32.xlu0 %v4177_v44, %s4958_s26  ;;  %v4210_v17 = vrot.slane %v4198_v25, 6  ;;  %v4201_v46 = vmul.f32 %v9367_v2, %v5202_v58  ;;  %v10553_v60 = vrot.slane %v9149_v38, 4  ;;  %v4216_v53 = vrot.slane %v9404_v57, 6  ;;  %v10554_v58 = vld [vmem:[#allocation47_spill] sm:$0xff] }
 0x41f   :  { %4062 = vrot.lane.b32.xlu1 %v4054_v8, %s4958_s26  ;;  %v3169_v41 = vadd.f32 %v10551_v24, %v3129_v11  ;;  %v3197_v37 = vadd.f32 %v10552_v10, %v3171_v39  ;;  %v4083_v4 = vmul.f32 %v9179_v61, %v5302_v27  ;;  %v4093_v23 = vrot.slane %v4080_v19, 5  ;;  %v10558_v39 = vld [vmem:[#allocation44_spill] sm:$0xff] }
 0x420   :  { %v3653_v43 = vpop.permute.xlu0 %3652  ;;  %v3531_v6 = vpop.permute.xlu1 %3530  ;;  %v4212_v34 = vsel %vm993_vm8, %v4210_v17, %v4211_v54  ;;  %v4059_v20 = vsel %vm50_vm0, %v10553_v60, %v4058_v29  ;;  %v4215_v55 = vrot.slane %v4201_v46, 6  ;;  %v10557_v11 = vrot.slane %v9194_v26, 5 }
 0x421   :  { %v3195_v5 = vadd.f32 %v10554_v58, %v3169_v41  ;;  %v3223_v25 = vadd.f32 %v10555_v12, %v3197_v37  ;;  %v3662_v1 = vadd.f32 %v3653_v43, %v3622_v49  ;;  %v4098_v56 = vrot.slane %v4083_v4, 5  ;;  %v10560_v41 = vld [vmem:[#allocation53_spill] sm:$0xff]  ;;  %v10561_v37 = vld [vmem:[#allocation72_spill] sm:$0xff]  ;;  %v10564_v12 = vld [vmem:[#allocation70_spill] sm:$0xff] }
 0x422   :  { %4220 = vrot.lane.b32.xlu0 %v4212_v34, %s4958_s26  ;;  %v4217_v61 = vsel %vm993_vm8, %v4215_v55, %v4216_v53  ;;  %v4120_v49 = vmul.f32 %v9225_v45, %v5350_v50  ;;  %v4094_v42 = vsel %vm533_vm2, %v10557_v11, %v4093_v23  ;;  %v10562_v43 = vrot.slane %v10561_v37, 5 }
 0x423   :  { %4066 = vrot.lane.b32.xlu1 %v4059_v20, %s4958_s26  ;;  %v3221_v38 = vadd.f32 %v10556_v3, %v3195_v5  ;;  %v3263_v63 = vadd.f32 %v9049_v30, %v3223_v25  ;;  %v4200_v22 = vmul.f32 %v9367_v2, %v5350_v50  ;;  %v4203_v50 = vmul.f32 %v9367_v2, %v5379_v51 }
 0x424   :  { %v3689_v47 = vpop.permute.xlu0 %3688  ;;  %v3535_v8 = vpop.permute.xlu1 %3534  ;;  %v4133_v24 = vrot.slane %v4120_v49, 5  ;;  %v4099_v34 = vsel %vm533_vm2, %v10562_v43, %v4098_v56 }
 0x425   :  { %v3261_v44 = vadd.f32 %v9016_v32, %v3221_v38  ;;  %v3303_v29 = vadd.f32 %v9110_v21, %v3263_v63  ;;  %v3700_v33 = vadd.f32 %v3689_v47, %v3660_v18  ;;  %v4123_v32 = vmul.f32 %v9225_v45, %v5379_v51  ;;  %v10559_v21 = vld [vmem:[#allocation42_spill] sm:$0xff] }
 0x426   :  { %4224 = vrot.lane.b32.xlu0 %v4217_v61, %s4958_s26  ;;  %v4160_v45 = vmul.f32 %v9299_v35, %v5283_v28  ;;  %v4134_v55 = vsel %vm533_vm2, %v4131_v40, %v4133_v24 }
 0x427   :  { %4102 = vrot.lane.b32.xlu1 %v4094_v42, %s4958_s26  ;;  %v3301_v30 = vadd.f32 %v9081_v62, %v3261_v44  ;;  %v3343_v19 = vadd.f32 %v10558_v39, %v3303_v29  ;;  %v10563_v62 = vld [vmem:[#allocation79_spill] sm:$0xff]  ;;  %v4138_v5 = vrot.slane %v4123_v32, 5 }
 0x428   :  { %v3693_v17 = vpop.permute.xlu0 %3692  ;;  %v3571_v46 = vpop.permute.xlu1 %3570  ;;  %v4173_v40 = vrot.slane %v4160_v45, 6 }
 0x429   :  { %v3341_v18 = vadd.f32 %v10559_v21, %v3301_v30  ;;  %v3383_v26 = vadd.f32 %v10560_v41, %v3343_v19  ;;  %v3702_v10 = vadd.f32 %v3693_v17, %v3662_v1  ;;  %v4139_v28 = vsel %vm533_vm2, %v4136_v15, %v4138_v5 }
 0x42b   :  { %4106 = vrot.lane.b32.xlu1 %v4099_v34, %s4958_s26  ;;  %v3381_v60 = vadd.f32 %v10563_v62, %v3341_v18  ;;  %v3423_v20 = vadd.f32 %v9295_v13, %v3383_v26 }
 0x42c   :  { %v3715_v4 = vpop.permute.xlu0 %3714  ;;  %v3575_v58 = vpop.permute.xlu1 %3574 }
 0x42d   :  { %v3421_v25 = vadd.f32 %v10564_v12, %v3381_v60  ;;  %v3463_v1 = vadd.f32 %v9345_v9, %v3423_v20  ;;  %v3726_v23 = vadd.f32 %v3715_v4, %v3700_v33  ;;  %v4163_v9 = vmul.f32 %v9299_v35, %v5302_v27 }
 0x42e   :  { %v4174_v27 = vsel %vm993_vm8, %v4171_v31, %v4173_v40 }
 0x42f   :  { %4142 = vrot.lane.b32.xlu1 %v4134_v55, %s4958_s26  ;;  %v3461_v3 = vadd.f32 %v9316_v16, %v3421_v25  ;;  %v3503_v13 = vadd.f32 %v9396_v36, %v3463_v1  ;;  %v4178_v44 = vrot.slane %v4163_v9, 6 }
 0x430   :  { %v3719_v38 = vpop.permute.xlu0 %3718  ;;  %v3611_v63 = vpop.permute.xlu1 %3610 }
 0x431   :  { %v3501_v47 = vadd.f32 %v9372_v7, %v3461_v3  ;;  %v3543_v14 = vadd.f32 %v3535_v8, %v3503_v13  ;;  %v3728_v61 = vadd.f32 %v3719_v38, %v3702_v10  ;;  %v4179_v30 = vsel %vm993_vm8, %v4176_v52, %v4178_v44 }
 0x433   :  { %4146 = vrot.lane.b32.xlu1 %v4139_v28, %s4958_s26  ;;  %v3541_v56 = vadd.f32 %v3531_v6, %v3501_v47  ;;  %v3583_v16 = vadd.f32 %v3575_v58, %v3543_v14  ;;  %v4213_v6 = vrot.slane %v4200_v22, 6 }
 0x434   :  { %v3741_v49 = vpop.permute.xlu0 %3740  ;;  %v3615_v36 = vpop.permute.xlu1 %3614 }
 0x435   :  { %v3581_v29 = vadd.f32 %v3571_v46, %v3541_v56  ;;  %v3752_v15 = vadd.f32 %v3741_v49, %v3726_v23  ;;  %v3623_v33 = vadd.f32 %v3615_v36, %v3583_v16  ;;  %v4214_v17 = vsel %vm993_vm8, %v4211_v54, %v4213_v6 }
 0x436   :  { %v4218_v46 = vrot.slane %v4203_v50, 6 }
 0x437   :  { %4182 = vrot.lane.b32.xlu1 %v4174_v27, %s4958_s26  ;;  %v3621_v35 = vadd.f32 %v3611_v63, %v3581_v29 }
 0x438   :  { %v3745_v7 = vpop.permute.xlu0 %3744  ;;  %v3651_v8 = vpop.permute.xlu1 %3650  ;;  %v4219_v51 = vsel %vm993_vm8, %v4216_v53, %v4218_v46 }
 0x439   :  { %v3754_v11 = vadd.f32 %v3745_v7, %v3728_v61  ;;  %v3661_v42 = vadd.f32 %v3651_v8, %v3621_v35 }
 0x43b   :  { %4186 = vrot.lane.b32.xlu1 %v4179_v30, %s4958_s26 }
 0x43c   :  { %v3781_v0 = vpop.permute.xlu0 %3780  ;;  %v3655_v39 = vpop.permute.xlu1 %3654 }
 0x43d   :  { %v3792_v31 = vadd.f32 %v3781_v0, %v3752_v15  ;;  %v3663_v19 = vadd.f32 %v3655_v39, %v3623_v33 }
 0x43f   :  { %4222 = vrot.lane.b32.xlu1 %v4214_v17, %s4958_s26 }
 0x440   :  { %v3785_v24 = vpop.permute.xlu0 %3784  ;;  %v3691_v59 = vpop.permute.xlu1 %3690 }
 0x441   :  { %v3794_v32 = vadd.f32 %v3785_v24, %v3754_v11  ;;  %v3701_v52 = vadd.f32 %v3691_v59, %v3661_v42 }
 0x443   :  { %4226 = vrot.lane.b32.xlu1 %v4219_v51, %s4958_s26 }
 0x444   :  { %v3821_v2 = vpop.permute.xlu0 %3820  ;;  %v3695_v21 = vpop.permute.xlu1 %3694 }
 0x445   :  { %v3703_v18 = vadd.f32 %v3695_v21, %v3663_v19  ;;  %v3832_v44 = vadd.f32 %v3821_v2, %v3792_v31 }
 0x448   :  { %v3825_v41 = vpop.permute.xlu0 %3824  ;;  %v3717_v48 = vpop.permute.xlu1 %3716 }
 0x449   :  { %v3727_v26 = vadd.f32 %v3717_v48, %v3701_v52  ;;  %v3834_v33 = vadd.f32 %v3825_v41, %v3794_v32 }
 0x44c   :  { %v3861_v54 = vpop.permute.xlu0 %3860  ;;  %v3721_v10 = vpop.permute.xlu1 %3720 }
 0x44d   :  { %v3729_v37 = vadd.f32 %v3721_v10, %v3703_v18  ;;  %v3872_v22 = vadd.f32 %v3861_v54, %v3832_v44 }
 0x450   :  { %v3865_v43 = vpop.permute.xlu0 %3864  ;;  %v3743_v34 = vpop.permute.xlu1 %3742 }
 0x451   :  { %v3753_v62 = vadd.f32 %v3743_v34, %v3727_v26  ;;  %v3874_v35 = vadd.f32 %v3865_v43, %v3834_v33 }
 0x454   :  { %v3901_v60 = vpop.permute.xlu0 %3900  ;;  %v3747_v20 = vpop.permute.xlu1 %3746 }
 0x455   :  { %v3755_v4 = vadd.f32 %v3747_v20, %v3729_v37  ;;  %v3912_v27 = vadd.f32 %v3901_v60, %v3872_v22 }
 0x458   :  { %v3905_v57 = vpop.permute.xlu0 %3904  ;;  %v3783_v58 = vpop.permute.xlu1 %3782 }
 0x459   :  { %v3793_v53 = vadd.f32 %v3783_v58, %v3753_v62  ;;  %v3914_v11 = vadd.f32 %v3905_v57, %v3874_v35 }
 0x45c   :  { %v3941_v5 = vpop.permute.xlu0 %3940  ;;  %v3787_v45 = vpop.permute.xlu1 %3786 }
 0x45d   :  { %v3795_v12 = vadd.f32 %v3787_v45, %v3755_v4  ;;  %v3952_v7 = vadd.f32 %v3941_v5, %v3912_v27  ;;  %v10565_v27 = vld [vmem:[#allocation15_spill] sm:$0xff] }
 0x460   :  { %v3945_v25 = vpop.permute.xlu0 %3944  ;;  %v3823_v1 = vpop.permute.xlu1 %3822 }
 0x461   :  { %v3954_v30 = vadd.f32 %v3945_v25, %v3914_v11  ;;  %v3833_v60 = vadd.f32 %v3823_v1, %v3793_v53 }
 0x464   :  { %v3981_v23 = vpop.permute.xlu0 %3980  ;;  %v3827_v55 = vpop.permute.xlu1 %3826 }
 0x465   :  { %v3992_v42 = vadd.f32 %v3981_v23, %v3952_v7  ;;  %v3835_v57 = vadd.f32 %v3827_v55, %v3795_v12 }
 0x468   :  { %v3985_v3 = vpop.permute.xlu0 %3984  ;;  %v3863_v13 = vpop.permute.xlu1 %3862 }
 0x469   :  { %v3994_v19 = vadd.f32 %v3985_v3, %v3954_v30  ;;  %v3873_v20 = vadd.f32 %v3863_v13, %v3833_v60 }
 0x46c   :  { %v4021_v38 = vpop.permute.xlu0 %4020  ;;  %v3867_v63 = vpop.permute.xlu1 %3866 }
 0x46d   :  { %v4032_v50 = vadd.f32 %v4021_v38, %v3992_v42  ;;  %v3875_v45 = vadd.f32 %v3867_v63, %v3835_v57 }
 0x470   :  { %v4025_v28 = vpop.permute.xlu0 %4024  ;;  %v3903_v9 = vpop.permute.xlu1 %3902 }
 0x471   :  { %v4034_v46 = vadd.f32 %v4025_v28, %v3994_v19  ;;  %v3913_v58 = vadd.f32 %v3903_v9, %v3873_v20 }
 0x474   :  { %v4061_v47 = vpop.permute.xlu0 %4060  ;;  %v3907_v14 = vpop.permute.xlu1 %3906 }
 0x475   :  { %v4072_v17 = vadd.f32 %v4061_v47, %v4032_v50  ;;  %v3915_v38 = vadd.f32 %v3907_v14, %v3875_v45 }
 0x478   :  { %v4065_v61 = vpop.permute.xlu0 %4064  ;;  %v3943_v40 = vpop.permute.xlu1 %3942 }
 0x479   :  { %v4074_v52 = vadd.f32 %v4065_v61, %v4034_v46  ;;  %v3953_v25 = vadd.f32 %v3943_v40, %v3913_v58 }
 0x47c   :  { %v4101_v56 = vpop.permute.xlu0 %4100  ;;  %v3947_v16 = vpop.permute.xlu1 %3946 }
 0x47d   :  { %v4112_v24 = vadd.f32 %v4101_v56, %v4072_v17  ;;  %v3955_v61 = vadd.f32 %v3947_v16, %v3915_v38  ;;  %v4959_v16 = vmov 0.0  }
 0x480   :  { %v4105_v49 = vpop.permute.xlu0 %4104  ;;  %v3983_v36 = vpop.permute.xlu1 %3982 }
 0x481   :  { %v4114_v32 = vadd.f32 %v4105_v49, %v4074_v52  ;;  %v3993_v28 = vadd.f32 %v3983_v36, %v3953_v25 }
 0x484   :  { %v4141_v29 = vpop.permute.xlu0 %4140 }
 0x485   :  { %v3987_v15 = vpop.permute.xlu1 %3986  ;;  %v4152_v51 = vadd.f32 %v4141_v29, %v4112_v24 }
 0x486   :  { %v3995_v22 = vadd.f32 %v3987_v15, %v3955_v61 }
 0x488   :  { %v4145_v8 = vpop.permute.xlu0 %4144 }
 0x489   :  { %v4023_v6 = vpop.permute.xlu1 %4022  ;;  %v4154_v41 = vadd.f32 %v4145_v8, %v4114_v32 }
 0x48a   :  { %v4033_v56 = vadd.f32 %v4023_v6, %v3993_v28  ;;  %v10566_v6 = vld [vmem:[#allocation16_spill] sm:$0xff] }
 0x48c   :  { %v4181_v0 = vpop.permute.xlu0 %4180 }
 0x48d   :  { %v4027_v39 = vpop.permute.xlu1 %4026  ;;  %v4192_v2 = vadd.f32 %v4181_v0, %v4152_v51 }
 0x48e   :  { %v4035_v1 = vadd.f32 %v4027_v39, %v3995_v22 }
 0x490   :  { %v4185_v31 = vpop.permute.xlu0 %4184 }
 0x491   :  { %v4063_v59 = vpop.permute.xlu1 %4062  ;;  %v4194_v26 = vadd.f32 %v4185_v31, %v4154_v41 }
 0x492   :  { %v4073_v53 = vadd.f32 %v4063_v59, %v4033_v56 }
 0x494   :  { %v4221_v21 = vpop.permute.xlu0 %4220 }
 0x495   :  { %v4067_v18 = vpop.permute.xlu1 %4066  ;;  %v4232_v48 = vadd.f32 %v4221_v21, %v4192_v2 }
 0x496   :  { %v4075_v55 = vadd.f32 %v4067_v18, %v4035_v1 }
 0x497   :  { %v4804_v54 = vmul.f32 -1.442695, %v4232_v48 }
 0x498   :  { %v4225_v10 = vpop.permute.xlu0 %4224 }
 0x499   :  { %v4103_v37 = vpop.permute.xlu1 %4102  ;;  %4835 = vpow2.f32 %v4804_v54  ;;  %v4234_v43 = vadd.f32 %v4225_v10, %v4194_v26 }
 0x49a   :  { %v4113_v13 = vadd.f32 %v4103_v37, %v4073_v53 }
 0x49b   :  { %v4806_v34 = vmul.f32 -1.442695, %v4234_v43 }
 0x49d   :  { %v4107_v62 = vpop.permute.xlu1 %4106  ;;  %4837 = vpow2.f32 %v4806_v34 }
 0x49e   :  { %v4115_v63 = vadd.f32 %v4107_v62, %v4075_v55 }
 0x4a1   :  { %v4143_v4 = vpop.permute.xlu1 %4142 }
 0x4a2   :  { %v4153_v9 = vadd.f32 %v4143_v4, %v4113_v13 }
 0x4a3   :  { %v4836_v5 = vpop.eup %4835 }
 0x4a4   :  { %v4248_v23 = vadd.f32 1.0, %v4836_v5 }
 0x4a5   :  { %v4147_v3 = vpop.permute.xlu1 %4146 }
 0x4a6   :  { %4839 = vrcp.f32 %v4248_v23  ;;  %v4155_v14 = vadd.f32 %v4147_v3, %v4115_v63 }
 0x4a7   :  { %v4838_v47 = vpop.eup %4837 }
 0x4a8   :  { %v4250_v49 = vadd.f32 1.0, %v4838_v47 }
 0x4a9   :  { %v4183_v44 = vpop.permute.xlu1 %4182 }
 0x4aa   :  { %4841 = vrcp.f32 %v4250_v49  ;;  %v4193_v40 = vadd.f32 %v4183_v44, %v4153_v9 }
 0x4ad   :  { %v4187_v12 = vpop.permute.xlu1 %4186 }
 0x4ae   :  { %v4195_v8 = vadd.f32 %v4187_v12, %v4155_v14 }
 0x4b0   :  { %v4840_v29 = vpop.eup %4839 }
 0x4b1   :  { %v4223_v33 = vpop.permute.xlu1 %4222  ;;  %v4267_v35 = vrot.slane %v4840_v29, %v10565_v27  ;;  %v4260_v7 = vcombine.high %v4840_v29, %v4959_v16 }
 0x4b2   :  { %v4233_v36 = vadd.f32 %v4223_v33, %v4193_v40 }
 0x4b3   :  { %v9495_v11 = vrot.slane %v4267_v35, %v10566_v6  ;;  %v9498_v42 = vrot.slane %v4260_v7, %v10565_v27  ;;  %v4275_v4 = vcombine.high %v4267_v35, %v4959_v16 }
 0x4b4   :  { %v4805_v15 = vmul.f32 -1.442695, %v4233_v36  ;;  %v4842_v30 = vpop.eup %4841 }
 0x4b5   :  { %v4227_v50 = vpop.permute.xlu1 %4226  ;;  %v4305_v39 = vcombine.high %v9495_v11, %v4959_v16  ;;  %v4365_v19 = vrot.slane %v4842_v30, %v10565_v27  ;;  %v4358_v17 = vcombine.high %v4842_v30, %v4959_v16  ;;  %v4290_v46 = vcombine.high %v9498_v42, %v4959_v16 }
 0x4b6   :  { %4843 = vpow2.f32 %v4805_v15  ;;  %v4235_v0 = vadd.f32 %v4227_v50, %v4195_v8  ;;  %v4289_v3 = vrot.slane %v4275_v4, %v10566_v6  ;;  %v4297_v29 = vrot.slane %v9498_v42, %v10566_v6 }
 0x4b7   :  { %4458 = vrot.lane.b32.xlu0 %v4305_v39, %s4949_s8  ;;  %v9508_v31 = vrot.slane %v4365_v19, %v10566_v6  ;;  %v4372_v59 = vrot.slane %v4358_v17, %v10565_v27  ;;  %v9512_v52 = vrot.slane %v4290_v46, %v10566_v6  ;;  %v4373_v47 = vcombine.high %v4365_v19, %v4959_v16 }
 0x4b8   :  { %v4807_v24 = vmul.f32 -1.442695, %v4235_v0  ;;  %v4306_v55 = vcombine.high %v4289_v3, %v4959_v16 }
 0x4b9   :  { %v4403_v51 = vcombine.high %v9508_v31, %v4959_v16  ;;  %v4388_v32 = vcombine.high %v4372_v59, %v4959_v16  ;;  %v9519_v2 = vcombine.high %v9512_v52, %v4959_v16  ;;  %v4387_v1 = vrot.slane %v4373_v47, %v10566_v6 }
 0x4ba   :  { %4845 = vpow2.f32 %v4807_v24  ;;  %v4395_v36 = vrot.slane %v4372_v59, %v10566_v6 }
 0x4bb   :  { %4460 = vrot.lane.b32.xlu1 %v4403_v51, %s4949_s8  ;;  %v9523_v21 = vrot.slane %v4388_v32, %v10566_v6  ;;  %v4404_v40 = vcombine.high %v4387_v1, %v4959_v16 }
 0x4bc   :  { %v4405_v7 = vcombine.high %v4395_v36, %v4959_v16 }
 0x4bd   :  { %v9527_v18 = vcombine.high %v9523_v21, %v4959_v16 }
 0x4c0   :  { %v4844_v41 = vpop.eup %4843 }
 0x4c1   :  { %v4249_v48 = vadd.f32 1.0, %v4844_v41 }
 0x4c3   :  { %4847 = vrcp.f32 %v4249_v48 }
 0x4c4   :  { %v4846_v26 = vpop.eup %4845 }
 0x4c5   :  { %v4251_v54 = vadd.f32 1.0, %v4846_v26 }
 0x4c7   :  { %4849 = vrcp.f32 %v4251_v54  ;;  %v4960_v54 = vmov 1966171168  }
 0x4cd   :  { %v4848_v10 = vpop.eup %4847 }
 0x4ce   :  { %v4316_v37 = vrot.slane %v4848_v10, %v10565_v27  ;;  %v4309_v43 = vcombine.high %v4848_v10, %v4959_v16  ;;  %v4609_v10 = vunpack.c.l.s4 %v4960_v54 }
 0x4d0   :  { %v9532_v34 = vrot.slane %v4316_v37, %v10566_v6  ;;  %v4323_v62 = vrot.slane %v4309_v43, %v10565_v27  ;;  %v4324_v28 = vcombine.high %v4316_v37, %v4959_v16 }
 0x4d1   :  { %v4850_v60 = vpop.eup %4849 }
 0x4d2   :  { %v4354_v20 = vcombine.high %v9532_v34, %v4959_v16  ;;  %v4414_v57 = vrot.slane %v4850_v60, %v10565_v27  ;;  %v4407_v58 = vcombine.high %v4850_v60, %v4959_v16  ;;  %v4339_v5 = vcombine.high %v4323_v62, %v4959_v16 }
 0x4d3   :  { %v4338_v53 = vrot.slane %v4324_v28, %v10566_v6  ;;  %v4346_v14 = vrot.slane %v4323_v62, %v10566_v6 }
 0x4d4   :  { %4514 = vrot.lane.b32.xlu0 %v4354_v20, %s4949_s8  ;;  %v9543_v45 = vrot.slane %v4414_v57, %v10566_v6  ;;  %v4421_v25 = vrot.slane %v4407_v58, %v10565_v27  ;;  %v4353_v23 = vrot.slane %v4339_v5, %v10566_v6  ;;  %v4422_v13 = vcombine.high %v4414_v57, %v4959_v16 }
 0x4d5   :  { %v4355_v63 = vcombine.high %v4338_v53, %v4959_v16  ;;  %v4307_v27 = vcombine.high %v4297_v29, %v4959_v16  ;;  %v4356_v35 = vcombine.high %v4346_v14, %v4959_v16  ;;  %v4610_v5 = vunpack.c.0.s8 %v4609_v10 }
 0x4d6   :  { %v4452_v38 = vcombine.high %v9543_v45, %v4959_v16  ;;  %v4444_v61 = vrot.slane %v4421_v25, %v10566_v6  ;;  %v4437_v56 = vcombine.high %v4421_v25, %v4959_v16  ;;  %v4357_v49 = vcombine.high %v4353_v23, %v4959_v16 }
 0x4d7   :  { %v4436_v9 = vrot.slane %v4422_v13, %v10566_v6 }
 0x4d8   :  { %4466 = vrot.lane.b32.xlu0 %v4289_v3, %s4948_s7  ;;  %4516 = vrot.lane.b32.xlu1 %v4452_v38, %s4949_s8  ;;  %v4454_v44 = vcombine.high %v4444_v61, %v4959_v16  ;;  %v4451_v22 = vrot.slane %v4437_v56, %v10566_v6  ;;  %v10567_v3 = vld [vmem:[#allocation14_spill] sm:$0xff] }
 0x4d9   :  { %v4453_v33 = vcombine.high %v4436_v9, %v4959_v16  ;;  %v4647_v38 = vsub.s32 0, %v10567_v3  ;;  %v4613_v13 = vsub.s32 %v4610_v5, %v10567_v3 }
 0x4da   :  { %v4455_v12 = vcombine.high %v4451_v22, %v4959_v16 }
 0x4dc   :  { %4522 = vrot.lane.b32.xlu0 %v4338_v53, %s4948_s7  ;;  %4468 = vrot.lane.b32.xlu1 %v4387_v1, %s4948_s7 }
 0x4e0   :  { %4474 = vrot.lane.b32.xlu0 %v4306_v55, %s4947_s6  ;;  %4524 = vrot.lane.b32.xlu1 %v4436_v9, %s4948_s7 }
 0x4e4   :  { %4530 = vrot.lane.b32.xlu0 %v4355_v63, %s4947_s6  ;;  %4476 = vrot.lane.b32.xlu1 %v4404_v40, %s4947_s6 }
 0x4e8   :  { %4482 = vrot.lane.b32.xlu0 %v4297_v29, %s4946_s5  ;;  %4532 = vrot.lane.b32.xlu1 %v4453_v33, %s4947_s6 }
 0x4ec   :  { %4538 = vrot.lane.b32.xlu0 %v4346_v14, %s4946_s5  ;;  %4484 = vrot.lane.b32.xlu1 %v4395_v36, %s4946_s5 }
 0x4f0   :  { %4490 = vrot.lane.b32.xlu0 %v4307_v27, %s4945_s4  ;;  %4540 = vrot.lane.b32.xlu1 %v4444_v61, %s4946_s5 }
 0x4f4   :  { %4546 = vrot.lane.b32.xlu0 %v4356_v35, %s4945_s4  ;;  %4492 = vrot.lane.b32.xlu1 %v4405_v7, %s4945_s4 }
 0x4f8   :  { %4498 = vrot.lane.b32.xlu0 %v9512_v52, %s4943_s0  ;;  %4548 = vrot.lane.b32.xlu1 %v4454_v44, %s4945_s4  ;;  %s4962_s4 = smov [#allocation8]  }
 0x4f9   :  { %s4690_s5 = sshll.u32 %s4962_s4, 4  ;;  %s9643_s5 = int_to_ptr.vmem [resolvable:$true] %s4690_s5 }
 0x4fc   :  { %4554 = vrot.lane.b32.xlu0 %v4353_v23, %s4943_s0  ;;  %4500 = vrot.lane.b32.xlu1 %v9523_v21, %s4943_s0 }
 0x500   :  { %4506 = vrot.lane.b32.xlu0 %v9519_v2, %s4944_s30  ;;  %4556 = vrot.lane.b32.xlu1 %v4451_v22, %s4943_s0  ;;  %s4961_s0 = smov [#allocation7]  }
 0x504   :  { %4562 = vrot.lane.b32.xlu0 %v4357_v49, %s4944_s30  ;;  %4508 = vrot.lane.b32.xlu1 %v9527_v18, %s4944_s30 }
 0x508   :  { %4564 = vrot.lane.b32.xlu1 %v4455_v12, %s4944_s30  ;;  %s4678_s30 = sshll.u32 %s4961_s0, 4  ;;  %s4679_s30 = int_to_ptr.vmem [resolvable:$true] %s4678_s30 }
 0x509   :  { %s4887_s6 = scalar_lea.vmem %s4679_s30, 256  ;;  %p4892_p0 = scmp.lt.s32.totalorder %s4679_s30, %s4679_s30 }
 0x50a   :  { %p4888_p13 = scmp.ne.s32.totalorder %s4679_s30, %s4887_s6  ;;  %p4893_p1 = scmp.lt.s32.totalorder %s4887_s6, %s4887_s6 }
 0x50c   :  { %p4894_p2 = por %p4893_p1, %p4892_p0 }
 0x50e   :  { %p4895_p3 = pnand %p4894_p2, %p4888_p13 }
 0x529   :  { %v4459_v16 = vpop.permute.xlu0 %4458 }
 0x52a   :  { %v4569_v37 = vsel %vm4568_vm9, %v9495_v11, %v4459_v16 }
 0x52d   :  { %v4461_v8 = vpop.permute.xlu1 %4460 }
 0x52e   :  { %v4570_v20 = vsel %vm4568_vm9, %v9508_v31, %v4461_v8 }
 0x546   :  { %v4515_v15 = vpop.permute.xlu0 %4514 }
 0x547   :  { %v4589_v62 = vsel %vm4568_vm9, %v9532_v34, %v4515_v15 }
 0x54a   :  { %v4467_v6 = vpop.permute.xlu0 %4466  ;;  %v4517_v42 = vpop.permute.xlu1 %4516 }
 0x54b   :  { %v4572_v43 = vsel %vm4571_vm10, %v4569_v37, %v4467_v6  ;;  %v4590_v28 = vsel %vm4568_vm9, %v9543_v45, %v4517_v42  ;;  %v10568_v42 = vlaneseq }
 0x54d   :  { %vm9637_vm0 = vcmp.lt.s32.totalorder %v10568_v42, 256 }
 0x54e   :  { %v4523_v30 = vpop.permute.xlu0 %4522  ;;  %v4469_v50 = vpop.permute.xlu1 %4468 }
 0x54f   :  { %v4591_v4 = vsel %vm4571_vm10, %v4589_v62, %v4523_v30  ;;  %v4573_v25 = vsel %vm4571_vm10, %v4570_v20, %v4469_v50 }
 0x552   :  { %v4475_v0 = vpop.permute.xlu0 %4474  ;;  %v4525_v39 = vpop.permute.xlu1 %4524 }
 0x553   :  { %v4575_v60 = vsel %vm4574_vm11, %v4572_v43, %v4475_v0  ;;  %v4592_v56 = vsel %vm4571_vm10, %v4590_v28, %v4525_v39 }
 0x556   :  { %v4531_v19 = vpop.permute.xlu0 %4530  ;;  %v4477_v17 = vpop.permute.xlu1 %4476 }
 0x557   :  { %v4593_v23 = vsel %vm4574_vm11, %v4591_v4, %v4531_v19  ;;  %v4576_v31 = vsel %vm4574_vm11, %v4573_v25, %v4477_v17  ;;  %v4851_v19 = vld [vmem:[#allocation2] sm:$0xff] }
 0x55a   :  { %v4483_v46 = vpop.permute.xlu0 %4482  ;;  %v4533_v24 = vpop.permute.xlu1 %4532 }
 0x55b   :  { %v4578_v57 = vsel %vm4577_vm12, %v4575_v60, %v4483_v46  ;;  %v4594_v53 = vsel %vm4574_vm11, %v4592_v56, %v4533_v24 }
 0x55e   :  { %v4539_v59 = vpop.permute.xlu0 %4538  ;;  %v4485_v52 = vpop.permute.xlu1 %4484 }
 0x55f   :  { %v4595_v47 = vsel %vm4577_vm12, %v4593_v23, %v4539_v59  ;;  %v4579_v49 = vsel %vm4577_vm12, %v4576_v31, %v4485_v52  ;;  %v4852_v52 = vld [vmem:[#allocation2 + $0x8] sm:$0xff] }
 0x562   :  { %v4491_v51 = vpop.permute.xlu0 %4490  ;;  %v4541_v32 = vpop.permute.xlu1 %4540 }
 0x563   :  { %v4581_v34 = vsel %vm4580_vm13, %v4578_v57, %v4491_v51  ;;  %v4596_v9 = vsel %vm4577_vm12, %v4594_v53, %v4541_v32 }
 0x566   :  { %v4547_v2 = vpop.permute.xlu0 %4546  ;;  %v4493_v21 = vpop.permute.xlu1 %4492 }
 0x567   :  { %v4597_v44 = vsel %vm4580_vm13, %v4595_v47, %v4547_v2  ;;  %v4582_v1 = vsel %vm4580_vm13, %v4579_v49, %v4493_v21 }
 0x56a   :  { %v4499_v18 = vpop.permute.xlu0 %4498  ;;  %v4549_v41 = vpop.permute.xlu1 %4548 }
 0x56b   :  { %v4584_v61 = vsel %vm4583_vm14, %v4581_v34, %v4499_v18  ;;  %v4598_v27 = vsel %vm4580_vm13, %v4596_v9, %v4549_v41 }
 0x56e   :  { %v4555_v48 = vpop.permute.xlu0 %4554  ;;  %v4501_v26 = vpop.permute.xlu1 %4500 }
 0x56f   :  { %v4599_v45 = vsel %vm4583_vm14, %v4597_v44, %v4555_v48  ;;  %v4585_v63 = vsel %vm4583_vm14, %v4582_v1, %v4501_v26 }
 0x572   :  { %v4507_v58 = vpop.permute.xlu0 %4506  ;;  %v4557_v11 = vpop.permute.xlu1 %4556 }
 0x573   :  { %v4587_v22 = vsel %vm4586_vm15, %v4584_v61, %v4507_v58  ;;  %v4600_v35 = vsel %vm4583_vm14, %v4598_v27, %v4557_v11 }
 0x574   :  { %v4648_v29 = vrot.slane %v4587_v22, %v4647_v38 }
 0x576   :  { %v4563_v12 = vpop.permute.xlu0 %4562  ;;  %v4509_v55 = vpop.permute.xlu1 %4508 }
 0x577   :  { %v4601_v40 = vsel %vm4586_vm15, %v4599_v45, %v4563_v12  ;;  %v4588_v36 = vsel %vm4586_vm15, %v4585_v63, %v4509_v55 }
 0x578   :  { %v4607_v33 = vcombine.low %v4587_v22, %v4601_v40  ;;  %v4652_v14 = vrot.slane %v4601_v40, %v4647_v38  ;;  %v4656_v15 = vrot.slane %v4588_v36, %v4647_v38 }
 0x57a   :  { %v4614_v7 = vrot.slane %v4607_v33, %v4613_v13  ;;  %v4565_v16 = vpop.permute.xlu1 %4564  ;;  %v4665_v8 = vcombine.low %v4648_v29, %v4652_v14 }
 0x57b   :  { %v4602_v6 = vsel %vm4586_vm15, %v4600_v35, %v4565_v16 }
 0x57c   :  { %v4621_v50 = vrot.slane %v4614_v7, %v4613_v13  ;;  %v4622_v0 = vcombine.low %v4588_v36, %v4602_v6  ;;  %v4660_v39 = vrot.slane %v4602_v6, %v4647_v38  ;;  %v4669_v17 = vmul.f32 %v4851_v19, %v4665_v8 }
 0x57e   :  { %v4629_v46 = vrot.slane %v4622_v0, %v4613_v13  ;;  %v4666_v24 = vcombine.low %v4656_v15, %v4660_v39  ;;  %4671 = vst [vmem:[#allocation7] sm:$0xff] %v4669_v17  ;;  %4643 = vst.msk [vmem:[#allocation8] sm:$0x3] %vm9637_vm0, %v4621_v50 }
 0x580   :  { %v4636_v59 = vrot.slane %v4629_v46, %v4613_v13  ;;  %v4670_v51 = vmul.f32 %v4852_v52, %v4666_v24 }
 0x582   :  { %4672 = vst [vmem:[#allocation7 + $0x8] sm:$0xff] %v4670_v51  ;;  %4644 = vst.msk [vmem:[#allocation8 + $0x2] sm:$0x3] %vm9637_vm0, %v4636_v59 }
 0x583   :  { %4898 = shalt.err (!%p4895_p3)
}
 0x584   :  { %s4899_s16 = scalar_lea.hbm %s9683_s2, 256 }
 0x585   :  { %p4900_p4 = scmp.ne.s32.totalorder %s9683_s2, %s4899_s16  ;;  %p4903_p5 = scmp.lt.u32.totalorder %s4899_s16, %s9683_s2 }
 0x587   :  { %p4905_p6 = pnand %p4903_p5, %p4900_p4 }
 0x589   :  { %4908 = shalt.err (!%p4905_p6)
}
 0x58a   :  { %4684 = dma.vmem_to_hbm [thread:$0]  %s4679_s30, 256, %s9683_s2, [#allocation4], %s4940_s1, %s4940_s1, %s4941_s25  }
 0x58b   :  { %s4909_s26 = scalar_lea.vmem %s9643_s5, 64  ;;  %p4914_p8 = scmp.lt.s32.totalorder %s9643_s5, %s9643_s5 }
 0x58c   :  { %p4910_p7 = scmp.ne.s32.totalorder %s9643_s5, %s4909_s26  ;;  %p4915_p9 = scmp.lt.s32.totalorder %s4909_s26, %s4909_s26 }
 0x58e   :  { %p4916_p10 = por %p4915_p9, %p4914_p8 }
 0x590   :  { %p4917_p11 = pnand %p4916_p10, %p4910_p7 }
 0x592   :  { %4920 = shalt.err (!%p4917_p11)
}
 0x593   :  { %s4921_s28 = scalar_lea.hbm %s9684_s3, 64 }
 0x594   :  { %p4922_p12 = scmp.ne.s32.totalorder %s9684_s3, %s4921_s28  ;;  %p4925_p13 = scmp.lt.u32.totalorder %s4921_s28, %s9684_s3 }
 0x596   :  { %p4927_p0 = pnand %p4925_p13, %p4922_p12 }
 0x598   :  { %4930 = shalt.err (!%p4927_p0)
}
 0x599   :  { %s4963_s2 = smov 2  }
 0x59a   :  { %4696 = dma.vmem_to_hbm [thread:$0]  %s9643_s5, 64, %s9684_s3, [#allocation9], %s4948_s7, %s4948_s7, %s4963_s2  }
 0x59b   :  { %4935 = dma.done.wait [#allocation4], 256  }
 0x59c   :  { %4936 = vsyncadd [#allocation4], 4294967040 }
 0x59d   :  { %4937 = dma.done.wait [#allocation9], 64  }
 0x59e   :  { %4938 = vsyncadd [#allocation9], 4294967232 }
 0x59f   :  { %4703 = vsyncpa [#allocation3], 1 }
 0x5a0   :  { %4704 = vsyncpa [#allocation4], 1 }
 0x5a1   :  { %4705 = vsyncpa [#allocation9], 1 }
 0x5a2   :  { %4706 = vsyncpa [#allocation5], 1 }

</bundles_post_ra>
